<compile_context>
chip_gen: v5e
topology: v5e:2x2
jax: 0.10.0
libtpu: 0.0.40
codegen_flags: <defaults>
</compile_context>

<pallas_src>
import functools
import math

import jax
import jax.numpy as jnp
from jax import lax
from jax.experimental import pallas as pl
from jax.experimental.pallas import tpu as pltpu


_MXU_DT = jnp.bfloat16            # MXU operand dtype (f32 accumulate everywhere)
_ACT_DT = jnp.bfloat16            # inter-kernel activation dtype
_VMEM_LIMIT = 32 * 1024 * 1024    # safe on v5e/v6e/v7x; raise to 64-96MiB on v5e/v6e


def _round_up(x, m):
    return (x + m - 1) // m * m


def _apply_act(y, act):
    # VPU/EUP math in f32 (y is an f32 accumulator).
    if act is None:
        return y
    if act == "gelu":             # exact (erf) GELU -> matches nn.GELU default
        return 0.5 * y * (1.0 + lax.erf(y * 0.7071067811865476))
    if act == "silu":
        return y * jax.nn.sigmoid(y)
    if act == "relu":
        return jnp.maximum(y, 0.0)
    if act == "hswish":           # x * ReLU6(x + 3) / 6
        return y * jnp.clip(y + 3.0, 0.0, 6.0) * (1.0 / 6.0)
    if act == "hsigmoid":         # ReLU6(x + 3) / 6
        return jnp.clip(y + 3.0, 0.0, 6.0) * (1.0 / 6.0)
    raise ValueError(act)


# --------------- fused (LN +) matmul + bias + act + residual -----------------

def _linear_kernel(*refs, act, eps, has_ln, has_bias, has_res):
    idx = 0
    x_ref = refs[idx]; idx += 1
    if has_ln:
        g_ref, bb_ref = refs[idx], refs[idx + 1]; idx += 2
    w_ref = refs[idx]; idx += 1
    if has_bias:
        b_ref = refs[idx]; idx += 1
    if has_res:
        res_ref = refs[idx]; idx += 1
    o_ref = refs[idx]

    x = x_ref[...].astype(jnp.float32)               # f32 LN statistics
    if has_ln:
        mu = jnp.mean(x, axis=-1, keepdims=True)
        xc = x - mu
        var = jnp.mean(xc * xc, axis=-1, keepdims=True)
        x = xc * lax.rsqrt(var + eps) * g_ref[...] + bb_ref[...]
    y = jnp.dot(x.astype(_MXU_DT), w_ref[...],
                preferred_element_type=jnp.float32)
    if has_bias:
        y = y + b_ref[...]
    y = _apply_act(y, act)
    if has_res:
        y = y + res_ref[...].astype(jnp.float32)     # fused residual add
    o_ref[...] = y.astype(o_ref.dtype)


def linear(x, w, b=None, act=None, ln=None, ln_eps=1e-5, residual=None,
           out_dtype=_ACT_DT, block_m=256):
    """(..., K) @ (K, N) with optional fused input-LN, bias, activation and
    residual add.  Row-tiled 'parallel' grid, bf16 MXU operands, f32 accumulate,
    bf16 output.  TODO(synk): add K/N tiling for production-size K (v7x)."""
    orig_shape = x.shape
    K = orig_shape[-1]
    M = 1
    for s in orig_shape[:-1]:
        M *= s
    N = w.shape[1]

    x2 = x.reshape(M, K)
    bm = min(block_m, _round_up(M, 8))               # multiple of 8 sublanes
    Mp = _round_up(M, bm)
    if Mp != M:
        x2 = jnp.pad(x2, ((0, Mp - M), (0, 0)))

    args = [x2]
    in_specs = [pl.BlockSpec((bm, K), lambda i: (i, 0))]
    if ln is not None:
        g, bb = ln
        args += [g.reshape(1, K).astype(jnp.float32),
                 bb.reshape(1, K).astype(jnp.float32)]
        in_specs += [pl.BlockSpec((1, K), lambda i: (0, 0)),
                     pl.BlockSpec((1, K), lambda i: (0, 0))]
    args.append(w.astype(_MXU_DT))
    in_specs.append(pl.BlockSpec((K, N), lambda i: (0, 0)))
    if b is not None:
        args.append(b.reshape(1, N).astype(jnp.float32))
        in_specs.append(pl.BlockSpec((1, N), lambda i: (0, 0)))
    if residual is not None:
        r2 = residual.reshape(M, N)
        if Mp != M:
            r2 = jnp.pad(r2, ((0, Mp - M), (0, 0)))
        args.append(r2)
        in_specs.append(pl.BlockSpec((bm, N), lambda i: (i, 0)))

    out = pl.pallas_call(
        functools.partial(_linear_kernel, act=act, eps=ln_eps,
                          has_ln=ln is not None, has_bias=b is not None,
                          has_res=residual is not None),
        grid=(Mp // bm,),
        in_specs=in_specs,
        out_specs=pl.BlockSpec((bm, N), lambda i: (i, 0)),
        out_shape=jax.ShapeDtypeStruct((Mp, N), out_dtype),
        compiler_params=pltpu.CompilerParams(
            dimension_semantics=("parallel",), vmem_limit_bytes=_VMEM_LIMIT),
    )(*args)
    if Mp != M:
        out = out[:M]
    return out.reshape(*orig_shape[:-1], N)


# ------------------------- stand-alone LayerNorm -----------------------------

def _layernorm_kernel(x_ref, g_ref, b_ref, o_ref, *, eps):
    x = x_ref[...].astype(jnp.float32)
    mu = jnp.mean(x, axis=-1, keepdims=True)
    xc = x - mu
    var = jnp.mean(xc * xc, axis=-1, keepdims=True)
    o_ref[...] = (xc * lax.rsqrt(var + eps) * g_ref[...] + b_ref[...]).astype(o_ref.dtype)


def layernorm(x, g, b, eps=1e-5, out_dtype=_ACT_DT, block_m=512):
    # TODO(synk): norm1_proj could be fused into the proj matmul via an in-kernel
    # group reshape; kept standalone for lowering robustness.
    orig_shape = x.shape
    C = orig_shape[-1]
    M = 1
    for s in orig_shape[:-1]:
        M *= s
    x2 = x.reshape(M, C)
    bm = min(block_m, _round_up(M, 8))
    Mp = _round_up(M, bm)
    if Mp != M:
        x2 = jnp.pad(x2, ((0, Mp - M), (0, 0)))
    out = pl.pallas_call(
        functools.partial(_layernorm_kernel, eps=eps),
        grid=(Mp // bm,),
        in_specs=[pl.BlockSpec((bm, C), lambda i: (i, 0)),
                  pl.BlockSpec((1, C), lambda i: (0, 0)),
                  pl.BlockSpec((1, C), lambda i: (0, 0))],
        out_specs=pl.BlockSpec((bm, C), lambda i: (i, 0)),
        out_shape=jax.ShapeDtypeStruct((Mp, C), out_dtype),
        compiler_params=pltpu.CompilerParams(
            dimension_semantics=("parallel",), vmem_limit_bytes=_VMEM_LIMIT),
    )(x2, g.reshape(1, C).astype(jnp.float32), b.reshape(1, C).astype(jnp.float32))
    if Mp != M:
        out = out[:M]
    return out.reshape(orig_shape)


# ----- multi-head attention, head-tiled grid, fused out-proj + residual ------

def _mha_kernel(q_ref, k_ref, v_ref, pw_ref, pb_ref, *rest,
                scale, with_residual, with_weights):
    idx = 0
    res_ref = None
    if with_residual:
        res_ref = rest[idx]; idx += 1
    o_ref = rest[idx]; idx += 1
    attn_ref = None
    if with_weights:
        attn_ref = rest[idx]; idx += 1
    acc_ref = rest[idx]

    h = pl.program_id(1)

    @pl.when(h == 0)
    def _():
        init = jnp.broadcast_to(pb_ref[...], acc_ref.shape)       # proj bias once
        if with_residual:
            init = init + res_ref[...].astype(jnp.float32)        # fused residual
        acc_ref[...] = init

    q = q_ref[...].astype(_MXU_DT)
    k = k_ref[...].astype(_MXU_DT)
    s = jnp.dot(q, k.T, preferred_element_type=jnp.float32) * scale
    s = s - jnp.max(s, axis=-1, keepdims=True)                    # f32 softmax stats
    e = jnp.exp(s)
    denom = jnp.sum(e, axis=-1, keepdims=True)
    if with_weights:
        p = e / denom                                             # exact for returned probs
        attn_ref[...] = p
    else:
        p = e * pl.reciprocal(denom, approx=True)                 # EUP reciprocal
    o = jnp.dot(p.astype(_MXU_DT), v_ref[...].astype(_MXU_DT),
                preferred_element_type=jnp.float32)
    acc_ref[...] += jnp.dot(o.astype(_MXU_DT), pw_ref[...],
                            preferred_element_type=jnp.float32)   # per-head out-proj

    @pl.when(h == pl.num_programs(1) - 1)
    def _():
        o_ref[...] = acc_ref[...].astype(o_ref.dtype)


def _mha_call(qkv_args, qkv_specs, B, H, Nq, Nk, dh, proj_w, proj_b, scale,
              residual, return_weights, out_dtype=_ACT_DT):
    Co = proj_w.shape[1]
    pw = proj_w.reshape(H, dh, Co).astype(_MXU_DT)
    pb = proj_b.reshape(1, Co).astype(jnp.float32)
    with_res = residual is not None

    args = list(qkv_args) + [pw, pb]
    in_specs = list(qkv_specs) + [
        pl.BlockSpec((None, dh, Co), lambda b, h: (h, 0, 0)),
        pl.BlockSpec((1, Co), lambda b, h: (0, 0))]
    if with_res:
        args.append(residual)
        in_specs.append(pl.BlockSpec((None, Nq, Co), lambda b, h: (b, 0, 0)))

    out_specs = [pl.BlockSpec((None, Nq, Co), lambda b, h: (b, 0, 0))]
    out_shape = [jax.ShapeDtypeStruct((B, Nq, Co), out_dtype)]
    if return_weights:
        out_specs.append(pl.BlockSpec((None, None, Nq, Nk), lambda b, h: (b, h, 0, 0)))
        out_shape.append(jax.ShapeDtypeStruct((B, H, Nq, Nk), jnp.float32))

    res = pl.pallas_call(
        functools.partial(_mha_kernel, scale=scale, with_residual=with_res,
                          with_weights=return_weights),
        grid=(B, H),
        in_specs=in_specs,
        out_specs=out_specs,
        out_shape=out_shape,
        scratch_shapes=[pltpu.VMEM((Nq, Co), jnp.float32)],       # out-proj accumulator
        compiler_params=pltpu.CompilerParams(
            dimension_semantics=("parallel", "arbitrary"),
            vmem_limit_bytes=_VMEM_LIMIT),
    )(*args)
    if return_weights:
        return res[0], res[1]
    return res[0], None


def _packed_spec(idx, N, dh):
    def imap(b, h):
        return (idx, b, h, 0, 0)
    return pl.BlockSpec((None, None, None, N, dh), imap)


def mha_packed(qkv, H, proj_w, proj_b, scale, residual, return_weights):
    """qkv: (B, N, 3*C) packed from the fused LN+qkv linear."""
    B, N, C3 = qkv.shape
    C = C3 // 3
    dh = C // H
    # single bf16 transpose to head-major layout (half the old f32 cost)
    qkv_t = qkv.reshape(B, N, 3, H, dh).transpose(2, 0, 3, 1, 4)   # (3,B,H,N,dh)
    specs = (_packed_spec(0, N, dh), _packed_spec(1, N, dh), _packed_spec(2, N, dh))
    return _mha_call((qkv_t, qkv_t, qkv_t), specs, B, H, N, N, dh,
                     proj_w, proj_b, scale, residual, return_weights)


def mha_cross(q, kv, H, proj_w, proj_b, scale):
    """q: (B, S, inner); kv: (B, M, 2*inner) packed k|v."""
    B, S, inner = q.shape
    dh = inner // H
    M = kv.shape[1]
    q_t = q.reshape(B, S, H, dh).transpose(0, 2, 1, 3)              # (B,H,S,dh)
    kv_t = kv.reshape(B, M, 2, H, dh).transpose(2, 0, 3, 1, 4)      # (2,B,H,M,dh)
    qs = pl.BlockSpec((None, None, S, dh), lambda b, h: (b, h, 0, 0))
    ks = pl.BlockSpec((None, None, None, M, dh), lambda b, h: (0, b, h, 0, 0))
    vs = pl.BlockSpec((None, None, None, M, dh), lambda b, h: (1, b, h, 0, 0))
    out, _ = _mha_call((q_t, kv_t, kv_t), (qs, ks, vs), B, H, S, M, dh,
                       proj_w, proj_b, scale, None, False)
    return out


# --------------- fused depthwise conv1d + SiLU (Mamba x|z path) --------------

def _dwconv1d_silu_kernel(xpad_ref, w_ref, y_ref, *, ksize):
    L = y_ref.shape[0]
    xp = xpad_ref[...].astype(jnp.float32)            # single slab load
    w = w_ref[...]
    acc = w[0:1, :] * xp[0:L, :]
    for j in range(1, ksize):                         # static tap unroll
        acc = acc + w[j:j + 1, :] * xp[j:j + L, :]
    y = acc * jax.nn.sigmoid(acc)                     # fused SiLU
    y_ref[...] = y.astype(y_ref.dtype)


def dwconv1d_silu(x, w):
    """Depthwise PyTorch-'same' conv1d (cross-correlation) + SiLU.
    x: (B, L, D) channels-last, w: (K, D) == weight[:, 0, :].T"""
    B, L, D = x.shape
    K = w.shape[0]
    left = (K - 1) // 2
    right = (K - 1) - left            # torch padding='same' puts the extra pad right
    xpad = jnp.pad(x, ((0, 0), (left, right), (0, 0)))
    return pl.pallas_call(
        functools.partial(_dwconv1d_silu_kernel, ksize=K),
        grid=(B,),
        in_specs=[pl.BlockSpec((None, L + K - 1, D), lambda b: (b, 0, 0)),
                  pl.BlockSpec((K, D), lambda b: (0, 0))],
        out_specs=pl.BlockSpec((None, L, D), lambda b: (b, 0, 0)),
        out_shape=jax.ShapeDtypeStruct((B, L, D), _ACT_DT),
        compiler_params=pltpu.CompilerParams(
            dimension_semantics=("parallel",), vmem_limit_bytes=_VMEM_LIMIT),
    )(xpad, w.astype(jnp.float32))


# ------------------------------ selective scan -------------------------------

def _selective_scan_kernel(u_ref, dt_ref, Bm_ref, Cm_ref, At_ref, Dv_ref, db_ref,
                           y_ref, hh_ref, *, chunk):
    # u, dt, y: (Lp, D); Bm, Cm: (Lp, N); At: (N, D); Dv, db: (1, D)
    Lp = u_ref.shape[0]
    N, D = At_ref.shape
    At = At_ref[...]
    Dv = Dv_ref[...]
    db = db_ref[...]

    def chunk_body(c, h):
        base = pl.multiple_of(c * chunk, chunk)
        u_c = u_ref[pl.ds(base, chunk), :].astype(jnp.float32)
        dt_c = dt_ref[pl.ds(base, chunk), :].astype(jnp.float32) + db
        # softplus (threshold=20), matching the selective_scan reference
        delta = jnp.where(dt_c > 20.0, dt_c,
                          jnp.log1p(jnp.exp(jnp.minimum(dt_c, 20.0))))
        B_c = Bm_ref[pl.ds(base, chunk), :].astype(jnp.float32)
        C_c = Cm_ref[pl.ds(base, chunk), :].astype(jnp.float32)
        dA = jnp.exp(delta[:, None, :] * At[None, :, :])          # (chunk, N, D)
        dBu = B_c[:, :, None] * (delta * u_c)[:, None, :]         # (chunk, N, D)
        for t in range(chunk):                                    # unrolled recurrence
            h = dA[t] * h + dBu[t]
            hh_ref[t] = h
        y_c = jnp.sum(C_c[:, :, None] * hh_ref[...], axis=1)      # (chunk, D)
        y_ref[pl.ds(base, chunk), :] = (y_c + Dv * u_c).astype(y_ref.dtype)
        return h

    lax.fori_loop(0, Lp // chunk, chunk_body, jnp.zeros((N, D), jnp.float32))


def selective_scan(u, dt, A, Bm, Cm, Dvec, delta_bias, chunk=8):
    """selective_scan_fn(..., z=None, delta_softplus=True) in (B, L, D) layout."""
    B, L, D = u.shape
    N = A.shape[1]
    Lp = _round_up(L, chunk)
    if Lp != L:
        padL = ((0, 0), (0, Lp - L), (0, 0))
        u, dt, Bm, Cm = (jnp.pad(t, padL) for t in (u, dt, Bm, Cm))
    At = A.T.astype(jnp.float32)                      # (N, D)
    Dv = Dvec.reshape(1, D).astype(jnp.float32)
    db = delta_bias.reshape(1, D).astype(jnp.float32)
    out = pl.pallas_call(
        functools.partial(_selective_scan_kernel, chunk=chunk),
        grid=(B,),
        in_specs=[pl.BlockSpec((None, Lp, D), lambda b: (b, 0, 0)),
                  pl.BlockSpec((None, Lp, D), lambda b: (b, 0, 0)),
                  pl.BlockSpec((None, Lp, N), lambda b: (b, 0, 0)),
                  pl.BlockSpec((None, Lp, N), lambda b: (b, 0, 0)),
                  pl.BlockSpec((N, D), lambda b: (0, 0)),
                  pl.BlockSpec((1, D), lambda b: (0, 0)),
                  pl.BlockSpec((1, D), lambda b: (0, 0))],
        out_specs=pl.BlockSpec((None, Lp, D), lambda b: (b, 0, 0)),
        out_shape=jax.ShapeDtypeStruct((B, Lp, D), _ACT_DT),
        scratch_shapes=[pltpu.VMEM((chunk, N, D), jnp.float32)],   # per-chunk h history
        compiler_params=pltpu.CompilerParams(
            dimension_semantics=("parallel",), vmem_limit_bytes=_VMEM_LIMIT),
    )(u, dt, Bm, Cm, At, Dv, db)
    return out[:, :L, :]


# -------------------- LocalityFeedForward (NHWC) kernels ---------------------

def _dwconv3x3_kernel(xpad_ref, w_ref, s_ref, b_ref, o_ref, p_ref, *, inv_hw):
    # xpad: (H+2, W+2, C); w: (9, 1, C) taps; s, b: (1, 1, C) folded BN affine
    H, W, _ = o_ref.shape
    xp = xpad_ref[...].astype(jnp.float32)            # single slab load
    w = w_ref[...]
    acc = w[0] * xp[0:H, 0:W, :]
    for kh in range(3):
        for kw in range(3):
            if kh == 0 and kw == 0:
                continue
            acc = acc + w[kh * 3 + kw] * xp[kh:kh + H, kw:kw + W, :]
    y = acc * s_ref[...] + b_ref[...]
    y = y * jnp.clip(y + 3.0, 0.0, 6.0) * (1.0 / 6.0)               # fused h-swish
    o_ref[...] = y.astype(o_ref.dtype)
    # fused SE global-average pool (second output) -> no extra HBM pass
    p_ref[...] = jnp.sum(jnp.sum(y, axis=0), axis=0, keepdims=True) * inv_hw


def dwconv3x3_bn_hswish(x_nhwc, w9, scale, shift):
    B, H, W, C = x_nhwc.shape
    xpad = jnp.pad(x_nhwc, ((0, 0), (1, 1), (1, 1), (0, 0)))
    out, pooled = pl.pallas_call(
        functools.partial(_dwconv3x3_kernel, inv_hw=1.0 / float(H * W)),
        grid=(B,),
        in_specs=[pl.BlockSpec((None, H + 2, W + 2, C), lambda b: (b, 0, 0, 0)),
                  pl.BlockSpec((9, 1, C), lambda b: (0, 0, 0)),
                  pl.BlockSpec((1, 1, C), lambda b: (0, 0, 0)),
                  pl.BlockSpec((1, 1, C), lambda b: (0, 0, 0))],
        out_specs=[pl.BlockSpec((None, H, W, C), lambda b: (b, 0, 0, 0)),
                   pl.BlockSpec((None, 1, C), lambda b: (b, 0, 0))],
        out_shape=[jax.ShapeDtypeStruct((B, H, W, C), _ACT_DT),
                   jax.ShapeDtypeStruct((B, 1, C), jnp.float32)],
        compiler_params=pltpu.CompilerParams(
            dimension_semantics=("parallel",), vmem_limit_bytes=_VMEM_LIMIT),
    )(xpad, w9.reshape(9, 1, C).astype(jnp.float32),
      scale.reshape(1, 1, C).astype(jnp.float32),
      shift.reshape(1, 1, C).astype(jnp.float32))
    return out, pooled


def _se_scale_linear_kernel(x_ref, p_ref, w1_ref, b1_ref, w2_ref, b2_ref,
                            w_ref, b_ref, res_ref, o_ref):
    # SE gate MLP (tiny, f32), SE scaling, 1x1 conv (BN folded) and residual,
    # all fused in one kernel.
    pool = p_ref[...]                                              # (1, C)
    hgate = jnp.maximum(
        jnp.dot(pool, w1_ref[...], preferred_element_type=jnp.float32) + b1_ref[...],
        0.0)
    gate = jnp.dot(hgate, w2_ref[...], preferred_element_type=jnp.float32) + b2_ref[...]
    gate = jnp.clip(gate + 3.0, 0.0, 6.0) * (1.0 / 6.0)            # h-sigmoid
    xs = x_ref[...].astype(jnp.float32) * gate                     # SE scale
    y = jnp.dot(xs.astype(_MXU_DT), w_ref[...],
                preferred_element_type=jnp.float32) + b_ref[...]
    y = y + res_ref[...].astype(jnp.float32)                       # fused residual
    o_ref[...] = y.astype(o_ref.dtype)


def sescale_linear(x, pooled, w1, b1, w2, b2, w, b, residual):
    B, HW, C = x.shape
    r = w1.shape[1]
    Co = w.shape[1]
    return pl.pallas_call(
        _se_scale_linear_kernel,
        grid=(B,),
        in_specs=[pl.BlockSpec((None, HW, C), lambda i: (i, 0, 0)),
                  pl.BlockSpec((None, 1, C), lambda i: (i, 0, 0)),
                  pl.BlockSpec((C, r), lambda i: (0, 0)),
                  pl.BlockSpec((1, r), lambda i: (0, 0)),
                  pl.BlockSpec((r, C), lambda i: (0, 0)),
                  pl.BlockSpec((1, C), lambda i: (0, 0)),
                  pl.BlockSpec((C, Co), lambda i: (0, 0)),
                  pl.BlockSpec((1, Co), lambda i: (0, 0)),
                  pl.BlockSpec((None, HW, Co), lambda i: (i, 0, 0))],
        out_specs=pl.BlockSpec((None, HW, Co), lambda i: (i, 0, 0)),
        out_shape=jax.ShapeDtypeStruct((B, HW, Co), _ACT_DT),
        compiler_params=pltpu.CompilerParams(
            dimension_semantics=("parallel",), vmem_limit_bytes=_VMEM_LIMIT),
    )(x, pooled, w1.astype(jnp.float32), b1.reshape(1, r).astype(jnp.float32),
      w2.astype(jnp.float32), b2.reshape(1, C).astype(jnp.float32),
      w.astype(_MXU_DT), b.reshape(1, Co).astype(jnp.float32), residual)


# --------------------------- composed sub-modules ----------------------------

def attention_block(x, ln_g, ln_b, p, num_heads, residual, return_weights):
    """timm/TNT-style self-attention; pre-LN fused into qkv, out-proj + residual
    fused into the head-tiled attention kernel."""
    C = x.shape[-1]
    dh = C // num_heads
    qkv = linear(x, p["qkv_w"], ln=(ln_g, ln_b))          # fused LN + qkv (no bias)
    return mha_packed(qkv, num_heads, p["proj_w"], p["proj_b"], dh ** -0.5,
                      residual, return_weights)


def mlp_block(x, ln_g, ln_b, p, residual):
    h = linear(x, p["fc1_w"], p["fc1_b"], act="gelu", ln=(ln_g, ln_b))
    return linear(h, p["fc2_w"], p["fc2_b"], residual=residual)


def cross_attention(pixel_embed, patch_embed, p, heads):
    b_pixel, n, _ = pixel_embed.shape
    b_patch = patch_embed.shape[0]
    if b_pixel != b_patch:
        pixel_embed = pixel_embed.reshape(b_patch, (b_pixel // b_patch) * n, -1)
    inner = p["q_w"].shape[1]
    dh = inner // heads
    q = linear(pixel_embed, p["q_w"])                                 # no bias
    kv = linear(patch_embed, jnp.concatenate([p["k_w"], p["v_w"]], axis=1))
    # to_out fused into the attention kernel; Dropout(0) == identity
    return mha_cross(q, kv, heads, p["out_w"], p["out_b"], dh ** -0.5)


def mamba_mixer(hidden_states, ln_g, ln_b, p):
    """MambaVisionMixer.forward in channels-last (B, L, D) layout; norm_mamba
    fused into in_proj, dt_proj folded into x_proj, residual fused into out_proj."""
    d_inner = p["in_proj_w"].shape[1]
    dh = d_inner // 2
    d_state = p["A_log"].shape[1]
    dt_rank = p["dt_proj_w"].shape[0]

    xz = linear(hidden_states, p["in_proj_w"], ln=(ln_g, ln_b))       # (B, L, d_inner)
    # fused depthwise conv1d + SiLU over the lane-dense x|z concat
    w_cat = jnp.concatenate([p["conv1d_x_w"], p["conv1d_z_w"]], axis=1)
    xz_c = dwconv1d_silu(xz, w_cat)
    x = xz_c[..., :dh]
    z = xz_c[..., dh:]

    # fold dt_proj into x_proj (trace-time weight product); one linear gives dt|B|C
    W_dt = p["x_proj_w"][:, :dt_rank] @ p["dt_proj_w"]                # (dh, dh)
    W_comb = jnp.concatenate([W_dt, p["x_proj_w"][:, dt_rank:]], axis=1)
    b_comb = jnp.concatenate(
        [p["dt_proj_b"], jnp.zeros((2 * d_state,), p["dt_proj_b"].dtype)])
    dbc = linear(x, W_comb, b_comb)                                   # (B, L, dh+2N)
    dt = dbc[..., :dh]
    Bm = dbc[..., dh:dh + d_state]
    Cm = dbc[..., dh + d_state:]

    A = -jnp.exp(p["A_log"].astype(jnp.float32))
    # NOTE: matches the reference exactly -- dt_proj.bias applied by the Linear
    # above AND passed again as delta_bias into the scan.
    y = selective_scan(x, dt, A, Bm, Cm, p["D"], p["dt_proj_b"])
    y = jnp.concatenate([y, z], axis=-1)
    return linear(y, p["out_proj_w"], residual=hidden_states)


def locality_ff(patch_tokens, ln_g, ln_b, p, B, Hs, Ws, bn_eps=1e-5):
    """LocalViT LocalityFeedForward (act='hs+se'), NHWC end-to-end, eval-mode BN
    (fresh running stats) folded into the adjacent matmul / affine; residual
    fused into the final SE-scale + 1x1 conv kernel."""
    hidden = p["conv1_w"].shape[1]
    inv1 = 1.0 / math.sqrt(1.0 + bn_eps)

    # fused: LN(norm_conv) + 1x1 conv (BN1 folded) + h-swish
    x = linear(patch_tokens, p["conv1_w"] * (p["bn1_g"] * inv1)[None, :],
               p["bn1_b"], act="hswish", ln=(ln_g, ln_b))             # (B, HW, hidden)
    # 3x3 depthwise conv + BN2 + h-swish, NHWC; SE pool emitted by the same kernel
    xh = x.reshape(B, Hs, Ws, hidden)
    xh, pooled = dwconv3x3_bn_hswish(xh, p["dw_w9"], p["bn2_g"] * inv1, p["bn2_b"])
    x = xh.reshape(B, Hs * Ws, hidden)
    # fused: SE gate MLP + SE scale + 1x1 conv (BN3 folded) + residual
    return sescale_linear(x, pooled, p["se_fc1_w"], p["se_fc1_b"],
                          p["se_fc2_w"], p["se_fc2_b"],
                          p["conv2_w"] * (p["bn3_g"] * inv1)[None, :],
                          p["bn3_b"], residual=patch_tokens)


# ------------------------------- Block forward -------------------------------

def block_forward(params, pixel_embed, patch_embed, *, num_heads, in_num_head):
    p = params
    # pixel branch: self-attention + MLP (residuals fused; DropPath(0) == identity)
    pixel_embed, _ = attention_block(pixel_embed, p["norm_in_g"], p["norm_in_b"],
                                     p["attn_in"], in_num_head,
                                     residual=pixel_embed, return_weights=False)
    pixel_embed = mlp_block(pixel_embed, p["norm_mlp_in_g"], p["norm_mlp_in_b"],
                            p["mlp_in"], residual=pixel_embed)

    B, N, C = patch_embed.shape
    Nsqrt = int(math.sqrt(N))

    # inject pixel information into patch tokens (skip cls token); residual fused
    pe_norm = layernorm(pixel_embed, p["norm1_proj_g"], p["norm1_proj_b"])
    patch_body = linear(pe_norm.reshape(B, N - 1, -1), p["proj_w"], p["proj_b"],
                        residual=patch_embed[:, 1:])
    patch_embed = jnp.concatenate(
        [patch_embed[:, :1].astype(patch_body.dtype), patch_body], axis=1)

    # Mamba mixer (norm fused into in_proj, residual fused into out_proj)
    patch_embed = mamba_mixer(patch_embed, p["norm_mamba_g"], p["norm_mamba_b"],
                              p["mamba"])

    # patch self-attention (residual fused); only this one materializes `weights`
    patch_embed, weights = attention_block(patch_embed, p["norm_out_g"],
                                           p["norm_out_b"], p["attn_out"],
                                           num_heads, residual=patch_embed,
                                           return_weights=True)

    # cross attention: pixels attend to patches (replaces pixel_embed)
    pixel_embed = cross_attention(pixel_embed, patch_embed, p["cross"], in_num_head)

    # local conv FFN on spatial patch tokens (residual fused inside)
    cls_token = patch_embed[:, :1]
    patch_tokens = locality_ff(patch_embed[:, 1:], p["norm_conv_g"],
                               p["norm_conv_b"], p["conv"], B, Nsqrt, Nsqrt)
    patch_embed = jnp.concatenate([cls_token, patch_tokens], axis=1)

    return (pixel_embed.astype(jnp.float32), patch_embed.astype(jnp.float32),
            weights)


# ------------------------------ parameter init -------------------------------

def init_params(key, *, dim, in_dim, num_pixel, in_num_head, mlp_ratio=4.0,
                d_state=16, d_conv=4, expand=2, cross_dim_head=64):
    keys = iter(jax.random.split(key, 40))

    def nrm(shape, scale=0.02):
        return jax.random.normal(next(keys), shape, jnp.float32) * scale

    d_inner = int(expand * dim)
    dh = d_inner // 2
    dt_rank = math.ceil(dim / 16)
    hidden_ff = int(dim * mlp_ratio)
    inner_cross = in_num_head * cross_dim_head
    se_hidden = max(hidden_ff // dim, 1)

    # MambaVisionMixer special inits (dt_init='random')
    dt_init_std = dt_rank ** -0.5
    dt_proj_w = jax.random.uniform(next(keys), (dt_rank, dh), jnp.float32,
                                   minval=-dt_init_std, maxval=dt_init_std)
    dt = jnp.exp(jax.random.uniform(next(keys), (dh,), jnp.float32)
                 * (math.log(0.1) - math.log(0.001)) + math.log(0.001))
    dt = jnp.maximum(dt, 1e-4)
    inv_dt = dt + jnp.log(-jnp.expm1(-dt))
    A_log = jnp.log(jnp.tile(jnp.arange(1, d_state + 1, dtype=jnp.float32)[None, :],
                             (dh, 1)))

    return {
        "norm_in_g": jnp.ones((in_dim,)), "norm_in_b": jnp.zeros((in_dim,)),
        "attn_in": {"qkv_w": nrm((in_dim, 3 * in_dim)),
                    "proj_w": nrm((in_dim, in_dim)), "proj_b": jnp.zeros((in_dim,))},
        "norm_mlp_in_g": jnp.ones((in_dim,)), "norm_mlp_in_b": jnp.zeros((in_dim,)),
        "mlp_in": {"fc1_w": nrm((in_dim, in_dim * 4)), "fc1_b": jnp.zeros((in_dim * 4,)),
                   "fc2_w": nrm((in_dim * 4, in_dim)), "fc2_b": jnp.zeros((in_dim,))},
        "norm1_proj_g": jnp.ones((in_dim,)), "norm1_proj_b": jnp.zeros((in_dim,)),
        "proj_w": nrm((in_dim * num_pixel, dim)), "proj_b": jnp.zeros((dim,)),
        "norm_mamba_g": jnp.ones((dim,)), "norm_mamba_b": jnp.zeros((dim,)),
        "mamba": {"in_proj_w": nrm((dim, d_inner)),
                  # conv1d weights stored as (K, dh) == torch weight[:, 0, :].T
                  "conv1d_x_w": nrm((d_conv, dh)),
                  "conv1d_z_w": nrm((d_conv, dh)),
                  "x_proj_w": nrm((dh, dt_rank + 2 * d_state)),
                  "dt_proj_w": dt_proj_w, "dt_proj_b": inv_dt,
                  "A_log": A_log, "D": jnp.ones((dh,)),
                  "out_proj_w": nrm((d_inner, dim))},
        "norm_out_g": jnp.ones((dim,)), "norm_out_b": jnp.zeros((dim,)),
        "attn_out": {"qkv_w": nrm((dim, 3 * dim)),
                     "proj_w": nrm((dim, dim)), "proj_b": jnp.zeros((dim,))},
        "norm_conv_g": jnp.ones((dim,)), "norm_conv_b": jnp.zeros((dim,)),
        "conv": {"conv1_w": nrm((dim, hidden_ff)),
                 "bn1_g": jnp.ones((hidden_ff,)), "bn1_b": jnp.zeros((hidden_ff,)),
                 # depthwise 3x3 stored tap-major: (9, hidden) == torch w[:,0].reshape(C,9).T
                 "dw_w9": nrm((9, hidden_ff)),
                 "bn2_g": jnp.ones((hidden_ff,)), "bn2_b": jnp.zeros((hidden_ff,)),
                 "se_fc1_w": nrm((hidden_ff, se_hidden)),
                 "se_fc1_b": jnp.zeros((se_hidden,)),
                 "se_fc2_w": nrm((se_hidden, hidden_ff)),
                 "se_fc2_b": jnp.zeros((hidden_ff,)),
                 "conv2_w": nrm((hidden_ff, dim)),
                 "bn3_g": jnp.ones((dim,)), "bn3_b": jnp.zeros((dim,))},
        "cross": {"q_w": nrm((in_dim, inner_cross)),
                  "k_w": nrm((dim, inner_cross)),
                  "v_w": nrm((dim, inner_cross)),
                  "out_w": nrm((inner_cross, in_dim)), "out_b": jnp.zeros((in_dim,))},
    }


# ------------------------------------ main -----------------------------------

if __name__ == "__main__":
    dim, in_dim, num_pixel = 64, 16, 4
    num_heads, in_num_head = 4, 4
    B = 2
    Np = 4                      # number of spatial patch tokens (Nsqrt = 2)
    N = Np + 1                  # +1 cls token

    key = jax.random.PRNGKey(0)
    kp, kx, ky = jax.random.split(key, 3)
    params = init_params(kp, dim=dim, in_dim=in_dim, num_pixel=num_pixel,
                         in_num_head=in_num_head)
    pixel_embed = jax.random.normal(kx, (B * Np, num_pixel, in_dim), jnp.float32)
    patch_embed = jax.random.normal(ky, (B, N, dim), jnp.float32)

    fwd = jax.jit(block_forward, static_argnames=("num_heads", "in_num_head"))
    pe_out, pa_out, attn_w = fwd(params, pixel_embed, patch_embed,
                                 num_heads=num_heads, in_num_head=in_num_head)
    jax.block_until_ready((pe_out, pa_out, attn_w))

    assert pe_out.shape == (B, Np * num_pixel, in_dim)
    assert pa_out.shape == (B, N, dim)
    assert attn_w.shape == (B, num_heads, N, N)
    assert bool(jnp.all(jnp.isfinite(pe_out))) and bool(jnp.all(jnp.isfinite(pa_out)))
    print("KERNEL_OK")
</pallas_src>

<mosaic_0001>
module attributes {stable_mosaic.version = 11 : i64} {
  func.func @_linear_kernel(%arg0: i32, %arg1: memref<32x16xf32, #tpu.memory_space<vmem>>, %arg2: memref<1x16xf32, #tpu.memory_space<vmem>>, %arg3: memref<1x16xf32, #tpu.memory_space<vmem>>, %arg4: memref<16x48xbf16, #tpu.memory_space<vmem>>, %arg5: memref<32x48xbf16, #tpu.memory_space<vmem>>) attributes {dimension_semantics = [#tpu.dimension_semantics<parallel>], iteration_bounds = array<i64: 1>, scalar_prefetch = 0 : i64, scratch_operands = 0 : i64, tpu.core_type = #tpu.core_type<tc>, window_params = [{transform_indices = @transform_0, window_bounds = array<i64: 32, 16>}, {pipeline_mode = #tpu.pipeline_mode<synchronous>, transform_indices = @transform_1, window_bounds = array<i64: 1, 16>}, {pipeline_mode = #tpu.pipeline_mode<synchronous>, transform_indices = @transform_2, window_bounds = array<i64: 1, 16>}, {pipeline_mode = #tpu.pipeline_mode<synchronous>, transform_indices = @transform_3, window_bounds = array<i64: 16, 48>}, {transform_indices = @transform_4, window_bounds = array<i64: 32, 48>}]} {
    %c0 = arith.constant 0 : index
    %c0_0 = arith.constant 0 : index
    %0 = vector.load %arg1[%c0, %c0_0] : memref<32x16xf32, #tpu.memory_space<vmem>>, vector<32x16xf32>
    %cst = arith.constant dense<0.000000e+00> : vector<32xf32>
    %1 = vector.multi_reduction <add>, %0, %cst [1] : vector<32x16xf32> to vector<32xf32>
    %2 = vector.shape_cast %1 : vector<32xf32> to vector<32x1xf32>
    %cst_1 = arith.constant 1.600000e+01 : f32
    %3 = vector.broadcast %cst_1 : f32 to vector<32x1xf32>
    %4 = arith.divf %2, %3 : vector<32x1xf32>
    %5 = vector.broadcast %4 : vector<32x1xf32> to vector<32x16xf32>
    %6 = arith.subf %0, %5 : vector<32x16xf32>
    %7 = arith.mulf %6, %6 : vector<32x16xf32>
    %cst_2 = arith.constant dense<0.000000e+00> : vector<32xf32>
    %8 = vector.multi_reduction <add>, %7, %cst_2 [1] : vector<32x16xf32> to vector<32xf32>
    %9 = vector.shape_cast %8 : vector<32xf32> to vector<32x1xf32>
    %cst_3 = arith.constant 1.600000e+01 : f32
    %10 = vector.broadcast %cst_3 : f32 to vector<32x1xf32>
    %11 = arith.divf %9, %10 : vector<32x1xf32>
    %cst_4 = arith.constant 9.99999974E-6 : f32
    %12 = vector.broadcast %cst_4 : f32 to vector<32x1xf32>
    %13 = arith.addf %11, %12 : vector<32x1xf32>
    %14 = math.rsqrt %13 : vector<32x1xf32>
    %15 = vector.broadcast %14 : vector<32x1xf32> to vector<32x16xf32>
    %16 = arith.mulf %6, %15 : vector<32x16xf32>
    %c0_5 = arith.constant 0 : index
    %c0_6 = arith.constant 0 : index
    %17 = vector.load %arg2[%c0_5, %c0_6] : memref<1x16xf32, #tpu.memory_space<vmem>>, vector<1x16xf32>
    %18 = vector.broadcast %17 : vector<1x16xf32> to vector<32x16xf32>
    %19 = arith.mulf %16, %18 : vector<32x16xf32>
    %c0_7 = arith.constant 0 : index
    %c0_8 = arith.constant 0 : index
    %20 = vector.load %arg3[%c0_7, %c0_8] : memref<1x16xf32, #tpu.memory_space<vmem>>, vector<1x16xf32>
    %21 = vector.broadcast %20 : vector<1x16xf32> to vector<32x16xf32>
    %22 = arith.addf %19, %21 : vector<32x16xf32>
    %23 = arith.truncf %22 : vector<32x16xf32> to vector<32x16xbf16>
    %c0_9 = arith.constant 0 : index
    %c0_10 = arith.constant 0 : index
    %24 = vector.load %arg4[%c0_9, %c0_10] : memref<16x48xbf16, #tpu.memory_space<vmem>>, vector<16x48xbf16>
    %cst_11 = arith.constant dense<0.000000e+00> : vector<32x48xf32>
    %25 = tpu.matmul %23, %24, %cst_11 {dimension_numbers = #tpu.dot_dimension_numbers<[1], [0], [0], [1], [0, 0, 1, 1], [], []>} : vector<32x16xbf16>, vector<16x48xbf16>, vector<32x48xf32> -> vector<32x48xf32>
    %26 = arith.truncf %25 : vector<32x48xf32> to vector<32x48xbf16>
    %c0_12 = arith.constant 0 : index
    %c0_13 = arith.constant 0 : index
    %27 = vector.load %arg5[%c0_12, %c0_13] : memref<32x48xbf16, #tpu.memory_space<vmem>>, vector<32x48xbf16>
    tpu.vector_store %arg5[%c0_12, %c0_13], %26 {strides = array<i32>} : memref<32x48xbf16, #tpu.memory_space<vmem>>, vector<32x48xbf16>,
    return
  }
  func.func @transform_0(%arg0: i32) -> (i32, i32) {
    %c0_i32 = arith.constant 0 : i32
    %c0_i32_0 = arith.constant 0 : i32
    return %arg0, %c0_i32 : i32, i32
  }
  func.func @transform_1(%arg0: i32) -> (i32, i32) {
    %c0_i32 = arith.constant 0 : i32
    %c0_i32_0 = arith.constant 0 : i32
    %c0_i32_1 = arith.constant 0 : i32
    return %c0_i32, %c0_i32_0 : i32, i32
  }
  func.func @transform_2(%arg0: i32) -> (i32, i32) {
    %c0_i32 = arith.constant 0 : i32
    %c0_i32_0 = arith.constant 0 : i32
    %c0_i32_1 = arith.constant 0 : i32
    return %c0_i32, %c0_i32_0 : i32, i32
  }
  func.func @transform_3(%arg0: i32) -> (i32, i32) {
    %c0_i32 = arith.constant 0 : i32
    %c0_i32_0 = arith.constant 0 : i32
    %c0_i32_1 = arith.constant 0 : i32
    return %c0_i32, %c0_i32_0 : i32, i32
  }
  func.func @transform_4(%arg0: i32) -> (i32, i32) {
    %c0_i32 = arith.constant 0 : i32
    %c0_i32_0 = arith.constant 0 : i32
    return %arg0, %c0_i32 : i32, i32
  }
}

module attributes {stable_mosaic.version = 11 : i64} {
  func.func @_linear_kernel(%arg0: i32, %arg1: memref<32x16xbf16, #tpu.memory_space<vmem>>, %arg2: memref<1x16xf32, #tpu.memory_space<vmem>>, %arg3: memref<1x16xf32, #tpu.memory_space<vmem>>, %arg4: memref<16x64xbf16, #tpu.memory_space<vmem>>, %arg5: memref<1x64xf32, #tpu.memory_space<vmem>>, %arg6: memref<32x64xbf16, #tpu.memory_space<vmem>>) attributes {dimension_semantics = [#tpu.dimension_semantics<parallel>], iteration_bounds = array<i64: 1>, scalar_prefetch = 0 : i64, scratch_operands = 0 : i64, tpu.core_type = #tpu.core_type<tc>, window_params = [{transform_indices = @transform_0, window_bounds = array<i64: 32, 16>}, {pipeline_mode = #tpu.pipeline_mode<synchronous>, transform_indices = @transform_1, window_bounds = array<i64: 1, 16>}, {pipeline_mode = #tpu.pipeline_mode<synchronous>, transform_indices = @transform_2, window_bounds = array<i64: 1, 16>}, {pipeline_mode = #tpu.pipeline_mode<synchronous>, transform_indices = @transform_3, window_bounds = array<i64: 16, 64>}, {pipeline_mode = #tpu.pipeline_mode<synchronous>, transform_indices = @transform_4, window_bounds = array<i64: 1, 64>}, {transform_indices = @transform_5, window_bounds = array<i64: 32, 64>}]} {
    %c0 = arith.constant 0 : index
    %c0_0 = arith.constant 0 : index
    %0 = vector.load %arg1[%c0, %c0_0] : memref<32x16xbf16, #tpu.memory_space<vmem>>, vector<32x16xbf16>
    %1 = arith.extf %0 : vector<32x16xbf16> to vector<32x16xf32>
    %cst = arith.constant dense<0.000000e+00> : vector<32xf32>
    %2 = vector.multi_reduction <add>, %1, %cst [1] : vector<32x16xf32> to vector<32xf32>
    %3 = vector.shape_cast %2 : vector<32xf32> to vector<32x1xf32>
    %cst_1 = arith.constant 1.600000e+01 : f32
    %4 = vector.broadcast %cst_1 : f32 to vector<32x1xf32>
    %5 = arith.divf %3, %4 : vector<32x1xf32>
    %6 = vector.broadcast %5 : vector<32x1xf32> to vector<32x16xf32>
    %7 = arith.subf %1, %6 : vector<32x16xf32>
    %8 = arith.mulf %7, %7 : vector<32x16xf32>
    %cst_2 = arith.constant dense<0.000000e+00> : vector<32xf32>
    %9 = vector.multi_reduction <add>, %8, %cst_2 [1] : vector<32x16xf32> to vector<32xf32>
    %10 = vector.shape_cast %9 : vector<32xf32> to vector<32x1xf32>
    %cst_3 = arith.constant 1.600000e+01 : f32
    %11 = vector.broadcast %cst_3 : f32 to vector<32x1xf32>
    %12 = arith.divf %10, %11 : vector<32x1xf32>
    %cst_4 = arith.constant 9.99999974E-6 : f32
    %13 = vector.broadcast %cst_4 : f32 to vector<32x1xf32>
    %14 = arith.addf %12, %13 : vector<32x1xf32>
    %15 = math.rsqrt %14 : vector<32x1xf32>
    %16 = vector.broadcast %15 : vector<32x1xf32> to vector<32x16xf32>
    %17 = arith.mulf %7, %16 : vector<32x16xf32>
    %c0_5 = arith.constant 0 : index
    %c0_6 = arith.constant 0 : index
    %18 = vector.load %arg2[%c0_5, %c0_6] : memref<1x16xf32, #tpu.memory_space<vmem>>, vector<1x16xf32>
    %19 = vector.broadcast %18 : vector<1x16xf32> to vector<32x16xf32>
    %20 = arith.mulf %17, %19 : vector<32x16xf32>
    %c0_7 = arith.constant 0 : index
    %c0_8 = arith.constant 0 : index
    %21 = vector.load %arg3[%c0_7, %c0_8] : memref<1x16xf32, #tpu.memory_space<vmem>>, vector<1x16xf32>
    %22 = vector.broadcast %21 : vector<1x16xf32> to vector<32x16xf32>
    %23 = arith.addf %20, %22 : vector<32x16xf32>
    %24 = arith.truncf %23 : vector<32x16xf32> to vector<32x16xbf16>
    %c0_9 = arith.constant 0 : index
    %c0_10 = arith.constant 0 : index
    %25 = vector.load %arg4[%c0_9, %c0_10] : memref<16x64xbf16, #tpu.memory_space<vmem>>, vector<16x64xbf16>
    %cst_11 = arith.constant dense<0.000000e+00> : vector<32x64xf32>
    %26 = tpu.matmul %24, %25, %cst_11 {dimension_numbers = #tpu.dot_dimension_numbers<[1], [0], [0], [1], [0, 0, 1, 1], [], []>} : vector<32x16xbf16>, vector<16x64xbf16>, vector<32x64xf32> -> vector<32x64xf32>
    %c0_12 = arith.constant 0 : index
    %c0_13 = arith.constant 0 : index
    %27 = vector.load %arg5[%c0_12, %c0_13] : memref<1x64xf32, #tpu.memory_space<vmem>>, vector<1x64xf32>
    %28 = vector.broadcast %27 : vector<1x64xf32> to vector<32x64xf32>
    %29 = arith.addf %26, %28 : vector<32x64xf32>
    %cst_14 = arith.constant 5.000000e-01 : f32
    %30 = vector.broadcast %cst_14 : f32 to vector<32x64xf32>
    %31 = arith.mulf %30, %29 : vector<32x64xf32>
    %cst_15 = arith.constant 0.707106769 : f32
    %32 = vector.broadcast %cst_15 : f32 to vector<32x64xf32>
    %33 = arith.mulf %29, %32 : vector<32x64xf32>
    %34 = math.erf %33 : vector<32x64xf32>
    %cst_16 = arith.constant 1.000000e+00 : f32
    %35 = vector.broadcast %cst_16 : f32 to vector<32x64xf32>
    %36 = arith.addf %35, %34 : vector<32x64xf32>
    %37 = arith.mulf %31, %36 : vector<32x64xf32>
    %38 = arith.truncf %37 : vector<32x64xf32> to vector<32x64xbf16>
    %c0_17 = arith.constant 0 : index
    %c0_18 = arith.constant 0 : index
    %39 = vector.load %arg6[%c0_17, %c0_18] : memref<32x64xbf16, #tpu.memory_space<vmem>>, vector<32x64xbf16>
    tpu.vector_store %arg6[%c0_17, %c0_18], %38 {strides = array<i32>} : memref<32x64xbf16, #tpu.memory_space<vmem>>, vector<32x64xbf16>,
    return
  }
  func.func @transform_0(%arg0: i32) -> (i32, i32) {
    %c0_i32 = arith.constant 0 : i32
    %c0_i32_0 = arith.constant 0 : i32
    return %arg0, %c0_i32 : i32, i32
  }
  func.func @transform_1(%arg0: i32) -> (i32, i32) {
    %c0_i32 = arith.constant 0 : i32
    %c0_i32_0 = arith.constant 0 : i32
    %c0_i32_1 = arith.constant 0 : i32
    return %c0_i32, %c0_i32_0 : i32, i32
  }
  func.func @transform_2(%arg0: i32) -> (i32, i32) {
    %c0_i32 = arith.constant 0 : i32
    %c0_i32_0 = arith.constant 0 : i32
    %c0_i32_1 = arith.constant 0 : i32
    return %c0_i32, %c0_i32_0 : i32, i32
  }
  func.func @transform_3(%arg0: i32) -> (i32, i32) {
    %c0_i32 = arith.constant 0 : i32
    %c0_i32_0 = arith.constant 0 : i32
    %c0_i32_1 = arith.constant 0 : i32
    return %c0_i32, %c0_i32_0 : i32, i32
  }
  func.func @transform_4(%arg0: i32) -> (i32, i32) {
    %c0_i32 = arith.constant 0 : i32
    %c0_i32_0 = arith.constant 0 : i32
    %c0_i32_1 = arith.constant 0 : i32
    return %c0_i32, %c0_i32_0 : i32, i32
  }
  func.func @transform_5(%arg0: i32) -> (i32, i32) {
    %c0_i32 = arith.constant 0 : i32
    %c0_i32_0 = arith.constant 0 : i32
    return %arg0, %c0_i32 : i32, i32
  }
}

module attributes {stable_mosaic.version = 11 : i64} {
  func.func @_mha_kernel(%arg0: i32, %arg1: i32, %arg2: memref<1x1x1x4x4xbf16, #tpu.memory_space<vmem>>, %arg3: memref<1x1x1x4x4xbf16, #tpu.memory_space<vmem>>, %arg4: memref<1x1x1x4x4xbf16, #tpu.memory_space<vmem>>, %arg5: memref<1x4x16xbf16, #tpu.memory_space<vmem>>, %arg6: memref<1x16xf32, #tpu.memory_space<vmem>>, %arg7: memref<1x4x16xf32, #tpu.memory_space<vmem>>, %arg8: memref<1x4x16xbf16, #tpu.memory_space<vmem>>, %arg9: memref<4x16xf32, #tpu.memory_space<vmem>>) attributes {dimension_semantics = [#tpu.dimension_semantics<parallel>, #tpu.dimension_semantics<arbitrary>], iteration_bounds = array<i64: 8, 4>, scalar_prefetch = 0 : i64, scratch_operands = 1 : i64, tpu.core_type = #tpu.core_type<tc>, window_params = [{transform_indices = @transform_0, window_bounds = array<i64: 1, 1, 1, 4, 4>}, {transform_indices = @transform_1, window_bounds = array<i64: 1, 1, 1, 4, 4>}, {transform_indices = @transform_2, window_bounds = array<i64: 1, 1, 1, 4, 4>}, {transform_indices = @transform_3, window_bounds = array<i64: 1, 4, 16>}, {pipeline_mode = #tpu.pipeline_mode<synchronous>, transform_indices = @transform_4, window_bounds = array<i64: 1, 16>}, {transform_indices = @transform_5, window_bounds = array<i64: 1, 4, 16>}, {transform_indices = @transform_6, window_bounds = array<i64: 1, 4, 16>}]} {
    %c0_i32 = arith.constant 0 : i32
    %0 = arith.cmpi eq, %arg1, %c0_i32 : i32
    %1 = arith.extui %0 : i1 to i32
    %c0_i32_0 = arith.constant 0 : i32
    %2 = arith.cmpi ne, %1, %c0_i32_0 : i32
    scf.if %2 {
      %c0_28 = arith.constant 0 : index
      %c0_29 = arith.constant 0 : index
      %35 = vector.load %arg6[%c0_28, %c0_29] : memref<1x16xf32, #tpu.memory_space<vmem>>, vector<1x16xf32>
      %36 = vector.shape_cast %35 : vector<1x16xf32> to vector<1x16xf32>
      %37 = vector.broadcast %36 : vector<1x16xf32> to vector<4x16xf32>
      %c0_30 = arith.constant 0 : index
      %c0_31 = arith.constant 0 : index
      %c0_32 = arith.constant 0 : index
      %38 = vector.load %arg7[%c0_30, %c0_31, %c0_32] : memref<1x4x16xf32, #tpu.memory_space<vmem>>, vector<1x4x16xf32>
      %39 = vector.shape_cast %38 : vector<1x4x16xf32> to vector<4x16xf32>
      %40 = arith.addf %37, %39 : vector<4x16xf32>
      %c0_33 = arith.constant 0 : index
      %c0_34 = arith.constant 0 : index
      %41 = vector.load %arg9[%c0_33, %c0_34] : memref<4x16xf32, #tpu.memory_space<vmem>>, vector<4x16xf32>
      tpu.vector_store %arg9[%c0_33, %c0_34], %40 {strides = array<i32>} : memref<4x16xf32, #tpu.memory_space<vmem>>, vector<4x16xf32>,
    } else {
    }
    %c0 = arith.constant 0 : index
    %c0_1 = arith.constant 0 : index
    %c0_2 = arith.constant 0 : index
    %c0_3 = arith.constant 0 : index
    %c0_4 = arith.constant 0 : index
    %3 = vector.load %arg2[%c0, %c0_1, %c0_2, %c0_3, %c0_4] : memref<1x1x1x4x4xbf16, #tpu.memory_space<vmem>>, vector<1x1x1x4x4xbf16>
    %4 = vector.shape_cast %3 : vector<1x1x1x4x4xbf16> to vector<4x4xbf16>
    %c0_5 = arith.constant 0 : index
    %c0_6 = arith.constant 0 : index
    %c0_7 = arith.constant 0 : index
    %c0_8 = arith.constant 0 : index
    %c0_9 = arith.constant 0 : index
    %5 = vector.load %arg3[%c0_5, %c0_6, %c0_7, %c0_8, %c0_9] : memref<1x1x1x4x4xbf16, #tpu.memory_space<vmem>>, vector<1x1x1x4x4xbf16>
    %6 = vector.shape_cast %5 : vector<1x1x1x4x4xbf16> to vector<4x4xbf16>
    %7 = tpu.transpose %6, [1, 0] : vector<4x4xbf16> -> vector<4x4xbf16>
    %cst = arith.constant dense<0.000000e+00> : vector<4x4xf32>
    %8 = tpu.matmul %4, %7, %cst {dimension_numbers = #tpu.dot_dimension_numbers<[1], [0], [0], [1], [0, 0, 1, 1], [], []>} : vector<4x4xbf16>, vector<4x4xbf16>, vector<4x4xf32> -> vector<4x4xf32>
    %cst_10 = arith.constant 5.000000e-01 : f32
    %9 = vector.broadcast %cst_10 : f32 to vector<4x4xf32>
    %10 = arith.mulf %8, %9 : vector<4x4xf32>
    %cst_11 = arith.constant dense<0xFF800000> : vector<4xf32>
    %11 = vector.multi_reduction <maximumf>, %10, %cst_11 [1] : vector<4x4xf32> to vector<4xf32>
    %12 = vector.shape_cast %11 : vector<4xf32> to vector<4x1xf32>
    %13 = vector.broadcast %12 : vector<4x1xf32> to vector<4x4xf32>
    %14 = arith.subf %10, %13 : vector<4x4xf32>
    %15 = math.exp %14 : vector<4x4xf32>
    %cst_12 = arith.constant dense<0.000000e+00> : vector<4xf32>
    %16 = vector.multi_reduction <add>, %15, %cst_12 [1] : vector<4x4xf32> to vector<4xf32>
    %17 = vector.shape_cast %16 : vector<4xf32> to vector<4x1xf32>
    %18 = tpu.reciprocal %17 {approx = true} : vector<4x1xf32> -> vector<4x1xf32>
    %19 = vector.broadcast %18 : vector<4x1xf32> to vector<4x4xf32>
    %20 = arith.mulf %15, %19 : vector<4x4xf32>
    %21 = arith.truncf %20 : vector<4x4xf32> to vector<4x4xbf16>
    %c0_13 = arith.constant 0 : index
    %c0_14 = arith.constant 0 : index
    %c0_15 = arith.constant 0 : index
    %c0_16 = arith.constant 0 : index
    %c0_17 = arith.constant 0 : index
    %22 = vector.load %arg4[%c0_13, %c0_14, %c0_15, %c0_16, %c0_17] : memref<1x1x1x4x4xbf16, #tpu.memory_space<vmem>>, vector<1x1x1x4x4xbf16>
    %23 = vector.shape_cast %22 : vector<1x1x1x4x4xbf16> to vector<4x4xbf16>
    %cst_18 = arith.constant dense<0.000000e+00> : vector<4x4xf32>
    %24 = tpu.matmul %21, %23, %cst_18 {dimension_numbers = #tpu.dot_dimension_numbers<[1], [0], [0], [1], [0, 0, 1, 1], [], []>} : vector<4x4xbf16>, vector<4x4xbf16>, vector<4x4xf32> -> vector<4x4xf32>
    %c0_19 = arith.constant 0 : index
    %c0_20 = arith.constant 0 : index
    %25 = vector.load %arg9[%c0_19, %c0_20] : memref<4x16xf32, #tpu.memory_space<vmem>>, vector<4x16xf32>
    %26 = arith.truncf %24 : vector<4x4xf32> to vector<4x4xbf16>
    %c0_21 = arith.constant 0 : index
    %c0_22 = arith.constant 0 : index
    %c0_23 = arith.constant 0 : index
    %27 = vector.load %arg5[%c0_21, %c0_22, %c0_23] : memref<1x4x16xbf16, #tpu.memory_space<vmem>>, vector<1x4x16xbf16>
    %28 = vector.shape_cast %27 : vector<1x4x16xbf16> to vector<4x16xbf16>
    %cst_24 = arith.constant dense<0.000000e+00> : vector<4x16xf32>
    %29 = tpu.matmul %26, %28, %cst_24 {dimension_numbers = #tpu.dot_dimension_numbers<[1], [0], [0], [1], [0, 0, 1, 1], [], []>} : vector<4x4xbf16>, vector<4x16xbf16>, vector<4x16xf32> -> vector<4x16xf32>
    %30 = arith.addf %25, %29 : vector<4x16xf32>
    %c0_25 = arith.constant 0 : index
    %c0_26 = arith.constant 0 : index
    %31 = vector.load %arg9[%c0_25, %c0_26] : memref<4x16xf32, #tpu.memory_space<vmem>>, vector<4x16xf32>
    tpu.vector_store %arg9[%c0_25, %c0_26], %30 {strides = array<i32>} : memref<4x16xf32, #tpu.memory_space<vmem>>, vector<4x16xf32>,
    %c3_i32 = arith.constant 3 : i32
    %32 = arith.cmpi eq, %arg1, %c3_i32 : i32
    %33 = arith.extui %32 : i1 to i32
    %c0_i32_27 = arith.constant 0 : i32
    %34 = arith.cmpi ne, %33, %c0_i32_27 : i32
    scf.if %34 {
      %c0_28 = arith.constant 0 : index
      %c0_29 = arith.constant 0 : index
      %35 = vector.load %arg9[%c0_28, %c0_29] : memref<4x16xf32, #tpu.memory_space<vmem>>, vector<4x16xf32>
      %36 = arith.truncf %35 : vector<4x16xf32> to vector<4x16xbf16>
      %c0_30 = arith.constant 0 : index
      %c0_31 = arith.constant 0 : index
      %c0_32 = arith.constant 0 : index
      %37 = vector.load %arg8[%c0_30, %c0_31, %c0_32] : memref<1x4x16xbf16, #tpu.memory_space<vmem>>, vector<1x4x16xbf16>
      %38 = vector.shape_cast %37 : vector<1x4x16xbf16> to vector<4x16xbf16>
      %39 = vector.shape_cast %36 : vector<4x16xbf16> to vector<1x4x16xbf16>
      tpu.vector_store %arg8[%c0_30, %c0_31, %c0_32], %39 {strides = array<i32>} : memref<1x4x16xbf16, #tpu.memory_space<vmem>>, vector<1x4x16xbf16>,
    } else {
    }
    return
  }
  func.func @transform_0(%arg0: i32, %arg1: i32) -> (i32, i32, i32, i32, i32) {
    %c0_i32 = arith.constant 0 : i32
    %c0_i32_0 = arith.constant 0 : i32
    %c0_i32_1 = arith.constant 0 : i32
    %c0_i32_2 = arith.constant 0 : i32
    return %c0_i32, %arg0, %arg1, %c0_i32_0, %c0_i32_1 : i32, i32, i32, i32, i32
  }
  func.func @transform_1(%arg0: i32, %arg1: i32) -> (i32, i32, i32, i32, i32) {
    %c1_i32 = arith.constant 1 : i32
    %c0_i32 = arith.constant 0 : i32
    %c0_i32_0 = arith.constant 0 : i32
    %c0_i32_1 = arith.constant 0 : i32
    return %c1_i32, %arg0, %arg1, %c0_i32, %c0_i32_0 : i32, i32, i32, i32, i32
  }
  func.func @transform_2(%arg0: i32, %arg1: i32) -> (i32, i32, i32, i32, i32) {
    %c2_i32 = arith.constant 2 : i32
    %c0_i32 = arith.constant 0 : i32
    %c0_i32_0 = arith.constant 0 : i32
    %c0_i32_1 = arith.constant 0 : i32
    return %c2_i32, %arg0, %arg1, %c0_i32, %c0_i32_0 : i32, i32, i32, i32, i32
  }
  func.func @transform_3(%arg0: i32, %arg1: i32) -> (i32, i32, i32) {
    %c0_i32 = arith.constant 0 : i32
    %c0_i32_0 = arith.constant 0 : i32
    %c0_i32_1 = arith.constant 0 : i32
    return %arg1, %c0_i32, %c0_i32_0 : i32, i32, i32
  }
  func.func @transform_4(%arg0: i32, %arg1: i32) -> (i32, i32) {
    %c0_i32 = arith.constant 0 : i32
    %c0_i32_0 = arith.constant 0 : i32
    %c0_i32_1 = arith.constant 0 : i32
    return %c0_i32, %c0_i32_0 : i32, i32
  }
  func.func @transform_5(%arg0: i32, %arg1: i32) -> (i32, i32, i32) {
    %c0_i32 = arith.constant 0 : i32
    %c0_i32_0 = arith.constant 0 : i32
    %c0_i32_1 = arith.constant 0 : i32
    return %arg0, %c0_i32, %c0_i32_0 : i32, i32, i32
  }
  func.func @transform_6(%arg0: i32, %arg1: i32) -> (i32, i32, i32) {
    %c0_i32 = arith.constant 0 : i32
    %c0_i32_0 = arith.constant 0 : i32
    %c0_i32_1 = arith.constant 0 : i32
    return %arg0, %c0_i32, %c0_i32_0 : i32, i32, i32
  }
}

module attributes {stable_mosaic.version = 11 : i64} {
  func.func @_linear_kernel(%arg0: i32, %arg1: memref<32x64xbf16, #tpu.memory_space<vmem>>, %arg2: memref<64x16xbf16, #tpu.memory_space<vmem>>, %arg3: memref<1x16xf32, #tpu.memory_space<vmem>>, %arg4: memref<32x16xbf16, #tpu.memory_space<vmem>>, %arg5: memref<32x16xbf16, #tpu.memory_space<vmem>>) attributes {dimension_semantics = [#tpu.dimension_semantics<parallel>], iteration_bounds = array<i64: 1>, scalar_prefetch = 0 : i64, scratch_operands = 0 : i64, tpu.core_type = #tpu.core_type<tc>, window_params = [{transform_indices = @transform_0, window_bounds = array<i64: 32, 64>}, {pipeline_mode = #tpu.pipeline_mode<synchronous>, transform_indices = @transform_1, window_bounds = array<i64: 64, 16>}, {pipeline_mode = #tpu.pipeline_mode<synchronous>, transform_indices = @transform_2, window_bounds = array<i64: 1, 16>}, {transform_indices = @transform_3, window_bounds = array<i64: 32, 16>}, {transform_indices = @transform_4, window_bounds = array<i64: 32, 16>}]} {
    %c0 = arith.constant 0 : index
    %c0_0 = arith.constant 0 : index
    %0 = vector.load %arg1[%c0, %c0_0] : memref<32x64xbf16, #tpu.memory_space<vmem>>, vector<32x64xbf16>
    %1 = arith.extf %0 : vector<32x64xbf16> to vector<32x64xf32>
    %2 = arith.truncf %1 : vector<32x64xf32> to vector<32x64xbf16>
    %c0_1 = arith.constant 0 : index
    %c0_2 = arith.constant 0 : index
    %3 = vector.load %arg2[%c0_1, %c0_2] : memref<64x16xbf16, #tpu.memory_space<vmem>>, vector<64x16xbf16>
    %cst = arith.constant dense<0.000000e+00> : vector<32x16xf32>
    %4 = tpu.matmul %2, %3, %cst {dimension_numbers = #tpu.dot_dimension_numbers<[1], [0], [0], [1], [0, 0, 1, 1], [], []>} : vector<32x64xbf16>, vector<64x16xbf16>, vector<32x16xf32> -> vector<32x16xf32>
    %c0_3 = arith.constant 0 : index
    %c0_4 = arith.constant 0 : index
    %5 = vector.load %arg3[%c0_3, %c0_4] : memref<1x16xf32, #tpu.memory_space<vmem>>, vector<1x16xf32>
    %6 = vector.broadcast %5 : vector<1x16xf32> to vector<32x16xf32>
    %7 = arith.addf %4, %6 : vector<32x16xf32>
    %c0_5 = arith.constant 0 : index
    %c0_6 = arith.constant 0 : index
    %8 = vector.load %arg4[%c0_5, %c0_6] : memref<32x16xbf16, #tpu.memory_space<vmem>>, vector<32x16xbf16>
    %9 = arith.extf %8 : vector<32x16xbf16> to vector<32x16xf32>
    %10 = arith.addf %7, %9 : vector<32x16xf32>
    %11 = arith.truncf %10 : vector<32x16xf32> to vector<32x16xbf16>
    %c0_7 = arith.constant 0 : index
    %c0_8 = arith.constant 0 : index
    %12 = vector.load %arg5[%c0_7, %c0_8] : memref<32x16xbf16, #tpu.memory_space<vmem>>, vector<32x16xbf16>
    tpu.vector_store %arg5[%c0_7, %c0_8], %11 {strides = array<i32>} : memref<32x16xbf16, #tpu.memory_space<vmem>>, vector<32x16xbf16>,
    return
  }
  func.func @transform_0(%arg0: i32) -> (i32, i32) {
    %c0_i32 = arith.constant 0 : i32
    %c0_i32_0 = arith.constant 0 : i32
    return %arg0, %c0_i32 : i32, i32
  }
  func.func @transform_1(%arg0: i32) -> (i32, i32) {
    %c0_i32 = arith.constant 0 : i32
    %c0_i32_0 = arith.constant 0 : i32
    %c0_i32_1 = arith.constant 0 : i32
    return %c0_i32, %c0_i32_0 : i32, i32
  }
  func.func @transform_2(%arg0: i32) -> (i32, i32) {
    %c0_i32 = arith.constant 0 : i32
    %c0_i32_0 = arith.constant 0 : i32
    %c0_i32_1 = arith.constant 0 : i32
    return %c0_i32, %c0_i32_0 : i32, i32
  }
  func.func @transform_3(%arg0: i32) -> (i32, i32) {
    %c0_i32 = arith.constant 0 : i32
    %c0_i32_0 = arith.constant 0 : i32
    return %arg0, %c0_i32 : i32, i32
  }
  func.func @transform_4(%arg0: i32) -> (i32, i32) {
    %c0_i32 = arith.constant 0 : i32
    %c0_i32_0 = arith.constant 0 : i32
    return %arg0, %c0_i32 : i32, i32
  }
}

module attributes {stable_mosaic.version = 11 : i64} {
  func.func @_layernorm_kernel(%arg0: i32, %arg1: memref<32x16xbf16, #tpu.memory_space<vmem>>, %arg2: memref<1x16xf32, #tpu.memory_space<vmem>>, %arg3: memref<1x16xf32, #tpu.memory_space<vmem>>, %arg4: memref<32x16xbf16, #tpu.memory_space<vmem>>) attributes {dimension_semantics = [#tpu.dimension_semantics<parallel>], iteration_bounds = array<i64: 1>, scalar_prefetch = 0 : i64, scratch_operands = 0 : i64, tpu.core_type = #tpu.core_type<tc>, window_params = [{transform_indices = @transform_0, window_bounds = array<i64: 32, 16>}, {pipeline_mode = #tpu.pipeline_mode<synchronous>, transform_indices = @transform_1, window_bounds = array<i64: 1, 16>}, {pipeline_mode = #tpu.pipeline_mode<synchronous>, transform_indices = @transform_2, window_bounds = array<i64: 1, 16>}, {transform_indices = @transform_3, window_bounds = array<i64: 32, 16>}]} {
    %c0 = arith.constant 0 : index
    %c0_0 = arith.constant 0 : index
    %0 = vector.load %arg1[%c0, %c0_0] : memref<32x16xbf16, #tpu.memory_space<vmem>>, vector<32x16xbf16>
    %1 = arith.extf %0 : vector<32x16xbf16> to vector<32x16xf32>
    %cst = arith.constant dense<0.000000e+00> : vector<32xf32>
    %2 = vector.multi_reduction <add>, %1, %cst [1] : vector<32x16xf32> to vector<32xf32>
    %3 = vector.shape_cast %2 : vector<32xf32> to vector<32x1xf32>
    %cst_1 = arith.constant 1.600000e+01 : f32
    %4 = vector.broadcast %cst_1 : f32 to vector<32x1xf32>
    %5 = arith.divf %3, %4 : vector<32x1xf32>
    %6 = vector.broadcast %5 : vector<32x1xf32> to vector<32x16xf32>
    %7 = arith.subf %1, %6 : vector<32x16xf32>
    %8 = arith.mulf %7, %7 : vector<32x16xf32>
    %cst_2 = arith.constant dense<0.000000e+00> : vector<32xf32>
    %9 = vector.multi_reduction <add>, %8, %cst_2 [1] : vector<32x16xf32> to vector<32xf32>
    %10 = vector.shape_cast %9 : vector<32xf32> to vector<32x1xf32>
    %cst_3 = arith.constant 1.600000e+01 : f32
    %11 = vector.broadcast %cst_3 : f32 to vector<32x1xf32>
    %12 = arith.divf %10, %11 : vector<32x1xf32>
    %cst_4 = arith.constant 9.99999974E-6 : f32
    %13 = vector.broadcast %cst_4 : f32 to vector<32x1xf32>
    %14 = arith.addf %12, %13 : vector<32x1xf32>
    %15 = math.rsqrt %14 : vector<32x1xf32>
    %16 = vector.broadcast %15 : vector<32x1xf32> to vector<32x16xf32>
    %17 = arith.mulf %7, %16 : vector<32x16xf32>
    %c0_5 = arith.constant 0 : index
    %c0_6 = arith.constant 0 : index
    %18 = vector.load %arg2[%c0_5, %c0_6] : memref<1x16xf32, #tpu.memory_space<vmem>>, vector<1x16xf32>
    %19 = vector.broadcast %18 : vector<1x16xf32> to vector<32x16xf32>
    %20 = arith.mulf %17, %19 : vector<32x16xf32>
    %c0_7 = arith.constant 0 : index
    %c0_8 = arith.constant 0 : index
    %21 = vector.load %arg3[%c0_7, %c0_8] : memref<1x16xf32, #tpu.memory_space<vmem>>, vector<1x16xf32>
    %22 = vector.broadcast %21 : vector<1x16xf32> to vector<32x16xf32>
    %23 = arith.addf %20, %22 : vector<32x16xf32>
    %24 = arith.truncf %23 : vector<32x16xf32> to vector<32x16xbf16>
    %c0_9 = arith.constant 0 : index
    %c0_10 = arith.constant 0 : index
    %25 = vector.load %arg4[%c0_9, %c0_10] : memref<32x16xbf16, #tpu.memory_space<vmem>>, vector<32x16xbf16>
    tpu.vector_store %arg4[%c0_9, %c0_10], %24 {strides = array<i32>} : memref<32x16xbf16, #tpu.memory_space<vmem>>, vector<32x16xbf16>,
    return
  }
  func.func @transform_0(%arg0: i32) -> (i32, i32) {
    %c0_i32 = arith.constant 0 : i32
    %c0_i32_0 = arith.constant 0 : i32
    return %arg0, %c0_i32 : i32, i32
  }
  func.func @transform_1(%arg0: i32) -> (i32, i32) {
    %c0_i32 = arith.constant 0 : i32
    %c0_i32_0 = arith.constant 0 : i32
    %c0_i32_1 = arith.constant 0 : i32
    return %c0_i32, %c0_i32_0 : i32, i32
  }
  func.func @transform_2(%arg0: i32) -> (i32, i32) {
    %c0_i32 = arith.constant 0 : i32
    %c0_i32_0 = arith.constant 0 : i32
    %c0_i32_1 = arith.constant 0 : i32
    return %c0_i32, %c0_i32_0 : i32, i32
  }
  func.func @transform_3(%arg0: i32) -> (i32, i32) {
    %c0_i32 = arith.constant 0 : i32
    %c0_i32_0 = arith.constant 0 : i32
    return %arg0, %c0_i32 : i32, i32
  }
}

module attributes {stable_mosaic.version = 11 : i64} {
  func.func @_linear_kernel(%arg0: i32, %arg1: memref<16x64xbf16, #tpu.memory_space<vmem>>, %arg2: memref<1x64xf32, #tpu.memory_space<vmem>>, %arg3: memref<1x64xf32, #tpu.memory_space<vmem>>, %arg4: memref<64x128xbf16, #tpu.memory_space<vmem>>, %arg5: memref<16x128xbf16, #tpu.memory_space<vmem>>) attributes {dimension_semantics = [#tpu.dimension_semantics<parallel>], iteration_bounds = array<i64: 1>, scalar_prefetch = 0 : i64, scratch_operands = 0 : i64, tpu.core_type = #tpu.core_type<tc>, window_params = [{transform_indices = @transform_0, window_bounds = array<i64: 16, 64>}, {pipeline_mode = #tpu.pipeline_mode<synchronous>, transform_indices = @transform_1, window_bounds = array<i64: 1, 64>}, {pipeline_mode = #tpu.pipeline_mode<synchronous>, transform_indices = @transform_2, window_bounds = array<i64: 1, 64>}, {pipeline_mode = #tpu.pipeline_mode<synchronous>, transform_indices = @transform_3, window_bounds = array<i64: 64, 128>}, {transform_indices = @transform_4, window_bounds = array<i64: 16, 128>}]} {
    %c0 = arith.constant 0 : index
    %c0_0 = arith.constant 0 : index
    %0 = vector.load %arg1[%c0, %c0_0] : memref<16x64xbf16, #tpu.memory_space<vmem>>, vector<16x64xbf16>
    %1 = arith.extf %0 : vector<16x64xbf16> to vector<16x64xf32>
    %cst = arith.constant dense<0.000000e+00> : vector<16xf32>
    %2 = vector.multi_reduction <add>, %1, %cst [1] : vector<16x64xf32> to vector<16xf32>
    %3 = vector.shape_cast %2 : vector<16xf32> to vector<16x1xf32>
    %cst_1 = arith.constant 6.400000e+01 : f32
    %4 = vector.broadcast %cst_1 : f32 to vector<16x1xf32>
    %5 = arith.divf %3, %4 : vector<16x1xf32>
    %6 = vector.broadcast %5 : vector<16x1xf32> to vector<16x64xf32>
    %7 = arith.subf %1, %6 : vector<16x64xf32>
    %8 = arith.mulf %7, %7 : vector<16x64xf32>
    %cst_2 = arith.constant dense<0.000000e+00> : vector<16xf32>
    %9 = vector.multi_reduction <add>, %8, %cst_2 [1] : vector<16x64xf32> to vector<16xf32>
    %10 = vector.shape_cast %9 : vector<16xf32> to vector<16x1xf32>
    %cst_3 = arith.constant 6.400000e+01 : f32
    %11 = vector.broadcast %cst_3 : f32 to vector<16x1xf32>
    %12 = arith.divf %10, %11 : vector<16x1xf32>
    %cst_4 = arith.constant 9.99999974E-6 : f32
    %13 = vector.broadcast %cst_4 : f32 to vector<16x1xf32>
    %14 = arith.addf %12, %13 : vector<16x1xf32>
    %15 = math.rsqrt %14 : vector<16x1xf32>
    %16 = vector.broadcast %15 : vector<16x1xf32> to vector<16x64xf32>
    %17 = arith.mulf %7, %16 : vector<16x64xf32>
    %c0_5 = arith.constant 0 : index
    %c0_6 = arith.constant 0 : index
    %18 = vector.load %arg2[%c0_5, %c0_6] : memref<1x64xf32, #tpu.memory_space<vmem>>, vector<1x64xf32>
    %19 = vector.broadcast %18 : vector<1x64xf32> to vector<16x64xf32>
    %20 = arith.mulf %17, %19 : vector<16x64xf32>
    %c0_7 = arith.constant 0 : index
    %c0_8 = arith.constant 0 : index
    %21 = vector.load %arg3[%c0_7, %c0_8] : memref<1x64xf32, #tpu.memory_space<vmem>>, vector<1x64xf32>
    %22 = vector.broadcast %21 : vector<1x64xf32> to vector<16x64xf32>
    %23 = arith.addf %20, %22 : vector<16x64xf32>
    %24 = arith.truncf %23 : vector<16x64xf32> to vector<16x64xbf16>
    %c0_9 = arith.constant 0 : index
    %c0_10 = arith.constant 0 : index
    %25 = vector.load %arg4[%c0_9, %c0_10] : memref<64x128xbf16, #tpu.memory_space<vmem>>, vector<64x128xbf16>
    %cst_11 = arith.constant dense<0.000000e+00> : vector<16x128xf32>
    %26 = tpu.matmul %24, %25, %cst_11 {dimension_numbers = #tpu.dot_dimension_numbers<[1], [0], [0], [1], [0, 0, 1, 1], [], []>} : vector<16x64xbf16>, vector<64x128xbf16>, vector<16x128xf32> -> vector<16x128xf32>
    %27 = arith.truncf %26 : vector<16x128xf32> to vector<16x128xbf16>
    %c0_12 = arith.constant 0 : index
    %c0_13 = arith.constant 0 : index
    %28 = vector.load %arg5[%c0_12, %c0_13] : memref<16x128xbf16, #tpu.memory_space<vmem>>, vector<16x128xbf16>
    tpu.vector_store %arg5[%c0_12, %c0_13], %27 {strides = array<i32>} : memref<16x128xbf16, #tpu.memory_space<vmem>>, vector<16x128xbf16>,
    return
  }
  func.func @transform_0(%arg0: i32) -> (i32, i32) {
    %c0_i32 = arith.constant 0 : i32
    %c0_i32_0 = arith.constant 0 : i32
    return %arg0, %c0_i32 : i32, i32
  }
  func.func @transform_1(%arg0: i32) -> (i32, i32) {
    %c0_i32 = arith.constant 0 : i32
    %c0_i32_0 = arith.constant 0 : i32
    %c0_i32_1 = arith.constant 0 : i32
    return %c0_i32, %c0_i32_0 : i32, i32
  }
  func.func @transform_2(%arg0: i32) -> (i32, i32) {
    %c0_i32 = arith.constant 0 : i32
    %c0_i32_0 = arith.constant 0 : i32
    %c0_i32_1 = arith.constant 0 : i32
    return %c0_i32, %c0_i32_0 : i32, i32
  }
  func.func @transform_3(%arg0: i32) -> (i32, i32) {
    %c0_i32 = arith.constant 0 : i32
    %c0_i32_0 = arith.constant 0 : i32
    %c0_i32_1 = arith.constant 0 : i32
    return %c0_i32, %c0_i32_0 : i32, i32
  }
  func.func @transform_4(%arg0: i32) -> (i32, i32) {
    %c0_i32 = arith.constant 0 : i32
    %c0_i32_0 = arith.constant 0 : i32
    return %arg0, %c0_i32 : i32, i32
  }
}

module attributes {stable_mosaic.version = 11 : i64} {
  func.func @_linear_kernel(%arg0: i32, %arg1: memref<8x64xbf16, #tpu.memory_space<vmem>>, %arg2: memref<64x64xbf16, #tpu.memory_space<vmem>>, %arg3: memref<1x64xf32, #tpu.memory_space<vmem>>, %arg4: memref<8x64xf32, #tpu.memory_space<vmem>>, %arg5: memref<8x64xbf16, #tpu.memory_space<vmem>>) attributes {dimension_semantics = [#tpu.dimension_semantics<parallel>], iteration_bounds = array<i64: 1>, scalar_prefetch = 0 : i64, scratch_operands = 0 : i64, tpu.core_type = #tpu.core_type<tc>, window_params = [{transform_indices = @transform_0, window_bounds = array<i64: 8, 64>}, {pipeline_mode = #tpu.pipeline_mode<synchronous>, transform_indices = @transform_1, window_bounds = array<i64: 64, 64>}, {pipeline_mode = #tpu.pipeline_mode<synchronous>, transform_indices = @transform_2, window_bounds = array<i64: 1, 64>}, {transform_indices = @transform_3, window_bounds = array<i64: 8, 64>}, {transform_indices = @transform_4, window_bounds = array<i64: 8, 64>}]} {
    %c0 = arith.constant 0 : index
    %c0_0 = arith.constant 0 : index
    %0 = vector.load %arg1[%c0, %c0_0] : memref<8x64xbf16, #tpu.memory_space<vmem>>, vector<8x64xbf16>
    %1 = arith.extf %0 : vector<8x64xbf16> to vector<8x64xf32>
    %2 = arith.truncf %1 : vector<8x64xf32> to vector<8x64xbf16>
    %c0_1 = arith.constant 0 : index
    %c0_2 = arith.constant 0 : index
    %3 = vector.load %arg2[%c0_1, %c0_2] : memref<64x64xbf16, #tpu.memory_space<vmem>>, vector<64x64xbf16>
    %cst = arith.constant dense<0.000000e+00> : vector<8x64xf32>
    %4 = tpu.matmul %2, %3, %cst {dimension_numbers = #tpu.dot_dimension_numbers<[1], [0], [0], [1], [0, 0, 1, 1], [], []>} : vector<8x64xbf16>, vector<64x64xbf16>, vector<8x64xf32> -> vector<8x64xf32>
    %c0_3 = arith.constant 0 : index
    %c0_4 = arith.constant 0 : index
    %5 = vector.load %arg3[%c0_3, %c0_4] : memref<1x64xf32, #tpu.memory_space<vmem>>, vector<1x64xf32>
    %6 = vector.broadcast %5 : vector<1x64xf32> to vector<8x64xf32>
    %7 = arith.addf %4, %6 : vector<8x64xf32>
    %c0_5 = arith.constant 0 : index
    %c0_6 = arith.constant 0 : index
    %8 = vector.load %arg4[%c0_5, %c0_6] : memref<8x64xf32, #tpu.memory_space<vmem>>, vector<8x64xf32>
    %9 = arith.addf %7, %8 : vector<8x64xf32>
    %10 = arith.truncf %9 : vector<8x64xf32> to vector<8x64xbf16>
    %c0_7 = arith.constant 0 : index
    %c0_8 = arith.constant 0 : index
    %11 = vector.load %arg5[%c0_7, %c0_8] : memref<8x64xbf16, #tpu.memory_space<vmem>>, vector<8x64xbf16>
    tpu.vector_store %arg5[%c0_7, %c0_8], %10 {strides = array<i32>} : memref<8x64xbf16, #tpu.memory_space<vmem>>, vector<8x64xbf16>,
    return
  }
  func.func @transform_0(%arg0: i32) -> (i32, i32) {
    %c0_i32 = arith.constant 0 : i32
    %c0_i32_0 = arith.constant 0 : i32
    return %arg0, %c0_i32 : i32, i32
  }
  func.func @transform_1(%arg0: i32) -> (i32, i32) {
    %c0_i32 = arith.constant 0 : i32
    %c0_i32_0 = arith.constant 0 : i32
    %c0_i32_1 = arith.constant 0 : i32
    return %c0_i32, %c0_i32_0 : i32, i32
  }
  func.func @transform_2(%arg0: i32) -> (i32, i32) {
    %c0_i32 = arith.constant 0 : i32
    %c0_i32_0 = arith.constant 0 : i32
    %c0_i32_1 = arith.constant 0 : i32
    return %c0_i32, %c0_i32_0 : i32, i32
  }
  func.func @transform_3(%arg0: i32) -> (i32, i32) {
    %c0_i32 = arith.constant 0 : i32
    %c0_i32_0 = arith.constant 0 : i32
    return %arg0, %c0_i32 : i32, i32
  }
  func.func @transform_4(%arg0: i32) -> (i32, i32) {
    %c0_i32 = arith.constant 0 : i32
    %c0_i32_0 = arith.constant 0 : i32
    return %arg0, %c0_i32 : i32, i32
  }
}

module attributes {stable_mosaic.version = 11 : i64} {
  func.func @_dwconv1d_silu_kernel(%arg0: i32, %arg1: memref<1x8x128xbf16, #tpu.memory_space<vmem>>, %arg2: memref<4x128xf32, #tpu.memory_space<vmem>>, %arg3: memref<1x5x128xbf16, #tpu.memory_space<vmem>>) attributes {dimension_semantics = [#tpu.dimension_semantics<parallel>], iteration_bounds = array<i64: 2>, scalar_prefetch = 0 : i64, scratch_operands = 0 : i64, tpu.core_type = #tpu.core_type<tc>, window_params = [{transform_indices = @transform_0, window_bounds = array<i64: 1, 8, 128>}, {pipeline_mode = #tpu.pipeline_mode<synchronous>, transform_indices = @transform_1, window_bounds = array<i64: 4, 128>}, {transform_indices = @transform_2, window_bounds = array<i64: 1, 5, 128>}]} {
    %c0 = arith.constant 0 : index
    %c0_0 = arith.constant 0 : index
    %c0_1 = arith.constant 0 : index
    %0 = vector.load %arg1[%c0, %c0_0, %c0_1] : memref<1x8x128xbf16, #tpu.memory_space<vmem>>, vector<1x8x128xbf16>
    %1 = vector.shape_cast %0 : vector<1x8x128xbf16> to vector<8x128xbf16>
    %2 = arith.extf %1 : vector<8x128xbf16> to vector<8x128xf32>
    %c0_2 = arith.constant 0 : index
    %c0_3 = arith.constant 0 : index
    %3 = vector.load %arg2[%c0_2, %c0_3] : memref<4x128xf32, #tpu.memory_space<vmem>>, vector<4x128xf32>
    %4 = vector.extract_strided_slice %3 {offsets = [0, 0], sizes = [1, 128], strides = [1, 1]} : vector<4x128xf32> to vector<1x128xf32>
    %5 = vector.extract_strided_slice %2 {offsets = [0, 0], sizes = [5, 128], strides = [1, 1]} : vector<8x128xf32> to vector<5x128xf32>
    %6 = vector.broadcast %4 : vector<1x128xf32> to vector<5x128xf32>
    %7 = arith.mulf %6, %5 : vector<5x128xf32>
    %8 = vector.extract_strided_slice %3 {offsets = [1, 0], sizes = [1, 128], strides = [1, 1]} : vector<4x128xf32> to vector<1x128xf32>
    %9 = vector.extract_strided_slice %2 {offsets = [1, 0], sizes = [5, 128], strides = [1, 1]} : vector<8x128xf32> to vector<5x128xf32>
    %10 = vector.broadcast %8 : vector<1x128xf32> to vector<5x128xf32>
    %11 = arith.mulf %10, %9 : vector<5x128xf32>
    %12 = arith.addf %7, %11 : vector<5x128xf32>
    %13 = vector.extract_strided_slice %3 {offsets = [2, 0], sizes = [1, 128], strides = [1, 1]} : vector<4x128xf32> to vector<1x128xf32>
    %14 = vector.extract_strided_slice %2 {offsets = [2, 0], sizes = [5, 128], strides = [1, 1]} : vector<8x128xf32> to vector<5x128xf32>
    %15 = vector.broadcast %13 : vector<1x128xf32> to vector<5x128xf32>
    %16 = arith.mulf %15, %14 : vector<5x128xf32>
    %17 = arith.addf %12, %16 : vector<5x128xf32>
    %18 = vector.extract_strided_slice %3 {offsets = [3, 0], sizes = [1, 128], strides = [1, 1]} : vector<4x128xf32> to vector<1x128xf32>
    %19 = vector.extract_strided_slice %2 {offsets = [3, 0], sizes = [5, 128], strides = [1, 1]} : vector<8x128xf32> to vector<5x128xf32>
    %20 = vector.broadcast %18 : vector<1x128xf32> to vector<5x128xf32>
    %21 = arith.mulf %20, %19 : vector<5x128xf32>
    %22 = arith.addf %17, %21 : vector<5x128xf32>
    %23 = arith.negf %22 : vector<5x128xf32>
    %24 = math.exp %23 : vector<5x128xf32>
    %cst = arith.constant 1.000000e+00 : f32
    %25 = vector.broadcast %cst : f32 to vector<5x128xf32>
    %26 = arith.addf %25, %24 : vector<5x128xf32>
    %27 = arith.divf %25, %26 : vector<5x128xf32>
    %28 = arith.mulf %22, %27 : vector<5x128xf32>
    %29 = arith.truncf %28 : vector<5x128xf32> to vector<5x128xbf16>
    %c0_4 = arith.constant 0 : index
    %c0_5 = arith.constant 0 : index
    %c0_6 = arith.constant 0 : index
    %30 = vector.load %arg3[%c0_4, %c0_5, %c0_6] : memref<1x5x128xbf16, #tpu.memory_space<vmem>>, vector<1x5x128xbf16>
    %31 = vector.shape_cast %30 : vector<1x5x128xbf16> to vector<5x128xbf16>
    %32 = vector.shape_cast %29 : vector<5x128xbf16> to vector<1x5x128xbf16>
    tpu.vector_store %arg3[%c0_4, %c0_5, %c0_6], %32 {strides = array<i32>} : memref<1x5x128xbf16, #tpu.memory_space<vmem>>, vector<1x5x128xbf16>,
    return
  }
  func.func @transform_0(%arg0: i32) -> (i32, i32, i32) {
    %c0_i32 = arith.constant 0 : i32
    %c0_i32_0 = arith.constant 0 : i32
    %c0_i32_1 = arith.constant 0 : i32
    return %arg0, %c0_i32, %c0_i32_0 : i32, i32, i32
  }
  func.func @transform_1(%arg0: i32) -> (i32, i32) {
    %c0_i32 = arith.constant 0 : i32
    %c0_i32_0 = arith.constant 0 : i32
    %c0_i32_1 = arith.constant 0 : i32
    return %c0_i32, %c0_i32_0 : i32, i32
  }
  func.func @transform_2(%arg0: i32) -> (i32, i32, i32) {
    %c0_i32 = arith.constant 0 : i32
    %c0_i32_0 = arith.constant 0 : i32
    %c0_i32_1 = arith.constant 0 : i32
    return %arg0, %c0_i32, %c0_i32_0 : i32, i32, i32
  }
}

module attributes {stable_mosaic.version = 11 : i64} {
  func.func @_linear_kernel(%arg0: i32, %arg1: memref<16x64xbf16, #tpu.memory_space<vmem>>, %arg2: memref<64x96xbf16, #tpu.memory_space<vmem>>, %arg3: memref<1x96xf32, #tpu.memory_space<vmem>>, %arg4: memref<16x96xbf16, #tpu.memory_space<vmem>>) attributes {dimension_semantics = [#tpu.dimension_semantics<parallel>], iteration_bounds = array<i64: 1>, scalar_prefetch = 0 : i64, scratch_operands = 0 : i64, tpu.core_type = #tpu.core_type<tc>, window_params = [{transform_indices = @transform_0, window_bounds = array<i64: 16, 64>}, {pipeline_mode = #tpu.pipeline_mode<synchronous>, transform_indices = @transform_1, window_bounds = array<i64: 64, 96>}, {pipeline_mode = #tpu.pipeline_mode<synchronous>, transform_indices = @transform_2, window_bounds = array<i64: 1, 96>}, {transform_indices = @transform_3, window_bounds = array<i64: 16, 96>}]} {
    %c0 = arith.constant 0 : index
    %c0_0 = arith.constant 0 : index
    %0 = vector.load %arg1[%c0, %c0_0] : memref<16x64xbf16, #tpu.memory_space<vmem>>, vector<16x64xbf16>
    %1 = arith.extf %0 : vector<16x64xbf16> to vector<16x64xf32>
    %2 = arith.truncf %1 : vector<16x64xf32> to vector<16x64xbf16>
    %c0_1 = arith.constant 0 : index
    %c0_2 = arith.constant 0 : index
    %3 = vector.load %arg2[%c0_1, %c0_2] : memref<64x96xbf16, #tpu.memory_space<vmem>>, vector<64x96xbf16>
    %cst = arith.constant dense<0.000000e+00> : vector<16x96xf32>
    %4 = tpu.matmul %2, %3, %cst {dimension_numbers = #tpu.dot_dimension_numbers<[1], [0], [0], [1], [0, 0, 1, 1], [], []>} : vector<16x64xbf16>, vector<64x96xbf16>, vector<16x96xf32> -> vector<16x96xf32>
    %c0_3 = arith.constant 0 : index
    %c0_4 = arith.constant 0 : index
    %5 = vector.load %arg3[%c0_3, %c0_4] : memref<1x96xf32, #tpu.memory_space<vmem>>, vector<1x96xf32>
    %6 = vector.broadcast %5 : vector<1x96xf32> to vector<16x96xf32>
    %7 = arith.addf %4, %6 : vector<16x96xf32>
    %8 = arith.truncf %7 : vector<16x96xf32> to vector<16x96xbf16>
    %c0_5 = arith.constant 0 : index
    %c0_6 = arith.constant 0 : index
    %9 = vector.load %arg4[%c0_5, %c0_6] : memref<16x96xbf16, #tpu.memory_space<vmem>>, vector<16x96xbf16>
    tpu.vector_store %arg4[%c0_5, %c0_6], %8 {strides = array<i32>} : memref<16x96xbf16, #tpu.memory_space<vmem>>, vector<16x96xbf16>,
    return
  }
  func.func @transform_0(%arg0: i32) -> (i32, i32) {
    %c0_i32 = arith.constant 0 : i32
    %c0_i32_0 = arith.constant 0 : i32
    return %arg0, %c0_i32 : i32, i32
  }
  func.func @transform_1(%arg0: i32) -> (i32, i32) {
    %c0_i32 = arith.constant 0 : i32
    %c0_i32_0 = arith.constant 0 : i32
    %c0_i32_1 = arith.constant 0 : i32
    return %c0_i32, %c0_i32_0 : i32, i32
  }
  func.func @transform_2(%arg0: i32) -> (i32, i32) {
    %c0_i32 = arith.constant 0 : i32
    %c0_i32_0 = arith.constant 0 : i32
    %c0_i32_1 = arith.constant 0 : i32
    return %c0_i32, %c0_i32_0 : i32, i32
  }
  func.func @transform_3(%arg0: i32) -> (i32, i32) {
    %c0_i32 = arith.constant 0 : i32
    %c0_i32_0 = arith.constant 0 : i32
    return %arg0, %c0_i32 : i32, i32
  }
}

module attributes {stable_mosaic.version = 11 : i64} {
  func.func @_selective_scan_kernel(%arg0: i32, %arg1: memref<1x8x64xbf16, #tpu.memory_space<vmem>>, %arg2: memref<1x8x64xbf16, #tpu.memory_space<vmem>>, %arg3: memref<1x8x16xbf16, #tpu.memory_space<vmem>>, %arg4: memref<1x8x16xbf16, #tpu.memory_space<vmem>>, %arg5: memref<16x64xf32, #tpu.memory_space<vmem>>, %arg6: memref<1x64xf32, #tpu.memory_space<vmem>>, %arg7: memref<1x64xf32, #tpu.memory_space<vmem>>, %arg8: memref<1x8x64xbf16, #tpu.memory_space<vmem>>, %arg9: memref<8x16x64xf32, #tpu.memory_space<vmem>>) attributes {dimension_semantics = [#tpu.dimension_semantics<parallel>], iteration_bounds = array<i64: 2>, scalar_prefetch = 0 : i64, scratch_operands = 1 : i64, tpu.core_type = #tpu.core_type<tc>, window_params = [{transform_indices = @transform_0, window_bounds = array<i64: 1, 8, 64>}, {transform_indices = @transform_1, window_bounds = array<i64: 1, 8, 64>}, {transform_indices = @transform_2, window_bounds = array<i64: 1, 8, 16>}, {transform_indices = @transform_3, window_bounds = array<i64: 1, 8, 16>}, {pipeline_mode = #tpu.pipeline_mode<synchronous>, transform_indices = @transform_4, window_bounds = array<i64: 16, 64>}, {pipeline_mode = #tpu.pipeline_mode<synchronous>, transform_indices = @transform_5, window_bounds = array<i64: 1, 64>}, {pipeline_mode = #tpu.pipeline_mode<synchronous>, transform_indices = @transform_6, window_bounds = array<i64: 1, 64>}, {transform_indices = @transform_7, window_bounds = array<i64: 1, 8, 64>}]} {
    %c0 = arith.constant 0 : index
    %c0_0 = arith.constant 0 : index
    %0 = vector.load %arg5[%c0, %c0_0] : memref<16x64xf32, #tpu.memory_space<vmem>>, vector<16x64xf32>
    %c0_1 = arith.constant 0 : index
    %c0_2 = arith.constant 0 : index
    %1 = vector.load %arg6[%c0_1, %c0_2] : memref<1x64xf32, #tpu.memory_space<vmem>>, vector<1x64xf32>
    %c0_3 = arith.constant 0 : index
    %c0_4 = arith.constant 0 : index
    %2 = vector.load %arg7[%c0_3, %c0_4] : memref<1x64xf32, #tpu.memory_space<vmem>>, vector<1x64xf32>
    %cst = arith.constant 0.000000e+00 : f32
    %3 = vector.broadcast %cst : f32 to vector<16x64xf32>
    %c0_i32 = arith.constant 0 : i32
    %c8_i32 = arith.constant 8 : i32
    %4 = arith.muli %c0_i32, %c8_i32 : i32
    %5 = tpu.assume_multiple %4, 8 : i32
    %c0_5 = arith.constant 0 : index
    %6 = arith.index_cast %5 : i32 to index
    %c0_6 = arith.constant 0 : index
    %7 = vector.load %arg1[%c0_5, %6, %c0_6] : memref<1x8x64xbf16, #tpu.memory_space<vmem>>, vector<1x8x64xbf16>
    %8 = vector.shape_cast %7 : vector<1x8x64xbf16> to vector<8x64xbf16>
    %9 = arith.extf %8 : vector<8x64xbf16> to vector<8x64xf32>
    %c0_7 = arith.constant 0 : index
    %10 = arith.index_cast %5 : i32 to index
    %c0_8 = arith.constant 0 : index
    %11 = vector.load %arg2[%c0_7, %10, %c0_8] : memref<1x8x64xbf16, #tpu.memory_space<vmem>>, vector<1x8x64xbf16>
    %12 = vector.shape_cast %11 : vector<1x8x64xbf16> to vector<8x64xbf16>
    %13 = arith.extf %12 : vector<8x64xbf16> to vector<8x64xf32>
    %14 = vector.broadcast %2 : vector<1x64xf32> to vector<8x64xf32>
    %15 = arith.addf %13, %14 : vector<8x64xf32>
    %cst_9 = arith.constant 2.000000e+01 : f32
    %16 = vector.broadcast %cst_9 : f32 to vector<8x64xf32>
    %17 = arith.cmpf ogt, %15, %16 : vector<8x64xf32>
    %cst_10 = arith.constant 2.000000e+01 : f32
    %18 = vector.broadcast %cst_10 : f32 to vector<8x64xf32>
    %19 = arith.minimumf %15, %18 : vector<8x64xf32>
    %20 = math.exp %19 : vector<8x64xf32>
    %21 = math.log1p %20 : vector<8x64xf32>
    %22 = arith.select %17, %15, %21 : vector<8x64xi1>, vector<8x64xf32>
    %c0_11 = arith.constant 0 : index
    %23 = arith.index_cast %5 : i32 to index
    %c0_12 = arith.constant 0 : index
    %24 = vector.load %arg3[%c0_11, %23, %c0_12] : memref<1x8x16xbf16, #tpu.memory_space<vmem>>, vector<1x8x16xbf16>
    %25 = vector.shape_cast %24 : vector<1x8x16xbf16> to vector<8x16xbf16>
    %26 = arith.extf %25 : vector<8x16xbf16> to vector<8x16xf32>
    %c0_13 = arith.constant 0 : index
    %27 = arith.index_cast %5 : i32 to index
    %c0_14 = arith.constant 0 : index
    %28 = vector.load %arg4[%c0_13, %27, %c0_14] : memref<1x8x16xbf16, #tpu.memory_space<vmem>>, vector<1x8x16xbf16>
    %29 = vector.shape_cast %28 : vector<1x8x16xbf16> to vector<8x16xbf16>
    %30 = arith.extf %29 : vector<8x16xbf16> to vector<8x16xf32>
    %31 = vector.shape_cast %22 : vector<8x64xf32> to vector<8x1x64xf32>
    %32 = vector.shape_cast %0 : vector<16x64xf32> to vector<1x16x64xf32>
    %33 = vector.broadcast %31 : vector<8x1x64xf32> to vector<8x16x64xf32>
    %34 = vector.broadcast %32 : vector<1x16x64xf32> to vector<8x16x64xf32>
    %35 = arith.mulf %33, %34 : vector<8x16x64xf32>
    %36 = math.exp %35 : vector<8x16x64xf32>
    %37 = vector.shape_cast %26 : vector<8x16xf32> to vector<8x16x1xf32>
    %38 = arith.mulf %22, %9 : vector<8x64xf32>
    %39 = vector.shape_cast %38 : vector<8x64xf32> to vector<8x1x64xf32>
    %40 = vector.broadcast %37 : vector<8x16x1xf32> to vector<8x16x64xf32>
    %41 = vector.broadcast %39 : vector<8x1x64xf32> to vector<8x16x64xf32>
    %42 = arith.mulf %40, %41 : vector<8x16x64xf32>
    %43 = vector.extract_strided_slice %36 {offsets = [0, 0, 0], sizes = [1, 16, 64], strides = [1, 1, 1]} : vector<8x16x64xf32> to vector<1x16x64xf32>
    %44 = vector.shape_cast %43 : vector<1x16x64xf32> to vector<16x64xf32>
    %45 = arith.mulf %44, %3 : vector<16x64xf32>
    %46 = vector.extract_strided_slice %42 {offsets = [0, 0, 0], sizes = [1, 16, 64], strides = [1, 1, 1]} : vector<8x16x64xf32> to vector<1x16x64xf32>
    %47 = vector.shape_cast %46 : vector<1x16x64xf32> to vector<16x64xf32>
    %48 = arith.addf %45, %47 : vector<16x64xf32>
    %c0_15 = arith.constant 0 : index
    %c0_16 = arith.constant 0 : index
    %c0_17 = arith.constant 0 : index
    %49 = vector.load %arg9[%c0_15, %c0_16, %c0_17] : memref<8x16x64xf32, #tpu.memory_space<vmem>>, vector<1x16x64xf32>
    %50 = vector.shape_cast %49 : vector<1x16x64xf32> to vector<16x64xf32>
    %51 = vector.shape_cast %48 : vector<16x64xf32> to vector<1x16x64xf32>
    tpu.vector_store %arg9[%c0_15, %c0_16, %c0_17], %51 {strides = array<i32>} : memref<8x16x64xf32, #tpu.memory_space<vmem>>, vector<1x16x64xf32>,
    %52 = vector.extract_strided_slice %36 {offsets = [1, 0, 0], sizes = [1, 16, 64], strides = [1, 1, 1]} : vector<8x16x64xf32> to vector<1x16x64xf32>
    %53 = vector.shape_cast %52 : vector<1x16x64xf32> to vector<16x64xf32>
    %54 = arith.mulf %53, %48 : vector<16x64xf32>
    %55 = vector.extract_strided_slice %42 {offsets = [1, 0, 0], sizes = [1, 16, 64], strides = [1, 1, 1]} : vector<8x16x64xf32> to vector<1x16x64xf32>
    %56 = vector.shape_cast %55 : vector<1x16x64xf32> to vector<16x64xf32>
    %57 = arith.addf %54, %56 : vector<16x64xf32>
    %c1 = arith.constant 1 : index
    %c0_18 = arith.constant 0 : index
    %c0_19 = arith.constant 0 : index
    %58 = vector.load %arg9[%c1, %c0_18, %c0_19] : memref<8x16x64xf32, #tpu.memory_space<vmem>>, vector<1x16x64xf32>
    %59 = vector.shape_cast %58 : vector<1x16x64xf32> to vector<16x64xf32>
    %60 = vector.shape_cast %57 : vector<16x64xf32> to vector<1x16x64xf32>
    tpu.vector_store %arg9[%c1, %c0_18, %c0_19], %60 {strides = array<i32>} : memref<8x16x64xf32, #tpu.memory_space<vmem>>, vector<1x16x64xf32>,
    %61 = vector.extract_strided_slice %36 {offsets = [2, 0, 0], sizes = [1, 16, 64], strides = [1, 1, 1]} : vector<8x16x64xf32> to vector<1x16x64xf32>
    %62 = vector.shape_cast %61 : vector<1x16x64xf32> to vector<16x64xf32>
    %63 = arith.mulf %62, %57 : vector<16x64xf32>
    %64 = vector.extract_strided_slice %42 {offsets = [2, 0, 0], sizes = [1, 16, 64], strides = [1, 1, 1]} : vector<8x16x64xf32> to vector<1x16x64xf32>
    %65 = vector.shape_cast %64 : vector<1x16x64xf32> to vector<16x64xf32>
    %66 = arith.addf %63, %65 : vector<16x64xf32>
    %c2 = arith.constant 2 : index
    %c0_20 = arith.constant 0 : index
    %c0_21 = arith.constant 0 : index
    %67 = vector.load %arg9[%c2, %c0_20, %c0_21] : memref<8x16x64xf32, #tpu.memory_space<vmem>>, vector<1x16x64xf32>
    %68 = vector.shape_cast %67 : vector<1x16x64xf32> to vector<16x64xf32>
    %69 = vector.shape_cast %66 : vector<16x64xf32> to vector<1x16x64xf32>
    tpu.vector_store %arg9[%c2, %c0_20, %c0_21], %69 {strides = array<i32>} : memref<8x16x64xf32, #tpu.memory_space<vmem>>, vector<1x16x64xf32>,
    %70 = vector.extract_strided_slice %36 {offsets = [3, 0, 0], sizes = [1, 16, 64], strides = [1, 1, 1]} : vector<8x16x64xf32> to vector<1x16x64xf32>
    %71 = vector.shape_cast %70 : vector<1x16x64xf32> to vector<16x64xf32>
    %72 = arith.mulf %71, %66 : vector<16x64xf32>
    %73 = vector.extract_strided_slice %42 {offsets = [3, 0, 0], sizes = [1, 16, 64], strides = [1, 1, 1]} : vector<8x16x64xf32> to vector<1x16x64xf32>
    %74 = vector.shape_cast %73 : vector<1x16x64xf32> to vector<16x64xf32>
    %75 = arith.addf %72, %74 : vector<16x64xf32>
    %c3 = arith.constant 3 : index
    %c0_22 = arith.constant 0 : index
    %c0_23 = arith.constant 0 : index
    %76 = vector.load %arg9[%c3, %c0_22, %c0_23] : memref<8x16x64xf32, #tpu.memory_space<vmem>>, vector<1x16x64xf32>
    %77 = vector.shape_cast %76 : vector<1x16x64xf32> to vector<16x64xf32>
    %78 = vector.shape_cast %75 : vector<16x64xf32> to vector<1x16x64xf32>
    tpu.vector_store %arg9[%c3, %c0_22, %c0_23], %78 {strides = array<i32>} : memref<8x16x64xf32, #tpu.memory_space<vmem>>, vector<1x16x64xf32>,
    %79 = vector.extract_strided_slice %36 {offsets = [4, 0, 0], sizes = [1, 16, 64], strides = [1, 1, 1]} : vector<8x16x64xf32> to vector<1x16x64xf32>
    %80 = vector.shape_cast %79 : vector<1x16x64xf32> to vector<16x64xf32>
    %81 = arith.mulf %80, %75 : vector<16x64xf32>
    %82 = vector.extract_strided_slice %42 {offsets = [4, 0, 0], sizes = [1, 16, 64], strides = [1, 1, 1]} : vector<8x16x64xf32> to vector<1x16x64xf32>
    %83 = vector.shape_cast %82 : vector<1x16x64xf32> to vector<16x64xf32>
    %84 = arith.addf %81, %83 : vector<16x64xf32>
    %c4 = arith.constant 4 : index
    %c0_24 = arith.constant 0 : index
    %c0_25 = arith.constant 0 : index
    %85 = vector.load %arg9[%c4, %c0_24, %c0_25] : memref<8x16x64xf32, #tpu.memory_space<vmem>>, vector<1x16x64xf32>
    %86 = vector.shape_cast %85 : vector<1x16x64xf32> to vector<16x64xf32>
    %87 = vector.shape_cast %84 : vector<16x64xf32> to vector<1x16x64xf32>
    tpu.vector_store %arg9[%c4, %c0_24, %c0_25], %87 {strides = array<i32>} : memref<8x16x64xf32, #tpu.memory_space<vmem>>, vector<1x16x64xf32>,
    %88 = vector.extract_strided_slice %36 {offsets = [5, 0, 0], sizes = [1, 16, 64], strides = [1, 1, 1]} : vector<8x16x64xf32> to vector<1x16x64xf32>
    %89 = vector.shape_cast %88 : vector<1x16x64xf32> to vector<16x64xf32>
    %90 = arith.mulf %89, %84 : vector<16x64xf32>
    %91 = vector.extract_strided_slice %42 {offsets = [5, 0, 0], sizes = [1, 16, 64], strides = [1, 1, 1]} : vector<8x16x64xf32> to vector<1x16x64xf32>
    %92 = vector.shape_cast %91 : vector<1x16x64xf32> to vector<16x64xf32>
    %93 = arith.addf %90, %92 : vector<16x64xf32>
    %c5 = arith.constant 5 : index
    %c0_26 = arith.constant 0 : index
    %c0_27 = arith.constant 0 : index
    %94 = vector.load %arg9[%c5, %c0_26, %c0_27] : memref<8x16x64xf32, #tpu.memory_space<vmem>>, vector<1x16x64xf32>
    %95 = vector.shape_cast %94 : vector<1x16x64xf32> to vector<16x64xf32>
    %96 = vector.shape_cast %93 : vector<16x64xf32> to vector<1x16x64xf32>
    tpu.vector_store %arg9[%c5, %c0_26, %c0_27], %96 {strides = array<i32>} : memref<8x16x64xf32, #tpu.memory_space<vmem>>, vector<1x16x64xf32>,
    %97 = vector.extract_strided_slice %36 {offsets = [6, 0, 0], sizes = [1, 16, 64], strides = [1, 1, 1]} : vector<8x16x64xf32> to vector<1x16x64xf32>
    %98 = vector.shape_cast %97 : vector<1x16x64xf32> to vector<16x64xf32>
    %99 = arith.mulf %98, %93 : vector<16x64xf32>
    %100 = vector.extract_strided_slice %42 {offsets = [6, 0, 0], sizes = [1, 16, 64], strides = [1, 1, 1]} : vector<8x16x64xf32> to vector<1x16x64xf32>
    %101 = vector.shape_cast %100 : vector<1x16x64xf32> to vector<16x64xf32>
    %102 = arith.addf %99, %101 : vector<16x64xf32>
    %c6 = arith.constant 6 : index
    %c0_28 = arith.constant 0 : index
    %c0_29 = arith.constant 0 : index
    %103 = vector.load %arg9[%c6, %c0_28, %c0_29] : memref<8x16x64xf32, #tpu.memory_space<vmem>>, vector<1x16x64xf32>
    %104 = vector.shape_cast %103 : vector<1x16x64xf32> to vector<16x64xf32>
    %105 = vector.shape_cast %102 : vector<16x64xf32> to vector<1x16x64xf32>
    tpu.vector_store %arg9[%c6, %c0_28, %c0_29], %105 {strides = array<i32>} : memref<8x16x64xf32, #tpu.memory_space<vmem>>, vector<1x16x64xf32>,
    %106 = vector.extract_strided_slice %36 {offsets = [7, 0, 0], sizes = [1, 16, 64], strides = [1, 1, 1]} : vector<8x16x64xf32> to vector<1x16x64xf32>
    %107 = vector.shape_cast %106 : vector<1x16x64xf32> to vector<16x64xf32>
    %108 = arith.mulf %107, %102 : vector<16x64xf32>
    %109 = vector.extract_strided_slice %42 {offsets = [7, 0, 0], sizes = [1, 16, 64], strides = [1, 1, 1]} : vector<8x16x64xf32> to vector<1x16x64xf32>
    %110 = vector.shape_cast %109 : vector<1x16x64xf32> to vector<16x64xf32>
    %111 = arith.addf %108, %110 : vector<16x64xf32>
    %c7 = arith.constant 7 : index
    %c0_30 = arith.constant 0 : index
    %c0_31 = arith.constant 0 : index
    %112 = vector.load %arg9[%c7, %c0_30, %c0_31] : memref<8x16x64xf32, #tpu.memory_space<vmem>>, vector<1x16x64xf32>
    %113 = vector.shape_cast %112 : vector<1x16x64xf32> to vector<16x64xf32>
    %114 = vector.shape_cast %111 : vector<16x64xf32> to vector<1x16x64xf32>
    tpu.vector_store %arg9[%c7, %c0_30, %c0_31], %114 {strides = array<i32>} : memref<8x16x64xf32, #tpu.memory_space<vmem>>, vector<1x16x64xf32>,
    %115 = vector.shape_cast %30 : vector<8x16xf32> to vector<8x16x1xf32>
    %c0_32 = arith.constant 0 : index
    %c0_33 = arith.constant 0 : index
    %c0_34 = arith.constant 0 : index
    %116 = vector.load %arg9[%c0_32, %c0_33, %c0_34] : memref<8x16x64xf32, #tpu.memory_space<vmem>>, vector<8x16x64xf32>
    %117 = vector.broadcast %115 : vector<8x16x1xf32> to vector<8x16x64xf32>
    %118 = arith.mulf %117, %116 : vector<8x16x64xf32>
    %cst_35 = arith.constant dense<0.000000e+00> : vector<8x64xf32>
    %119 = vector.multi_reduction <add>, %118, %cst_35 [1] : vector<8x16x64xf32> to vector<8x64xf32>
    %120 = vector.broadcast %1 : vector<1x64xf32> to vector<8x64xf32>
    %121 = arith.mulf %120, %9 : vector<8x64xf32>
    %122 = arith.addf %119, %121 : vector<8x64xf32>
    %123 = arith.truncf %122 : vector<8x64xf32> to vector<8x64xbf16>
    %c0_36 = arith.constant 0 : index
    %124 = arith.index_cast %5 : i32 to index
    %c0_37 = arith.constant 0 : index
    %125 = vector.load %arg8[%c0_36, %124, %c0_37] : memref<1x8x64xbf16, #tpu.memory_space<vmem>>, vector<1x8x64xbf16>
    %126 = vector.shape_cast %125 : vector<1x8x64xbf16> to vector<8x64xbf16>
    %127 = vector.shape_cast %123 : vector<8x64xbf16> to vector<1x8x64xbf16>
    tpu.vector_store %arg8[%c0_36, %124, %c0_37], %127 {strides = array<i32>} : memref<1x8x64xbf16, #tpu.memory_space<vmem>>, vector<1x8x64xbf16>,
    %c1_i32 = arith.constant 1 : i32
    return
  }
  func.func @transform_0(%arg0: i32) -> (i32, i32, i32) {
    %c0_i32 = arith.constant 0 : i32
    %c0_i32_0 = arith.constant 0 : i32
    %c0_i32_1 = arith.constant 0 : i32
    return %arg0, %c0_i32, %c0_i32_0 : i32, i32, i32
  }
  func.func @transform_1(%arg0: i32) -> (i32, i32, i32) {
    %c0_i32 = arith.constant 0 : i32
    %c0_i32_0 = arith.constant 0 : i32
    %c0_i32_1 = arith.constant 0 : i32
    return %arg0, %c0_i32, %c0_i32_0 : i32, i32, i32
  }
  func.func @transform_2(%arg0: i32) -> (i32, i32, i32) {
    %c0_i32 = arith.constant 0 : i32
    %c0_i32_0 = arith.constant 0 : i32
    %c0_i32_1 = arith.constant 0 : i32
    return %arg0, %c0_i32, %c0_i32_0 : i32, i32, i32
  }
  func.func @transform_3(%arg0: i32) -> (i32, i32, i32) {
    %c0_i32 = arith.constant 0 : i32
    %c0_i32_0 = arith.constant 0 : i32
    %c0_i32_1 = arith.constant 0 : i32
    return %arg0, %c0_i32, %c0_i32_0 : i32, i32, i32
  }
  func.func @transform_4(%arg0: i32) -> (i32, i32) {
    %c0_i32 = arith.constant 0 : i32
    %c0_i32_0 = arith.constant 0 : i32
    %c0_i32_1 = arith.constant 0 : i32
    return %c0_i32, %c0_i32_0 : i32, i32
  }
  func.func @transform_5(%arg0: i32) -> (i32, i32) {
    %c0_i32 = arith.constant 0 : i32
    %c0_i32_0 = arith.constant 0 : i32
    %c0_i32_1 = arith.constant 0 : i32
    return %c0_i32, %c0_i32_0 : i32, i32
  }
  func.func @transform_6(%arg0: i32) -> (i32, i32) {
    %c0_i32 = arith.constant 0 : i32
    %c0_i32_0 = arith.constant 0 : i32
    %c0_i32_1 = arith.constant 0 : i32
    return %c0_i32, %c0_i32_0 : i32, i32
  }
  func.func @transform_7(%arg0: i32) -> (i32, i32, i32) {
    %c0_i32 = arith.constant 0 : i32
    %c0_i32_0 = arith.constant 0 : i32
    %c0_i32_1 = arith.constant 0 : i32
    return %arg0, %c0_i32, %c0_i32_0 : i32, i32, i32
  }
}

module attributes {stable_mosaic.version = 11 : i64} {
  func.func @_linear_kernel(%arg0: i32, %arg1: memref<16x128xbf16, #tpu.memory_space<vmem>>, %arg2: memref<128x64xbf16, #tpu.memory_space<vmem>>, %arg3: memref<16x64xbf16, #tpu.memory_space<vmem>>, %arg4: memref<16x64xbf16, #tpu.memory_space<vmem>>) attributes {dimension_semantics = [#tpu.dimension_semantics<parallel>], iteration_bounds = array<i64: 1>, scalar_prefetch = 0 : i64, scratch_operands = 0 : i64, tpu.core_type = #tpu.core_type<tc>, window_params = [{transform_indices = @transform_0, window_bounds = array<i64: 16, 128>}, {pipeline_mode = #tpu.pipeline_mode<synchronous>, transform_indices = @transform_1, window_bounds = array<i64: 128, 64>}, {transform_indices = @transform_2, window_bounds = array<i64: 16, 64>}, {transform_indices = @transform_3, window_bounds = array<i64: 16, 64>}]} {
    %c0 = arith.constant 0 : index
    %c0_0 = arith.constant 0 : index
    %0 = vector.load %arg1[%c0, %c0_0] : memref<16x128xbf16, #tpu.memory_space<vmem>>, vector<16x128xbf16>
    %1 = arith.extf %0 : vector<16x128xbf16> to vector<16x128xf32>
    %2 = arith.truncf %1 : vector<16x128xf32> to vector<16x128xbf16>
    %c0_1 = arith.constant 0 : index
    %c0_2 = arith.constant 0 : index
    %3 = vector.load %arg2[%c0_1, %c0_2] : memref<128x64xbf16, #tpu.memory_space<vmem>>, vector<128x64xbf16>
    %cst = arith.constant dense<0.000000e+00> : vector<16x64xf32>
    %4 = tpu.matmul %2, %3, %cst {dimension_numbers = #tpu.dot_dimension_numbers<[1], [0], [0], [1], [0, 0, 1, 1], [], []>} : vector<16x128xbf16>, vector<128x64xbf16>, vector<16x64xf32> -> vector<16x64xf32>
    %c0_3 = arith.constant 0 : index
    %c0_4 = arith.constant 0 : index
    %5 = vector.load %arg3[%c0_3, %c0_4] : memref<16x64xbf16, #tpu.memory_space<vmem>>, vector<16x64xbf16>
    %6 = arith.extf %5 : vector<16x64xbf16> to vector<16x64xf32>
    %7 = arith.addf %4, %6 : vector<16x64xf32>
    %8 = arith.truncf %7 : vector<16x64xf32> to vector<16x64xbf16>
    %c0_5 = arith.constant 0 : index
    %c0_6 = arith.constant 0 : index
    %9 = vector.load %arg4[%c0_5, %c0_6] : memref<16x64xbf16, #tpu.memory_space<vmem>>, vector<16x64xbf16>
    tpu.vector_store %arg4[%c0_5, %c0_6], %8 {strides = array<i32>} : memref<16x64xbf16, #tpu.memory_space<vmem>>, vector<16x64xbf16>,
    return
  }
  func.func @transform_0(%arg0: i32) -> (i32, i32) {
    %c0_i32 = arith.constant 0 : i32
    %c0_i32_0 = arith.constant 0 : i32
    return %arg0, %c0_i32 : i32, i32
  }
  func.func @transform_1(%arg0: i32) -> (i32, i32) {
    %c0_i32 = arith.constant 0 : i32
    %c0_i32_0 = arith.constant 0 : i32
    %c0_i32_1 = arith.constant 0 : i32
    return %c0_i32, %c0_i32_0 : i32, i32
  }
  func.func @transform_2(%arg0: i32) -> (i32, i32) {
    %c0_i32 = arith.constant 0 : i32
    %c0_i32_0 = arith.constant 0 : i32
    return %arg0, %c0_i32 : i32, i32
  }
  func.func @transform_3(%arg0: i32) -> (i32, i32) {
    %c0_i32 = arith.constant 0 : i32
    %c0_i32_0 = arith.constant 0 : i32
    return %arg0, %c0_i32 : i32, i32
  }
}

module attributes {stable_mosaic.version = 11 : i64} {
  func.func @_linear_kernel(%arg0: i32, %arg1: memref<16x64xbf16, #tpu.memory_space<vmem>>, %arg2: memref<1x64xf32, #tpu.memory_space<vmem>>, %arg3: memref<1x64xf32, #tpu.memory_space<vmem>>, %arg4: memref<64x192xbf16, #tpu.memory_space<vmem>>, %arg5: memref<16x192xbf16, #tpu.memory_space<vmem>>) attributes {dimension_semantics = [#tpu.dimension_semantics<parallel>], iteration_bounds = array<i64: 1>, scalar_prefetch = 0 : i64, scratch_operands = 0 : i64, tpu.core_type = #tpu.core_type<tc>, window_params = [{transform_indices = @transform_0, window_bounds = array<i64: 16, 64>}, {pipeline_mode = #tpu.pipeline_mode<synchronous>, transform_indices = @transform_1, window_bounds = array<i64: 1, 64>}, {pipeline_mode = #tpu.pipeline_mode<synchronous>, transform_indices = @transform_2, window_bounds = array<i64: 1, 64>}, {pipeline_mode = #tpu.pipeline_mode<synchronous>, transform_indices = @transform_3, window_bounds = array<i64: 64, 192>}, {transform_indices = @transform_4, window_bounds = array<i64: 16, 192>}]} {
    %c0 = arith.constant 0 : index
    %c0_0 = arith.constant 0 : index
    %0 = vector.load %arg1[%c0, %c0_0] : memref<16x64xbf16, #tpu.memory_space<vmem>>, vector<16x64xbf16>
    %1 = arith.extf %0 : vector<16x64xbf16> to vector<16x64xf32>
    %cst = arith.constant dense<0.000000e+00> : vector<16xf32>
    %2 = vector.multi_reduction <add>, %1, %cst [1] : vector<16x64xf32> to vector<16xf32>
    %3 = vector.shape_cast %2 : vector<16xf32> to vector<16x1xf32>
    %cst_1 = arith.constant 6.400000e+01 : f32
    %4 = vector.broadcast %cst_1 : f32 to vector<16x1xf32>
    %5 = arith.divf %3, %4 : vector<16x1xf32>
    %6 = vector.broadcast %5 : vector<16x1xf32> to vector<16x64xf32>
    %7 = arith.subf %1, %6 : vector<16x64xf32>
    %8 = arith.mulf %7, %7 : vector<16x64xf32>
    %cst_2 = arith.constant dense<0.000000e+00> : vector<16xf32>
    %9 = vector.multi_reduction <add>, %8, %cst_2 [1] : vector<16x64xf32> to vector<16xf32>
    %10 = vector.shape_cast %9 : vector<16xf32> to vector<16x1xf32>
    %cst_3 = arith.constant 6.400000e+01 : f32
    %11 = vector.broadcast %cst_3 : f32 to vector<16x1xf32>
    %12 = arith.divf %10, %11 : vector<16x1xf32>
    %cst_4 = arith.constant 9.99999974E-6 : f32
    %13 = vector.broadcast %cst_4 : f32 to vector<16x1xf32>
    %14 = arith.addf %12, %13 : vector<16x1xf32>
    %15 = math.rsqrt %14 : vector<16x1xf32>
    %16 = vector.broadcast %15 : vector<16x1xf32> to vector<16x64xf32>
    %17 = arith.mulf %7, %16 : vector<16x64xf32>
    %c0_5 = arith.constant 0 : index
    %c0_6 = arith.constant 0 : index
    %18 = vector.load %arg2[%c0_5, %c0_6] : memref<1x64xf32, #tpu.memory_space<vmem>>, vector<1x64xf32>
    %19 = vector.broadcast %18 : vector<1x64xf32> to vector<16x64xf32>
    %20 = arith.mulf %17, %19 : vector<16x64xf32>
    %c0_7 = arith.constant 0 : index
    %c0_8 = arith.constant 0 : index
    %21 = vector.load %arg3[%c0_7, %c0_8] : memref<1x64xf32, #tpu.memory_space<vmem>>, vector<1x64xf32>
    %22 = vector.broadcast %21 : vector<1x64xf32> to vector<16x64xf32>
    %23 = arith.addf %20, %22 : vector<16x64xf32>
    %24 = arith.truncf %23 : vector<16x64xf32> to vector<16x64xbf16>
    %c0_9 = arith.constant 0 : index
    %c0_10 = arith.constant 0 : index
    %25 = vector.load %arg4[%c0_9, %c0_10] : memref<64x192xbf16, #tpu.memory_space<vmem>>, vector<64x192xbf16>
    %cst_11 = arith.constant dense<0.000000e+00> : vector<16x192xf32>
    %26 = tpu.matmul %24, %25, %cst_11 {dimension_numbers = #tpu.dot_dimension_numbers<[1], [0], [0], [1], [0, 0, 1, 1], [], []>} : vector<16x64xbf16>, vector<64x192xbf16>, vector<16x192xf32> -> vector<16x192xf32>
    %27 = arith.truncf %26 : vector<16x192xf32> to vector<16x192xbf16>
    %c0_12 = arith.constant 0 : index
    %c0_13 = arith.constant 0 : index
    %28 = vector.load %arg5[%c0_12, %c0_13] : memref<16x192xbf16, #tpu.memory_space<vmem>>, vector<16x192xbf16>
    tpu.vector_store %arg5[%c0_12, %c0_13], %27 {strides = array<i32>} : memref<16x192xbf16, #tpu.memory_space<vmem>>, vector<16x192xbf16>,
    return
  }
  func.func @transform_0(%arg0: i32) -> (i32, i32) {
    %c0_i32 = arith.constant 0 : i32
    %c0_i32_0 = arith.constant 0 : i32
    return %arg0, %c0_i32 : i32, i32
  }
  func.func @transform_1(%arg0: i32) -> (i32, i32) {
    %c0_i32 = arith.constant 0 : i32
    %c0_i32_0 = arith.constant 0 : i32
    %c0_i32_1 = arith.constant 0 : i32
    return %c0_i32, %c0_i32_0 : i32, i32
  }
  func.func @transform_2(%arg0: i32) -> (i32, i32) {
    %c0_i32 = arith.constant 0 : i32
    %c0_i32_0 = arith.constant 0 : i32
    %c0_i32_1 = arith.constant 0 : i32
    return %c0_i32, %c0_i32_0 : i32, i32
  }
  func.func @transform_3(%arg0: i32) -> (i32, i32) {
    %c0_i32 = arith.constant 0 : i32
    %c0_i32_0 = arith.constant 0 : i32
    %c0_i32_1 = arith.constant 0 : i32
    return %c0_i32, %c0_i32_0 : i32, i32
  }
  func.func @transform_4(%arg0: i32) -> (i32, i32) {
    %c0_i32 = arith.constant 0 : i32
    %c0_i32_0 = arith.constant 0 : i32
    return %arg0, %c0_i32 : i32, i32
  }
}

module attributes {stable_mosaic.version = 11 : i64} {
  func.func @_mha_kernel(%arg0: i32, %arg1: i32, %arg2: memref<1x1x1x5x16xbf16, #tpu.memory_space<vmem>>, %arg3: memref<1x1x1x5x16xbf16, #tpu.memory_space<vmem>>, %arg4: memref<1x1x1x5x16xbf16, #tpu.memory_space<vmem>>, %arg5: memref<1x16x64xbf16, #tpu.memory_space<vmem>>, %arg6: memref<1x64xf32, #tpu.memory_space<vmem>>, %arg7: memref<1x5x64xbf16, #tpu.memory_space<vmem>>, %arg8: memref<1x5x64xbf16, #tpu.memory_space<vmem>>, %arg9: memref<1x1x5x5xf32, #tpu.memory_space<vmem>>, %arg10: memref<5x64xf32, #tpu.memory_space<vmem>>) attributes {dimension_semantics = [#tpu.dimension_semantics<parallel>, #tpu.dimension_semantics<arbitrary>], iteration_bounds = array<i64: 2, 4>, scalar_prefetch = 0 : i64, scratch_operands = 1 : i64, tpu.core_type = #tpu.core_type<tc>, window_params = [{transform_indices = @transform_0, window_bounds = array<i64: 1, 1, 1, 5, 16>}, {transform_indices = @transform_1, window_bounds = array<i64: 1, 1, 1, 5, 16>}, {transform_indices = @transform_2, window_bounds = array<i64: 1, 1, 1, 5, 16>}, {transform_indices = @transform_3, window_bounds = array<i64: 1, 16, 64>}, {pipeline_mode = #tpu.pipeline_mode<synchronous>, transform_indices = @transform_4, window_bounds = array<i64: 1, 64>}, {transform_indices = @transform_5, window_bounds = array<i64: 1, 5, 64>}, {transform_indices = @transform_6, window_bounds = array<i64: 1, 5, 64>}, {transform_indices = @transform_7, window_bounds = array<i64: 1, 1, 5, 5>}]} {
    %c0_i32 = arith.constant 0 : i32
    %0 = arith.cmpi eq, %arg1, %c0_i32 : i32
    %1 = arith.extui %0 : i1 to i32
    %c0_i32_0 = arith.constant 0 : i32
    %2 = arith.cmpi ne, %1, %c0_i32_0 : i32
    scf.if %2 {
      %c0_32 = arith.constant 0 : index
      %c0_33 = arith.constant 0 : index
      %37 = vector.load %arg6[%c0_32, %c0_33] : memref<1x64xf32, #tpu.memory_space<vmem>>, vector<1x64xf32>
      %38 = vector.shape_cast %37 : vector<1x64xf32> to vector<1x64xf32>
      %39 = vector.broadcast %38 : vector<1x64xf32> to vector<5x64xf32>
      %c0_34 = arith.constant 0 : index
      %c0_35 = arith.constant 0 : index
      %c0_36 = arith.constant 0 : index
      %40 = vector.load %arg7[%c0_34, %c0_35, %c0_36] : memref<1x5x64xbf16, #tpu.memory_space<vmem>>, vector<1x5x64xbf16>
      %41 = vector.shape_cast %40 : vector<1x5x64xbf16> to vector<5x64xbf16>
      %42 = arith.extf %41 : vector<5x64xbf16> to vector<5x64xf32>
      %43 = arith.addf %39, %42 : vector<5x64xf32>
      %c0_37 = arith.constant 0 : index
      %c0_38 = arith.constant 0 : index
      %44 = vector.load %arg10[%c0_37, %c0_38] : memref<5x64xf32, #tpu.memory_space<vmem>>, vector<5x64xf32>
      tpu.vector_store %arg10[%c0_37, %c0_38], %43 {strides = array<i32>} : memref<5x64xf32, #tpu.memory_space<vmem>>, vector<5x64xf32>,
    } else {
    }
    %c0 = arith.constant 0 : index
    %c0_1 = arith.constant 0 : index
    %c0_2 = arith.constant 0 : index
    %c0_3 = arith.constant 0 : index
    %c0_4 = arith.constant 0 : index
    %3 = vector.load %arg2[%c0, %c0_1, %c0_2, %c0_3, %c0_4] : memref<1x1x1x5x16xbf16, #tpu.memory_space<vmem>>, vector<1x1x1x5x16xbf16>
    %4 = vector.shape_cast %3 : vector<1x1x1x5x16xbf16> to vector<5x16xbf16>
    %c0_5 = arith.constant 0 : index
    %c0_6 = arith.constant 0 : index
    %c0_7 = arith.constant 0 : index
    %c0_8 = arith.constant 0 : index
    %c0_9 = arith.constant 0 : index
    %5 = vector.load %arg3[%c0_5, %c0_6, %c0_7, %c0_8, %c0_9] : memref<1x1x1x5x16xbf16, #tpu.memory_space<vmem>>, vector<1x1x1x5x16xbf16>
    %6 = vector.shape_cast %5 : vector<1x1x1x5x16xbf16> to vector<5x16xbf16>
    %7 = tpu.transpose %6, [1, 0] : vector<5x16xbf16> -> vector<16x5xbf16>
    %cst = arith.constant dense<0.000000e+00> : vector<5x5xf32>
    %8 = tpu.matmul %4, %7, %cst {dimension_numbers = #tpu.dot_dimension_numbers<[1], [0], [0], [1], [0, 0, 1, 1], [], []>} : vector<5x16xbf16>, vector<16x5xbf16>, vector<5x5xf32> -> vector<5x5xf32>
    %cst_10 = arith.constant 2.500000e-01 : f32
    %9 = vector.broadcast %cst_10 : f32 to vector<5x5xf32>
    %10 = arith.mulf %8, %9 : vector<5x5xf32>
    %cst_11 = arith.constant dense<0xFF800000> : vector<5xf32>
    %11 = vector.multi_reduction <maximumf>, %10, %cst_11 [1] : vector<5x5xf32> to vector<5xf32>
    %12 = vector.shape_cast %11 : vector<5xf32> to vector<5x1xf32>
    %13 = vector.broadcast %12 : vector<5x1xf32> to vector<5x5xf32>
    %14 = arith.subf %10, %13 : vector<5x5xf32>
    %15 = math.exp %14 : vector<5x5xf32>
    %cst_12 = arith.constant dense<0.000000e+00> : vector<5xf32>
    %16 = vector.multi_reduction <add>, %15, %cst_12 [1] : vector<5x5xf32> to vector<5xf32>
    %17 = vector.shape_cast %16 : vector<5xf32> to vector<5x1xf32>
    %18 = vector.broadcast %17 : vector<5x1xf32> to vector<5x5xf32>
    %19 = arith.divf %15, %18 : vector<5x5xf32>
    %c0_13 = arith.constant 0 : index
    %c0_14 = arith.constant 0 : index
    %c0_15 = arith.constant 0 : index
    %c0_16 = arith.constant 0 : index
    %20 = vector.load %arg9[%c0_13, %c0_14, %c0_15, %c0_16] : memref<1x1x5x5xf32, #tpu.memory_space<vmem>>, vector<1x1x5x5xf32>
    %21 = vector.shape_cast %20 : vector<1x1x5x5xf32> to vector<5x5xf32>
    %22 = vector.shape_cast %19 : vector<5x5xf32> to vector<1x1x5x5xf32>
    tpu.vector_store %arg9[%c0_13, %c0_14, %c0_15, %c0_16], %22 {strides = array<i32>} : memref<1x1x5x5xf32, #tpu.memory_space<vmem>>, vector<1x1x5x5xf32>,
    %23 = arith.truncf %19 : vector<5x5xf32> to vector<5x5xbf16>
    %c0_17 = arith.constant 0 : index
    %c0_18 = arith.constant 0 : index
    %c0_19 = arith.constant 0 : index
    %c0_20 = arith.constant 0 : index
    %c0_21 = arith.constant 0 : index
    %24 = vector.load %arg4[%c0_17, %c0_18, %c0_19, %c0_20, %c0_21] : memref<1x1x1x5x16xbf16, #tpu.memory_space<vmem>>, vector<1x1x1x5x16xbf16>
    %25 = vector.shape_cast %24 : vector<1x1x1x5x16xbf16> to vector<5x16xbf16>
    %cst_22 = arith.constant dense<0.000000e+00> : vector<5x16xf32>
    %26 = tpu.matmul %23, %25, %cst_22 {dimension_numbers = #tpu.dot_dimension_numbers<[1], [0], [0], [1], [0, 0, 1, 1], [], []>} : vector<5x5xbf16>, vector<5x16xbf16>, vector<5x16xf32> -> vector<5x16xf32>
    %c0_23 = arith.constant 0 : index
    %c0_24 = arith.constant 0 : index
    %27 = vector.load %arg10[%c0_23, %c0_24] : memref<5x64xf32, #tpu.memory_space<vmem>>, vector<5x64xf32>
    %28 = arith.truncf %26 : vector<5x16xf32> to vector<5x16xbf16>
    %c0_25 = arith.constant 0 : index
    %c0_26 = arith.constant 0 : index
    %c0_27 = arith.constant 0 : index
    %29 = vector.load %arg5[%c0_25, %c0_26, %c0_27] : memref<1x16x64xbf16, #tpu.memory_space<vmem>>, vector<1x16x64xbf16>
    %30 = vector.shape_cast %29 : vector<1x16x64xbf16> to vector<16x64xbf16>
    %cst_28 = arith.constant dense<0.000000e+00> : vector<5x64xf32>
    %31 = tpu.matmul %28, %30, %cst_28 {dimension_numbers = #tpu.dot_dimension_numbers<[1], [0], [0], [1], [0, 0, 1, 1], [], []>} : vector<5x16xbf16>, vector<16x64xbf16>, vector<5x64xf32> -> vector<5x64xf32>
    %32 = arith.addf %27, %31 : vector<5x64xf32>
    %c0_29 = arith.constant 0 : index
    %c0_30 = arith.constant 0 : index
    %33 = vector.load %arg10[%c0_29, %c0_30] : memref<5x64xf32, #tpu.memory_space<vmem>>, vector<5x64xf32>
    tpu.vector_store %arg10[%c0_29, %c0_30], %32 {strides = array<i32>} : memref<5x64xf32, #tpu.memory_space<vmem>>, vector<5x64xf32>,
    %c3_i32 = arith.constant 3 : i32
    %34 = arith.cmpi eq, %arg1, %c3_i32 : i32
    %35 = arith.extui %34 : i1 to i32
    %c0_i32_31 = arith.constant 0 : i32
    %36 = arith.cmpi ne, %35, %c0_i32_31 : i32
    scf.if %36 {
      %c0_32 = arith.constant 0 : index
      %c0_33 = arith.constant 0 : index
      %37 = vector.load %arg10[%c0_32, %c0_33] : memref<5x64xf32, #tpu.memory_space<vmem>>, vector<5x64xf32>
      %38 = arith.truncf %37 : vector<5x64xf32> to vector<5x64xbf16>
      %c0_34 = arith.constant 0 : index
      %c0_35 = arith.constant 0 : index
      %c0_36 = arith.constant 0 : index
      %39 = vector.load %arg8[%c0_34, %c0_35, %c0_36] : memref<1x5x64xbf16, #tpu.memory_space<vmem>>, vector<1x5x64xbf16>
      %40 = vector.shape_cast %39 : vector<1x5x64xbf16> to vector<5x64xbf16>
      %41 = vector.shape_cast %38 : vector<5x64xbf16> to vector<1x5x64xbf16>
      tpu.vector_store %arg8[%c0_34, %c0_35, %c0_36], %41 {strides = array<i32>} : memref<1x5x64xbf16, #tpu.memory_space<vmem>>, vector<1x5x64xbf16>,
    } else {
    }
    return
  }
  func.func @transform_0(%arg0: i32, %arg1: i32) -> (i32, i32, i32, i32, i32) {
    %c0_i32 = arith.constant 0 : i32
    %c0_i32_0 = arith.constant 0 : i32
    %c0_i32_1 = arith.constant 0 : i32
    %c0_i32_2 = arith.constant 0 : i32
    return %c0_i32, %arg0, %arg1, %c0_i32_0, %c0_i32_1 : i32, i32, i32, i32, i32
  }
  func.func @transform_1(%arg0: i32, %arg1: i32) -> (i32, i32, i32, i32, i32) {
    %c1_i32 = arith.constant 1 : i32
    %c0_i32 = arith.constant 0 : i32
    %c0_i32_0 = arith.constant 0 : i32
    %c0_i32_1 = arith.constant 0 : i32
    return %c1_i32, %arg0, %arg1, %c0_i32, %c0_i32_0 : i32, i32, i32, i32, i32
  }
  func.func @transform_2(%arg0: i32, %arg1: i32) -> (i32, i32, i32, i32, i32) {
    %c2_i32 = arith.constant 2 : i32
    %c0_i32 = arith.constant 0 : i32
    %c0_i32_0 = arith.constant 0 : i32
    %c0_i32_1 = arith.constant 0 : i32
    return %c2_i32, %arg0, %arg1, %c0_i32, %c0_i32_0 : i32, i32, i32, i32, i32
  }
  func.func @transform_3(%arg0: i32, %arg1: i32) -> (i32, i32, i32) {
    %c0_i32 = arith.constant 0 : i32
    %c0_i32_0 = arith.constant 0 : i32
    %c0_i32_1 = arith.constant 0 : i32
    return %arg1, %c0_i32, %c0_i32_0 : i32, i32, i32
  }
  func.func @transform_4(%arg0: i32, %arg1: i32) -> (i32, i32) {
    %c0_i32 = arith.constant 0 : i32
    %c0_i32_0 = arith.constant 0 : i32
    %c0_i32_1 = arith.constant 0 : i32
    return %c0_i32, %c0_i32_0 : i32, i32
  }
  func.func @transform_5(%arg0: i32, %arg1: i32) -> (i32, i32, i32) {
    %c0_i32 = arith.constant 0 : i32
    %c0_i32_0 = arith.constant 0 : i32
    %c0_i32_1 = arith.constant 0 : i32
    return %arg0, %c0_i32, %c0_i32_0 : i32, i32, i32
  }
  func.func @transform_6(%arg0: i32, %arg1: i32) -> (i32, i32, i32) {
    %c0_i32 = arith.constant 0 : i32
    %c0_i32_0 = arith.constant 0 : i32
    %c0_i32_1 = arith.constant 0 : i32
    return %arg0, %c0_i32, %c0_i32_0 : i32, i32, i32
  }
  func.func @transform_7(%arg0: i32, %arg1: i32) -> (i32, i32, i32, i32) {
    %c0_i32 = arith.constant 0 : i32
    %c0_i32_0 = arith.constant 0 : i32
    %c0_i32_1 = arith.constant 0 : i32
    return %arg0, %arg1, %c0_i32, %c0_i32_0 : i32, i32, i32, i32
  }
}

module attributes {stable_mosaic.version = 11 : i64} {
  func.func @_linear_kernel(%arg0: i32, %arg1: memref<8x64xbf16, #tpu.memory_space<vmem>>, %arg2: memref<1x64xf32, #tpu.memory_space<vmem>>, %arg3: memref<1x64xf32, #tpu.memory_space<vmem>>, %arg4: memref<64x256xbf16, #tpu.memory_space<vmem>>, %arg5: memref<1x256xf32, #tpu.memory_space<vmem>>, %arg6: memref<8x256xbf16, #tpu.memory_space<vmem>>) attributes {dimension_semantics = [#tpu.dimension_semantics<parallel>], iteration_bounds = array<i64: 1>, scalar_prefetch = 0 : i64, scratch_operands = 0 : i64, tpu.core_type = #tpu.core_type<tc>, window_params = [{transform_indices = @transform_0, window_bounds = array<i64: 8, 64>}, {pipeline_mode = #tpu.pipeline_mode<synchronous>, transform_indices = @transform_1, window_bounds = array<i64: 1, 64>}, {pipeline_mode = #tpu.pipeline_mode<synchronous>, transform_indices = @transform_2, window_bounds = array<i64: 1, 64>}, {pipeline_mode = #tpu.pipeline_mode<synchronous>, transform_indices = @transform_3, window_bounds = array<i64: 64, 256>}, {pipeline_mode = #tpu.pipeline_mode<synchronous>, transform_indices = @transform_4, window_bounds = array<i64: 1, 256>}, {transform_indices = @transform_5, window_bounds = array<i64: 8, 256>}]} {
    %c0 = arith.constant 0 : index
    %c0_0 = arith.constant 0 : index
    %0 = vector.load %arg1[%c0, %c0_0] : memref<8x64xbf16, #tpu.memory_space<vmem>>, vector<8x64xbf16>
    %1 = arith.extf %0 : vector<8x64xbf16> to vector<8x64xf32>
    %cst = arith.constant dense<0.000000e+00> : vector<8xf32>
    %2 = vector.multi_reduction <add>, %1, %cst [1] : vector<8x64xf32> to vector<8xf32>
    %3 = vector.shape_cast %2 : vector<8xf32> to vector<8x1xf32>
    %cst_1 = arith.constant 6.400000e+01 : f32
    %4 = vector.broadcast %cst_1 : f32 to vector<8x1xf32>
    %5 = arith.divf %3, %4 : vector<8x1xf32>
    %6 = vector.broadcast %5 : vector<8x1xf32> to vector<8x64xf32>
    %7 = arith.subf %1, %6 : vector<8x64xf32>
    %8 = arith.mulf %7, %7 : vector<8x64xf32>
    %cst_2 = arith.constant dense<0.000000e+00> : vector<8xf32>
    %9 = vector.multi_reduction <add>, %8, %cst_2 [1] : vector<8x64xf32> to vector<8xf32>
    %10 = vector.shape_cast %9 : vector<8xf32> to vector<8x1xf32>
    %cst_3 = arith.constant 6.400000e+01 : f32
    %11 = vector.broadcast %cst_3 : f32 to vector<8x1xf32>
    %12 = arith.divf %10, %11 : vector<8x1xf32>
    %cst_4 = arith.constant 9.99999974E-6 : f32
    %13 = vector.broadcast %cst_4 : f32 to vector<8x1xf32>
    %14 = arith.addf %12, %13 : vector<8x1xf32>
    %15 = math.rsqrt %14 : vector<8x1xf32>
    %16 = vector.broadcast %15 : vector<8x1xf32> to vector<8x64xf32>
    %17 = arith.mulf %7, %16 : vector<8x64xf32>
    %c0_5 = arith.constant 0 : index
    %c0_6 = arith.constant 0 : index
    %18 = vector.load %arg2[%c0_5, %c0_6] : memref<1x64xf32, #tpu.memory_space<vmem>>, vector<1x64xf32>
    %19 = vector.broadcast %18 : vector<1x64xf32> to vector<8x64xf32>
    %20 = arith.mulf %17, %19 : vector<8x64xf32>
    %c0_7 = arith.constant 0 : index
    %c0_8 = arith.constant 0 : index
    %21 = vector.load %arg3[%c0_7, %c0_8] : memref<1x64xf32, #tpu.memory_space<vmem>>, vector<1x64xf32>
    %22 = vector.broadcast %21 : vector<1x64xf32> to vector<8x64xf32>
    %23 = arith.addf %20, %22 : vector<8x64xf32>
    %24 = arith.truncf %23 : vector<8x64xf32> to vector<8x64xbf16>
    %c0_9 = arith.constant 0 : index
    %c0_10 = arith.constant 0 : index
    %25 = vector.load %arg4[%c0_9, %c0_10] : memref<64x256xbf16, #tpu.memory_space<vmem>>, vector<64x256xbf16>
    %cst_11 = arith.constant dense<0.000000e+00> : vector<8x256xf32>
    %26 = tpu.matmul %24, %25, %cst_11 {dimension_numbers = #tpu.dot_dimension_numbers<[1], [0], [0], [1], [0, 0, 1, 1], [], []>} : vector<8x64xbf16>, vector<64x256xbf16>, vector<8x256xf32> -> vector<8x256xf32>
    %c0_12 = arith.constant 0 : index
    %c0_13 = arith.constant 0 : index
    %27 = vector.load %arg5[%c0_12, %c0_13] : memref<1x256xf32, #tpu.memory_space<vmem>>, vector<1x256xf32>
    %28 = vector.broadcast %27 : vector<1x256xf32> to vector<8x256xf32>
    %29 = arith.addf %26, %28 : vector<8x256xf32>
    %cst_14 = arith.constant 3.000000e+00 : f32
    %30 = vector.broadcast %cst_14 : f32 to vector<8x256xf32>
    %31 = arith.addf %29, %30 : vector<8x256xf32>
    %cst_15 = arith.constant 0.000000e+00 : f32
    %cst_16 = arith.constant 6.000000e+00 : f32
    %32 = vector.broadcast %cst_15 : f32 to vector<8x256xf32>
    %33 = arith.maximumf %32, %31 : vector<8x256xf32>
    %34 = vector.broadcast %cst_16 : f32 to vector<8x256xf32>
    %35 = arith.minimumf %34, %33 : vector<8x256xf32>
    %36 = arith.mulf %29, %35 : vector<8x256xf32>
    %cst_17 = arith.constant 0.166666672 : f32
    %37 = vector.broadcast %cst_17 : f32 to vector<8x256xf32>
    %38 = arith.mulf %36, %37 : vector<8x256xf32>
    %39 = arith.truncf %38 : vector<8x256xf32> to vector<8x256xbf16>
    %c0_18 = arith.constant 0 : index
    %c0_19 = arith.constant 0 : index
    %40 = vector.load %arg6[%c0_18, %c0_19] : memref<8x256xbf16, #tpu.memory_space<vmem>>, vector<8x256xbf16>
    tpu.vector_store %arg6[%c0_18, %c0_19], %39 {strides = array<i32>} : memref<8x256xbf16, #tpu.memory_space<vmem>>, vector<8x256xbf16>,
    return
  }
  func.func @transform_0(%arg0: i32) -> (i32, i32) {
    %c0_i32 = arith.constant 0 : i32
    %c0_i32_0 = arith.constant 0 : i32
    return %arg0, %c0_i32 : i32, i32
  }
  func.func @transform_1(%arg0: i32) -> (i32, i32) {
    %c0_i32 = arith.constant 0 : i32
    %c0_i32_0 = arith.constant 0 : i32
    %c0_i32_1 = arith.constant 0 : i32
    return %c0_i32, %c0_i32_0 : i32, i32
  }
  func.func @transform_2(%arg0: i32) -> (i32, i32) {
    %c0_i32 = arith.constant 0 : i32
    %c0_i32_0 = arith.constant 0 : i32
    %c0_i32_1 = arith.constant 0 : i32
    return %c0_i32, %c0_i32_0 : i32, i32
  }
  func.func @transform_3(%arg0: i32) -> (i32, i32) {
    %c0_i32 = arith.constant 0 : i32
    %c0_i32_0 = arith.constant 0 : i32
    %c0_i32_1 = arith.constant 0 : i32
    return %c0_i32, %c0_i32_0 : i32, i32
  }
  func.func @transform_4(%arg0: i32) -> (i32, i32) {
    %c0_i32 = arith.constant 0 : i32
    %c0_i32_0 = arith.constant 0 : i32
    %c0_i32_1 = arith.constant 0 : i32
    return %c0_i32, %c0_i32_0 : i32, i32
  }
  func.func @transform_5(%arg0: i32) -> (i32, i32) {
    %c0_i32 = arith.constant 0 : i32
    %c0_i32_0 = arith.constant 0 : i32
    return %arg0, %c0_i32 : i32, i32
  }
}

module attributes {stable_mosaic.version = 11 : i64} {
  func.func @_dwconv3x3_kernel(%arg0: i32, %arg1: memref<1x4x4x256xbf16, #tpu.memory_space<vmem>>, %arg2: memref<9x1x256xf32, #tpu.memory_space<vmem>>, %arg3: memref<1x1x256xf32, #tpu.memory_space<vmem>>, %arg4: memref<1x1x256xf32, #tpu.memory_space<vmem>>, %arg5: memref<1x2x2x256xbf16, #tpu.memory_space<vmem>>, %arg6: memref<1x1x256xf32, #tpu.memory_space<vmem>>) attributes {dimension_semantics = [#tpu.dimension_semantics<parallel>], iteration_bounds = array<i64: 2>, scalar_prefetch = 0 : i64, scratch_operands = 0 : i64, tpu.core_type = #tpu.core_type<tc>, window_params = [{transform_indices = @transform_0, window_bounds = array<i64: 1, 4, 4, 256>}, {pipeline_mode = #tpu.pipeline_mode<synchronous>, transform_indices = @transform_1, window_bounds = array<i64: 9, 1, 256>}, {pipeline_mode = #tpu.pipeline_mode<synchronous>, transform_indices = @transform_2, window_bounds = array<i64: 1, 1, 256>}, {pipeline_mode = #tpu.pipeline_mode<synchronous>, transform_indices = @transform_3, window_bounds = array<i64: 1, 1, 256>}, {transform_indices = @transform_4, window_bounds = array<i64: 1, 2, 2, 256>}, {transform_indices = @transform_5, window_bounds = array<i64: 1, 1, 256>}]} {
    %c0 = arith.constant 0 : index
    %c0_0 = arith.constant 0 : index
    %c0_1 = arith.constant 0 : index
    %c0_2 = arith.constant 0 : index
    %0 = vector.load %arg1[%c0, %c0_0, %c0_1, %c0_2] : memref<1x4x4x256xbf16, #tpu.memory_space<vmem>>, vector<1x4x4x256xbf16>
    %1 = vector.shape_cast %0 : vector<1x4x4x256xbf16> to vector<4x4x256xbf16>
    %2 = arith.extf %1 : vector<4x4x256xbf16> to vector<4x4x256xf32>
    %c0_3 = arith.constant 0 : index
    %c0_4 = arith.constant 0 : index
    %c0_5 = arith.constant 0 : index
    %3 = vector.load %arg2[%c0_3, %c0_4, %c0_5] : memref<9x1x256xf32, #tpu.memory_space<vmem>>, vector<9x1x256xf32>
    %4 = vector.extract_strided_slice %3 {offsets = [0, 0, 0], sizes = [1, 1, 256], strides = [1, 1, 1]} : vector<9x1x256xf32> to vector<1x1x256xf32>
    %5 = vector.shape_cast %4 : vector<1x1x256xf32> to vector<1x256xf32>
    %6 = vector.extract_strided_slice %2 {offsets = [0, 0, 0], sizes = [2, 2, 256], strides = [1, 1, 1]} : vector<4x4x256xf32> to vector<2x2x256xf32>
    %7 = vector.shape_cast %5 : vector<1x256xf32> to vector<1x1x256xf32>
    %8 = vector.broadcast %7 : vector<1x1x256xf32> to vector<2x2x256xf32>
    %9 = arith.mulf %8, %6 : vector<2x2x256xf32>
    %10 = vector.extract_strided_slice %3 {offsets = [1, 0, 0], sizes = [1, 1, 256], strides = [1, 1, 1]} : vector<9x1x256xf32> to vector<1x1x256xf32>
    %11 = vector.shape_cast %10 : vector<1x1x256xf32> to vector<1x256xf32>
    %12 = vector.extract_strided_slice %2 {offsets = [0, 1, 0], sizes = [2, 2, 256], strides = [1, 1, 1]} : vector<4x4x256xf32> to vector<2x2x256xf32>
    %13 = vector.shape_cast %11 : vector<1x256xf32> to vector<1x1x256xf32>
    %14 = vector.broadcast %13 : vector<1x1x256xf32> to vector<2x2x256xf32>
    %15 = arith.mulf %14, %12 : vector<2x2x256xf32>
    %16 = arith.addf %9, %15 : vector<2x2x256xf32>
    %17 = vector.extract_strided_slice %3 {offsets = [2, 0, 0], sizes = [1, 1, 256], strides = [1, 1, 1]} : vector<9x1x256xf32> to vector<1x1x256xf32>
    %18 = vector.shape_cast %17 : vector<1x1x256xf32> to vector<1x256xf32>
    %19 = vector.extract_strided_slice %2 {offsets = [0, 2, 0], sizes = [2, 2, 256], strides = [1, 1, 1]} : vector<4x4x256xf32> to vector<2x2x256xf32>
    %20 = vector.shape_cast %18 : vector<1x256xf32> to vector<1x1x256xf32>
    %21 = vector.broadcast %20 : vector<1x1x256xf32> to vector<2x2x256xf32>
    %22 = arith.mulf %21, %19 : vector<2x2x256xf32>
    %23 = arith.addf %16, %22 : vector<2x2x256xf32>
    %24 = vector.extract_strided_slice %3 {offsets = [3, 0, 0], sizes = [1, 1, 256], strides = [1, 1, 1]} : vector<9x1x256xf32> to vector<1x1x256xf32>
    %25 = vector.shape_cast %24 : vector<1x1x256xf32> to vector<1x256xf32>
    %26 = vector.extract_strided_slice %2 {offsets = [1, 0, 0], sizes = [2, 2, 256], strides = [1, 1, 1]} : vector<4x4x256xf32> to vector<2x2x256xf32>
    %27 = vector.shape_cast %25 : vector<1x256xf32> to vector<1x1x256xf32>
    %28 = vector.broadcast %27 : vector<1x1x256xf32> to vector<2x2x256xf32>
    %29 = arith.mulf %28, %26 : vector<2x2x256xf32>
    %30 = arith.addf %23, %29 : vector<2x2x256xf32>
    %31 = vector.extract_strided_slice %3 {offsets = [4, 0, 0], sizes = [1, 1, 256], strides = [1, 1, 1]} : vector<9x1x256xf32> to vector<1x1x256xf32>
    %32 = vector.shape_cast %31 : vector<1x1x256xf32> to vector<1x256xf32>
    %33 = vector.extract_strided_slice %2 {offsets = [1, 1, 0], sizes = [2, 2, 256], strides = [1, 1, 1]} : vector<4x4x256xf32> to vector<2x2x256xf32>
    %34 = vector.shape_cast %32 : vector<1x256xf32> to vector<1x1x256xf32>
    %35 = vector.broadcast %34 : vector<1x1x256xf32> to vector<2x2x256xf32>
    %36 = arith.mulf %35, %33 : vector<2x2x256xf32>
    %37 = arith.addf %30, %36 : vector<2x2x256xf32>
    %38 = vector.extract_strided_slice %3 {offsets = [5, 0, 0], sizes = [1, 1, 256], strides = [1, 1, 1]} : vector<9x1x256xf32> to vector<1x1x256xf32>
    %39 = vector.shape_cast %38 : vector<1x1x256xf32> to vector<1x256xf32>
    %40 = vector.extract_strided_slice %2 {offsets = [1, 2, 0], sizes = [2, 2, 256], strides = [1, 1, 1]} : vector<4x4x256xf32> to vector<2x2x256xf32>
    %41 = vector.shape_cast %39 : vector<1x256xf32> to vector<1x1x256xf32>
    %42 = vector.broadcast %41 : vector<1x1x256xf32> to vector<2x2x256xf32>
    %43 = arith.mulf %42, %40 : vector<2x2x256xf32>
    %44 = arith.addf %37, %43 : vector<2x2x256xf32>
    %45 = vector.extract_strided_slice %3 {offsets = [6, 0, 0], sizes = [1, 1, 256], strides = [1, 1, 1]} : vector<9x1x256xf32> to vector<1x1x256xf32>
    %46 = vector.shape_cast %45 : vector<1x1x256xf32> to vector<1x256xf32>
    %47 = vector.extract_strided_slice %2 {offsets = [2, 0, 0], sizes = [2, 2, 256], strides = [1, 1, 1]} : vector<4x4x256xf32> to vector<2x2x256xf32>
    %48 = vector.shape_cast %46 : vector<1x256xf32> to vector<1x1x256xf32>
    %49 = vector.broadcast %48 : vector<1x1x256xf32> to vector<2x2x256xf32>
    %50 = arith.mulf %49, %47 : vector<2x2x256xf32>
    %51 = arith.addf %44, %50 : vector<2x2x256xf32>
    %52 = vector.extract_strided_slice %3 {offsets = [7, 0, 0], sizes = [1, 1, 256], strides = [1, 1, 1]} : vector<9x1x256xf32> to vector<1x1x256xf32>
    %53 = vector.shape_cast %52 : vector<1x1x256xf32> to vector<1x256xf32>
    %54 = vector.extract_strided_slice %2 {offsets = [2, 1, 0], sizes = [2, 2, 256], strides = [1, 1, 1]} : vector<4x4x256xf32> to vector<2x2x256xf32>
    %55 = vector.shape_cast %53 : vector<1x256xf32> to vector<1x1x256xf32>
    %56 = vector.broadcast %55 : vector<1x1x256xf32> to vector<2x2x256xf32>
    %57 = arith.mulf %56, %54 : vector<2x2x256xf32>
    %58 = arith.addf %51, %57 : vector<2x2x256xf32>
    %59 = vector.extract_strided_slice %3 {offsets = [8, 0, 0], sizes = [1, 1, 256], strides = [1, 1, 1]} : vector<9x1x256xf32> to vector<1x1x256xf32>
    %60 = vector.shape_cast %59 : vector<1x1x256xf32> to vector<1x256xf32>
    %61 = vector.extract_strided_slice %2 {offsets = [2, 2, 0], sizes = [2, 2, 256], strides = [1, 1, 1]} : vector<4x4x256xf32> to vector<2x2x256xf32>
    %62 = vector.shape_cast %60 : vector<1x256xf32> to vector<1x1x256xf32>
    %63 = vector.broadcast %62 : vector<1x1x256xf32> to vector<2x2x256xf32>
    %64 = arith.mulf %63, %61 : vector<2x2x256xf32>
    %65 = arith.addf %58, %64 : vector<2x2x256xf32>
    %c0_6 = arith.constant 0 : index
    %c0_7 = arith.constant 0 : index
    %c0_8 = arith.constant 0 : index
    %66 = vector.load %arg3[%c0_6, %c0_7, %c0_8] : memref<1x1x256xf32, #tpu.memory_space<vmem>>, vector<1x1x256xf32>
    %67 = vector.broadcast %66 : vector<1x1x256xf32> to vector<2x2x256xf32>
    %68 = arith.mulf %65, %67 : vector<2x2x256xf32>
    %c0_9 = arith.constant 0 : index
    %c0_10 = arith.constant 0 : index
    %c0_11 = arith.constant 0 : index
    %69 = vector.load %arg4[%c0_9, %c0_10, %c0_11] : memref<1x1x256xf32, #tpu.memory_space<vmem>>, vector<1x1x256xf32>
    %70 = vector.broadcast %69 : vector<1x1x256xf32> to vector<2x2x256xf32>
    %71 = arith.addf %68, %70 : vector<2x2x256xf32>
    %cst = arith.constant 3.000000e+00 : f32
    %72 = vector.broadcast %cst : f32 to vector<2x2x256xf32>
    %73 = arith.addf %71, %72 : vector<2x2x256xf32>
    %cst_12 = arith.constant 0.000000e+00 : f32
    %cst_13 = arith.constant 6.000000e+00 : f32
    %74 = vector.broadcast %cst_12 : f32 to vector<2x2x256xf32>
    %75 = arith.maximumf %74, %73 : vector<2x2x256xf32>
    %76 = vector.broadcast %cst_13 : f32 to vector<2x2x256xf32>
    %77 = arith.minimumf %76, %75 : vector<2x2x256xf32>
    %78 = arith.mulf %71, %77 : vector<2x2x256xf32>
    %cst_14 = arith.constant 0.166666672 : f32
    %79 = vector.broadcast %cst_14 : f32 to vector<2x2x256xf32>
    %80 = arith.mulf %78, %79 : vector<2x2x256xf32>
    %81 = arith.truncf %80 : vector<2x2x256xf32> to vector<2x2x256xbf16>
    %c0_15 = arith.constant 0 : index
    %c0_16 = arith.constant 0 : index
    %c0_17 = arith.constant 0 : index
    %c0_18 = arith.constant 0 : index
    %82 = vector.load %arg5[%c0_15, %c0_16, %c0_17, %c0_18] : memref<1x2x2x256xbf16, #tpu.memory_space<vmem>>, vector<1x2x2x256xbf16>
    %83 = vector.shape_cast %82 : vector<1x2x2x256xbf16> to vector<2x2x256xbf16>
    %84 = vector.shape_cast %81 : vector<2x2x256xbf16> to vector<1x2x2x256xbf16>
    tpu.vector_store %arg5[%c0_15, %c0_16, %c0_17, %c0_18], %84 {strides = array<i32>} : memref<1x2x2x256xbf16, #tpu.memory_space<vmem>>, vector<1x2x2x256xbf16>,
    %cst_19 = arith.constant dense<0.000000e+00> : vector<2x256xf32>
    %85 = vector.multi_reduction <add>, %80, %cst_19 [0] : vector<2x2x256xf32> to vector<2x256xf32>
    %cst_20 = arith.constant dense<0.000000e+00> : vector<256xf32>
    %86 = vector.multi_reduction <add>, %85, %cst_20 [0] : vector<2x256xf32> to vector<256xf32>
    %87 = vector.shape_cast %86 : vector<256xf32> to vector<1x256xf32>
    %cst_21 = arith.constant 2.500000e-01 : f32
    %88 = vector.broadcast %cst_21 : f32 to vector<1x256xf32>
    %89 = arith.mulf %87, %88 : vector<1x256xf32>
    %c0_22 = arith.constant 0 : index
    %c0_23 = arith.constant 0 : index
    %c0_24 = arith.constant 0 : index
    %90 = vector.load %arg6[%c0_22, %c0_23, %c0_24] : memref<1x1x256xf32, #tpu.memory_space<vmem>>, vector<1x1x256xf32>
    %91 = vector.shape_cast %90 : vector<1x1x256xf32> to vector<1x256xf32>
    %92 = vector.shape_cast %89 : vector<1x256xf32> to vector<1x1x256xf32>
    tpu.vector_store %arg6[%c0_22, %c0_23, %c0_24], %92 {strides = array<i32>} : memref<1x1x256xf32, #tpu.memory_space<vmem>>, vector<1x1x256xf32>,
    return
  }
  func.func @transform_0(%arg0: i32) -> (i32, i32, i32, i32) {
    %c0_i32 = arith.constant 0 : i32
    %c0_i32_0 = arith.constant 0 : i32
    %c0_i32_1 = arith.constant 0 : i32
    %c0_i32_2 = arith.constant 0 : i32
    return %arg0, %c0_i32, %c0_i32_0, %c0_i32_1 : i32, i32, i32, i32
  }
  func.func @transform_1(%arg0: i32) -> (i32, i32, i32) {
    %c0_i32 = arith.constant 0 : i32
    %c0_i32_0 = arith.constant 0 : i32
    %c0_i32_1 = arith.constant 0 : i32
    %c0_i32_2 = arith.constant 0 : i32
    return %c0_i32, %c0_i32_0, %c0_i32_1 : i32, i32, i32
  }
  func.func @transform_2(%arg0: i32) -> (i32, i32, i32) {
    %c0_i32 = arith.constant 0 : i32
    %c0_i32_0 = arith.constant 0 : i32
    %c0_i32_1 = arith.constant 0 : i32
    %c0_i32_2 = arith.constant 0 : i32
    return %c0_i32, %c0_i32_0, %c0_i32_1 : i32, i32, i32
  }
  func.func @transform_3(%arg0: i32) -> (i32, i32, i32) {
    %c0_i32 = arith.constant 0 : i32
    %c0_i32_0 = arith.constant 0 : i32
    %c0_i32_1 = arith.constant 0 : i32
    %c0_i32_2 = arith.constant 0 : i32
    return %c0_i32, %c0_i32_0, %c0_i32_1 : i32, i32, i32
  }
  func.func @transform_4(%arg0: i32) -> (i32, i32, i32, i32) {
    %c0_i32 = arith.constant 0 : i32
    %c0_i32_0 = arith.constant 0 : i32
    %c0_i32_1 = arith.constant 0 : i32
    %c0_i32_2 = arith.constant 0 : i32
    return %arg0, %c0_i32, %c0_i32_0, %c0_i32_1 : i32, i32, i32, i32
  }
  func.func @transform_5(%arg0: i32) -> (i32, i32, i32) {
    %c0_i32 = arith.constant 0 : i32
    %c0_i32_0 = arith.constant 0 : i32
    %c0_i32_1 = arith.constant 0 : i32
    return %arg0, %c0_i32, %c0_i32_0 : i32, i32, i32
  }
}

module attributes {stable_mosaic.version = 11 : i64} {
  func.func @_se_scale_linear_kernel(%arg0: i32, %arg1: memref<1x4x256xbf16, #tpu.memory_space<vmem>>, %arg2: memref<1x1x256xf32, #tpu.memory_space<vmem>>, %arg3: memref<256x4xf32, #tpu.memory_space<vmem>>, %arg4: memref<1x4xf32, #tpu.memory_space<vmem>>, %arg5: memref<4x256xf32, #tpu.memory_space<vmem>>, %arg6: memref<1x256xf32, #tpu.memory_space<vmem>>, %arg7: memref<256x64xbf16, #tpu.memory_space<vmem>>, %arg8: memref<1x64xf32, #tpu.memory_space<vmem>>, %arg9: memref<1x4x64xbf16, #tpu.memory_space<vmem>>, %arg10: memref<1x4x64xbf16, #tpu.memory_space<vmem>>) attributes {dimension_semantics = [#tpu.dimension_semantics<parallel>], iteration_bounds = array<i64: 2>, scalar_prefetch = 0 : i64, scratch_operands = 0 : i64, tpu.core_type = #tpu.core_type<tc>, window_params = [{transform_indices = @transform_0, window_bounds = array<i64: 1, 4, 256>}, {transform_indices = @transform_1, window_bounds = array<i64: 1, 1, 256>}, {pipeline_mode = #tpu.pipeline_mode<synchronous>, transform_indices = @transform_2, window_bounds = array<i64: 256, 4>}, {pipeline_mode = #tpu.pipeline_mode<synchronous>, transform_indices = @transform_3, window_bounds = array<i64: 1, 4>}, {pipeline_mode = #tpu.pipeline_mode<synchronous>, transform_indices = @transform_4, window_bounds = array<i64: 4, 256>}, {pipeline_mode = #tpu.pipeline_mode<synchronous>, transform_indices = @transform_5, window_bounds = array<i64: 1, 256>}, {pipeline_mode = #tpu.pipeline_mode<synchronous>, transform_indices = @transform_6, window_bounds = array<i64: 256, 64>}, {pipeline_mode = #tpu.pipeline_mode<synchronous>, transform_indices = @transform_7, window_bounds = array<i64: 1, 64>}, {transform_indices = @transform_8, window_bounds = array<i64: 1, 4, 64>}, {transform_indices = @transform_9, window_bounds = array<i64: 1, 4, 64>}]} {
    %c0 = arith.constant 0 : index
    %c0_0 = arith.constant 0 : index
    %c0_1 = arith.constant 0 : index
    %0 = vector.load %arg2[%c0, %c0_0, %c0_1] : memref<1x1x256xf32, #tpu.memory_space<vmem>>, vector<1x1x256xf32>
    %1 = vector.shape_cast %0 : vector<1x1x256xf32> to vector<1x256xf32>
    %c0_2 = arith.constant 0 : index
    %c0_3 = arith.constant 0 : index
    %2 = vector.load %arg3[%c0_2, %c0_3] : memref<256x4xf32, #tpu.memory_space<vmem>>, vector<256x4xf32>
    %cst = arith.constant dense<0.000000e+00> : vector<1x4xf32>
    %3 = tpu.matmul %1, %2, %cst {dimension_numbers = #tpu.dot_dimension_numbers<[1], [0], [0], [1], [0, 0, 1, 1], [], []>} : vector<1x256xf32>, vector<256x4xf32>, vector<1x4xf32> -> vector<1x4xf32>
    %c0_4 = arith.constant 0 : index
    %c0_5 = arith.constant 0 : index
    %4 = vector.load %arg4[%c0_4, %c0_5] : memref<1x4xf32, #tpu.memory_space<vmem>>, vector<1x4xf32>
    %5 = arith.addf %3, %4 : vector<1x4xf32>
    %cst_6 = arith.constant 0.000000e+00 : f32
    %6 = vector.broadcast %cst_6 : f32 to vector<1x4xf32>
    %7 = arith.maximumf %5, %6 : vector<1x4xf32>
    %c0_7 = arith.constant 0 : index
    %c0_8 = arith.constant 0 : index
    %8 = vector.load %arg5[%c0_7, %c0_8] : memref<4x256xf32, #tpu.memory_space<vmem>>, vector<4x256xf32>
    %cst_9 = arith.constant dense<0.000000e+00> : vector<1x256xf32>
    %9 = tpu.matmul %7, %8, %cst_9 {dimension_numbers = #tpu.dot_dimension_numbers<[1], [0], [0], [1], [0, 0, 1, 1], [], []>} : vector<1x4xf32>, vector<4x256xf32>, vector<1x256xf32> -> vector<1x256xf32>
    %c0_10 = arith.constant 0 : index
    %c0_11 = arith.constant 0 : index
    %10 = vector.load %arg6[%c0_10, %c0_11] : memref<1x256xf32, #tpu.memory_space<vmem>>, vector<1x256xf32>
    %11 = arith.addf %9, %10 : vector<1x256xf32>
    %cst_12 = arith.constant 3.000000e+00 : f32
    %12 = vector.broadcast %cst_12 : f32 to vector<1x256xf32>
    %13 = arith.addf %11, %12 : vector<1x256xf32>
    %cst_13 = arith.constant 0.000000e+00 : f32
    %cst_14 = arith.constant 6.000000e+00 : f32
    %14 = vector.broadcast %cst_13 : f32 to vector<1x256xf32>
    %15 = arith.maximumf %14, %13 : vector<1x256xf32>
    %16 = vector.broadcast %cst_14 : f32 to vector<1x256xf32>
    %17 = arith.minimumf %16, %15 : vector<1x256xf32>
    %cst_15 = arith.constant 0.166666672 : f32
    %18 = vector.broadcast %cst_15 : f32 to vector<1x256xf32>
    %19 = arith.mulf %17, %18 : vector<1x256xf32>
    %c0_16 = arith.constant 0 : index
    %c0_17 = arith.constant 0 : index
    %c0_18 = arith.constant 0 : index
    %20 = vector.load %arg1[%c0_16, %c0_17, %c0_18] : memref<1x4x256xbf16, #tpu.memory_space<vmem>>, vector<1x4x256xbf16>
    %21 = vector.shape_cast %20 : vector<1x4x256xbf16> to vector<4x256xbf16>
    %22 = arith.extf %21 : vector<4x256xbf16> to vector<4x256xf32>
    %23 = vector.broadcast %19 : vector<1x256xf32> to vector<4x256xf32>
    %24 = arith.mulf %22, %23 : vector<4x256xf32>
    %25 = arith.truncf %24 : vector<4x256xf32> to vector<4x256xbf16>
    %c0_19 = arith.constant 0 : index
    %c0_20 = arith.constant 0 : index
    %26 = vector.load %arg7[%c0_19, %c0_20] : memref<256x64xbf16, #tpu.memory_space<vmem>>, vector<256x64xbf16>
    %cst_21 = arith.constant dense<0.000000e+00> : vector<4x64xf32>
    %27 = tpu.matmul %25, %26, %cst_21 {dimension_numbers = #tpu.dot_dimension_numbers<[1], [0], [0], [1], [0, 0, 1, 1], [], []>} : vector<4x256xbf16>, vector<256x64xbf16>, vector<4x64xf32> -> vector<4x64xf32>
    %c0_22 = arith.constant 0 : index
    %c0_23 = arith.constant 0 : index
    %28 = vector.load %arg8[%c0_22, %c0_23] : memref<1x64xf32, #tpu.memory_space<vmem>>, vector<1x64xf32>
    %29 = vector.broadcast %28 : vector<1x64xf32> to vector<4x64xf32>
    %30 = arith.addf %27, %29 : vector<4x64xf32>
    %c0_24 = arith.constant 0 : index
    %c0_25 = arith.constant 0 : index
    %c0_26 = arith.constant 0 : index
    %31 = vector.load %arg9[%c0_24, %c0_25, %c0_26] : memref<1x4x64xbf16, #tpu.memory_space<vmem>>, vector<1x4x64xbf16>
    %32 = vector.shape_cast %31 : vector<1x4x64xbf16> to vector<4x64xbf16>
    %33 = arith.extf %32 : vector<4x64xbf16> to vector<4x64xf32>
    %34 = arith.addf %30, %33 : vector<4x64xf32>
    %35 = arith.truncf %34 : vector<4x64xf32> to vector<4x64xbf16>
    %c0_27 = arith.constant 0 : index
    %c0_28 = arith.constant 0 : index
    %c0_29 = arith.constant 0 : index
    %36 = vector.load %arg10[%c0_27, %c0_28, %c0_29] : memref<1x4x64xbf16, #tpu.memory_space<vmem>>, vector<1x4x64xbf16>
    %37 = vector.shape_cast %36 : vector<1x4x64xbf16> to vector<4x64xbf16>
    %38 = vector.shape_cast %35 : vector<4x64xbf16> to vector<1x4x64xbf16>
    tpu.vector_store %arg10[%c0_27, %c0_28, %c0_29], %38 {strides = array<i32>} : memref<1x4x64xbf16, #tpu.memory_space<vmem>>, vector<1x4x64xbf16>,
    return
  }
  func.func @transform_0(%arg0: i32) -> (i32, i32, i32) {
    %c0_i32 = arith.constant 0 : i32
    %c0_i32_0 = arith.constant 0 : i32
    %c0_i32_1 = arith.constant 0 : i32
    return %arg0, %c0_i32, %c0_i32_0 : i32, i32, i32
  }
  func.func @transform_1(%arg0: i32) -> (i32, i32, i32) {
    %c0_i32 = arith.constant 0 : i32
    %c0_i32_0 = arith.constant 0 : i32
    %c0_i32_1 = arith.constant 0 : i32
    return %arg0, %c0_i32, %c0_i32_0 : i32, i32, i32
  }
  func.func @transform_2(%arg0: i32) -> (i32, i32) {
    %c0_i32 = arith.constant 0 : i32
    %c0_i32_0 = arith.constant 0 : i32
    %c0_i32_1 = arith.constant 0 : i32
    return %c0_i32, %c0_i32_0 : i32, i32
  }
  func.func @transform_3(%arg0: i32) -> (i32, i32) {
    %c0_i32 = arith.constant 0 : i32
    %c0_i32_0 = arith.constant 0 : i32
    %c0_i32_1 = arith.constant 0 : i32
    return %c0_i32, %c0_i32_0 : i32, i32
  }
  func.func @transform_4(%arg0: i32) -> (i32, i32) {
    %c0_i32 = arith.constant 0 : i32
    %c0_i32_0 = arith.constant 0 : i32
    %c0_i32_1 = arith.constant 0 : i32
    return %c0_i32, %c0_i32_0 : i32, i32
  }
  func.func @transform_5(%arg0: i32) -> (i32, i32) {
    %c0_i32 = arith.constant 0 : i32
    %c0_i32_0 = arith.constant 0 : i32
    %c0_i32_1 = arith.constant 0 : i32
    return %c0_i32, %c0_i32_0 : i32, i32
  }
  func.func @transform_6(%arg0: i32) -> (i32, i32) {
    %c0_i32 = arith.constant 0 : i32
    %c0_i32_0 = arith.constant 0 : i32
    %c0_i32_1 = arith.constant 0 : i32
    return %c0_i32, %c0_i32_0 : i32, i32
  }
  func.func @transform_7(%arg0: i32) -> (i32, i32) {
    %c0_i32 = arith.constant 0 : i32
    %c0_i32_0 = arith.constant 0 : i32
    %c0_i32_1 = arith.constant 0 : i32
    return %c0_i32, %c0_i32_0 : i32, i32
  }
  func.func @transform_8(%arg0: i32) -> (i32, i32, i32) {
    %c0_i32 = arith.constant 0 : i32
    %c0_i32_0 = arith.constant 0 : i32
    %c0_i32_1 = arith.constant 0 : i32
    return %arg0, %c0_i32, %c0_i32_0 : i32, i32, i32
  }
  func.func @transform_9(%arg0: i32) -> (i32, i32, i32) {
    %c0_i32 = arith.constant 0 : i32
    %c0_i32_0 = arith.constant 0 : i32
    %c0_i32_1 = arith.constant 0 : i32
    return %arg0, %c0_i32, %c0_i32_0 : i32, i32, i32
  }
}

module attributes {stable_mosaic.version = 11 : i64} {
  func.func @_linear_kernel(%arg0: i32, %arg1: memref<16x64xbf16, #tpu.memory_space<vmem>>, %arg2: memref<64x512xbf16, #tpu.memory_space<vmem>>, %arg3: memref<16x512xbf16, #tpu.memory_space<vmem>>) attributes {dimension_semantics = [#tpu.dimension_semantics<parallel>], iteration_bounds = array<i64: 1>, scalar_prefetch = 0 : i64, scratch_operands = 0 : i64, tpu.core_type = #tpu.core_type<tc>, window_params = [{transform_indices = @transform_0, window_bounds = array<i64: 16, 64>}, {pipeline_mode = #tpu.pipeline_mode<synchronous>, transform_indices = @transform_1, window_bounds = array<i64: 64, 512>}, {transform_indices = @transform_2, window_bounds = array<i64: 16, 512>}]} {
    %c0 = arith.constant 0 : index
    %c0_0 = arith.constant 0 : index
    %0 = vector.load %arg1[%c0, %c0_0] : memref<16x64xbf16, #tpu.memory_space<vmem>>, vector<16x64xbf16>
    %1 = arith.extf %0 : vector<16x64xbf16> to vector<16x64xf32>
    %2 = arith.truncf %1 : vector<16x64xf32> to vector<16x64xbf16>
    %c0_1 = arith.constant 0 : index
    %c0_2 = arith.constant 0 : index
    %3 = vector.load %arg2[%c0_1, %c0_2] : memref<64x512xbf16, #tpu.memory_space<vmem>>, vector<64x512xbf16>
    %cst = arith.constant dense<0.000000e+00> : vector<16x512xf32>
    %4 = tpu.matmul %2, %3, %cst {dimension_numbers = #tpu.dot_dimension_numbers<[1], [0], [0], [1], [0, 0, 1, 1], [], []>} : vector<16x64xbf16>, vector<64x512xbf16>, vector<16x512xf32> -> vector<16x512xf32>
    %5 = arith.truncf %4 : vector<16x512xf32> to vector<16x512xbf16>
    %c0_3 = arith.constant 0 : index
    %c0_4 = arith.constant 0 : index
    %6 = vector.load %arg3[%c0_3, %c0_4] : memref<16x512xbf16, #tpu.memory_space<vmem>>, vector<16x512xbf16>
    tpu.vector_store %arg3[%c0_3, %c0_4], %5 {strides = array<i32>} : memref<16x512xbf16, #tpu.memory_space<vmem>>, vector<16x512xbf16>,
    return
  }
  func.func @transform_0(%arg0: i32) -> (i32, i32) {
    %c0_i32 = arith.constant 0 : i32
    %c0_i32_0 = arith.constant 0 : i32
    return %arg0, %c0_i32 : i32, i32
  }
  func.func @transform_1(%arg0: i32) -> (i32, i32) {
    %c0_i32 = arith.constant 0 : i32
    %c0_i32_0 = arith.constant 0 : i32
    %c0_i32_1 = arith.constant 0 : i32
    return %c0_i32, %c0_i32_0 : i32, i32
  }
  func.func @transform_2(%arg0: i32) -> (i32, i32) {
    %c0_i32 = arith.constant 0 : i32
    %c0_i32_0 = arith.constant 0 : i32
    return %arg0, %c0_i32 : i32, i32
  }
}

module attributes {stable_mosaic.version = 11 : i64} {
  func.func @_linear_kernel(%arg0: i32, %arg1: memref<32x16xbf16, #tpu.memory_space<vmem>>, %arg2: memref<16x256xbf16, #tpu.memory_space<vmem>>, %arg3: memref<32x256xbf16, #tpu.memory_space<vmem>>) attributes {dimension_semantics = [#tpu.dimension_semantics<parallel>], iteration_bounds = array<i64: 1>, scalar_prefetch = 0 : i64, scratch_operands = 0 : i64, tpu.core_type = #tpu.core_type<tc>, window_params = [{transform_indices = @transform_0, window_bounds = array<i64: 32, 16>}, {pipeline_mode = #tpu.pipeline_mode<synchronous>, transform_indices = @transform_1, window_bounds = array<i64: 16, 256>}, {transform_indices = @transform_2, window_bounds = array<i64: 32, 256>}]} {
    %c0 = arith.constant 0 : index
    %c0_0 = arith.constant 0 : index
    %0 = vector.load %arg1[%c0, %c0_0] : memref<32x16xbf16, #tpu.memory_space<vmem>>, vector<32x16xbf16>
    %1 = arith.extf %0 : vector<32x16xbf16> to vector<32x16xf32>
    %2 = arith.truncf %1 : vector<32x16xf32> to vector<32x16xbf16>
    %c0_1 = arith.constant 0 : index
    %c0_2 = arith.constant 0 : index
    %3 = vector.load %arg2[%c0_1, %c0_2] : memref<16x256xbf16, #tpu.memory_space<vmem>>, vector<16x256xbf16>
    %cst = arith.constant dense<0.000000e+00> : vector<32x256xf32>
    %4 = tpu.matmul %2, %3, %cst {dimension_numbers = #tpu.dot_dimension_numbers<[1], [0], [0], [1], [0, 0, 1, 1], [], []>} : vector<32x16xbf16>, vector<16x256xbf16>, vector<32x256xf32> -> vector<32x256xf32>
    %5 = arith.truncf %4 : vector<32x256xf32> to vector<32x256xbf16>
    %c0_3 = arith.constant 0 : index
    %c0_4 = arith.constant 0 : index
    %6 = vector.load %arg3[%c0_3, %c0_4] : memref<32x256xbf16, #tpu.memory_space<vmem>>, vector<32x256xbf16>
    tpu.vector_store %arg3[%c0_3, %c0_4], %5 {strides = array<i32>} : memref<32x256xbf16, #tpu.memory_space<vmem>>, vector<32x256xbf16>,
    return
  }
  func.func @transform_0(%arg0: i32) -> (i32, i32) {
    %c0_i32 = arith.constant 0 : i32
    %c0_i32_0 = arith.constant 0 : i32
    return %arg0, %c0_i32 : i32, i32
  }
  func.func @transform_1(%arg0: i32) -> (i32, i32) {
    %c0_i32 = arith.constant 0 : i32
    %c0_i32_0 = arith.constant 0 : i32
    %c0_i32_1 = arith.constant 0 : i32
    return %c0_i32, %c0_i32_0 : i32, i32
  }
  func.func @transform_2(%arg0: i32) -> (i32, i32) {
    %c0_i32 = arith.constant 0 : i32
    %c0_i32_0 = arith.constant 0 : i32
    return %arg0, %c0_i32 : i32, i32
  }
}

module attributes {stable_mosaic.version = 11 : i64} {
  func.func @_mha_kernel(%arg0: i32, %arg1: i32, %arg2: memref<1x1x16x64xbf16, #tpu.memory_space<vmem>>, %arg3: memref<1x1x1x5x64xbf16, #tpu.memory_space<vmem>>, %arg4: memref<1x1x1x5x64xbf16, #tpu.memory_space<vmem>>, %arg5: memref<1x64x16xbf16, #tpu.memory_space<vmem>>, %arg6: memref<1x16xf32, #tpu.memory_space<vmem>>, %arg7: memref<1x16x16xbf16, #tpu.memory_space<vmem>>, %arg8: memref<16x16xf32, #tpu.memory_space<vmem>>) attributes {dimension_semantics = [#tpu.dimension_semantics<parallel>, #tpu.dimension_semantics<arbitrary>], iteration_bounds = array<i64: 2, 4>, scalar_prefetch = 0 : i64, scratch_operands = 1 : i64, tpu.core_type = #tpu.core_type<tc>, window_params = [{transform_indices = @transform_0, window_bounds = array<i64: 1, 1, 16, 64>}, {transform_indices = @transform_1, window_bounds = array<i64: 1, 1, 1, 5, 64>}, {transform_indices = @transform_2, window_bounds = array<i64: 1, 1, 1, 5, 64>}, {transform_indices = @transform_3, window_bounds = array<i64: 1, 64, 16>}, {pipeline_mode = #tpu.pipeline_mode<synchronous>, transform_indices = @transform_4, window_bounds = array<i64: 1, 16>}, {transform_indices = @transform_5, window_bounds = array<i64: 1, 16, 16>}]} {
    %c0_i32 = arith.constant 0 : i32
    %0 = arith.cmpi eq, %arg1, %c0_i32 : i32
    %1 = arith.extui %0 : i1 to i32
    %c0_i32_0 = arith.constant 0 : i32
    %2 = arith.cmpi ne, %1, %c0_i32_0 : i32
    scf.if %2 {
      %c0_27 = arith.constant 0 : index
      %c0_28 = arith.constant 0 : index
      %35 = vector.load %arg6[%c0_27, %c0_28] : memref<1x16xf32, #tpu.memory_space<vmem>>, vector<1x16xf32>
      %36 = vector.shape_cast %35 : vector<1x16xf32> to vector<1x16xf32>
      %37 = vector.broadcast %36 : vector<1x16xf32> to vector<16x16xf32>
      %c0_29 = arith.constant 0 : index
      %c0_30 = arith.constant 0 : index
      %38 = vector.load %arg8[%c0_29, %c0_30] : memref<16x16xf32, #tpu.memory_space<vmem>>, vector<16x16xf32>
      tpu.vector_store %arg8[%c0_29, %c0_30], %37 {strides = array<i32>} : memref<16x16xf32, #tpu.memory_space<vmem>>, vector<16x16xf32>,
    } else {
    }
    %c0 = arith.constant 0 : index
    %c0_1 = arith.constant 0 : index
    %c0_2 = arith.constant 0 : index
    %c0_3 = arith.constant 0 : index
    %3 = vector.load %arg2[%c0, %c0_1, %c0_2, %c0_3] : memref<1x1x16x64xbf16, #tpu.memory_space<vmem>>, vector<1x1x16x64xbf16>
    %4 = vector.shape_cast %3 : vector<1x1x16x64xbf16> to vector<16x64xbf16>
    %c0_4 = arith.constant 0 : index
    %c0_5 = arith.constant 0 : index
    %c0_6 = arith.constant 0 : index
    %c0_7 = arith.constant 0 : index
    %c0_8 = arith.constant 0 : index
    %5 = vector.load %arg3[%c0_4, %c0_5, %c0_6, %c0_7, %c0_8] : memref<1x1x1x5x64xbf16, #tpu.memory_space<vmem>>, vector<1x1x1x5x64xbf16>
    %6 = vector.shape_cast %5 : vector<1x1x1x5x64xbf16> to vector<5x64xbf16>
    %7 = tpu.transpose %6, [1, 0] : vector<5x64xbf16> -> vector<64x5xbf16>
    %cst = arith.constant dense<0.000000e+00> : vector<16x5xf32>
    %8 = tpu.matmul %4, %7, %cst {dimension_numbers = #tpu.dot_dimension_numbers<[1], [0], [0], [1], [0, 0, 1, 1], [], []>} : vector<16x64xbf16>, vector<64x5xbf16>, vector<16x5xf32> -> vector<16x5xf32>
    %cst_9 = arith.constant 1.250000e-01 : f32
    %9 = vector.broadcast %cst_9 : f32 to vector<16x5xf32>
    %10 = arith.mulf %8, %9 : vector<16x5xf32>
    %cst_10 = arith.constant dense<0xFF800000> : vector<16xf32>
    %11 = vector.multi_reduction <maximumf>, %10, %cst_10 [1] : vector<16x5xf32> to vector<16xf32>
    %12 = vector.shape_cast %11 : vector<16xf32> to vector<16x1xf32>
    %13 = vector.broadcast %12 : vector<16x1xf32> to vector<16x5xf32>
    %14 = arith.subf %10, %13 : vector<16x5xf32>
    %15 = math.exp %14 : vector<16x5xf32>
    %cst_11 = arith.constant dense<0.000000e+00> : vector<16xf32>
    %16 = vector.multi_reduction <add>, %15, %cst_11 [1] : vector<16x5xf32> to vector<16xf32>
    %17 = vector.shape_cast %16 : vector<16xf32> to vector<16x1xf32>
    %18 = tpu.reciprocal %17 {approx = true} : vector<16x1xf32> -> vector<16x1xf32>
    %19 = vector.broadcast %18 : vector<16x1xf32> to vector<16x5xf32>
    %20 = arith.mulf %15, %19 : vector<16x5xf32>
    %21 = arith.truncf %20 : vector<16x5xf32> to vector<16x5xbf16>
    %c0_12 = arith.constant 0 : index
    %c0_13 = arith.constant 0 : index
    %c0_14 = arith.constant 0 : index
    %c0_15 = arith.constant 0 : index
    %c0_16 = arith.constant 0 : index
    %22 = vector.load %arg4[%c0_12, %c0_13, %c0_14, %c0_15, %c0_16] : memref<1x1x1x5x64xbf16, #tpu.memory_space<vmem>>, vector<1x1x1x5x64xbf16>
    %23 = vector.shape_cast %22 : vector<1x1x1x5x64xbf16> to vector<5x64xbf16>
    %cst_17 = arith.constant dense<0.000000e+00> : vector<16x64xf32>
    %24 = tpu.matmul %21, %23, %cst_17 {dimension_numbers = #tpu.dot_dimension_numbers<[1], [0], [0], [1], [0, 0, 1, 1], [], []>} : vector<16x5xbf16>, vector<5x64xbf16>, vector<16x64xf32> -> vector<16x64xf32>
    %c0_18 = arith.constant 0 : index
    %c0_19 = arith.constant 0 : index
    %25 = vector.load %arg8[%c0_18, %c0_19] : memref<16x16xf32, #tpu.memory_space<vmem>>, vector<16x16xf32>
    %26 = arith.truncf %24 : vector<16x64xf32> to vector<16x64xbf16>
    %c0_20 = arith.constant 0 : index
    %c0_21 = arith.constant 0 : index
    %c0_22 = arith.constant 0 : index
    %27 = vector.load %arg5[%c0_20, %c0_21, %c0_22] : memref<1x64x16xbf16, #tpu.memory_space<vmem>>, vector<1x64x16xbf16>
    %28 = vector.shape_cast %27 : vector<1x64x16xbf16> to vector<64x16xbf16>
    %cst_23 = arith.constant dense<0.000000e+00> : vector<16x16xf32>
    %29 = tpu.matmul %26, %28, %cst_23 {dimension_numbers = #tpu.dot_dimension_numbers<[1], [0], [0], [1], [0, 0, 1, 1], [], []>} : vector<16x64xbf16>, vector<64x16xbf16>, vector<16x16xf32> -> vector<16x16xf32>
    %30 = arith.addf %25, %29 : vector<16x16xf32>
    %c0_24 = arith.constant 0 : index
    %c0_25 = arith.constant 0 : index
    %31 = vector.load %arg8[%c0_24, %c0_25] : memref<16x16xf32, #tpu.memory_space<vmem>>, vector<16x16xf32>
    tpu.vector_store %arg8[%c0_24, %c0_25], %30 {strides = array<i32>} : memref<16x16xf32, #tpu.memory_space<vmem>>, vector<16x16xf32>,
    %c3_i32 = arith.constant 3 : i32
    %32 = arith.cmpi eq, %arg1, %c3_i32 : i32
    %33 = arith.extui %32 : i1 to i32
    %c0_i32_26 = arith.constant 0 : i32
    %34 = arith.cmpi ne, %33, %c0_i32_26 : i32
    scf.if %34 {
      %c0_27 = arith.constant 0 : index
      %c0_28 = arith.constant 0 : index
      %35 = vector.load %arg8[%c0_27, %c0_28] : memref<16x16xf32, #tpu.memory_space<vmem>>, vector<16x16xf32>
      %36 = arith.truncf %35 : vector<16x16xf32> to vector<16x16xbf16>
      %c0_29 = arith.constant 0 : index
      %c0_30 = arith.constant 0 : index
      %c0_31 = arith.constant 0 : index
      %37 = vector.load %arg7[%c0_29, %c0_30, %c0_31] : memref<1x16x16xbf16, #tpu.memory_space<vmem>>, vector<1x16x16xbf16>
      %38 = vector.shape_cast %37 : vector<1x16x16xbf16> to vector<16x16xbf16>
      %39 = vector.shape_cast %36 : vector<16x16xbf16> to vector<1x16x16xbf16>
      tpu.vector_store %arg7[%c0_29, %c0_30, %c0_31], %39 {strides = array<i32>} : memref<1x16x16xbf16, #tpu.memory_space<vmem>>, vector<1x16x16xbf16>,
    } else {
    }
    return
  }
  func.func @transform_0(%arg0: i32, %arg1: i32) -> (i32, i32, i32, i32) {
    %c0_i32 = arith.constant 0 : i32
    %c0_i32_0 = arith.constant 0 : i32
    %c0_i32_1 = arith.constant 0 : i32
    return %arg0, %arg1, %c0_i32, %c0_i32_0 : i32, i32, i32, i32
  }
  func.func @transform_1(%arg0: i32, %arg1: i32) -> (i32, i32, i32, i32, i32) {
    %c0_i32 = arith.constant 0 : i32
    %c0_i32_0 = arith.constant 0 : i32
    %c0_i32_1 = arith.constant 0 : i32
    %c0_i32_2 = arith.constant 0 : i32
    return %c0_i32, %arg0, %arg1, %c0_i32_0, %c0_i32_1 : i32, i32, i32, i32, i32
  }
  func.func @transform_2(%arg0: i32, %arg1: i32) -> (i32, i32, i32, i32, i32) {
    %c1_i32 = arith.constant 1 : i32
    %c0_i32 = arith.constant 0 : i32
    %c0_i32_0 = arith.constant 0 : i32
    %c0_i32_1 = arith.constant 0 : i32
    return %c1_i32, %arg0, %arg1, %c0_i32, %c0_i32_0 : i32, i32, i32, i32, i32
  }
  func.func @transform_3(%arg0: i32, %arg1: i32) -> (i32, i32, i32) {
    %c0_i32 = arith.constant 0 : i32
    %c0_i32_0 = arith.constant 0 : i32
    %c0_i32_1 = arith.constant 0 : i32
    return %arg1, %c0_i32, %c0_i32_0 : i32, i32, i32
  }
  func.func @transform_4(%arg0: i32, %arg1: i32) -> (i32, i32) {
    %c0_i32 = arith.constant 0 : i32
    %c0_i32_0 = arith.constant 0 : i32
    %c0_i32_1 = arith.constant 0 : i32
    return %c0_i32, %c0_i32_0 : i32, i32
  }
  func.func @transform_5(%arg0: i32, %arg1: i32) -> (i32, i32, i32) {
    %c0_i32 = arith.constant 0 : i32
    %c0_i32_0 = arith.constant 0 : i32
    %c0_i32_1 = arith.constant 0 : i32
    return %arg0, %c0_i32, %c0_i32_0 : i32, i32, i32
  }
}

</mosaic_0001>

<bundles_post_ra>
// kernel: block_forward.21
= control target key start
LH: loop header
LB: loop body
LE: loop exit
PB: predicated region body
PF: predicated region fallthrough
CT: control target
= control target key end

     0   :  { %vm29_vm0 = vcmask 130048   ;;  %v412_v10 = vmov 16.0   ;;  %s586_s0 = inlined_call_operand.vmem [shape: bf16[32,16], index: 0, kind: input, shape index: {}]   ;;  %s587_s1 = inlined_call_operand.vmem [shape: f32[1,16], index: 1, kind: input, shape index: {}]   ;;  %s588_s2 = inlined_call_operand.vmem [shape: f32[1,16], index: 2, kind: input, shape index: {}]   ;;  %s589_s4 = inlined_call_operand.vmem [shape: f32[1,64], index: 4, kind: input, shape index: {}]   ;;  %s590_s3 = inlined_call_operand.vmem [shape: bf16[16,64], index: 3, kind: input, shape index: {}]   ;;  %s591_s5 = inlined_call_operand.vmem [shape: bf16[32,64], index: 5, kind: output, shape index: {}]  }
   0x1   :  { %v388_v0 = vld [vmem:[%s586_s0 + $0x8] sm:$0xff]   ;;  %v381_v1 = vld [vmem:[%s586_s0] sm:$0xff]   ;;  %394 = vrcp.f32 %v412_v10 }
   0x2   :  { %v386_v2 = vunpack.c.l.bf16 %v388_v0  ;;  %v382_v3 = vunpack.c.l.bf16 %v381_v1  ;;  %v387_v6 = vunpack.c.h.bf16 %v388_v0  ;;  %v383_v7 = vunpack.c.h.bf16 %v381_v1  ;;  %v379_v39 = vld [vmem:[%s590_s3] sm:$0xff] }
   0x3   :  { %168 = vmatpush.bf16.msra.mxu0 %v379_v39  ;;  %389 = vmatpush.bf16.msra.mxu1 %v379_v39 }
   0x4   :  { %v36_v4 = vsel %vm29_vm0, %v386_v2, 0.0  ;;  %v30_v5 = vsel %vm29_vm0, %v382_v3, 0.0  ;;  %v39_v8 = vsel %vm29_vm0, %v387_v6, 0.0  ;;  %v33_v9 = vsel %vm29_vm0, %v383_v7, 0.0 }
   0x5   :  { %37 = vadd.xlane.f32.xlu1 %v36_v4  ;;  %31 = vadd.xlane.f32.xlu0 %v30_v5 }
   0x7   :  { %v395_v11 = vpop.eup %394 }
   0x8   :  { %v43_v12 = vmul.f32 16.0, %v395_v11  ;;  %vm47_vm1 = vweird.f32 %v395_v11 }
   0xa   :  { %v44_v13 = vsub.f32 1.0, %v43_v12 }
   0xc   :  { %v45_v14 = vmul.f32 %v395_v11, %v44_v13 }
   0xd   :  { %40 = vadd.xlane.f32.xlu1 %v39_v8  ;;  %34 = vadd.xlane.f32.xlu0 %v33_v9 }
   0xe   :  { %v46_v15 = vadd.f32 %v395_v11, %v45_v14 }
  0x10   :  { %v48_v16 = vsel %vm47_vm1, %v395_v11, %v46_v15  ;;  %v391_v11 = vld [vmem:[%s587_s1] ss:$0 sm:$0xff] }
  0x78   :  { %v38_v17 = vpop.xlane.xlu1 %37  ;;  %v32_v18 = vpop.xlane.xlu0 %31 }
  0x79   :  { %v51_v19 = vmul.f32 %v48_v16, %v38_v17  ;;  %v49_v20 = vmul.f32 %v48_v16, %v32_v18  ;;  %v392_v18 = vld [vmem:[%s588_s2] ss:$0 sm:$0xff] }
  0x7b   :  { %v453_v21 = vsub.f32 %v386_v2, %v51_v19  ;;  %v455_v22 = vsub.f32 %v382_v3, %v49_v20 }
  0x7d   :  { %v59_v23 = vmul.f32 %v453_v21, %v453_v21  ;;  %v57_v24 = vmul.f32 %v455_v22, %v455_v22 }
  0x7f   :  { %v67_v25 = vsel %vm29_vm0, %v59_v23, 0.0  ;;  %v61_v26 = vsel %vm29_vm0, %v57_v24, 0.0 }
  0x80   :  { %v41_v27 = vpop.xlane.xlu1 %40  ;;  %68 = vadd.xlane.f32.xlu0 %v67_v25  ;;  %62 = vadd.xlane.f32.xlu2 %v61_v26  ;;  %v35_v28 = vpop.xlane.xlu0 %34 }
  0x81   :  { %v52_v29 = vmul.f32 %v48_v16, %v41_v27  ;;  %v50_v30 = vmul.f32 %v48_v16, %v35_v28 }
  0x83   :  { %v463_v31 = vsub.f32 %v387_v6, %v52_v29  ;;  %v465_v32 = vsub.f32 %v383_v7, %v50_v30  ;;  %v393_v30 = vld [vmem:[%s589_s4] ss:$0 sm:$0xff] }
  0x85   :  { %v60_v33 = vmul.f32 %v463_v31, %v463_v31  ;;  %v58_v34 = vmul.f32 %v465_v32, %v465_v32 }
  0x87   :  { %v70_v35 = vsel %vm29_vm0, %v60_v33, 0.0  ;;  %v64_v36 = vsel %vm29_vm0, %v58_v34, 0.0 }
  0x88   :  { %71 = vadd.xlane.f32.xlu1 %v70_v35  ;;  %65 = vadd.xlane.f32.xlu2 %v64_v36 }
  0xf3   :  { %v63_v37 = vpop.xlane.xlu2 %62  ;;  %v69_v38 = vpop.xlane.xlu0 %68 }
  0xf4   :  { %v73_v40 = vmul.f32 %v63_v37, %v48_v16  ;;  %v75_v41 = vmul.f32 %v69_v38, %v48_v16 }
  0xf6   :  { %v77_v42 = vadd.f32 1e-05, %v73_v40  ;;  %v79_v43 = vadd.f32 1e-05, %v75_v41 }
  0xf8   :  { %396 = vrsqrt.f32 %v77_v42  ;;  %vm107_vm4 = vweird.f32 %v79_v43  ;;  %vm87_vm5 = vweird.f32 %v77_v42 }
  0xf9   :  { %398 = vrsqrt.f32 %v79_v43 }
  0xfb   :  { %v72_v44 = vpop.xlane.xlu1 %71  ;;  %v66_v45 = vpop.xlane.xlu2 %65 }
  0xfc   :  { %v76_v46 = vmul.f32 %v72_v44, %v48_v16  ;;  %v74_v47 = vmul.f32 %v66_v45, %v48_v16 }
  0xfe   :  { %v397_v48 = vpop.eup %396  ;;  %v80_v49 = vadd.f32 1e-05, %v76_v46  ;;  %v78_v50 = vadd.f32 1e-05, %v74_v47 }
  0xff   :  { %v399_v51 = vpop.eup %398  ;;  %v82_v52 = vmul.f32 %v397_v48, %v77_v42  ;;  %vm88_vm3 = vweird.f32 %v397_v48 }
 0x100   :  { %v102_v53 = vmul.f32 %v399_v51, %v79_v43  ;;  %400 = vrsqrt.f32 %v80_v49  ;;  %vm108_vm2 = vweird.f32 %v399_v51  ;;  %vm89_vm7 = vmor %vm87_vm5, %vm88_vm3  ;;  %vm117_vm10 = vweird.f32 %v80_v49 }
 0x101   :  { %v83_v54 = vmul.f32 %v397_v48, %v82_v52  ;;  %402 = vrsqrt.f32 %v78_v50  ;;  %vm109_vm6 = vmor %vm107_vm4, %vm108_vm2  ;;  %vm97_vm12 = vweird.f32 %v78_v50 }
 0x102   :  { %v103_v55 = vmul.f32 %v399_v51, %v102_v53 }
 0x103   :  { %v84_v56 = vmul.f32 0.5, %v83_v54 }
 0x104   :  { %v104_v57 = vmul.f32 0.5, %v103_v55 }
 0x105   :  { %v85_v58 = vsub.f32 1.5, %v84_v56 }
 0x106   :  { %v401_v59 = vpop.eup %400  ;;  %v105_v60 = vsub.f32 1.5, %v104_v57 }
 0x107   :  { %v403_v61 = vpop.eup %402  ;;  %v112_v62 = vmul.f32 %v401_v59, %v80_v49  ;;  %v86_v63 = vmul.f32 %v397_v48, %v85_v58  ;;  %vm118_vm8 = vweird.f32 %v401_v59 }
 0x108   :  { %v106_v0 = vmul.f32 %v399_v51, %v105_v60  ;;  %v92_v1 = vmul.f32 %v403_v61, %v78_v50  ;;  %vm98_vm9 = vweird.f32 %v403_v61  ;;  %vm119_vm11 = vmor %vm117_vm10, %vm118_vm8 }
 0x109   :  { %v113_v2 = vmul.f32 %v401_v59, %v112_v62  ;;  %v90_v6 = vsel %vm89_vm7, %v397_v48, %v86_v63  ;;  %vm99_vm13 = vmor %vm97_vm12, %vm98_vm9 }
 0x10a   :  { %v93_v3 = vmul.f32 %v403_v61, %v92_v1  ;;  %v110_v4 = vsel %vm109_vm6, %v399_v51, %v106_v0  ;;  %v121_v12 = vmul.f32 %v90_v6, %v455_v22  ;;  %vm360_vm6 = vcmask 519168  }
 0x10b   :  { %v114_v5 = vmul.f32 0.5, %v113_v2  ;;  %v123_v9 = vmul.f32 %v110_v4, %v453_v21 }
 0x10c   :  { %v94_v7 = vmul.f32 0.5, %v93_v3  ;;  %v129_v21 = vmul.f32 %v391_v11, %v121_v12 }
 0x10d   :  { %v115_v8 = vsub.f32 1.5, %v114_v5  ;;  %v131_v19 = vmul.f32 %v391_v11, %v123_v9 }
 0x10e   :  { %v95_v10 = vsub.f32 1.5, %v94_v7  ;;  %v137_v26 = vadd.f32 %v392_v18, %v129_v21 }
 0x10f   :  { %v116_v13 = vmul.f32 %v401_v59, %v115_v8  ;;  %v139_v24 = vadd.f32 %v392_v18, %v131_v19 }
 0x110   :  { %v96_v14 = vmul.f32 %v403_v61, %v95_v10 }
 0x111   :  { %v120_v15 = vsel %vm119_vm11, %v401_v59, %v116_v13 }
 0x112   :  { %v124_v16 = vmul.f32 %v120_v15, %v463_v31  ;;  %v100_v17 = vsel %vm99_vm13, %v403_v61, %v96_v14 }
 0x113   :  { %v122_v20 = vmul.f32 %v100_v17, %v465_v32 }
 0x114   :  { %v132_v23 = vmul.f32 %v391_v11, %v124_v16 }
 0x115   :  { %v130_v22 = vmul.f32 %v391_v11, %v122_v20 }
 0x116   :  { %v140_v25 = vadd.f32 %v392_v18, %v132_v23 }
 0x117   :  { %v138_v27 = vadd.f32 %v392_v18, %v130_v22 }
 0x118   :  { %v142_v28 = vpack.c.bf16 %v140_v25, %v139_v24 }
 0x119   :  { %v141_v29 = vpack.c.bf16 %v138_v27, %v137_v26 }
 0x11a   :  { %374 = vmatmul.msk.bf16.vlgmr.msra.gmra.mxu1 %vm29_vm0, %v142_v28 }
 0x11b   :  { %373 = vmatmul.msk.bf16.vlgmr.msra.gmra.mxu0 %vm29_vm0, %v141_v29 }
 0x197   :  { %v175_v31 = vpop.f32.mrf.mxu1 }
 0x198   :  { %v170_v33 = vpop.f32.mrf.mxu0  ;;  %v491_v32 = vadd.f32 %v393_v30, %v175_v31 }
 0x199   :  { %v493_v34 = vadd.f32 %v393_v30, %v170_v33 }
 0x19a   :  { %v496_v35 = vmul.f32 0.70710677, %v491_v32 }
 0x19b   :  { %v499_v36 = vmul.f32 0.70710677, %v493_v34 }
 0x19c   :  { %v268_v37 = vmul.f32 %v496_v35, %v496_v35 }
 0x19d   :  { %v188_v38 = vmul.f32 %v499_v36, %v499_v36 }
 0x19e   :  { %v269_v39 = vmin.f32 %v268_v37, 16.0 }
 0x19f   :  { %v505_v40 = vmin.f32 %v188_v38, 16.0  ;;  %v177_v41 = vpop.f32.mrf.mxu1 }
 0x1a0   :  { %v270_v42 = vmul.f32 2.1237322e-06, %v269_v39  ;;  %v281_v43 = vmul.f32 3.8918573e-05, %v269_v39  ;;  %v172_v44 = vpop.f32.mrf.mxu0  ;;  %v507_v45 = vadd.f32 %v393_v30, %v177_v41 }
 0x1a1   :  { %v190_v46 = vmul.f32 2.1237322e-06, %v505_v40  ;;  %v201_v47 = vmul.f32 3.8918573e-05, %v505_v40  ;;  %v511_v48 = vadd.f32 %v393_v30, %v172_v44 }
 0x1a2   :  { %v271_v49 = vadd.f32 0.00028619796, %v270_v42  ;;  %v282_v50 = vadd.f32 0.001143296, %v281_v43  ;;  %v517_v56 = vmul.f32 0.70710677, %v507_v45 }
 0x1a3   :  { %v191_v51 = vadd.f32 0.00028619796, %v190_v46  ;;  %v202_v52 = vadd.f32 0.001143296, %v201_v47  ;;  %v514_v55 = vmul.f32 0.70710677, %v511_v48 }
 0x1a4   :  { %v272_v53 = vmul.f32 %v271_v49, %v269_v39  ;;  %v283_v54 = vmul.f32 %v282_v50, %v269_v39  ;;  %v308_v62 = vmul.f32 %v517_v56, %v517_v56 }
 0x1a5   :  { %v192_v57 = vmul.f32 %v191_v51, %v505_v40  ;;  %v203_v58 = vmul.f32 %v202_v52, %v505_v40  ;;  %v228_v61 = vmul.f32 %v514_v55, %v514_v55 }
 0x1a6   :  { %v273_v59 = vadd.f32 0.0036580483, %v272_v53  ;;  %v284_v60 = vadd.f32 0.014752088, %v283_v54  ;;  %v529_v6 = vmin.f32 %v308_v62, 16.0 }
 0x1a7   :  { %v193_v63 = vadd.f32 0.0036580483, %v192_v57  ;;  %v204_v0 = vadd.f32 0.014752088, %v203_v58  ;;  %v525_v3 = vmin.f32 %v228_v61, 16.0 }
 0x1a8   :  { %v274_v1 = vmul.f32 %v273_v59, %v269_v39  ;;  %v285_v2 = vmul.f32 %v284_v60, %v269_v39  ;;  %v310_v18 = vmul.f32 2.1237322e-06, %v529_v6  ;;  %v321_v19 = vmul.f32 3.8918573e-05, %v529_v6 }
 0x1a9   :  { %v194_v4 = vmul.f32 %v193_v63, %v505_v40  ;;  %v205_v5 = vmul.f32 %v204_v0, %v505_v40  ;;  %v230_v9 = vmul.f32 2.1237322e-06, %v525_v3  ;;  %v241_v11 = vmul.f32 3.8918573e-05, %v525_v3 }
 0x1aa   :  { %v275_v7 = vadd.f32 0.05243302, %v274_v1  ;;  %v286_v8 = vadd.f32 0.112945676, %v285_v2  ;;  %v322_v27 = vadd.f32 0.001143296, %v321_v19 }
 0x1ab   :  { %v206_v10 = vadd.f32 0.112945676, %v205_v5  ;;  %v195_v12 = vadd.f32 0.05243302, %v194_v4  ;;  %v231_v15 = vadd.f32 0.00028619796, %v230_v9 }
 0x1ac   :  { %v276_v13 = vmul.f32 %v275_v7, %v269_v39  ;;  %v287_v14 = vmul.f32 %v286_v8, %v269_v39  ;;  %v242_v17 = vadd.f32 0.001143296, %v241_v11  ;;  %v311_v30 = vadd.f32 0.00028619796, %v310_v18 }
 0x1ad   :  { %v207_v16 = vmul.f32 %v206_v10, %v505_v40  ;;  %v232_v23 = vmul.f32 %v231_v15, %v525_v3  ;;  %v196_v24 = vmul.f32 %v195_v12, %v505_v40  ;;  %v323_v41 = vmul.f32 %v322_v27, %v529_v6 }
 0x1ae   :  { %v288_v20 = vadd.f32 0.4994258, %v287_v14  ;;  %v243_v22 = vmul.f32 %v242_v17, %v525_v3  ;;  %v277_v25 = vadd.f32 0.18741608, %v276_v13  ;;  %v312_v44 = vmul.f32 %v311_v30, %v529_v6 }
 0x1af   :  { %v208_v21 = vadd.f32 0.4994258, %v207_v16  ;;  %v233_v37 = vadd.f32 0.0036580483, %v232_v23  ;;  %v197_v42 = vadd.f32 0.18741608, %v196_v24 }
 0x1b0   :  { %v289_v26 = vmul.f32 %v288_v20, %v269_v39  ;;  %v244_v29 = vadd.f32 0.014752088, %v243_v22  ;;  %v278_v43 = vmul.f32 %v277_v25, %v269_v39  ;;  %v324_v49 = vadd.f32 0.014752088, %v323_v41 }
 0x1b1   :  { %v209_v28 = vmul.f32 %v208_v21, %v505_v40  ;;  %v234_v46 = vmul.f32 %v233_v37, %v525_v3  ;;  %v198_v50 = vmul.f32 %v197_v42, %v505_v40  ;;  %v313_v53 = vadd.f32 0.0036580483, %v312_v44 }
 0x1b2   :  { %v290_v31 = vadd.f32 1.0, %v289_v26  ;;  %v245_v38 = vmul.f32 %v244_v29, %v525_v3  ;;  %v279_v51 = vadd.f32 1.1283791, %v278_v43  ;;  %v325_v54 = vmul.f32 %v324_v49, %v529_v6 }
 0x1b3   :  { %v210_v33 = vadd.f32 1.0, %v209_v28  ;;  %v235_v39 = vadd.f32 0.05243302, %v234_v46  ;;  %v199_v61 = vadd.f32 1.1283791, %v198_v50  ;;  %v314_v4 = vmul.f32 %v313_v53, %v529_v6 }
 0x1b4   :  { %404 = vrcp.f32 %v290_v31  ;;  %v246_v47 = vadd.f32 0.112945676, %v245_v38  ;;  %v280_v63 = vmul.f32 %v279_v51, %v496_v35  ;;  %v326_v0 = vadd.f32 0.112945676, %v325_v54 }
 0x1b5   :  { %406 = vrcp.f32 %v210_v33  ;;  %v300_v2 = vand.u32 2147483647, %v290_v31  ;;  %v222_v7 = vand.u32 2147483648, %v210_v33  ;;  %v302_v8 = vand.u32 2147483648, %v290_v31 }
 0x1b6   :  { %v247_v52 = vmul.f32 %v246_v47, %v525_v3  ;;  %v327_v9 = vmul.f32 %v326_v0, %v529_v6  ;;  %v236_v11 = vmul.f32 %v235_v39, %v525_v3  ;;  %v220_v35 = vand.u32 2147483647, %v210_v33 }
 0x1b7   :  { %vm296_vm0 = vweird.f32 %v290_v31  ;;  %v315_v16 = vadd.f32 0.05243302, %v314_v4  ;;  %vm216_vm1 = vweird.f32 %v210_v33  ;;  %v303_v18 = vor.u32 1.1754944e-38, %v302_v8 }
 0x1b8   :  { %v248_v60 = vadd.f32 0.4994258, %v247_v52  ;;  %v328_v14 = vadd.f32 0.4994258, %v327_v9  ;;  %v223_v20 = vor.u32 1.1754944e-38, %v222_v7  ;;  %vm301_vm4 = vcmp.eq.f32.partialorder %v300_v2, 8.507059e+37 }
 0x1b9   :  { %v237_v23 = vadd.f32 0.18741608, %v236_v11  ;;  %v200_v22 = vmul.f32 %v199_v61, %v499_v36  ;;  %vm221_vm5 = vcmp.eq.f32.partialorder %v220_v35, 8.507059e+37  ;;  %v316_v28 = vmul.f32 %v315_v16, %v529_v6 }
 0x1ba   :  { %v405_v57 = vpop.eup %404  ;;  %v249_v40 = vmul.f32 %v248_v60, %v525_v3  ;;  %v329_v19 = vmul.f32 %v328_v14, %v529_v6  ;;  %v182_v42 = vmul.f32 0.5, %v491_v32  ;;  %v180_v44 = vmul.f32 0.5, %v493_v34 }
 0x1bb   :  { %v407_v58 = vpop.eup %406  ;;  %v292_v59 = vmul.f32 %v405_v57, %v290_v31  ;;  %vm297_vm14 = vweird.f32 %v405_v57  ;;  %v238_v37 = vmul.f32 %v237_v23, %v525_v3  ;;  %v317_v43 = vadd.f32 0.18741608, %v316_v28 }
 0x1bc   :  { %v212_v62 = vmul.f32 %v407_v58, %v210_v33  ;;  %v552_v12 = vadd.f32 1.0, %v249_v40  ;;  %vm217_vm15 = vweird.f32 %v407_v58  ;;  %vm298_vm2 = vmor %vm296_vm0, %vm297_vm14  ;;  %v330_v29 = vadd.f32 1.0, %v329_v19 }
 0x1bd   :  { %v293_v1 = vsub.f32 1.0, %v292_v59  ;;  %vm218_vm3 = vmor %vm216_vm1, %vm217_vm15  ;;  %v239_v50 = vadd.f32 1.1283791, %v238_v37  ;;  %v318_v32 = vmul.f32 %v317_v43, %v529_v6  ;;  %v181_v7 = vmul.f32 0.5, %v511_v48 }
 0x1be   :  { %v213_v5 = vsub.f32 1.0, %v212_v62  ;;  %408 = vrcp.f32 %v552_v12  ;;  %v262_v51 = vand.u32 2147483648, %v552_v12  ;;  %v260_v3 = vand.u32 2147483647, %v552_v12 }
 0x1bf   :  { %v294_v10 = vmul.f32 %v405_v57, %v293_v1  ;;  %410 = vrcp.f32 %v330_v29  ;;  %vm256_vm8 = vweird.f32 %v552_v12  ;;  %v240_v60 = vmul.f32 %v239_v50, %v514_v55 }
 0x1c0   :  { %v214_v13 = vmul.f32 %v407_v58, %v213_v5  ;;  %v263_v39 = vor.u32 1.1754944e-38, %v262_v51  ;;  %vm261_vm10 = vcmp.eq.f32.partialorder %v260_v3, 8.507059e+37  ;;  %v342_v0 = vand.u32 2147483648, %v330_v29 }
 0x1c1   :  { %v295_v15 = vadd.f32 %v405_v57, %v294_v10  ;;  %v340_v40 = vand.u32 2147483647, %v330_v29  ;;  %vm336_vm12 = vweird.f32 %v330_v29 }
 0x1c2   :  { %v215_v17 = vadd.f32 %v407_v58, %v214_v13  ;;  %v343_v8 = vor.u32 1.1754944e-38, %v342_v0 }
 0x1c3   :  { %v299_v21 = vsel %vm298_vm2, %v405_v57, %v295_v15  ;;  %vm341_vm14 = vcmp.eq.f32.partialorder %v340_v40, 8.507059e+37  ;;  %v183_v15 = vmul.f32 0.5, %v507_v45 }
 0x1c4   :  { %v219_v24 = vsel %vm218_vm3, %v407_v58, %v215_v17  ;;  %v304_v25 = vsel %vm301_vm4, %v303_v18, %v299_v21  ;;  %v409_v31 = vpop.eup %408 }
 0x1c5   :  { %v224_v26 = vsel %vm221_vm5, %v223_v20, %v219_v24  ;;  %v305_v27 = vmul.f32 %v304_v25, %v280_v63  ;;  %v252_v41 = vmul.f32 %v409_v31, %v552_v12  ;;  %vm257_vm7 = vweird.f32 %v409_v31  ;;  %v411_v54 = vpop.eup %410 }
 0x1c6   :  { %v225_v30 = vmul.f32 %v224_v26, %v200_v22  ;;  %v332_v34 = vmul.f32 %v411_v54, %v330_v29  ;;  %vm258_vm9 = vmor %vm256_vm8, %vm257_vm7  ;;  %v319_v63 = vadd.f32 1.1283791, %v318_v32  ;;  %vm337_vm11 = vweird.f32 %v411_v54 }
 0x1c7   :  { %v377_v33 = vclamps-f32 %v305_v27, 1.0  ;;  %v253_v47 = vsub.f32 1.0, %v252_v41  ;;  %vm338_vm13 = vmor %vm336_vm12, %vm337_vm11 }
 0x1c8   :  { %v375_v38 = vclamps-f32 %v225_v30, 1.0  ;;  %v333_v61 = vsub.f32 1.0, %v332_v34  ;;  %v320_v55 = vmul.f32 %v319_v63, %v517_v56 }
 0x1c9   :  { %v350_v36 = vadd.f32 1.0, %v377_v33  ;;  %v254_v53 = vmul.f32 %v409_v31, %v253_v47 }
 0x1ca   :  { %v348_v46 = vadd.f32 1.0, %v375_v38  ;;  %v334_v2 = vmul.f32 %v411_v54, %v333_v61 }
 0x1cb   :  { %v354_v49 = vmul.f32 %v350_v36, %v182_v42  ;;  %v255_v59 = vadd.f32 %v409_v31, %v254_v53 }
 0x1cc   :  { %v352_v52 = vmul.f32 %v348_v46, %v180_v44  ;;  %v335_v5 = vadd.f32 %v411_v54, %v334_v2 }
 0x1cd   :  { %v358_v57 = vpack.c.bf16 %v354_v49, %v354_v49  ;;  %v259_v6 = vsel %vm258_vm9, %v409_v31, %v255_v59 }
 0x1ce   :  { %v356_v58 = vpack.c.bf16 %v352_v52, %v352_v52  ;;  %v264_v62 = vsel %vm261_vm10, %v263_v39, %v259_v6  ;;  %v339_v10 = vsel %vm338_vm13, %v411_v54, %v335_v5 }
 0x1cf   :  { %363 = vst.msk [vmem:[%s591_s5 + $0x8] sm:$0xf] %vm360_vm6, %v358_v57  ;;  %v265_v1 = vmul.f32 %v264_v62, %v240_v60  ;;  %v344_v11 = vsel %vm341_vm14, %v343_v8, %v339_v10 }
 0x1d0   :  { %361 = vst.msk [vmem:[%s591_s5] sm:$0xf] %vm360_vm6, %v356_v58  ;;  %v345_v13 = vmul.f32 %v344_v11, %v320_v55 }
 0x1d1   :  { %v376_v4 = vclamps-f32 %v265_v1, 1.0 }
 0x1d2   :  { %v378_v14 = vclamps-f32 %v345_v13, 1.0 }
 0x1d3   :  { %v349_v9 = vadd.f32 1.0, %v376_v4 }
 0x1d4   :  { %v351_v48 = vadd.f32 1.0, %v378_v14 }
 0x1d5   :  { %v353_v12 = vmul.f32 %v349_v9, %v181_v7 }
 0x1d6   :  { %v355_v16 = vmul.f32 %v351_v48, %v183_v15 }
 0x1d7   :  { %v357_v35 = vpack.c.bf16 %v353_v12, %v353_v12 }
 0x1d8   :  { %v359_v17 = vpack.c.bf16 %v355_v16, %v355_v16 }
 0x1d9   :  { %362 = vst.msk [vmem:[%s591_s5 + $0x4] sm:$0xf] %vm360_vm6, %v357_v35 }
 0x1da   :  { %364 = vst.msk [vmem:[%s591_s5 + $0xc] sm:$0xf] %vm360_vm6, %v359_v17 }

// kernel: block_forward.19
= control target key start
LH: loop header
LB: loop body
LE: loop exit
PB: predicated region body
PF: predicated region fallthrough
CT: control target
= control target key end

     0   :  { %vm22_vm0 = vcmask 130048   ;;  %v203_v8 = vmov 16.0   ;;  %vm173_vm14 = vcmask 388096   ;;  %s292_s0 = inlined_call_operand.vmem [shape: f32[32,16], index: 0, kind: input, shape index: {}]   ;;  %s293_s1 = inlined_call_operand.vmem [shape: f32[1,16], index: 1, kind: input, shape index: {}]   ;;  %s294_s2 = inlined_call_operand.vmem [shape: f32[1,16], index: 2, kind: input, shape index: {}]   ;;  %s295_s3 = inlined_call_operand.vmem [shape: bf16[16,48], index: 3, kind: input, shape index: {}]   ;;  %s296_s4 = inlined_call_operand.vmem [shape: bf16[32,48], index: 4, kind: output, shape index: {}]  }
   0x1   :  { %v20_v0 = vld [vmem:[%s292_s0 + $0x10] sm:$0xff]  ;;  %v18_v1 = vld [vmem:[%s292_s0] sm:$0xff]  ;;  %v21_v4 = vld [vmem:[%s292_s0 + $0x18] sm:$0xff]  ;;  %193 = vrcp.f32 %v203_v8 }
   0x2   :  { %v29_v2 = vsel %vm22_vm0, %v20_v0, 0.0  ;;  %v23_v3 = vsel %vm22_vm0, %v18_v1, 0.0  ;;  %v19_v5 = vld [vmem:[%s292_s0 + $0x8] sm:$0xff]  ;;  %v32_v6 = vsel %vm22_vm0, %v21_v4, 0.0  ;;  %v188_v37 = vld [vmem:[%s295_s3] sm:$0xff] }
   0x3   :  { %30 = vadd.xlane.f32.xlu1 %v29_v2  ;;  %24 = vadd.xlane.f32.xlu0 %v23_v3  ;;  %v26_v7 = vsel %vm22_vm0, %v19_v5, 0.0 }
   0x4   :  { %157 = vmatpush.bf16.msra.mxu0 %v188_v37  ;;  %189 = vmatpush.bf16.msra.mxu1 %v188_v37 }
   0x7   :  { %v194_v9 = vpop.eup %193 }
   0x8   :  { %v36_v10 = vmul.f32 16.0, %v194_v9  ;;  %vm40_vm1 = vweird.f32 %v194_v9 }
   0xa   :  { %v37_v11 = vsub.f32 1.0, %v36_v10 }
   0xb   :  { %33 = vadd.xlane.f32.xlu1 %v32_v6  ;;  %27 = vadd.xlane.f32.xlu0 %v26_v7 }
   0xc   :  { %v38_v12 = vmul.f32 %v194_v9, %v37_v11 }
   0xe   :  { %v39_v13 = vadd.f32 %v194_v9, %v38_v12 }
  0x10   :  { %v41_v14 = vsel %vm40_vm1, %v194_v9, %v39_v13  ;;  %v191_v9 = vld [vmem:[%s293_s1] ss:$0 sm:$0xff] }
  0x76   :  { %v31_v15 = vpop.xlane.xlu1 %30  ;;  %v25_v16 = vpop.xlane.xlu0 %24 }
  0x77   :  { %v44_v17 = vmul.f32 %v41_v14, %v31_v15  ;;  %v42_v18 = vmul.f32 %v41_v14, %v25_v16  ;;  %v192_v16 = vld [vmem:[%s294_s2] ss:$0 sm:$0xff] }
  0x79   :  { %v245_v19 = vsub.f32 %v20_v0, %v44_v17  ;;  %v247_v20 = vsub.f32 %v18_v1, %v42_v18 }
  0x7b   :  { %v52_v21 = vmul.f32 %v245_v19, %v245_v19  ;;  %v50_v22 = vmul.f32 %v247_v20, %v247_v20 }
  0x7d   :  { %v60_v23 = vsel %vm22_vm0, %v52_v21, 0.0  ;;  %v54_v24 = vsel %vm22_vm0, %v50_v22, 0.0 }
  0x7e   :  { %v34_v25 = vpop.xlane.xlu1 %33  ;;  %61 = vadd.xlane.f32.xlu0 %v60_v23  ;;  %55 = vadd.xlane.f32.xlu2 %v54_v24  ;;  %v28_v26 = vpop.xlane.xlu0 %27 }
  0x7f   :  { %v45_v27 = vmul.f32 %v41_v14, %v34_v25  ;;  %v43_v28 = vmul.f32 %v41_v14, %v28_v26 }
  0x81   :  { %v255_v29 = vsub.f32 %v21_v4, %v45_v27  ;;  %v257_v30 = vsub.f32 %v19_v5, %v43_v28 }
  0x83   :  { %v53_v31 = vmul.f32 %v255_v29, %v255_v29  ;;  %v51_v32 = vmul.f32 %v257_v30, %v257_v30 }
  0x85   :  { %v63_v33 = vsel %vm22_vm0, %v53_v31, 0.0  ;;  %v57_v34 = vsel %vm22_vm0, %v51_v32, 0.0 }
  0x86   :  { %64 = vadd.xlane.f32.xlu1 %v63_v33  ;;  %58 = vadd.xlane.f32.xlu2 %v57_v34 }
  0xf1   :  { %v56_v35 = vpop.xlane.xlu2 %55  ;;  %v62_v36 = vpop.xlane.xlu0 %61 }
  0xf2   :  { %v66_v38 = vmul.f32 %v56_v35, %v41_v14  ;;  %v68_v39 = vmul.f32 %v62_v36, %v41_v14 }
  0xf4   :  { %v70_v40 = vadd.f32 1e-05, %v66_v38  ;;  %v72_v41 = vadd.f32 1e-05, %v68_v39 }
  0xf6   :  { %195 = vrsqrt.f32 %v70_v40  ;;  %vm100_vm4 = vweird.f32 %v72_v41  ;;  %vm80_vm5 = vweird.f32 %v70_v40 }
  0xf7   :  { %197 = vrsqrt.f32 %v72_v41 }
  0xf9   :  { %v65_v42 = vpop.xlane.xlu1 %64  ;;  %v59_v43 = vpop.xlane.xlu2 %58 }
  0xfa   :  { %v69_v44 = vmul.f32 %v65_v42, %v41_v14  ;;  %v67_v45 = vmul.f32 %v59_v43, %v41_v14 }
  0xfc   :  { %v196_v46 = vpop.eup %195  ;;  %v73_v47 = vadd.f32 1e-05, %v69_v44  ;;  %v71_v48 = vadd.f32 1e-05, %v67_v45 }
  0xfd   :  { %v198_v49 = vpop.eup %197  ;;  %v75_v50 = vmul.f32 %v196_v46, %v70_v40  ;;  %vm81_vm3 = vweird.f32 %v196_v46 }
  0xfe   :  { %v95_v51 = vmul.f32 %v198_v49, %v72_v41  ;;  %199 = vrsqrt.f32 %v73_v47  ;;  %vm101_vm2 = vweird.f32 %v198_v49  ;;  %vm82_vm7 = vmor %vm80_vm5, %vm81_vm3  ;;  %vm110_vm10 = vweird.f32 %v73_v47 }
  0xff   :  { %v76_v52 = vmul.f32 %v196_v46, %v75_v50  ;;  %201 = vrsqrt.f32 %v71_v48  ;;  %vm102_vm6 = vmor %vm100_vm4, %vm101_vm2  ;;  %vm90_vm12 = vweird.f32 %v71_v48 }
 0x100   :  { %v96_v53 = vmul.f32 %v198_v49, %v95_v51 }
 0x101   :  { %v77_v54 = vmul.f32 0.5, %v76_v52 }
 0x102   :  { %v97_v55 = vmul.f32 0.5, %v96_v53 }
 0x103   :  { %v78_v56 = vsub.f32 1.5, %v77_v54 }
 0x104   :  { %v200_v57 = vpop.eup %199  ;;  %v98_v58 = vsub.f32 1.5, %v97_v55 }
 0x105   :  { %v202_v59 = vpop.eup %201  ;;  %v105_v60 = vmul.f32 %v200_v57, %v73_v47  ;;  %v79_v61 = vmul.f32 %v196_v46, %v78_v56  ;;  %vm111_vm8 = vweird.f32 %v200_v57 }
 0x106   :  { %v99_v62 = vmul.f32 %v198_v49, %v98_v58  ;;  %v85_v63 = vmul.f32 %v202_v59, %v71_v48  ;;  %vm91_vm9 = vweird.f32 %v202_v59  ;;  %vm112_vm11 = vmor %vm110_vm10, %vm111_vm8 }
 0x107   :  { %v106_v0 = vmul.f32 %v200_v57, %v105_v60  ;;  %v83_v4 = vsel %vm82_vm7, %v196_v46, %v79_v61  ;;  %vm92_vm13 = vmor %vm90_vm12, %vm91_vm9 }
 0x108   :  { %v86_v1 = vmul.f32 %v202_v59, %v85_v63  ;;  %v103_v2 = vsel %vm102_vm6, %v198_v49, %v99_v62  ;;  %v114_v10 = vmul.f32 %v83_v4, %v247_v20 }
 0x109   :  { %v107_v3 = vmul.f32 0.5, %v106_v0  ;;  %v116_v7 = vmul.f32 %v103_v2, %v245_v19 }
 0x10a   :  { %v87_v5 = vmul.f32 0.5, %v86_v1  ;;  %v122_v19 = vmul.f32 %v191_v9, %v114_v10 }
 0x10b   :  { %v108_v6 = vsub.f32 1.5, %v107_v3  ;;  %v124_v17 = vmul.f32 %v191_v9, %v116_v7 }
 0x10c   :  { %v88_v8 = vsub.f32 1.5, %v87_v5  ;;  %v130_v24 = vadd.f32 %v192_v16, %v122_v19 }
 0x10d   :  { %v109_v11 = vmul.f32 %v200_v57, %v108_v6  ;;  %v132_v22 = vadd.f32 %v192_v16, %v124_v17 }
 0x10e   :  { %v89_v12 = vmul.f32 %v202_v59, %v88_v8 }
 0x10f   :  { %v113_v13 = vsel %vm112_vm11, %v200_v57, %v109_v11 }
 0x110   :  { %v117_v14 = vmul.f32 %v113_v13, %v255_v29  ;;  %v93_v15 = vsel %vm92_vm13, %v202_v59, %v89_v12 }
 0x111   :  { %v115_v18 = vmul.f32 %v93_v15, %v257_v30 }
 0x112   :  { %v125_v21 = vmul.f32 %v191_v9, %v117_v14 }
 0x113   :  { %v123_v20 = vmul.f32 %v191_v9, %v115_v18 }
 0x114   :  { %v133_v23 = vadd.f32 %v192_v16, %v125_v21 }
 0x115   :  { %v131_v25 = vadd.f32 %v192_v16, %v123_v20 }
 0x116   :  { %v135_v26 = vpack.c.bf16 %v133_v23, %v132_v22 }
 0x117   :  { %v134_v27 = vpack.c.bf16 %v131_v25, %v130_v24 }
 0x118   :  { %187 = vmatmul.msk.bf16.vlgmr.msra.gmra.mxu1 %vm22_vm0, %v135_v26 }
 0x119   :  { %186 = vmatmul.msk.bf16.vlgmr.msra.gmra.mxu0 %vm22_vm0, %v134_v27 }
 0x195   :  { %v164_v28 = vpop.f32.mrf.mxu1 }
 0x196   :  { %v159_v29 = vpop.f32.mrf.mxu0  ;;  %v171_v31 = vpack.c.bf16 %v164_v28, %v164_v28 }
 0x197   :  { %v169_v32 = vpack.c.bf16 %v159_v29, %v159_v29 }
 0x198   :  { %176 = vst.msk [vmem:[%s296_s4 + $0x8] sm:$0xf] %vm173_vm14, %v171_v31 }
 0x199   :  { %174 = vst.msk [vmem:[%s296_s4] sm:$0xf] %vm173_vm14, %v169_v32 }
 0x19d   :  { %v166_v30 = vpop.f32.mrf.mxu1 }
 0x19e   :  { %v161_v33 = vpop.f32.mrf.mxu0  ;;  %v172_v34 = vpack.c.bf16 %v166_v30, %v166_v30 }
 0x19f   :  { %v170_v35 = vpack.c.bf16 %v161_v33, %v161_v33 }
 0x1a0   :  { %177 = vst.msk [vmem:[%s296_s4 + $0xc] sm:$0xf] %vm173_vm14, %v172_v34 }
 0x1a1   :  { %175 = vst.msk [vmem:[%s296_s4 + $0x4] sm:$0xf] %vm173_vm14, %v170_v35 }

// kernel: block_forward.20
= control target key start
LH: loop header
LB: loop body
LE: loop exit
PB: predicated region body
PF: predicated region fallthrough
CT: control target
= control target key end

     0   :  { %s757_s21 = smov 0   ;;  %s759_s22 = smov 0   ;;  %s844_s0 = inlined_call_operand.vmem [shape: bf16[3,8,4,4,4], index: 0, kind: input, shape index: {}, may-alias: {0,1,2}]   ;;  %s845_s1 = inlined_call_operand.vmem [shape: bf16[3,8,4,4,4], index: 1, kind: input, shape index: {}, may-alias: {0,1,2}]   ;;  %s846_s2 = inlined_call_operand.vmem [shape: bf16[3,8,4,4,4], index: 2, kind: input, shape index: {}, may-alias: {0,1,2}]   ;;  %s847_s3 = inlined_call_operand.vmem [shape: bf16[4,4,16], index: 3, kind: input, shape index: {}]   ;;  %s848_s4 = inlined_call_operand.vmem [shape: f32[1,16], index: 4, kind: input, shape index: {}]   ;;  %s849_s5 = inlined_call_operand.vmem [shape: f32[8,4,16], index: 5, kind: input, shape index: {}]   ;;  %s850_s6 = inlined_call_operand.vmem [shape: bf16[8,4,16], index: 6, kind: output, shape index: {}]  }
   0x1   :  { %s761_s23 = smov 0   ;;  %s763_s24 = smov 0  }
   0x2   :  { %s765_s25 = smov 0  }
   0x3 LB: > { %s25_s26 = sadd.s32 1, %s712_s23  ;;  %s28_s27 = sadd.s32 1, %s716_s24  ;;  %s720_s25 = sphi %s765_s25, %s16_s25   ;;  %s716_s24 = sphi %s763_s24, %s856_s24   ;;  %s712_s23 = sphi %s761_s23, %s855_s23   ;;  %s708_s22 = sphi %s759_s22, %s854_s22   ;;  %s704_s21 = sphi %s757_s21, %s853_s21  }
   0x4   : > { %p26_p0 = scmp.ge.s32.totalorder %s25_s26, 4  ;;  %p618_p1 = scmp.ge.s32.totalorder %s720_s25, 1 }
   0x5   : > { %p279_p2 = scmp.lt.s32.totalorder %s720_s25, 33 }
   0x6   : > { %s858_s26 = smov (%p26_p0, %s25_s26), 0  ;;  %s860_s27 = smov (!%p26_p0, %s28_s27), %s716_s24 }
   0x7   : > { %p280_p3 = pnand %p618_p1, %p279_p2  ;;  %p30_p4 = scmp.ge.s32.totalorder %s860_s27, 8 }
   0x8   : > { %p337_p5 = scmp.lt.s32.totalorder (!%p280_p3), %s708_s22, 7  ;;  %p339_p6 = scmp.lt.s32.totalorder (!%p280_p3), %s704_s21, 3 }
   0x9   : > { %s862_s27 = smov (%p30_p4, %s860_s27), 0  ;;  %283 = sbr.rel (%p280_p3) target bundleno = 697 (0x2b9), region = 44 }
   0xa   : > { %851 = sst [smem:[#allocation3_spill]] %s862_s27  ;;  %p628_p7 = scmp.ne.s32.totalorder (!%p280_p3), %s704_s21, 0 }
   0xe   : > { %s864_s22 = smov (!%p337_p5, %s708_s22), 7 }
   0xf   : > { %s340_s28 = scalar_select %p339_p6, %s704_s21, 3 }
  0x10   : > { %s619_s29 = sshll.u32 %s864_s22, 2  ;;  %s627_s30 = sshll.u32 %s864_s22, 1 }
  0x11   : > { %s342_s7 = sadd.s32 %s619_s29, %s340_s28  ;;  %s625_s8 = sshll.u32 %s340_s28, 1 }
  0x12   : > { %s791_s9 = sshll.u32 %s342_s7, 1  ;;  %s796_s12 = scalar_lea.vmem %s847_s3, %s625_s8 }
  0x13   : > { %s344_s15 = scalar_lea.vmem %s844_s0, %s791_s9  ;;  %s542_s18 = scalar_lea.vmem %s845_s1, %s791_s9 }
  0x14   : > { %s547_s22 = scalar_lea.vmem %s846_s2, %s791_s9  ;;  %s370_s10 = scalar_lea.vmem %s849_s5, %s619_s29 }
  0x15   : > { %s816_s8 = scalar_lea.vmem %s850_s6, %s627_s30  ;;  %379 = sbr.rel (%p628_p7) target bundleno = 31 (0x1f), region = 48 }
  0x1a   : > { %v677_v0 = vld [vmem:[%s848_s4] ss:$0 sm:$0xff]  ;;  %vm386_vm0 = vcmask 125952  }
  0x1b   : > { %v384_v1 = vld [vmem:[%s370_s10] sm:$0xf] }
  0x1c   : > { %v385_v2 = vadd.f32 %v677_v0, %v384_v1 }
  0x1e   : > { %387 = vst.msk [vmem:[#allocation2] sm:$0xf] %vm386_vm0, %v385_v2 }
  0x1f PF: > { %v629_v3 = vld [vmem:[%s542_s18 + $0x40] sm:$0x3]  ;;  %vm390_vm1 = vcmask 31744   ;;  %vm411_vm2 = vcmask 27648   ;;  %vm428_vm3 = vcmask 1041408   ;;  %vm468_vm4 = vcmask 125952  }
  0x20   : > { %v395_v4 = vsel %vm390_vm1, %v629_v3, 0  ;;  %v388_v5 = vld [vmem:[%s344_s15] sm:$0x3]  ;;  %p634_p8 = scmp.ne.s32.totalorder %s704_s21, 3 }
  0x21   : > { %404 = vmatpush.bf16.xpose.msra.mxu0 %v395_v4  ;;  %v631_v15 = vld [vmem:[%s547_s22 + $0x80] sm:$0x3] }
  0x22   : > { %v430_v16 = vsel %vm428_vm3, %v631_v15, 0  ;;  %v447_v21 = vld [vmem:[%s796_s12] sm:$0x3] }
  0x23   : > { %439 = vmatpush.bf16.msra.mxu1 %v430_v16  ;;  %v452_v22 = vsel %vm428_vm3, %v447_v21, 0 }
  0x24   : > { %461 = vmatpush.bf16.msra.mxu2 %v452_v22 }
  0x25   : > { %v445_v26 = vld [vmem:[#allocation2] sm:$0xf] }
  0x28   : > { %630 = vmatmul.msk.bf16.vlgmr.msra.gmra.mxu0 %vm390_vm1, %v388_v5 }
  0xa5   : > { %v406_v6 = vpop.f32.mrf.mxu0 }
  0xa6   : > { %v410_v7 = vmul.f32 0.5, %v406_v6 }
  0xa8   : > { %v412_v8 = vsel %vm411_vm2, %v410_v7, -inf }
  0xa9   : > { %413 = vmax.xlane.f32.xlu0 %v412_v8 }
  0xad   : > { %v408_v9 = vpop.f32.mrf.mxu0 }
 0x11c   : > { %v414_v10 = vpop.xlane.xlu0 %413 }
 0x11d   : > { %v415_v11 = vsub.f32 %v410_v7, %v414_v10 }
 0x11f   : > { %v416_v12 = vmul.f32 1.442695, %v415_v11 }
 0x121   : > { %678 = vpow2.f32 %v416_v12 }
 0x127   : > { %v679_v13 = vpop.eup %678 }
 0x128   : > { %v418_v14 = vsel %vm411_vm2, %v679_v13, 0.0 }
 0x129   : > { %419 = vadd.xlane.f32.xlu0 %v418_v14 }
 0x19c   : > { %v420_v17 = vpop.xlane.xlu0 %419 }
 0x19d   : > { %680 = vrcp.f32 %v420_v17 }
 0x1a3   : > { %v681_v18 = vpop.eup %680 }
 0x1a4   : > { %v422_v19 = vmul.f32 %v681_v18, %v679_v13 }
 0x1a6   : > { %v423_v20 = vpack.c.bf16 %v422_v19, %v422_v19 }
 0x1a8   : > { %632 = vmatmul.msk.bf16.vlgmr.msra.gmra.mxu1 %vm390_vm1, %v423_v20 }
 0x225   : > { %v441_v23 = vpop.f32.mrf.mxu1 }
 0x226   : > { %v446_v24 = vpack.c.bf16 %v441_v23, %v441_v23 }
 0x228   : > { %633 = vmatmul.msk.bf16.vlgmr.msra.gmra.mxu2 %vm390_vm1, %v446_v24 }
 0x22d   : > { %v443_v25 = vpop.f32.mrf.mxu1 }
 0x2ab   : > { %v463_v27 = vpop.f32.mrf.mxu2 }
 0x2ac   : > { %v467_v28 = vadd.f32 %v463_v27, %v445_v26 }
 0x2ae   : > { %469 = vst.msk [vmem:[#allocation2] sm:$0xf] %vm468_vm4, %v467_v28 }
 0x2af   : > { %473 = sbr.rel (%p634_p8) target bundleno = 697 (0x2b9), region = 52 }
 0x2b3   : > { %v465_v29 = vpop.f32.mrf.mxu2 }
 0x2b4   : > { %vm476_vm5 = vcmask 123904  }
 0x2b5   : > { %v474_v30 = vld [vmem:[#allocation2] sm:$0xf] }
 0x2b6   : > { %v475_v31 = vpack.c.bf16 %v474_v30, %v474_v30 }
 0x2b8   : > { %477 = vst.msk [vmem:[%s816_s8] sm:$0x3] %vm476_vm5, %v475_v31 }
 0x2b9 PF: > { %s16_s25 = sadd.s32 1, %s720_s25   ;;  %s852_s27 = sld [smem:[#allocation3_spill]] }
 0x2ba   : > { %p13_p9 = scmp.ge.s32.totalorder %s16_s25, 34   ;;  %s853_s21 = smov %s712_s23 }
 0x2bb   : > { %s854_s22 = smov %s716_s24  ;;  %s855_s23 = smov %s858_s26 }
 0x2bc   :  { %15 = sbr.rel (!%p13_p9) target bundleno = 3 (0x3), region = 94 }
 0x2bf   : > { %s856_s24 = smov %s852_s27 }

// kernel: block_forward.22
= control target key start
LH: loop header
LB: loop body
LE: loop exit
PB: predicated region body
PF: predicated region fallthrough
CT: control target
= control target key end

     0   :  { %vm68_vm0 = vcmask 523264   ;;  %vm110_vm1 = vcmask 125952   ;;  %s233_s1 = inlined_call_operand.vmem [shape: bf16[64,16], index: 1, kind: input, shape index: {}]   ;;  %s234_s2 = inlined_call_operand.vmem [shape: f32[1,16], index: 2, kind: input, shape index: {}]   ;;  %s235_s0 = inlined_call_operand.vmem [shape: bf16[32,64], index: 0, kind: input, shape index: {}]   ;;  %s236_s3 = inlined_call_operand.vmem [shape: bf16[32,16], index: 3, kind: input, shape index: {}]   ;;  %s237_s4 = inlined_call_operand.vmem [shape: bf16[32,16], index: 4, kind: output, shape index: {}]  }
   0x1   :  { %v150_v0 = vld [vmem:[%s233_s1 + $0x18] sm:$0xff]  ;;  %v149_v1 = vld [vmem:[%s233_s1 + $0x10] sm:$0xff]  ;;  %v148_v2 = vld [vmem:[%s233_s1 + $0x8] sm:$0xff] }
   0x2   :  { %79 = vmatpush.bf16.msra.mxu0 %v150_v0  ;;  %160 = vmatpush.bf16.msra.mxu1 %v150_v0  ;;  %v147_v3 = vld [vmem:[%s233_s1] sm:$0xff]  ;;  %v146_v5 = vld [vmem:[%s235_s0 + $0x8] sm:$0xff] }
   0x3   :  { %v145_v4 = vld [vmem:[%s235_s0] sm:$0xff]  ;;  %v159_v7 = vld [vmem:[%s236_s3 + $0x8] sm:$0xff]  }
   0x4   :  { %v152_v6 = vld [vmem:[%s236_s3] sm:$0xff]   ;;  %v157_v10 = vunpack.c.l.bf16 %v159_v7  ;;  %v158_v20 = vunpack.c.h.bf16 %v159_v7 }
   0x5   :  { %v164_v8 = vld [vmem:[%s234_s2] ss:$0 sm:$0xff]  ;;  %v153_v9 = vunpack.c.l.bf16 %v152_v6  ;;  %v154_v19 = vunpack.c.h.bf16 %v152_v6 }
   0x6   :  { %80 = vmatpush.bf16.msra.mxu0 %v149_v1  ;;  %161 = vmatpush.bf16.msra.mxu1 %v149_v1 }
   0xa   :  { %81 = vmatpush.bf16.msra.mxu0 %v148_v2  ;;  %162 = vmatpush.bf16.msra.mxu1 %v148_v2 }
   0xe   :  { %82 = vmatpush.bf16.msra.mxu0 %v147_v3  ;;  %163 = vmatpush.bf16.msra.mxu1 %v147_v3 }
  0x11   :  { %143 = vmatmul.msk.bf16.vlgmr.msra.gmra.mxu0 %vm68_vm0, %v145_v4  ;;  %144 = vmatmul.msk.bf16.vlgmr.msra.gmra.mxu1 %vm68_vm0, %v146_v5 }
  0x8e   :  { %v84_v11 = vpop.f32.mrf.mxu0  ;;  %v89_v12 = vpop.f32.mrf.mxu1 }
  0x8f   :  { %v85_v13 = vadd.f32 %v164_v8, %v84_v11  ;;  %v90_v14 = vadd.f32 %v164_v8, %v89_v12 }
  0x91   :  { %v102_v15 = vadd.f32 %v153_v9, %v85_v13  ;;  %v104_v16 = vadd.f32 %v157_v10, %v90_v14 }
  0x93   :  { %v106_v17 = vpack.c.bf16 %v102_v15, %v102_v15  ;;  %v108_v18 = vpack.c.bf16 %v104_v16, %v104_v16 }
  0x95   :  { %111 = vst.msk [vmem:[%s237_s4] sm:$0xf] %vm110_vm1, %v106_v17 }
  0x96   :  { %113 = vst.msk [vmem:[%s237_s4 + $0x8] sm:$0xf] %vm110_vm1, %v108_v18  ;;  %v86_v21 = vpop.f32.mrf.mxu0  ;;  %v91_v22 = vpop.f32.mrf.mxu1 }
  0x97   :  { %v87_v23 = vadd.f32 %v164_v8, %v86_v21  ;;  %v92_v24 = vadd.f32 %v164_v8, %v91_v22 }
  0x99   :  { %v103_v25 = vadd.f32 %v154_v19, %v87_v23  ;;  %v105_v26 = vadd.f32 %v158_v20, %v92_v24 }
  0x9b   :  { %v107_v27 = vpack.c.bf16 %v103_v25, %v103_v25  ;;  %v109_v28 = vpack.c.bf16 %v105_v26, %v105_v26 }
  0x9d   :  { %112 = vst.msk [vmem:[%s237_s4 + $0x4] sm:$0xf] %vm110_vm1, %v107_v27 }
  0x9e   :  { %114 = vst.msk [vmem:[%s237_s4 + $0xc] sm:$0xf] %vm110_vm1, %v109_v28 }

// kernel: block_forward.23
= control target key start
LH: loop header
LB: loop body
LE: loop exit
PB: predicated region body
PF: predicated region fallthrough
CT: control target
= control target key end

     0   :  { %vm22_vm0 = vcmask 130048   ;;  %v169_v10 = vmov 16.0   ;;  %vm138_vm10 = vcmask 125952   ;;  %s241_s0 = inlined_call_operand.vmem [shape: bf16[32,16], index: 0, kind: input, shape index: {}]   ;;  %s242_s1 = inlined_call_operand.vmem [shape: f32[1,16], index: 1, kind: input, shape index: {}]   ;;  %s243_s2 = inlined_call_operand.vmem [shape: f32[1,16], index: 2, kind: input, shape index: {}]   ;;  %s244_s3 = inlined_call_operand.vmem [shape: bf16[32,16], index: 3, kind: output, shape index: {}]  }
   0x1   :  { %v155_v0 = vld [vmem:[%s241_s0 + $0x8] sm:$0xff]   ;;  %v148_v1 = vld [vmem:[%s241_s0] sm:$0xff]   ;;  %159 = vrcp.f32 %v169_v10 }
   0x2   :  { %v153_v2 = vunpack.c.l.bf16 %v155_v0  ;;  %v149_v3 = vunpack.c.l.bf16 %v148_v1  ;;  %v154_v6 = vunpack.c.h.bf16 %v155_v0  ;;  %v150_v7 = vunpack.c.h.bf16 %v148_v1  ;;  %v157_v63 = vld [vmem:[%s242_s1] ss:$0 sm:$0xff] }
   0x4   :  { %v29_v4 = vsel %vm22_vm0, %v153_v2, 0.0  ;;  %v23_v5 = vsel %vm22_vm0, %v149_v3, 0.0  ;;  %v32_v8 = vsel %vm22_vm0, %v154_v6, 0.0  ;;  %v26_v9 = vsel %vm22_vm0, %v150_v7, 0.0 }
   0x5   :  { %30 = vadd.xlane.f32.xlu1 %v29_v4  ;;  %24 = vadd.xlane.f32.xlu0 %v23_v5  ;;  %v158_v4 = vld [vmem:[%s243_s2] ss:$0 sm:$0xff] }
   0x7   :  { %v160_v11 = vpop.eup %159 }
   0x8   :  { %v36_v12 = vmul.f32 16.0, %v160_v11  ;;  %vm40_vm1 = vweird.f32 %v160_v11 }
   0xa   :  { %v37_v13 = vsub.f32 1.0, %v36_v12 }
   0xc   :  { %v38_v14 = vmul.f32 %v160_v11, %v37_v13 }
   0xd   :  { %33 = vadd.xlane.f32.xlu1 %v32_v8  ;;  %27 = vadd.xlane.f32.xlu0 %v26_v9 }
   0xe   :  { %v39_v15 = vadd.f32 %v160_v11, %v38_v14 }
  0x10   :  { %v41_v16 = vsel %vm40_vm1, %v160_v11, %v39_v15 }
  0x78   :  { %v31_v17 = vpop.xlane.xlu1 %30  ;;  %v25_v18 = vpop.xlane.xlu0 %24 }
  0x79   :  { %v44_v19 = vmul.f32 %v41_v16, %v31_v17  ;;  %v42_v20 = vmul.f32 %v41_v16, %v25_v18 }
  0x7b   :  { %v200_v21 = vsub.f32 %v153_v2, %v44_v19  ;;  %v46_v22 = vsub.f32 %v149_v3, %v42_v20 }
  0x7d   :  { %v52_v23 = vmul.f32 %v200_v21, %v200_v21  ;;  %v50_v24 = vmul.f32 %v46_v22, %v46_v22 }
  0x7f   :  { %v60_v25 = vsel %vm22_vm0, %v52_v23, 0.0  ;;  %v54_v26 = vsel %vm22_vm0, %v50_v24, 0.0 }
  0x80   :  { %v34_v27 = vpop.xlane.xlu1 %33  ;;  %61 = vadd.xlane.f32.xlu0 %v60_v25  ;;  %55 = vadd.xlane.f32.xlu2 %v54_v26  ;;  %v28_v28 = vpop.xlane.xlu0 %27 }
  0x81   :  { %v45_v29 = vmul.f32 %v41_v16, %v34_v27  ;;  %v43_v30 = vmul.f32 %v41_v16, %v28_v28 }
  0x83   :  { %v206_v31 = vsub.f32 %v154_v6, %v45_v29  ;;  %v208_v32 = vsub.f32 %v150_v7, %v43_v30 }
  0x85   :  { %v53_v33 = vmul.f32 %v206_v31, %v206_v31  ;;  %v51_v34 = vmul.f32 %v208_v32, %v208_v32 }
  0x87   :  { %v63_v35 = vsel %vm22_vm0, %v53_v33, 0.0  ;;  %v57_v36 = vsel %vm22_vm0, %v51_v34, 0.0 }
  0x88   :  { %64 = vadd.xlane.f32.xlu1 %v63_v35  ;;  %58 = vadd.xlane.f32.xlu2 %v57_v36 }
  0xf3   :  { %v56_v37 = vpop.xlane.xlu2 %55  ;;  %v62_v38 = vpop.xlane.xlu0 %61 }
  0xf4   :  { %v66_v39 = vmul.f32 %v56_v37, %v41_v16  ;;  %v68_v40 = vmul.f32 %v62_v38, %v41_v16 }
  0xf6   :  { %v70_v41 = vadd.f32 1e-05, %v66_v39  ;;  %v72_v42 = vadd.f32 1e-05, %v68_v40 }
  0xf8   :  { %161 = vrsqrt.f32 %v70_v41  ;;  %vm80_vm4 = vweird.f32 %v70_v41  ;;  %vm100_vm6 = vweird.f32 %v72_v42 }
  0xf9   :  { %163 = vrsqrt.f32 %v72_v42 }
  0xfb   :  { %v65_v43 = vpop.xlane.xlu1 %64  ;;  %v59_v44 = vpop.xlane.xlu2 %58 }
  0xfc   :  { %v69_v45 = vmul.f32 %v65_v43, %v41_v16  ;;  %v67_v46 = vmul.f32 %v59_v44, %v41_v16 }
  0xfe   :  { %v162_v47 = vpop.eup %161  ;;  %v73_v48 = vadd.f32 1e-05, %v69_v45  ;;  %v71_v49 = vadd.f32 1e-05, %v67_v46 }
  0xff   :  { %v164_v50 = vpop.eup %163  ;;  %v75_v51 = vmul.f32 %v162_v47, %v70_v41  ;;  %vm81_vm2 = vweird.f32 %v162_v47 }
 0x100   :  { %v95_v52 = vmul.f32 %v164_v50, %v72_v42  ;;  %165 = vrsqrt.f32 %v73_v48  ;;  %vm101_vm3 = vweird.f32 %v164_v50  ;;  %vm82_vm5 = vmor %vm80_vm4, %vm81_vm2  ;;  %vm110_vm11 = vweird.f32 %v73_v48 }
 0x101   :  { %v76_v53 = vmul.f32 %v162_v47, %v75_v51  ;;  %167 = vrsqrt.f32 %v71_v49  ;;  %vm102_vm7 = vmor %vm100_vm6, %vm101_vm3  ;;  %vm90_vm13 = vweird.f32 %v71_v49 }
 0x102   :  { %v96_v54 = vmul.f32 %v164_v50, %v95_v52 }
 0x103   :  { %v77_v55 = vmul.f32 0.5, %v76_v53 }
 0x104   :  { %v97_v56 = vmul.f32 0.5, %v96_v54 }
 0x105   :  { %v78_v57 = vsub.f32 1.5, %v77_v55 }
 0x106   :  { %v166_v58 = vpop.eup %165  ;;  %v98_v59 = vsub.f32 1.5, %v97_v56 }
 0x107   :  { %v168_v60 = vpop.eup %167  ;;  %v79_v61 = vmul.f32 %v162_v47, %v78_v57  ;;  %v105_v62 = vmul.f32 %v166_v58, %v73_v48  ;;  %vm111_vm8 = vweird.f32 %v166_v58 }
 0x108   :  { %v99_v0 = vmul.f32 %v164_v50, %v98_v59  ;;  %v85_v1 = vmul.f32 %v168_v60, %v71_v49  ;;  %vm91_vm9 = vweird.f32 %v168_v60  ;;  %vm112_vm12 = vmor %vm110_vm11, %vm111_vm8 }
 0x109   :  { %v83_v2 = vsel %vm82_vm5, %v162_v47, %v79_v61  ;;  %v106_v3 = vmul.f32 %v166_v58, %v105_v62  ;;  %vm92_vm14 = vmor %vm90_vm13, %vm91_vm9 }
 0x10a   :  { %v114_v5 = vmul.f32 %v83_v2, %v46_v22  ;;  %v103_v6 = vsel %vm102_vm7, %v164_v50, %v99_v0  ;;  %v86_v7 = vmul.f32 %v168_v60, %v85_v1 }
 0x10b   :  { %v116_v8 = vmul.f32 %v103_v6, %v200_v21  ;;  %v107_v9 = vmul.f32 0.5, %v106_v3 }
 0x10c   :  { %v122_v10 = vmul.f32 %v157_v63, %v114_v5  ;;  %v87_v11 = vmul.f32 0.5, %v86_v7 }
 0x10d   :  { %v124_v12 = vmul.f32 %v157_v63, %v116_v8  ;;  %v108_v13 = vsub.f32 1.5, %v107_v9 }
 0x10e   :  { %v130_v14 = vadd.f32 %v158_v4, %v122_v10  ;;  %v88_v15 = vsub.f32 1.5, %v87_v11 }
 0x10f   :  { %v132_v16 = vadd.f32 %v158_v4, %v124_v12  ;;  %v109_v17 = vmul.f32 %v166_v58, %v108_v13 }
 0x110   :  { %v134_v18 = vpack.c.bf16 %v130_v14, %v130_v14  ;;  %v89_v19 = vmul.f32 %v168_v60, %v88_v15 }
 0x111   :  { %v136_v20 = vpack.c.bf16 %v132_v16, %v132_v16  ;;  %v113_v22 = vsel %vm112_vm12, %v166_v58, %v109_v17 }
 0x112   :  { %139 = vst.msk [vmem:[%s244_s3] sm:$0xf] %vm138_vm10, %v134_v18  ;;  %v117_v21 = vmul.f32 %v113_v22, %v206_v31  ;;  %v93_v23 = vsel %vm92_vm14, %v168_v60, %v89_v19 }
 0x113   :  { %141 = vst.msk [vmem:[%s244_s3 + $0x8] sm:$0xf] %vm138_vm10, %v136_v20  ;;  %v115_v24 = vmul.f32 %v93_v23, %v208_v32 }
 0x114   :  { %v125_v25 = vmul.f32 %v157_v63, %v117_v21 }
 0x115   :  { %v123_v26 = vmul.f32 %v157_v63, %v115_v24 }
 0x116   :  { %v133_v27 = vadd.f32 %v158_v4, %v125_v25 }
 0x117   :  { %v131_v28 = vadd.f32 %v158_v4, %v123_v26 }
 0x118   :  { %v137_v29 = vpack.c.bf16 %v133_v27, %v133_v27 }
 0x119   :  { %v135_v30 = vpack.c.bf16 %v131_v28, %v131_v28 }
 0x11a   :  { %142 = vst.msk [vmem:[%s244_s3 + $0xc] sm:$0xf] %vm138_vm10, %v137_v29 }
 0x11b   :  { %140 = vst.msk [vmem:[%s244_s3 + $0x4] sm:$0xf] %vm138_vm10, %v135_v30 }

// kernel: block_forward.25
= control target key start
LH: loop header
LB: loop body
LE: loop exit
PB: predicated region body
PF: predicated region fallthrough
CT: control target
= control target key end

     0   :  { %vm22_vm0 = vcmask 523264   ;;  %v183_v5 = vmov 64.0   ;;  %s238_s0 = inlined_call_operand.vmem [shape: bf16[16,64], index: 0, kind: input, shape index: {}]   ;;  %s239_s1 = inlined_call_operand.vmem [shape: f32[1,64], index: 1, kind: input, shape index: {}]   ;;  %s240_s2 = inlined_call_operand.vmem [shape: f32[1,64], index: 2, kind: input, shape index: {}]   ;;  %s241_s3 = inlined_call_operand.vmem [shape: bf16[64,128], index: 3, kind: input, shape index: {}]   ;;  %s242_s4 = inlined_call_operand.vmem [shape: bf16[16,128], index: 4, kind: output, shape index: {}]  }
   0x1   :  { %v166_v0 = vld [vmem:[%s238_s0] sm:$0xff]   ;;  %177 = vrcp.f32 %v183_v5  ;;  %v164_v22 = vld [vmem:[%s241_s3 + $0x18] sm:$0xff]  ;;  %v163_v23 = vld [vmem:[%s241_s3 + $0x10] sm:$0xff] }
   0x2   :  { %v167_v1 = vunpack.c.l.bf16 %v166_v0  ;;  %v168_v3 = vunpack.c.h.bf16 %v166_v0  ;;  %126 = vmatpush.bf16.msra.mxu0 %v164_v22  ;;  %v162_v24 = vld [vmem:[%s241_s3 + $0x8] sm:$0xff]  ;;  %v161_v26 = vld [vmem:[%s241_s3] sm:$0xff] }
   0x3   :  { %v175_v45 = vld [vmem:[%s239_s1] ss:$0 sm:$0xff] }
   0x4   :  { %v23_v2 = vsel %vm22_vm0, %v167_v1, 0.0  ;;  %v26_v4 = vsel %vm22_vm0, %v168_v3, 0.0  ;;  %v176_v50 = vld [vmem:[%s240_s2] ss:$0 sm:$0xff] }
   0x5   :  { %24 = vadd.xlane.f32.xlu0 %v23_v2 }
   0x6   :  { %127 = vmatpush.bf16.msra.mxu0 %v163_v23 }
   0x7   :  { %v178_v6 = vpop.eup %177 }
   0x8   :  { %v30_v7 = vmul.f32 64.0, %v178_v6  ;;  %vm34_vm1 = vweird.f32 %v178_v6 }
   0xa   :  { %v31_v8 = vsub.f32 1.0, %v30_v7  ;;  %128 = vmatpush.bf16.msra.mxu0 %v162_v24 }
   0xc   :  { %v32_v9 = vmul.f32 %v178_v6, %v31_v8 }
   0xd   :  { %27 = vadd.xlane.f32.xlu0 %v26_v4 }
   0xe   :  { %v33_v10 = vadd.f32 %v178_v6, %v32_v9  ;;  %129 = vmatpush.bf16.msra.mxu0 %v161_v26 }
  0x10   :  { %v35_v11 = vsel %vm34_vm1, %v178_v6, %v33_v10 }
  0x78   :  { %v25_v12 = vpop.xlane.xlu0 %24 }
  0x79   :  { %v36_v13 = vmul.f32 %v35_v11, %v25_v12 }
  0x7b   :  { %v38_v14 = vsub.f32 %v167_v1, %v36_v13 }
  0x7d   :  { %v40_v15 = vmul.f32 %v38_v14, %v38_v14 }
  0x7f   :  { %v42_v16 = vsel %vm22_vm0, %v40_v15, 0.0 }
  0x80   :  { %43 = vadd.xlane.f32.xlu1 %v42_v16  ;;  %v28_v17 = vpop.xlane.xlu0 %27 }
  0x81   :  { %v37_v18 = vmul.f32 %v35_v11, %v28_v17 }
  0x83   :  { %v39_v19 = vsub.f32 %v168_v3, %v37_v18 }
  0x85   :  { %v41_v20 = vmul.f32 %v39_v19, %v39_v19 }
  0x87   :  { %v45_v21 = vsel %vm22_vm0, %v41_v20, 0.0 }
  0x88   :  { %46 = vadd.xlane.f32.xlu1 %v45_v21 }
  0xf3   :  { %v44_v25 = vpop.xlane.xlu1 %43 }
  0xf4   :  { %v48_v27 = vmul.f32 %v44_v25, %v35_v11 }
  0xf6   :  { %v50_v28 = vadd.f32 1e-05, %v48_v27 }
  0xf8   :  { %179 = vrsqrt.f32 %v50_v28  ;;  %vm58_vm3 = vweird.f32 %v50_v28 }
  0xfb   :  { %v47_v29 = vpop.xlane.xlu1 %46 }
  0xfc   :  { %v49_v30 = vmul.f32 %v47_v29, %v35_v11 }
  0xfe   :  { %v180_v31 = vpop.eup %179  ;;  %v51_v32 = vadd.f32 1e-05, %v49_v30 }
  0xff   :  { %v53_v33 = vmul.f32 %v180_v31, %v50_v28  ;;  %vm59_vm2 = vweird.f32 %v180_v31 }
 0x100   :  { %181 = vrsqrt.f32 %v51_v32  ;;  %vm60_vm4 = vmor %vm58_vm3, %vm59_vm2  ;;  %vm68_vm6 = vweird.f32 %v51_v32 }
 0x101   :  { %v54_v34 = vmul.f32 %v180_v31, %v53_v33 }
 0x103   :  { %v55_v35 = vmul.f32 0.5, %v54_v34 }
 0x105   :  { %v56_v36 = vsub.f32 1.5, %v55_v35 }
 0x106   :  { %v182_v37 = vpop.eup %181 }
 0x107   :  { %v57_v38 = vmul.f32 %v180_v31, %v56_v36  ;;  %v63_v39 = vmul.f32 %v182_v37, %v51_v32  ;;  %vm69_vm5 = vweird.f32 %v182_v37 }
 0x108   :  { %vm70_vm7 = vmor %vm68_vm6, %vm69_vm5 }
 0x109   :  { %v64_v40 = vmul.f32 %v182_v37, %v63_v39  ;;  %v61_v41 = vsel %vm60_vm4, %v180_v31, %v57_v38 }
 0x10a   :  { %v72_v44 = vmul.f32 %v61_v41, %v38_v14 }
 0x10b   :  { %v65_v42 = vmul.f32 0.5, %v64_v40 }
 0x10c   :  { %v78_v49 = vmul.f32 %v175_v45, %v72_v44 }
 0x10d   :  { %v66_v43 = vsub.f32 1.5, %v65_v42 }
 0x10e   :  { %v84_v52 = vadd.f32 %v176_v50, %v78_v49 }
 0x10f   :  { %v67_v46 = vmul.f32 %v182_v37, %v66_v43 }
 0x111   :  { %v71_v47 = vsel %vm70_vm7, %v182_v37, %v67_v46 }
 0x112   :  { %v73_v48 = vmul.f32 %v71_v47, %v39_v19 }
 0x114   :  { %v79_v51 = vmul.f32 %v175_v45, %v73_v48 }
 0x116   :  { %v85_v53 = vadd.f32 %v176_v50, %v79_v51 }
 0x118   :  { %v86_v54 = vpack.c.bf16 %v85_v53, %v84_v52 }
 0x11a   :  { %160 = vmatmul.msk.bf16.vlgmr.msra.gmra.mxu0 %vm22_vm0, %v86_v54 }
 0x197   :  { %v131_v55 = vpop.f32.mrf.mxu0 }
 0x19f   :  { %v133_v56 = vpop.f32.mrf.mxu0 }
 0x1a0   :  { %v172_v57 = vpack.c.bf16 %v133_v56, %v131_v55 }
 0x1a2   :  { %173 = vst [vmem:[%s242_s4] sm:$0xff] %v172_v57  }

// kernel: block_forward.24
= control target key start
LH: loop header
LB: loop body
LE: loop exit
PB: predicated region body
PF: predicated region fallthrough
CT: control target
= control target key end

     0   :  { %vm55_vm0 = vcmask 523264   ;;  %vm75_vm1 = vcmask 519168   ;;  %s152_s1 = inlined_call_operand.vmem [shape: bf16[64,64], index: 1, kind: input, shape index: {}]   ;;  %s153_s2 = inlined_call_operand.vmem [shape: f32[1,64], index: 2, kind: input, shape index: {}]   ;;  %s154_s0 = inlined_call_operand.vmem [shape: bf16[8,64], index: 0, kind: input, shape index: {}]   ;;  %s155_s3 = inlined_call_operand.vmem [shape: f32[8,64], index: 3, kind: input, shape index: {}]   ;;  %s156_s4 = inlined_call_operand.vmem [shape: bf16[8,64], index: 4, kind: output, shape index: {}]  }
   0x1   :  { %v101_v0 = vld [vmem:[%s152_s1 + $0x18] sm:$0xff]  ;;  %v100_v1 = vld [vmem:[%s152_s1 + $0x10] sm:$0xff]  ;;  %v99_v2 = vld [vmem:[%s152_s1 + $0x8] sm:$0xff] }
   0x2   :  { %63 = vmatpush.bf16.msra.mxu0 %v101_v0  ;;  %v98_v3 = vld [vmem:[%s152_s1] sm:$0xff] }
   0x3   :  { %v18_v4 = vld [vmem:[%s154_s0] sm:$0xf] }
   0x4   :  { %v102_v5 = vld [vmem:[%s153_s2] ss:$0 sm:$0xff] }
   0x5   :  { %v72_v7 = vld [vmem:[%s155_s3] sm:$0xff] }
   0x6   :  { %64 = vmatpush.bf16.msra.mxu0 %v100_v1 }
   0xa   :  { %65 = vmatpush.bf16.msra.mxu0 %v99_v2 }
   0xe   :  { %66 = vmatpush.bf16.msra.mxu0 %v98_v3 }
  0x11   :  { %97 = vmatmul.msk.bf16.vlgmr.msra.gmra.mxu0 %vm55_vm0, %v18_v4 }
  0x8e   :  { %v68_v6 = vpop.f32.mrf.mxu0 }
  0x8f   :  { %v69_v8 = vadd.f32 %v102_v5, %v68_v6 }
  0x91   :  { %v73_v9 = vadd.f32 %v72_v7, %v69_v8 }
  0x93   :  { %v74_v10 = vpack.c.bf16 %v73_v9, %v73_v9 }
  0x95   :  { %76 = vst.msk [vmem:[%s156_s4] sm:$0xf] %vm75_vm1, %v74_v10 }
  0x96   :  { %v70_v11 = vpop.f32.mrf.mxu0 }

// kernel: block_forward.26
= control target key start
LH: loop header
LB: loop body
LE: loop exit
PB: predicated region body
PF: predicated region fallthrough
CT: control target
= control target key end

     0   :  { %s287_s9 = smov 0   ;;  %s314_s0 = inlined_call_operand.vmem [shape: bf16[2,8,128], index: 0, kind: input, shape index: {}]   ;;  %s315_s1 = inlined_call_operand.vmem [shape: f32[4,128], index: 1, kind: input, shape index: {}]   ;;  %s316_s2 = inlined_call_operand.vmem [shape: bf16[2,5,128], index: 2, kind: output, shape index: {}]  }
   0x1 LB: > { %s242_s10 = sadd.s32 4294967295, %s270_s9   ;;  %p246_p0 = scmp.ge.s32.totalorder %s270_s9, 1  ;;  %s270_s9 = sphi %s287_s9, %s12_s9  }
   0x2   : > { %p111_p1 = scmp.lt.s32.totalorder %s270_s9, 3 }
   0x4   : > { %p112_p2 = pnand %p246_p0, %p111_p1 }
   0x5   : > { %p131_p3 = scmp.lt.s32.totalorder (!%p112_p2), %s242_s10, 1 }
   0x6   : > { %115 = sbr.rel (%p112_p2) target bundleno = 61 (0x3d), region = 28 }
   0xb   : > { %s318_s10 = smov (!%p131_p3, %s242_s10), 1  ;;  %v141_v0 = vld [vmem:[%s315_s1] sm:$0xf]  ;;  %vm183_vm4 = vcmask 1042432   ;;  %vm184_vm5 = vsmask.f32 2304 }
   0xc   : > { %s247_s13 = sshll.u32 %s318_s10, 2  ;;  %v142_v1 = vperm.slane %v141_v0, 0  ;;  %v144_v2 = vperm.slane %v141_v0, 1  ;;  %v150_v3 = vperm.slane %v141_v0, 2  ;;  %v156_v4 = vperm.slane %v141_v0, 3  ;;  %vm185_vm6 = vmand %vm183_vm4, %vm184_vm5 }
   0xd   : > { %s134_s16 = scalar_lea.vmem %s314_s0, %s247_s13  ;;  %s138_s19 = scalar_lea.vmem %s316_s2, %s247_s13 }
   0xe   : > { %v139_v5 = vld [vmem:[%s134_s16] sm:$0xf] }
   0xf   : > { %v140_v6 = vunpack.c.l.bf16 %v139_v5  ;;  %v186_v31 = vld [vmem:[%s138_s19] sm:$0x7] }
  0x11   : > { %v143_v7 = vmul.f32 %v142_v1, %v140_v6  ;;  %v145_v8 = vmul.f32 %v144_v2, %v140_v6  ;;  %v151_v9 = vmul.f32 %v150_v3, %v140_v6  ;;  %v157_v10 = vmul.f32 %v156_v4, %v140_v6 }
  0x13   : > { %v147_v11 = vrot.slane %v145_v8, 1  ;;  %v153_v12 = vrot.slane %v151_v9, 2  ;;  %v159_v14 = vrot.slane %v157_v10, 3 }
  0x15   : > { %v149_v13 = vadd.f32 %v147_v11, %v143_v7 }
  0x17   : > { %v155_v15 = vadd.f32 %v153_v12, %v149_v13 }
  0x19   : > { %v161_v16 = vadd.f32 %v159_v14, %v155_v15 }
  0x1b   : > { %v249_v17 = vmul.f32 -1.442695, %v161_v16 }
  0x1d   : > { %260 = vpow2.f32 %v249_v17 }
  0x23   : > { %v261_v18 = vpop.eup %260 }
  0x24   : > { %v165_v19 = vadd.f32 1.0, %v261_v18 }
  0x26   : > { %262 = vrcp.f32 %v165_v19  ;;  %v177_v22 = vand.u32 2147483648, %v165_v19  ;;  %vm171_vm0 = vweird.f32 %v165_v19  ;;  %v175_v24 = vand.u32 2147483647, %v165_v19 }
  0x28   : > { %v178_v26 = vor.u32 1.1754944e-38, %v177_v22  ;;  %vm176_vm3 = vcmp.eq.f32.partialorder %v175_v24, 8.507059e+37 }
  0x2c   : > { %v263_v20 = vpop.eup %262 }
  0x2d   : > { %v167_v21 = vmul.f32 %v263_v20, %v165_v19  ;;  %vm172_vm1 = vweird.f32 %v263_v20 }
  0x2e   : > { %vm173_vm2 = vmor %vm171_vm0, %vm172_vm1 }
  0x2f   : > { %v168_v23 = vsub.f32 1.0, %v167_v21 }
  0x31   : > { %v169_v25 = vmul.f32 %v263_v20, %v168_v23 }
  0x33   : > { %v170_v27 = vadd.f32 %v263_v20, %v169_v25 }
  0x35   : > { %v174_v28 = vsel %vm173_vm2, %v263_v20, %v170_v27 }
  0x36   : > { %v179_v29 = vsel %vm176_vm3, %v178_v26, %v174_v28 }
  0x37   : > { %v181_v30 = vmul.f32 %v179_v29, %v161_v16 }
  0x39   : > { %v182_v32 = vpack.c.bf16 %v181_v30, %v181_v30 }
  0x3b   : > { %v187_v33 = vsel %vm185_vm6, %v182_v32, %v186_v31 }
  0x3c   : > { %188 = vst [vmem:[%s138_s19] sm:$0x7] %v187_v33 }
  0x3d PF: > { %s12_s9 = sadd.s32 1, %s270_s9  }
  0x3e   : > { %p9_p4 = scmp.ge.s32.totalorder %s12_s9, 4  }
  0x40   :  { %11 = sbr.rel (!%p9_p4) target bundleno = 1 (0x1), region = 58 }

// kernel: block_forward.27
= control target key start
LH: loop header
LB: loop body
LE: loop exit
PB: predicated region body
PF: predicated region fallthrough
CT: control target
= control target key end

     0   :  { %vm58_vm0 = vcmask 523264   ;;  %vm78_vm1 = vcmask 781312   ;;  %s156_s1 = inlined_call_operand.vmem [shape: bf16[64,96], index: 1, kind: input, shape index: {}]   ;;  %s157_s2 = inlined_call_operand.vmem [shape: f32[1,96], index: 2, kind: input, shape index: {}]   ;;  %s158_s0 = inlined_call_operand.vmem [shape: bf16[16,64], index: 0, kind: input, shape index: {}]   ;;  %s159_s3 = inlined_call_operand.vmem [shape: bf16[16,96], index: 3, kind: output, shape index: {}]  }
   0x1   :  { %v110_v0 = vld [vmem:[%s156_s1 + $0x18] sm:$0xff]  ;;  %v109_v1 = vld [vmem:[%s156_s1 + $0x10] sm:$0xff]  ;;  %v108_v2 = vld [vmem:[%s156_s1 + $0x8] sm:$0xff] }
   0x2   :  { %66 = vmatpush.bf16.msra.mxu0 %v110_v0  ;;  %v107_v3 = vld [vmem:[%s156_s1] sm:$0xff] }
   0x3   :  { %v106_v4 = vld [vmem:[%s158_s0] sm:$0xff] }
   0x4   :  { %v111_v5 = vld [vmem:[%s157_s2] ss:$0 sm:$0xff] }
   0x6   :  { %67 = vmatpush.bf16.msra.mxu0 %v109_v1 }
   0xa   :  { %68 = vmatpush.bf16.msra.mxu0 %v108_v2 }
   0xe   :  { %69 = vmatpush.bf16.msra.mxu0 %v107_v3 }
  0x11   :  { %105 = vmatmul.msk.bf16.vlgmr.msra.gmra.mxu0 %vm58_vm0, %v106_v4 }
  0x8e   :  { %v71_v6 = vpop.f32.mrf.mxu0 }
  0x8f   :  { %v72_v7 = vadd.f32 %v111_v5, %v71_v6 }
  0x91   :  { %v76_v8 = vpack.c.bf16 %v72_v7, %v72_v7 }
  0x93   :  { %79 = vst.msk [vmem:[%s159_s3] sm:$0xf] %vm78_vm1, %v76_v8 }
  0x96   :  { %v73_v9 = vpop.f32.mrf.mxu0 }
  0x97   :  { %v74_v10 = vadd.f32 %v111_v5, %v73_v9 }
  0x99   :  { %v77_v11 = vpack.c.bf16 %v74_v10, %v74_v10 }
  0x9b   :  { %80 = vst.msk [vmem:[%s159_s3 + $0x4] sm:$0xf] %vm78_vm1, %v77_v11 }

// kernel: block_forward.29
= control target key start
LH: loop header
LB: loop body
LE: loop exit
PB: predicated region body
PF: predicated region fallthrough
CT: control target
= control target key end

     0   :  { %vm106_vm0 = vcmask 519168   ;;  %s218_s1 = inlined_call_operand.vmem [shape: bf16[128,64], index: 1, kind: input, shape index: {}]   ;;  %s219_s0 = inlined_call_operand.vmem [shape: bf16[16,128], index: 0, kind: input, shape index: {}]   ;;  %s220_s2 = inlined_call_operand.vmem [shape: bf16[16,64], index: 2, kind: input, shape index: {}]   ;;  %s221_s3 = inlined_call_operand.vmem [shape: bf16[16,64], index: 3, kind: output, shape index: {}]  }
   0x1   :  { %v157_v0 = vld [vmem:[%s218_s1 + $0x38] sm:$0xff]  ;;  %v156_v1 = vld [vmem:[%s218_s1 + $0x30] sm:$0xff]  ;;  %v155_v2 = vld [vmem:[%s218_s1 + $0x28] sm:$0xff] }
   0x2   :  { %90 = vmatpush.bf16.msra.mxu0 %v157_v0  ;;  %v154_v3 = vld [vmem:[%s218_s1 + $0x20] sm:$0xff]  ;;  %v153_v4 = vld [vmem:[%s218_s1 + $0x18] sm:$0xff]  ;;  %v152_v5 = vld [vmem:[%s218_s1 + $0x10] sm:$0xff] }
   0x3   :  { %v151_v6 = vld [vmem:[%s218_s1 + $0x8] sm:$0xff]  ;;  %v150_v7 = vld [vmem:[%s218_s1] sm:$0xff] }
   0x4   :  { %v149_v8 = vld [vmem:[%s219_s0] sm:$0xff] }
   0x5   :  { %v159_v9 = vld [vmem:[%s220_s2] sm:$0xff]  }
   0x6   :  { %91 = vmatpush.bf16.msra.mxu0 %v156_v1  ;;  %v160_v10 = vunpack.c.l.bf16 %v159_v9  ;;  %v161_v14 = vunpack.c.h.bf16 %v159_v9 }
   0xa   :  { %92 = vmatpush.bf16.msra.mxu0 %v155_v2 }
   0xe   :  { %93 = vmatpush.bf16.msra.mxu0 %v154_v3 }
  0x12   :  { %94 = vmatpush.bf16.msra.mxu0 %v153_v4 }
  0x16   :  { %95 = vmatpush.bf16.msra.mxu0 %v152_v5 }
  0x1a   :  { %96 = vmatpush.bf16.msra.mxu0 %v151_v6 }
  0x1e   :  { %97 = vmatpush.bf16.msra.mxu0 %v150_v7 }
  0x21   :  { %98 = vmatmul.bf16.vlgmr.msra.gmra.mxu0 %v149_v8 }
  0x9e   :  { %v99_v11 = vpop.f32.mrf.mxu0 }
  0x9f   :  { %v100_v12 = vadd.f32 %v160_v10, %v99_v11 }
  0xa1   :  { %v104_v13 = vpack.c.bf16 %v100_v12, %v100_v12 }
  0xa3   :  { %107 = vst.msk [vmem:[%s221_s3] sm:$0xf] %vm106_vm0, %v104_v13 }
  0xa6   :  { %v101_v15 = vpop.f32.mrf.mxu0 }
  0xa7   :  { %v102_v16 = vadd.f32 %v161_v14, %v101_v15 }
  0xa9   :  { %v105_v17 = vpack.c.bf16 %v102_v16, %v102_v16 }
  0xab   :  { %108 = vst.msk [vmem:[%s221_s3 + $0x4] sm:$0xf] %vm106_vm0, %v105_v17 }

// kernel: block_forward.28
= control target key start
LH: loop header
LB: loop body
LE: loop exit
PB: predicated region body
PF: predicated region fallthrough
CT: control target
= control target key end

     0   :  { %s1201_s24 = smov 0   ;;  %s1398_s0 = inlined_call_operand.vmem [shape: bf16[2,8,64], index: 0, kind: input, shape index: {}]   ;;  %s1399_s1 = inlined_call_operand.vmem [shape: bf16[2,8,64], index: 1, kind: input, shape index: {}]   ;;  %s1400_s2 = inlined_call_operand.vmem [shape: bf16[2,8,16], index: 2, kind: input, shape index: {}]   ;;  %s1401_s3 = inlined_call_operand.vmem [shape: bf16[2,8,16], index: 3, kind: input, shape index: {}]   ;;  %s1402_s4 = inlined_call_operand.vmem [shape: f32[16,64], index: 4, kind: input, shape index: {}]   ;;  %s1403_s5 = inlined_call_operand.vmem [shape: f32[1,64], index: 5, kind: input, shape index: {}]   ;;  %s1404_s6 = inlined_call_operand.vmem [shape: f32[1,64], index: 6, kind: input, shape index: {}]   ;;  %s1405_s7 = inlined_call_operand.vmem [shape: bf16[2,8,64], index: 7, kind: output, shape index: {}]  }
   0x1 LB: > { %s1002_s25 = sadd.s32 4294967295, %s1159_s24   ;;  %p1006_p0 = scmp.ge.s32.totalorder %s1159_s24, 1  ;;  %s1159_s24 = sphi %s1201_s24, %s17_s24  }
   0x2   : > { %p263_p1 = scmp.lt.s32.totalorder %s1159_s24, 3 }
   0x4   : > { %p264_p2 = pnand %p1006_p0, %p263_p1 }
   0x5   : > { %p305_p3 = scmp.lt.s32.totalorder (!%p264_p2), %s1002_s25, 1 }
   0x6   : > { %267 = sbr.rel (%p264_p2) target bundleno = 242 (0xf2), region = 48 }
   0xb   : > { %v428_v0 = vlaneseq  ;;  %s1407_s25 = smov (!%p305_p3, %s1002_s25), 1  ;;  %v1115_v29 = vld [vmem:[%s1404_s6] ss:$0 sm:$0xff]  ;;  %vm576_vm2 = vcmask 523264   ;;  %vm889_vm3 = vcmask 1041409   ;;  %vm892_vm4 = vcmask 1042434  }
   0xc   : > { %s1213_s26 = sshll.u32 %s1407_s25, 2  ;;  %v1242_v48 = vld [vmem:[%s1402_s4] sm:$0xff]  ;;  %vm895_vm5 = vcmask 1043459   ;;  %vm898_vm6 = vcmask 1044484   ;;  %vm901_vm7 = vcmask 1045509   ;;  %vm904_vm8 = vcmask 1046534  }
   0xd   : > { %v1209_v1 = vshrl.u32 %v428_v0, 7  ;;  %s316_s29 = scalar_lea.vmem %s1400_s2, %s1213_s26  ;;  %s320_s9 = scalar_lea.vmem %s1401_s3, %s1213_s26  ;;  %vm907_vm9 = vcmask 1047559   ;;  %vm911_vm10 = vcmask 519168  }
   0xe   : > { %v351_v2 = vld [vmem:[%s316_s29] sm:$0xf]  ;;  %s312_s12 = scalar_lea.vmem %s1399_s1, %s1213_s26  ;;  %s308_s19 = scalar_lea.vmem %s1398_s0, %s1213_s26 }
   0xf   : > { %1034 = vset.pattern.permute.xlu1 %v1209_v1  ;;  %1022 = vset.pattern.permute.xlu0 %v1209_v1  ;;  %v352_v3 = vunpack.c.l.bf16 %v351_v2  ;;  %v436_v13 = vadd.s32 8, %v1209_v1  ;;  %v353_v16 = vld [vmem:[%s320_s9] sm:$0xf]  ;;  %s324_s28 = scalar_lea.vmem %s1405_s7, %s1213_s26 }
  0x10   : > { %1040 = vset.pattern.permute.xlu2 %v1209_v1  ;;  %v354_v17 = vunpack.c.l.bf16 %v353_v16  ;;  %v331_v27 = vld [vmem:[%s312_s12] sm:$0xf] }
  0x11   : > { %v453_v4 = vperm.slane %v352_v3, 2  ;;  %v466_v5 = vperm.slane %v352_v3, 3  ;;  %v427_v6 = vperm.slane %v352_v3, 0  ;;  %v440_v7 = vperm.slane %v352_v3, 1  ;;  %v1251_v54 = vld [vmem:[%s308_s19] sm:$0xf] }
  0x12   : > { %v479_v8 = vperm.slane %v352_v3, 4  ;;  %v492_v9 = vperm.slane %v352_v3, 5  ;;  %v505_v14 = vperm.slane %v352_v3, 6  ;;  %v518_v15 = vperm.slane %v352_v3, 7 }
  0x13   : > { %v1035_v10 = vpack.i.bf16 %v466_v5, %v453_v4  ;;  %v1023_v11 = vpack.i.bf16 %v440_v7, %v427_v6  ;;  %v628_v19 = vperm.slane %v354_v17, 0  ;;  %v641_v20 = vperm.slane %v354_v17, 1  ;;  %v1274_v6 = vld [vmem:[%s1402_s4 + $0x8] sm:$0xff] }
  0x14   : > { %v1041_v12 = vpack.i.bf16 %v492_v9, %v479_v8  ;;  %v1064_v18 = vpack.i.bf16 %v518_v15, %v505_v14  ;;  %v654_v22 = vperm.slane %v354_v17, 2  ;;  %v667_v23 = vperm.slane %v354_v17, 3 }
  0x15   : > { %v1070_v21 = vpack.i.bf16 %v641_v20, %v628_v19  ;;  %v680_v25 = vperm.slane %v354_v17, 4  ;;  %v693_v26 = vperm.slane %v354_v17, 5  ;;  %v332_v30 = vunpack.c.l.bf16 %v331_v27 }
  0x16   : > { %v1082_v24 = vpack.i.bf16 %v667_v23, %v654_v22  ;;  %v706_v34 = vperm.slane %v354_v17, 6  ;;  %v719_v35 = vperm.slane %v354_v17, 7  ;;  %v330_v58 = vunpack.c.l.bf16 %v1251_v54 }
  0x17   : > { %1036 = vperm.xlu1 %1034, %v1035_v10   ;;  %1024 = vperm.xlu0 %1022, %v1023_v11   ;;  %v1098_v28 = vpack.i.bf16 %v693_v26, %v680_v25  ;;  %v336_v31 = vadd.f32 %v1115_v29, %v332_v30 }
  0x18   : > { %1042 = vperm.xlu2 %1040, %v1041_v12   ;;  %v1110_v36 = vpack.i.bf16 %v719_v35, %v706_v34 }
  0x19   : > { %v338_v32 = vmin.f32 %v336_v31, 20.0  ;;  %vm337_vm1 = vcmp.gt.f32.partialorder %v336_v31, 20.0 }
  0x1b   : > { %v339_v33 = vmul.f32 1.442695, %v338_v32 }
  0x1d   : > { %1117 = vpow2.f32 %v339_v33 }
  0x1f   : > { %1046 = vset.pattern.permute.xlu1 %v436_v13  ;;  %1028 = vset.pattern.permute.xlu0 %v436_v13 }
  0x20   : > { %1058 = vset.pattern.permute.xlu2 %v436_v13 }
  0x23   : > { %v1118_v37 = vpop.eup %1117 }
  0x24   : > { %v341_v38 = vadd.f32 1.0, %v1118_v37  ;;  %v344_v39 = vmul.f32 -0.5, %v1118_v37  ;;  %v347_v42 = vand.u32 2147483647, %v1118_v37 }
  0x26   : > { %1119 = vlog2.f32 %v341_v38  ;;  %v345_v40 = vadd.f32 1.0, %v344_v39  ;;  %vm348_vm0 = vcmp.lt.f32.partialorder %v347_v42, 0.0004427343 }
  0x27   : > { %1048 = vperm.xlu1 %1046, %v1035_v10   ;;  %1030 = vperm.xlu0 %1028, %v1023_v11  }
  0x28   : > { %1060 = vperm.xlu2 %1058, %v1041_v12   ;;  %v346_v44 = vmul.f32 %v1118_v37, %v345_v40 }
  0x2c   : > { %v1120_v41 = vpop.eup %1119 }
  0x2d   : > { %v343_v43 = vmul.f32 0.6931472, %v1120_v41 }
  0x2f   : > { %1052 = vset.pattern.permute.xlu1 %v1209_v1  ;;  %1069 = vset.pattern.permute.xlu0 %v1209_v1  ;;  %v349_v45 = vsel %vm348_vm0, %v346_v44, %v343_v43 }
  0x30   : > { %1065 = vperm.xlu2 %1058, %v1064_v18   ;;  %v1236_v46 = vsel %vm337_vm1, %v336_v31, %v349_v45 }
  0x31   : > { %v363_v47 = vperm.slane %v1236_v46, 0  ;;  %v356_v49 = vrot.slane %v1236_v46, 1  ;;  %v357_v51 = vrot.slane %v1236_v46, 2  ;;  %v358_v55 = vrot.slane %v1236_v46, 3 }
  0x32   : > { %v359_v59 = vrot.slane %v1236_v46, 4  ;;  %v1263_v63 = vmul.f32 %v1236_v46, %v330_v58  ;;  %v360_v0 = vrot.slane %v1236_v46, 5 }
  0x33   : > { %v379_v50 = vmul.f32 %v363_v47, %v1242_v48  ;;  %v364_v52 = vperm.slane %v356_v49, 0  ;;  %v365_v56 = vperm.slane %v357_v51, 0  ;;  %v1257_v60 = vperm.slane %v358_v55, 0 }
  0x34   : > { %v533_v2 = vrot.slane %v1263_v63, 1  ;;  %v1267_v3 = vperm.slane %v359_v59, 0  ;;  %v540_v7 = vperm.slane %v1263_v63, 0  ;;  %v1277_v9 = vperm.slane %v360_v0, 0 }
  0x35   : > { %v395_v53 = vmul.f32 1.442695, %v379_v50  ;;  %v381_v57 = vmul.f32 %v364_v52, %v1242_v48  ;;  %v383_v61 = vmul.f32 %v365_v56, %v1242_v48  ;;  %v385_v4 = vmul.f32 %v1257_v60, %v1242_v48 }
  0x36   : > { %v380_v14 = vmul.f32 %v363_v47, %v1274_v6  ;;  %v387_v15 = vmul.f32 %v1267_v3, %v1242_v48  ;;  %v535_v22 = vrot.slane %v1263_v63, 3  ;;  %v389_v23 = vmul.f32 %v1277_v9, %v1242_v48 }
  0x37   : > { %1054 = vperm.xlu1 %1052, %v1064_v18   ;;  %1071 = vperm.xlu0 %1069, %v1070_v21   ;;  %1121 = vpow2.f32 %v395_v53  ;;  %v399_v62 = vmul.f32 1.442695, %v381_v57  ;;  %v403_v5 = vmul.f32 1.442695, %v383_v61  ;;  %v407_v16 = vmul.f32 1.442695, %v385_v4 }
  0x38   : > { %1081 = vset.pattern.permute.xlu2 %v1209_v1  ;;  %v534_v18 = vrot.slane %v1263_v63, 2  ;;  %v397_v26 = vmul.f32 1.442695, %v380_v14  ;;  %v411_v27 = vmul.f32 1.442695, %v387_v15  ;;  %v536_v33 = vrot.slane %v1263_v63, 4 }
  0x39   : > { %1123 = vpow2.f32 %v399_v62  ;;  %v415_v34 = vmul.f32 1.442695, %v389_v23  ;;  %v1299_v37 = vperm.slane %v535_v22, 0  ;;  %v384_v42 = vmul.f32 %v365_v56, %v1274_v6 }
  0x3a   : > { %1125 = vpow2.f32 %v403_v5  ;;  %v1294_v30 = vperm.slane %v534_v18, 0  ;;  %v537_v44 = vrot.slane %v1263_v63, 5  ;;  %v1305_v45 = vperm.slane %v536_v33, 0 }
  0x3b   : > { %1127 = vpow2.f32 %v407_v16  ;;  %v386_v57 = vmul.f32 %v1257_v60, %v1274_v6  ;;  %v405_v59 = vmul.f32 1.442695, %v384_v42  ;;  %v388_v14 = vmul.f32 %v1267_v3, %v1274_v6 }
  0x3c   : > { %1129 = vpow2.f32 %v397_v26  ;;  %v1315_v62 = vperm.slane %v537_v44, 0  ;;  %v390_v26 = vmul.f32 %v1277_v9, %v1274_v6 }
  0x3d   : > { %1131 = vpow2.f32 %v411_v27  ;;  %v409_v15 = vmul.f32 1.442695, %v386_v57 }
  0x3e   : > { %1133 = vpow2.f32 %v415_v34  ;;  %v417_v33 = vmul.f32 1.442695, %v390_v26 }
  0x3f   : > { %1075 = vset.pattern.permute.xlu1 %v436_v13  ;;  %1097 = vset.pattern.permute.xlu0 %v436_v13 }
  0x40   : > { %1083 = vperm.xlu2 %1081, %v1082_v24  }
  0x47   : > { %1077 = vperm.xlu1 %1075, %v1070_v21   ;;  %1099 = vperm.xlu0 %1097, %v1098_v28  }
  0x48   : > { %1093 = vperm.xlu2 %1081, %v1098_v28   ;;  %v382_v28 = vmul.f32 %v364_v52, %v1274_v6  ;;  %v362_v52 = vrot.slane %v1236_v46, 7 }
  0x4a   : > { %v401_v38 = vmul.f32 1.442695, %v382_v28 }
  0x4c   : > { %1135 = vpow2.f32 %v401_v38  ;;  %v538_v38 = vrot.slane %v1263_v63, 6 }
  0x4d   : > { %1137 = vpow2.f32 %v405_v59 }
  0x4e   : > { %1139 = vpow2.f32 %v409_v15 }
  0x4f   : > { %1088 = vperm.xlu1 %1075, %v1082_v24  }
  0x50   : > { %1109 = vset.pattern.permute.xlu2 %v436_v13  ;;  %v1279_v13 = vperm.slane %v533_v2, 0 }
  0x57   : > { %1103 = vset.pattern.permute.xlu1 %v1209_v1  ;;  %v1122_v1 = vpop.eup %1121 }
  0x58   : > { %1111 = vperm.xlu2 %1109, %v1110_v36   ;;  %v572_v10 = vmul.f32 0.0, %v1122_v1  ;;  %v1124_v20 = vpop.eup %1123 }
  0x59   : > { %v1126_v32 = vpop.eup %1125 }
  0x5a   : > { %v1128_v43 = vpop.eup %1127 }
  0x5b   : > { %v1130_v53 = vpop.eup %1129 }
  0x5c   : > { %v1132_v61 = vpop.eup %1131 }
  0x5f   : > { %1105 = vperm.xlu1 %1103, %v1110_v36   ;;  %v361_v36 = vrot.slane %v1236_v46, 6 }
  0x61   : > { %v369_v51 = vperm.slane %v361_v36, 0 }
  0x63   : > { %v391_v46 = vmul.f32 %v369_v51, %v1242_v48 }
  0x72   : > { %v1284_v17 = vpop.permute.xlu2 %1042 }
  0x73   : > { %v1044_v47 = vunpack.i.l.bf16 %v1284_v17  ;;  %v1045_v1 = vunpack.i.h.bf16 %v1284_v17 }
  0x75   : > { %v564_v2 = vmul.f32 %v1044_v47, %v1305_v45  ;;  %v566_v18 = vmul.f32 %v1045_v1, %v1315_v62 }
  0x82   : > { %v1308_v50 = vpop.permute.xlu2 %1060 }
  0x89   : > { %v1025_v8 = vpop.permute.xlu0 %1024  ;;  %v1037_v21 = vpop.permute.xlu1 %1036 }
  0x8a   : > { %v1027_v11 = vunpack.i.h.bf16 %v1025_v8  ;;  %v1026_v12 = vunpack.i.l.bf16 %v1025_v8  ;;  %v1038_v29 = vunpack.i.l.bf16 %v1037_v21  ;;  %v1039_v39 = vunpack.i.h.bf16 %v1037_v21  ;;  %v1329_v3 = vpop.permute.xlu2 %1065 }
  0x8c   : > { %v556_v19 = vmul.f32 %v1026_v12, %v540_v7  ;;  %v558_v24 = vmul.f32 %v1027_v11, %v1279_v13  ;;  %v560_v40 = vmul.f32 %v1038_v29, %v1294_v30  ;;  %v562_v55 = vmul.f32 %v1039_v39, %v1299_v37  ;;  %v1134_v12 = vpop.eup %1133 }
  0x8d   : > { %v370_v11 = vperm.slane %v362_v52, 0  ;;  %v1136_v16 = vpop.eup %1135  ;;  %v546_v52 = vperm.slane %v538_v38, 0 }
  0x8e   : > { %v574_v25 = vadd.f32 %v572_v10, %v556_v19  ;;  %v573_v10 = vmul.f32 0.0, %v1130_v53  ;;  %v1138_v29 = vpop.eup %1137 }
  0x8f   : > { %v393_v23 = vmul.f32 %v370_v11, %v1242_v48  ;;  %v392_v48 = vmul.f32 %v369_v51, %v1274_v6  ;;  %v1140_v36 = vpop.eup %1139  ;;  %v539_v51 = vrot.slane %v1263_v63, 7 }
  0x90   : > { %577 = vst.msk [vmem:[#allocation2] sm:$0xff] %vm576_vm2, %v574_v25  ;;  %v579_v31 = vmul.f32 %v1124_v20, %v574_v25 }
  0x91   : > { %v547_v63 = vperm.slane %v539_v51, 0 }
  0x92   : > { %v581_v35 = vadd.f32 %v579_v31, %v558_v24  ;;  %v419_v24 = vmul.f32 1.442695, %v391_v46 }
  0x94   : > { %584 = vst.msk [vmem:[#allocation2 + $0x10] sm:$0xff] %vm576_vm2, %v581_v35  ;;  %v586_v41 = vmul.f32 %v1126_v32, %v581_v35  ;;  %1141 = vpow2.f32 %v419_v24  ;;  %v423_v32 = vmul.f32 1.442695, %v393_v23 }
  0x96   : > { %v588_v49 = vadd.f32 %v586_v41, %v560_v40  ;;  %v421_v40 = vmul.f32 1.442695, %v392_v48  ;;  %v394_v41 = vmul.f32 %v370_v11, %v1274_v6 }
  0x97   : > { %v732_v26 = vld [vmem:[#allocation2] sm:$0xff] }
  0x98   : > { %591 = vst.msk [vmem:[#allocation2 + $0x20] sm:$0xff] %vm576_vm2, %v588_v49  ;;  %v593_v56 = vmul.f32 %v1128_v43, %v588_v49  ;;  %v1062_v43 = vunpack.i.l.bf16 %v1308_v50  ;;  %v425_v6 = vmul.f32 1.442695, %v394_v41 }
  0x99   : > { %v1031_v0 = vpop.permute.xlu0 %1030  ;;  %v1049_v20 = vpop.permute.xlu1 %1048 }
  0x9a   : > { %v595_v4 = vadd.f32 %v593_v56, %v562_v55  ;;  %v1033_v5 = vunpack.i.h.bf16 %v1031_v0  ;;  %v1032_v8 = vunpack.i.l.bf16 %v1031_v0  ;;  %v1050_v27 = vunpack.i.l.bf16 %v1049_v20  ;;  %v1142_v42 = vpop.eup %1141  ;;  %v1344_v53 = vpop.permute.xlu2 %1083 }
  0x9b   : > { %v1051_v34 = vunpack.i.h.bf16 %v1049_v20  ;;  %v565_v1 = vmul.f32 %v1062_v43, %v1305_v45  ;;  %v1086_v41 = vunpack.i.h.bf16 %v1344_v53 }
  0x9c   : > { %598 = vst.msk [vmem:[#allocation2 + $0x30] sm:$0xff] %vm576_vm2, %v595_v4  ;;  %v600_v60 = vmul.f32 %v1132_v61, %v595_v4  ;;  %v557_v17 = vmul.f32 %v1032_v8, %v540_v7  ;;  %v559_v21 = vmul.f32 %v1033_v5, %v1279_v13  ;;  %v413_v7 = vmul.f32 1.442695, %v388_v14 }
  0x9d   : > { %v561_v9 = vmul.f32 %v1050_v27, %v1294_v30  ;;  %v563_v44 = vmul.f32 %v1051_v34, %v1299_v37  ;;  %v1063_v37 = vunpack.i.h.bf16 %v1308_v50 }
  0x9e   : > { %v602_v19 = vadd.f32 %v600_v60, %v564_v2  ;;  %v575_v22 = vadd.f32 %v573_v10, %v557_v17  ;;  %1143 = vpow2.f32 %v413_v7  ;;  %v1067_v60 = vunpack.i.l.bf16 %v1329_v3  ;;  %v734_v7 = vld [vmem:[#allocation2 + $0x10] sm:$0xff] }
  0x9f   : > { %1145 = vpow2.f32 %v423_v32 }
  0xa0   : > { %605 = vst.msk [vmem:[#allocation2 + $0x40] sm:$0xff] %vm576_vm2, %v602_v19  ;;  %v607_v25 = vmul.f32 %v1134_v12, %v602_v19  ;;  %v580_v28 = vmul.f32 %v1136_v16, %v575_v22  ;;  %1147 = vpow2.f32 %v417_v33  ;;  %v567_v12 = vmul.f32 %v1063_v37, %v1315_v62  ;;  %v736_v37 = vld [vmem:[#allocation2 + $0x20] sm:$0xff] }
  0xa1   : > { %578 = vst.msk [vmem:[#allocation2 + $0x8] sm:$0xff] %vm576_vm2, %v575_v22  ;;  %1149 = vpow2.f32 %v421_v40  ;;  %v1068_v16 = vunpack.i.h.bf16 %v1329_v3 }
  0xa2   : > { %v609_v13 = vadd.f32 %v607_v25, %v566_v18  ;;  %v582_v31 = vadd.f32 %v580_v28, %v559_v21  ;;  %1151 = vpow2.f32 %v425_v6  ;;  %v1094_v17 = vpop.permute.xlu2 %1093  ;;  %v569_v18 = vmul.f32 %v1067_v60, %v546_v52 }
  0xa3   : > { %v1095_v22 = vunpack.i.l.bf16 %v1094_v17  ;;  %v571_v24 = vmul.f32 %v1068_v16, %v547_v63  ;;  %v1096_v27 = vunpack.i.h.bf16 %v1094_v17 }
  0xa4   : > { %612 = vst.msk [vmem:[#allocation2 + $0x50] sm:$0xff] %vm576_vm2, %v609_v13  ;;  %v587_v35 = vmul.f32 %v1138_v29, %v582_v31  ;;  %v1144_v49 = vpop.eup %1143  ;;  %v614_v61 = vmul.f32 %v1142_v42, %v609_v13 }
  0xa5   : > { %585 = vst.msk [vmem:[#allocation2 + $0x18] sm:$0xff] %vm576_vm2, %v582_v31  ;;  %v1146_v0 = vpop.eup %1145 }
  0xa6   : > { %v589_v39 = vadd.f32 %v587_v35, %v561_v9  ;;  %v1148_v4 = vpop.eup %1147 }
  0xa7   : > { %v1150_v11 = vpop.eup %1149  ;;  %v740_v25 = vld [vmem:[#allocation2 + $0x40] sm:$0xff] }
  0xa8   : > { %592 = vst.msk [vmem:[#allocation2 + $0x28] sm:$0xff] %vm576_vm2, %v589_v39  ;;  %v594_v30 = vmul.f32 %v1140_v36, %v589_v39  ;;  %v1152_v62 = vpop.eup %1151  ;;  %v756_v35 = vmul.f32 %v1095_v22, %v740_v25  ;;  %v733_v38 = vld [vmem:[#allocation2 + $0x8] sm:$0xff] }
  0xa9   : > { %v1055_v47 = vpop.permute.xlu1 %1054  ;;  %v1072_v50 = vpop.permute.xlu0 %1071 }
  0xaa   : > { %v1056_v55 = vunpack.i.l.bf16 %v1055_v47  ;;  %v596_v56 = vadd.f32 %v594_v30, %v563_v44  ;;  %v1057_v57 = vunpack.i.h.bf16 %v1055_v47  ;;  %v1074_v20 = vunpack.i.h.bf16 %v1072_v50 }
  0xab   : > { %v1073_v21 = vunpack.i.l.bf16 %v1072_v50  ;;  %v742_v48 = vld [vmem:[#allocation2 + $0x50] sm:$0xff]  ;;  %v1085_v47 = vunpack.i.l.bf16 %v1344_v53 }
  0xac   : > { %v568_v59 = vmul.f32 %v1056_v55, %v546_v52  ;;  %599 = vst.msk [vmem:[#allocation2 + $0x38] sm:$0xff] %vm576_vm2, %v596_v56  ;;  %v601_v2 = vmul.f32 %v1144_v49, %v596_v56  ;;  %v570_v8 = vmul.f32 %v1057_v57, %v547_v63  ;;  %v750_v29 = vmul.f32 %v1074_v20, %v734_v7  ;;  %v735_v39 = vld [vmem:[#allocation2 + $0x18] sm:$0xff] }
  0xad   : > { %v748_v28 = vmul.f32 %v1073_v21, %v732_v26  ;;  %v758_v49 = vmul.f32 %v1096_v27, %v742_v48 }
  0xae   : > { %v616_v46 = vadd.f32 %v614_v61, %v568_v59  ;;  %v603_v5 = vadd.f32 %v601_v2, %v565_v1  ;;  %v773_v51 = vsel %vm576_vm2, %v750_v29, 0.0  ;;  %v800_v59 = vsel %vm576_vm2, %v756_v35, 0.0  ;;  %v738_v1 = vld [vmem:[#allocation2 + $0x30] sm:$0xff] }
  0xaf   : > { %v764_v55 = vsel %vm576_vm2, %v748_v28, 0.0  ;;  %v754_v60 = vmul.f32 %v1086_v41, %v738_v1  ;;  %v737_v50 = vld [vmem:[#allocation2 + $0x28] sm:$0xff] }
  0xb0   : > { %619 = vst.msk [vmem:[#allocation2 + $0x60] sm:$0xff] %vm576_vm2, %v616_v46  ;;  %v621_v10 = vmul.f32 %v1146_v0, %v616_v46  ;;  %v608_v45 = vmul.f32 %v1148_v4, %v603_v5  ;;  %v809_v4 = vsel %vm576_vm2, %v758_v49, 0.0 }
  0xb1   : > { %606 = vst.msk [vmem:[#allocation2 + $0x48] sm:$0xff] %vm576_vm2, %v603_v5 }
  0xb2   : > { %v623_v14 = vadd.f32 %v621_v10, %v570_v8  ;;  %v610_v15 = vadd.f32 %v608_v45, %v567_v12  ;;  %v752_v12 = vmul.f32 %v1085_v47, %v736_v37  ;;  %v1112_v29 = vpop.permute.xlu2 %1111 }
  0xb4   : > { %626 = vst.msk [vmem:[#allocation2 + $0x70] sm:$0xff] %vm576_vm2, %v623_v14  ;;  %v615_v19 = vmul.f32 %v1150_v11, %v610_v15  ;;  %v739_v14 = vld [vmem:[#allocation2 + $0x38] sm:$0xff]  ;;  %v782_v22 = vsel %vm576_vm2, %v752_v12, 0.0 }
  0xb5   : > { %613 = vst.msk [vmem:[#allocation2 + $0x58] sm:$0xff] %vm576_vm2, %v610_v15 }
  0xb6   : > { %v617_v23 = vadd.f32 %v615_v19, %v569_v18 }
  0xb8   : > { %620 = vst.msk [vmem:[#allocation2 + $0x68] sm:$0xff] %vm576_vm2, %v617_v23  ;;  %v622_v3 = vmul.f32 %v1152_v62, %v617_v23  ;;  %v741_v40 = vld [vmem:[#allocation2 + $0x48] sm:$0xff]  ;;  %v791_v23 = vsel %vm576_vm2, %v754_v60, 0.0 }
  0xb9   : > { %v1078_v13 = vpop.permute.xlu1 %1077  ;;  %v1100_v31 = vpop.permute.xlu0 %1099 }
  0xba   : > { %v1080_v32 = vunpack.i.h.bf16 %v1078_v13  ;;  %v1079_v33 = vunpack.i.l.bf16 %v1078_v13  ;;  %v1102_v34 = vunpack.i.h.bf16 %v1100_v31  ;;  %v1101_v9 = vunpack.i.l.bf16 %v1100_v31 }
  0xbb   : > { %v624_v36 = vadd.f32 %v622_v3, %v571_v24  ;;  %v1116_v24 = vld [vmem:[%s1403_s5] ss:$0 sm:$0xff]  ;;  %v746_v1 = vld [vmem:[#allocation2 + $0x70] sm:$0xff] }
  0xbc   : > { %v749_v42 = vmul.f32 %v1079_v33, %v733_v38  ;;  %v751_v43 = vmul.f32 %v1080_v32, %v735_v39  ;;  %v743_v44 = vld [vmem:[#allocation2 + $0x58] sm:$0xff]  ;;  %v757_v30 = vmul.f32 %v1101_v9, %v741_v40  ;;  %v1377_v32 = vmul.f32 %v1116_v24, %v330_v58 }
  0xbd   : > { %627 = vst.msk [vmem:[#allocation2 + $0x78] sm:$0xff] %vm576_vm2, %v624_v36  ;;  %v759_v52 = vmul.f32 %v1102_v34, %v743_v44  ;;  %v1114_v36 = vunpack.i.h.bf16 %v1112_v29  ;;  %v1113_v38 = vunpack.i.l.bf16 %v1112_v29 }
  0xbe   : > { %v765_v56 = vsel %vm576_vm2, %v749_v42, 0.0  ;;  %v774_v57 = vsel %vm576_vm2, %v751_v43, 0.0  ;;  %v801_v6 = vsel %vm576_vm2, %v757_v30, 0.0  ;;  %v841_v30 = vrot.slane %v1377_v32, 1 }
  0xbf   : > { %v766_v61 = vadd.f32 %v765_v56, %v764_v55  ;;  %v775_v0 = vadd.f32 %v774_v57, %v773_v51  ;;  %v810_v53 = vsel %vm576_vm2, %v759_v52, 0.0  ;;  %v802_v2 = vadd.f32 %v801_v6, %v800_v59  ;;  %v745_v40 = vld [vmem:[#allocation2 + $0x68] sm:$0xff] }
  0xc0   : > { %v811_v8 = vadd.f32 %v810_v53, %v809_v4  ;;  %v761_v58 = vmul.f32 %v1113_v38, %v745_v40  ;;  %v842_v55 = vrot.slane %v1377_v32, 2  ;;  %v843_v53 = vrot.slane %v1377_v32, 3 }
  0xc1   : > { %v767_v63 = vrot.slane %v766_v61, 4  ;;  %v776_v46 = vrot.slane %v775_v0, 4  ;;  %v1089_v5 = vpop.permute.xlu1 %1088  ;;  %v803_v15 = vrot.slane %v802_v2, 4 }
  0xc2   : > { %v1091_v10 = vunpack.i.h.bf16 %v1089_v5  ;;  %v1090_v11 = vunpack.i.l.bf16 %v1089_v5  ;;  %v812_v20 = vrot.slane %v811_v8, 4 }
  0xc3   : > { %v777_v45 = vadd.f32 %v776_v46, %v775_v0  ;;  %v768_v18 = vadd.f32 %v767_v63, %v766_v61  ;;  %v804_v26 = vadd.f32 %v803_v15, %v802_v2  ;;  %v744_v46 = vld [vmem:[#allocation2 + $0x60] sm:$0xff] }
  0xc4   : > { %v753_v16 = vmul.f32 %v1090_v11, %v737_v50  ;;  %v755_v17 = vmul.f32 %v1091_v10, %v739_v14  ;;  %v813_v28 = vadd.f32 %v812_v20, %v811_v8  ;;  %v747_v41 = vld [vmem:[#allocation2 + $0x78] sm:$0xff]  ;;  %v819_v10 = vsel %vm576_vm2, %v761_v58, 0.0 }
  0xc5   : > { %v778_v19 = vrot.slane %v777_v45, 2  ;;  %v769_v3 = vrot.slane %v768_v18, 2  ;;  %v805_v33 = vrot.slane %v804_v26, 2  ;;  %v763_v52 = vmul.f32 %v1114_v36, %v747_v41 }
  0xc6   : > { %v783_v21 = vsel %vm576_vm2, %v753_v16, 0.0  ;;  %v792_v62 = vsel %vm576_vm2, %v755_v17, 0.0  ;;  %v814_v39 = vrot.slane %v813_v28, 2 }
  0xc7   : > { %v779_v25 = vadd.f32 %v778_v19, %v777_v45  ;;  %v784_v7 = vadd.f32 %v783_v21, %v782_v22  ;;  %v793_v27 = vadd.f32 %v792_v62, %v791_v23  ;;  %v770_v35 = vadd.f32 %v769_v3, %v768_v18 }
  0xc8   : > { %v806_v47 = vadd.f32 %v805_v33, %v804_v26  ;;  %v815_v57 = vadd.f32 %v814_v39, %v813_v28  ;;  %v828_v60 = vsel %vm576_vm2, %v763_v52, 0.0  ;;  %v844_v19 = vrot.slane %v1377_v32, 4 }
  0xc9   : > { %v785_v13 = vrot.slane %v784_v7, 4  ;;  %v794_v31 = vrot.slane %v793_v27, 4  ;;  %v780_v48 = vrot.slane %v779_v25, 1  ;;  %v771_v54 = vrot.slane %v770_v35, 1 }
  0xca   : > { %v807_v2 = vrot.slane %v806_v47, 1  ;;  %v816_v12 = vrot.slane %v815_v57, 1  ;;  %v845_v23 = vrot.slane %v1377_v32, 5 }
  0xcb   : > { %v786_v34 = vadd.f32 %v785_v13, %v784_v7  ;;  %v795_v9 = vadd.f32 %v794_v31, %v793_v27  ;;  %v781_v44 = vadd.f32 %v780_v48, %v779_v25  ;;  %v772_v8 = vadd.f32 %v771_v54, %v770_v35 }
  0xcc   : > { %v808_v18 = vadd.f32 %v807_v2, %v806_v47  ;;  %v817_v26 = vadd.f32 %v816_v12, %v815_v57 }
  0xcd   : > { %v787_v42 = vrot.slane %v786_v34, 2  ;;  %v796_v43 = vrot.slane %v795_v9, 2  ;;  %v857_v0 = vadd.f32 %v841_v30, %v781_v44  ;;  %v856_v62 = vadd.f32 %v1377_v32, %v772_v8 }
  0xce   : > { %v860_v3 = vadd.f32 %v844_v19, %v808_v18  ;;  %v846_v44 = vrot.slane %v1377_v32, 6 }
  0xcf   : > { %v788_v49 = vadd.f32 %v787_v42, %v786_v34  ;;  %v797_v51 = vadd.f32 %v796_v43, %v795_v9  ;;  %v865_v14 = vpack.c.bf16 %v857_v0, %v857_v0  ;;  %v864_v13 = vpack.c.bf16 %v856_v62, %v856_v62 }
  0xd0   : > { %v861_v34 = vadd.f32 %v845_v23, %v817_v26  ;;  %v868_v36 = vpack.c.bf16 %v860_v3, %v860_v3  ;;  %v847_v42 = vrot.slane %v1377_v32, 7 }
  0xd1   : > { %v1106_v56 = vpop.permute.xlu1 %1105  ;;  %v789_v6 = vrot.slane %v788_v49, 1  ;;  %v798_v59 = vrot.slane %v797_v51, 1  ;;  %v881_v25 = vunpack.c.l.b16 %v865_v14  ;;  %v880_v40 = vunpack.c.l.b16 %v864_v13 }
  0xd2   : > { %v1108_v61 = vunpack.i.h.bf16 %v1106_v56  ;;  %v1107_v37 = vunpack.i.l.bf16 %v1106_v56  ;;  %v869_v47 = vpack.c.bf16 %v861_v34, %v861_v34  ;;  %v884_v54 = vunpack.c.l.b16 %v868_v36 }
  0xd3   : > { %v790_v4 = vadd.f32 %v789_v6, %v788_v49  ;;  %v799_v63 = vadd.f32 %v798_v59, %v797_v51  ;;  %v888_v33 = vrot.slane %v881_v25, 7 }
  0xd4   : > { %v762_v5 = vmul.f32 %v1108_v61, %v746_v1  ;;  %v760_v11 = vmul.f32 %v1107_v37, %v744_v46  ;;  %v885_v57 = vunpack.c.l.b16 %v869_v47  ;;  %v897_v61 = vrot.slane %v884_v54, 4 }
  0xd5   : > { %v858_v45 = vadd.f32 %v842_v55, %v790_v4  ;;  %v859_v15 = vadd.f32 %v843_v53, %v799_v63  ;;  %v890_v30 = vsel %vm889_vm3, %v888_v33, %v880_v40 }
  0xd6   : > { %v827_v50 = vsel %vm576_vm2, %v762_v5, 0.0  ;;  %v818_v16 = vsel %vm576_vm2, %v760_v11, 0.0  ;;  %v900_v1 = vrot.slane %v885_v57, 3 }
  0xd7   : > { %v829_v17 = vadd.f32 %v828_v60, %v827_v50  ;;  %v866_v20 = vpack.c.bf16 %v858_v45, %v858_v45  ;;  %v820_v21 = vadd.f32 %v819_v10, %v818_v16  ;;  %v867_v7 = vpack.c.bf16 %v859_v15, %v859_v15 }
  0xd9   : > { %v830_v22 = vrot.slane %v829_v17, 4  ;;  %v821_v24 = vrot.slane %v820_v21, 4  ;;  %v882_v28 = vunpack.c.l.b16 %v866_v20  ;;  %v883_v9 = vunpack.c.l.b16 %v867_v7 }
  0xdb   : > { %v831_v27 = vadd.f32 %v830_v22, %v829_v17  ;;  %v822_v29 = vadd.f32 %v821_v24, %v820_v21  ;;  %v891_v38 = vrot.slane %v882_v28, 6  ;;  %v894_v49 = vrot.slane %v883_v9, 5 }
  0xdd   : > { %v832_v31 = vrot.slane %v831_v27, 2  ;;  %v823_v48 = vrot.slane %v822_v29, 2  ;;  %v893_v58 = vsel %vm892_vm4, %v891_v38, %v890_v30 }
  0xde   : > { %v896_v6 = vsel %vm895_vm5, %v894_v49, %v893_v58 }
  0xdf   : > { %v833_v35 = vadd.f32 %v832_v31, %v831_v27  ;;  %v824_v39 = vadd.f32 %v823_v48, %v822_v29  ;;  %v899_v37 = vsel %vm898_vm6, %v897_v61, %v896_v6 }
  0xe0   : > { %v902_v63 = vsel %vm901_vm7, %v900_v1, %v899_v37 }
  0xe1   : > { %v834_v41 = vrot.slane %v833_v35, 1  ;;  %v825_v43 = vrot.slane %v824_v39, 1 }
  0xe3   : > { %v835_v51 = vadd.f32 %v834_v41, %v833_v35  ;;  %v826_v52 = vadd.f32 %v825_v43, %v824_v39 }
  0xe5   : > { %v863_v55 = vadd.f32 %v847_v42, %v835_v51  ;;  %v862_v56 = vadd.f32 %v846_v44, %v826_v52 }
  0xe7   : > { %v871_v59 = vpack.c.bf16 %v863_v55, %v863_v55  ;;  %v870_v0 = vpack.c.bf16 %v862_v56, %v862_v56 }
  0xe9   : > { %v887_v53 = vunpack.c.l.b16 %v871_v59  ;;  %v886_v32 = vunpack.c.l.b16 %v870_v0 }
  0xeb   : > { %v906_v2 = vrot.slane %v887_v53, 1  ;;  %v903_v4 = vrot.slane %v886_v32, 2 }
  0xed   : > { %v905_v46 = vsel %vm904_vm8, %v903_v4, %v902_v63 }
  0xee   : > { %v908_v5 = vsel %vm907_vm9, %v906_v2, %v905_v46 }
  0xef   : > { %v909_v8 = vpack.c.b16 %v908_v5, %v908_v5 }
  0xf1   : > { %912 = vst.msk [vmem:[%s324_s28] sm:$0xf] %vm911_vm10, %v909_v8 }
  0xf2 PF: > { %s17_s24 = sadd.s32 1, %s1159_s24  }
  0xf3   : > { %p14_p4 = scmp.ge.s32.totalorder %s17_s24, 4  }
  0xf5   :  { %16 = sbr.rel (!%p14_p4) target bundleno = 1 (0x1), region = 94 }

// kernel: block_forward.30
= control target key start
LH: loop header
LB: loop body
LE: loop exit
PB: predicated region body
PF: predicated region fallthrough
CT: control target
= control target key end

     0   :  { %vm22_vm0 = vcmask 523264   ;;  %v232_v5 = vmov 64.0   ;;  %vm168_vm8 = vcmask 1043456   ;;  %vm169_vm9 = vcmask 523268   ;;  %s337_s0 = inlined_call_operand.vmem [shape: bf16[16,64], index: 0, kind: input, shape index: {}]   ;;  %s338_s1 = inlined_call_operand.vmem [shape: f32[1,64], index: 1, kind: input, shape index: {}]   ;;  %s339_s2 = inlined_call_operand.vmem [shape: f32[1,64], index: 2, kind: input, shape index: {}]   ;;  %s340_s3 = inlined_call_operand.vmem [shape: bf16[64,192], index: 3, kind: input, shape index: {}]   ;;  %s341_s4 = inlined_call_operand.vmem [shape: bf16[16,192], index: 4, kind: output, shape index: {}]  }
   0x1   :  { %v220_v0 = vld [vmem:[%s337_s0] sm:$0xff]   ;;  %226 = vrcp.f32 %v232_v5  ;;  %v203_v22 = vld [vmem:[%s340_s3 + $0x30] sm:$0xf]  ;;  %v218_v23 = vld [vmem:[%s340_s3 + $0x34] sm:$0xf0] }
   0x2   :  { %v221_v1 = vunpack.c.l.bf16 %v220_v0  ;;  %v222_v3 = vunpack.c.h.bf16 %v220_v0  ;;  %v217_v24 = vld [vmem:[%s340_s3 + $0x34] sm:$0xf]  ;;  %v204_v25 = vor.u32 %v218_v23, %v203_v22  ;;  %v205_v26 = vld [vmem:[%s340_s3 + $0x38] sm:$0xf0]  ;;  %v195_v28 = vld [vmem:[%s340_s3 + $0x20] sm:$0xf] }
   0x3   :  { %v208_v27 = vor.u32 %v217_v24, %v205_v26  ;;  %v216_v29 = vld [vmem:[%s340_s3 + $0x24] sm:$0xf0]  ;;  %v215_v30 = vld [vmem:[%s340_s3 + $0x24] sm:$0xf]  ;;  %v197_v32 = vld [vmem:[%s340_s3 + $0x28] sm:$0xf0] }
   0x4   :  { %v23_v2 = vsel %vm22_vm0, %v221_v1, 0.0  ;;  %v26_v4 = vsel %vm22_vm0, %v222_v3, 0.0  ;;  %142 = vmatpush.bf16.msra.mxu0 %v204_v25  ;;  %v196_v31 = vor.u32 %v216_v29, %v195_v28  ;;  %v200_v33 = vor.u32 %v215_v30, %v197_v32  ;;  %v187_v34 = vld [vmem:[%s340_s3 + $0x10] sm:$0xf]  ;;  %v214_v35 = vld [vmem:[%s340_s3 + $0x14] sm:$0xf0]  ;;  %vm170_vm10 = vmor %vm169_vm9, %vm168_vm8 }
   0x5   :  { %24 = vadd.xlane.f32.xlu0 %v23_v2  ;;  %156 = vmatpush.bf16.msra.mxu1 %v208_v27  ;;  %v213_v36 = vld [vmem:[%s340_s3 + $0x14] sm:$0xf]  ;;  %v188_v37 = vor.u32 %v214_v35, %v187_v34  ;;  %v189_v38 = vld [vmem:[%s340_s3 + $0x18] sm:$0xf0]  ;;  %v179_v40 = vld [vmem:[%s340_s3] sm:$0xf] }
   0x6   :  { %v192_v39 = vor.u32 %v213_v36, %v189_v38  ;;  %v212_v41 = vld [vmem:[%s340_s3 + $0x4] sm:$0xf0]  ;;  %v211_v42 = vld [vmem:[%s340_s3 + $0x4] sm:$0xf]  ;;  %v181_v45 = vld [vmem:[%s340_s3 + $0x8] sm:$0xf0] }
   0x7   :  { %v227_v6 = vpop.eup %226  ;;  %v180_v44 = vor.u32 %v212_v41, %v179_v40  ;;  %v184_v47 = vor.u32 %v211_v42, %v181_v45 }
   0x8   :  { %v30_v7 = vmul.f32 64.0, %v227_v6  ;;  %vm34_vm1 = vweird.f32 %v227_v6  ;;  %143 = vmatpush.bf16.msra.mxu0 %v196_v31 }
   0x9   :  { %157 = vmatpush.bf16.msra.mxu1 %v200_v33 }
   0xa   :  { %v31_v8 = vsub.f32 1.0, %v30_v7 }
   0xc   :  { %v32_v9 = vmul.f32 %v227_v6, %v31_v8  ;;  %144 = vmatpush.bf16.msra.mxu0 %v188_v37 }
   0xd   :  { %27 = vadd.xlane.f32.xlu0 %v26_v4  ;;  %158 = vmatpush.bf16.msra.mxu1 %v192_v39 }
   0xe   :  { %v33_v10 = vadd.f32 %v227_v6, %v32_v9 }
  0x10   :  { %v35_v11 = vsel %vm34_vm1, %v227_v6, %v33_v10  ;;  %145 = vmatpush.bf16.msra.mxu0 %v180_v44  ;;  %v225_v6 = vld [vmem:[%s339_s2] ss:$0 sm:$0xff] }
  0x11   :  { %159 = vmatpush.bf16.msra.mxu1 %v184_v47 }
  0x78   :  { %v25_v12 = vpop.xlane.xlu0 %24 }
  0x79   :  { %v36_v13 = vmul.f32 %v35_v11, %v25_v12 }
  0x7b   :  { %v263_v14 = vsub.f32 %v221_v1, %v36_v13  ;;  %v224_v1 = vld [vmem:[%s338_s1] ss:$0 sm:$0xff] }
  0x7d   :  { %v40_v15 = vmul.f32 %v263_v14, %v263_v14 }
  0x7f   :  { %v42_v16 = vsel %vm22_vm0, %v40_v15, 0.0 }
  0x80   :  { %43 = vadd.xlane.f32.xlu1 %v42_v16  ;;  %v28_v17 = vpop.xlane.xlu0 %27 }
  0x81   :  { %v37_v18 = vmul.f32 %v35_v11, %v28_v17 }
  0x83   :  { %v268_v19 = vsub.f32 %v222_v3, %v37_v18 }
  0x85   :  { %v41_v20 = vmul.f32 %v268_v19, %v268_v19 }
  0x87   :  { %v45_v21 = vsel %vm22_vm0, %v41_v20, 0.0 }
  0x88   :  { %46 = vadd.xlane.f32.xlu1 %v45_v21 }
  0xf3   :  { %v44_v43 = vpop.xlane.xlu1 %43 }
  0xf4   :  { %v48_v46 = vmul.f32 %v44_v43, %v35_v11 }
  0xf6   :  { %v50_v48 = vadd.f32 1e-05, %v48_v46 }
  0xf8   :  { %228 = vrsqrt.f32 %v50_v48  ;;  %vm58_vm3 = vweird.f32 %v50_v48 }
  0xfb   :  { %v47_v49 = vpop.xlane.xlu1 %46 }
  0xfc   :  { %v49_v50 = vmul.f32 %v47_v49, %v35_v11 }
  0xfe   :  { %v229_v51 = vpop.eup %228  ;;  %v51_v52 = vadd.f32 1e-05, %v49_v50 }
  0xff   :  { %v53_v53 = vmul.f32 %v229_v51, %v50_v48  ;;  %vm59_vm2 = vweird.f32 %v229_v51 }
 0x100   :  { %230 = vrsqrt.f32 %v51_v52  ;;  %vm60_vm4 = vmor %vm58_vm3, %vm59_vm2  ;;  %vm68_vm6 = vweird.f32 %v51_v52 }
 0x101   :  { %v54_v54 = vmul.f32 %v229_v51, %v53_v53 }
 0x103   :  { %v55_v55 = vmul.f32 0.5, %v54_v54 }
 0x105   :  { %v56_v56 = vsub.f32 1.5, %v55_v55 }
 0x106   :  { %v231_v57 = vpop.eup %230 }
 0x107   :  { %v57_v58 = vmul.f32 %v229_v51, %v56_v56  ;;  %v63_v59 = vmul.f32 %v231_v57, %v51_v52  ;;  %vm69_vm5 = vweird.f32 %v231_v57 }
 0x108   :  { %vm70_vm7 = vmor %vm68_vm6, %vm69_vm5 }
 0x109   :  { %v64_v60 = vmul.f32 %v231_v57, %v63_v59  ;;  %v61_v61 = vsel %vm60_vm4, %v229_v51, %v57_v58 }
 0x10a   :  { %v72_v0 = vmul.f32 %v61_v61, %v263_v14 }
 0x10b   :  { %v65_v62 = vmul.f32 0.5, %v64_v60 }
 0x10c   :  { %v78_v5 = vmul.f32 %v224_v1, %v72_v0 }
 0x10d   :  { %v66_v63 = vsub.f32 1.5, %v65_v62 }
 0x10e   :  { %v84_v8 = vadd.f32 %v225_v6, %v78_v5 }
 0x10f   :  { %v67_v2 = vmul.f32 %v231_v57, %v66_v63 }
 0x111   :  { %v71_v3 = vsel %vm70_vm7, %v231_v57, %v67_v2 }
 0x112   :  { %v73_v4 = vmul.f32 %v71_v3, %v268_v19 }
 0x114   :  { %v79_v7 = vmul.f32 %v224_v1, %v73_v4 }
 0x116   :  { %v85_v9 = vadd.f32 %v225_v6, %v79_v7 }
 0x118   :  { %v86_v10 = vpack.c.bf16 %v85_v9, %v84_v8 }
 0x11a   :  { %209 = vmatmul.msk.bf16.vlgmr.msra.gmra.mxu0 %vm22_vm0, %v86_v10  ;;  %210 = vmatmul.msk.bf16.vlgmr.msra.gmra.mxu1 %vm22_vm0, %v86_v10 }
 0x197   :  { %v147_v11 = vpop.f32.mrf.mxu0  ;;  %v161_v12 = vpop.f32.mrf.mxu1 }
 0x198   :  { %v166_v13 = vpack.c.bf16 %v161_v12, %v147_v11 }
 0x19a   :  { %171 = vst.msk [vmem:[%s341_s4] sm:$0xff] %vm170_vm10, %v166_v13 }
 0x19f   :  { %v149_v14 = vpop.f32.mrf.mxu0  ;;  %v163_v15 = vpop.f32.mrf.mxu1 }
 0x1a0   :  { %v167_v16 = vpack.c.bf16 %v163_v15, %v149_v14 }
 0x1a2   :  { %172 = vst.msk [vmem:[%s341_s4 + $0x8] sm:$0xff] %vm170_vm10, %v167_v16 }

// kernel: block_forward.31
= control target key start
LH: loop header
LB: loop body
LE: loop exit
PB: predicated region body
PF: predicated region fallthrough
CT: control target
= control target key end

     0   :  { %s898_s24 = smov 0   ;;  %s900_s25 = smov 0   ;;  %s999_s0 = inlined_call_operand.vmem [shape: bf16[3,2,4,5,16], index: 0, kind: input, shape index: {}, may-alias: {0,1,2}]   ;;  %s1000_s1 = inlined_call_operand.vmem [shape: bf16[3,2,4,5,16], index: 1, kind: input, shape index: {}, may-alias: {0,1,2}]   ;;  %s1001_s2 = inlined_call_operand.vmem [shape: bf16[3,2,4,5,16], index: 2, kind: input, shape index: {}, may-alias: {0,1,2}]   ;;  %s1002_s3 = inlined_call_operand.vmem [shape: bf16[4,16,64], index: 3, kind: input, shape index: {}]   ;;  %s1003_s4 = inlined_call_operand.vmem [shape: f32[1,64], index: 4, kind: input, shape index: {}]   ;;  %s1004_s5 = inlined_call_operand.vmem [shape: bf16[2,5,64], index: 5, kind: input, shape index: {}]   ;;  %s1005_s6 = inlined_call_operand.vmem [shape: bf16[2,5,64], index: 6, kind: output, shape index: {0}]   ;;  %s1006_s7 = inlined_call_operand.vmem [shape: f32[2,4,5,5], index: 7, kind: output, shape index: {1}]  }
   0x1   :  { %1007 = sst [smem:[#allocation5_spill]] %s999_s0  ;;  %s902_s26 = smov 0  }
   0x2   :  { %1008 = sst [smem:[#allocation6_spill]] %s1002_s3  ;;  %s904_s27 = smov 0  }
   0x3   :  { %s906_s28 = smov 0  }
   0x4 LB: > { %s27_s29 = sadd.s32 1, %s847_s26  ;;  %s30_s30 = sadd.s32 1, %s851_s27  ;;  %s855_s28 = sphi %s906_s28, %s18_s28   ;;  %s851_s27 = sphi %s904_s27, %s1018_s27   ;;  %s847_s26 = sphi %s902_s26, %s1017_s26   ;;  %s843_s25 = sphi %s900_s25, %s1016_s25   ;;  %s839_s24 = sphi %s898_s24, %s1015_s24  }
   0x5   : > { %p28_p0 = scmp.ge.s32.totalorder %s27_s29, 4  ;;  %p743_p1 = scmp.ge.s32.totalorder %s855_s28, 1 }
   0x6   : > { %p310_p2 = scmp.lt.s32.totalorder %s855_s28, 9 }
   0x7   : > { %s1020_s29 = smov (%p28_p0, %s27_s29), 0  ;;  %s1022_s30 = smov (!%p28_p0, %s30_s30), %s851_s27 }
   0x8   : > { %1009 = sst [smem:[#allocation3_spill]] %s1020_s29  ;;  %p311_p3 = pnand %p743_p1, %p310_p2 }
   0x9   : > { %p32_p4 = scmp.ge.s32.totalorder %s1022_s30, 2  ;;  %p379_p5 = scmp.lt.s32.totalorder (!%p311_p3), %s843_s25, 1 }
   0xa   : > { %314 = sbr.rel (%p311_p3) target bundleno = 712 (0x2c8), region = 44  ;;  %p381_p6 = scmp.lt.s32.totalorder (!%p311_p3), %s839_s24, 3 }
   0xb   : > { %s1024_s30 = smov (%p32_p4, %s1022_s30), 0  ;;  %s1011_s3 = sld [smem:[#allocation6_spill]] (!%p311_p3) }
   0xc   : > { %1010 = sst [smem:[#allocation4_spill]] %s1024_s30  ;;  %p756_p7 = scmp.ne.s32.totalorder (!%p311_p3), %s839_s24, 0 }
   0xd   : > { %s1012_s0 = sld [smem:[#allocation5_spill]] (!%p311_p3) }
   0xf   : > { %s1026_s25 = smov (!%p379_p5, %s843_s25), 1 }
  0x10   : > { %s382_s8 = scalar_select %p381_p6, %s839_s24, 3 }
  0x11   : > { %s744_s9 = sshll.u32 %s1026_s25, 2 }
  0x12   : > { %s384_s10 = sadd.s32 %s744_s9, %s382_s8  ;;  %s769_s11 = sshll.u32 %s382_s8, 3 }
  0x13   : > { %s932_s12 = sshll.u32 %s384_s10, 2  ;;  %s937_s15 = scalar_lea.vmem %s1011_s3, %s769_s11 }
  0x14   : > { %s386_s18 = scalar_lea.vmem %s1012_s0, %s932_s12  ;;  %s646_s21 = scalar_lea.vmem %s1000_s1, %s932_s12 }
  0x15   : > { %s651_s25 = scalar_lea.vmem %s1001_s2, %s932_s12  ;;  %s413_s13 = scalar_lea.vmem %s1004_s5, %s744_s9 }
  0x16   : > { %s957_s11 = scalar_lea.vmem %s1005_s6, %s744_s9  ;;  %s755_s3 = sshll.u32 %s384_s10, 3 }
  0x17   : > { %s962_s0 = scalar_lea.vmem %s1006_s7, %s755_s3  ;;  %430 = sbr.rel (%p756_p7) target bundleno = 35 (0x23), region = 48 }
  0x1c   : > { %v812_v0 = vld [vmem:[%s1003_s4] ss:$0 sm:$0xff]  ;;  %vm438_vm0 = vcmask 520192  }
  0x1d   : > { %v435_v1 = vld [vmem:[%s413_s13] sm:$0x7] }
  0x1e   : > { %v436_v2 = vunpack.c.l.bf16 %v435_v1 }
  0x20   : > { %v437_v3 = vadd.f32 %v812_v0, %v436_v2 }
  0x22   : > { %439 = vst.msk [vmem:[#allocation2] sm:$0x1f] %vm438_vm0, %v437_v3 }
  0x23 PF: > { %v757_v4 = vld [vmem:[%s646_s21 + $0x20] sm:$0x7]  ;;  %vm442_vm1 = vcmask 130048   ;;  %vm463_vm2 = vcmask 36864   ;;  %vm495_vm3 = vcmask 1041408   ;;  %vm496_vm4 = vcmask 1042432  }
  0x24   : > { %v447_v5 = vsel %vm442_vm1, %v757_v4, 0  ;;  %v440_v6 = vld [vmem:[%s386_s18] sm:$0x7]  ;;  %v857_v16 = vmov 65535   ;;  %vm491_vm9 = vcmask 39936   ;;  %vm542_vm10 = vcmask 520192  }
  0x25   : > { %456 = vmatpush.bf16.xpose.msra.mxu0 %v447_v5  ;;  %v497_v17 = vsel %vm495_vm3, 4294967295, %v857_v16  ;;  %v759_v18 = vld [vmem:[%s651_s25 + $0x40] sm:$0x7]  ;;  %p766_p8 = scmp.ne.s32.totalorder %s839_s24, 3 }
  0x26   : > { %v498_v19 = vsel %vm496_vm4, %v497_v17, 0  ;;  %v770_v34 = vld [vmem:[%s937_s15] sm:$0xff] }
  0x27   : > { %v500_v20 = vand.u32 %v759_v18, %v498_v19  ;;  %535 = vmatpush.bf16.msra.mxu2 %v770_v34 }
  0x29   : > { %509 = vmatpush.bf16.msra.mxu1 %v500_v20  ;;  %v515_v38 = vld [vmem:[#allocation2] sm:$0x1f] }
  0x2c   : > { %758 = vmatmul.msk.bf16.vlgmr.msra.gmra.mxu0 %vm442_vm1, %v440_v6 }
  0xa9   : > { %v458_v7 = vpop.f32.mrf.mxu0 }
  0xaa   : > { %v462_v8 = vmul.f32 0.25, %v458_v7 }
  0xac   : > { %v464_v9 = vsel %vm463_vm2, %v462_v8, -inf }
  0xad   : > { %465 = vmax.xlane.f32.xlu0 %v464_v9 }
  0xb1   : > { %v460_v10 = vpop.f32.mrf.mxu0 }
 0x120   : > { %v466_v11 = vpop.xlane.xlu0 %465 }
 0x121   : > { %v467_v12 = vsub.f32 %v462_v8, %v466_v11 }
 0x123   : > { %v468_v13 = vmul.f32 1.442695, %v467_v12 }
 0x125   : > { %813 = vpow2.f32 %v468_v13 }
 0x12b   : > { %v814_v14 = vpop.eup %813 }
 0x12c   : > { %v470_v15 = vsel %vm463_vm2, %v814_v14, 0.0 }
 0x12d   : > { %471 = vadd.xlane.f32.xlu0 %v470_v15 }
 0x1a0   : > { %v472_v21 = vpop.xlane.xlu0 %471 }
 0x1a1   : > { %815 = vrcp.f32 %v472_v21  ;;  %v484_v25 = vand.u32 2147483648, %v472_v21  ;;  %v482_v27 = vand.u32 2147483647, %v472_v21  ;;  %vm478_vm6 = vweird.f32 %v472_v21 }
 0x1a3   : > { %v485_v29 = vor.u32 1.1754944e-38, %v484_v25  ;;  %vm483_vm8 = vcmp.eq.f32.partialorder %v482_v27, 8.507059e+37 }
 0x1a7   : > { %v816_v22 = vpop.eup %815 }
 0x1a8   : > { %v474_v23 = vmul.f32 %v816_v22, %v472_v21  ;;  %vm479_vm5 = vweird.f32 %v816_v22 }
 0x1a9   : > { %vm480_vm7 = vmor %vm478_vm6, %vm479_vm5 }
 0x1aa   : > { %v475_v24 = vsub.f32 1.0, %v474_v23 }
 0x1ac   : > { %v476_v26 = vmul.f32 %v816_v22, %v475_v24 }
 0x1ae   : > { %v477_v28 = vadd.f32 %v816_v22, %v476_v26 }
 0x1b0   : > { %v481_v30 = vsel %vm480_vm7, %v816_v22, %v477_v28 }
 0x1b1   : > { %v486_v31 = vsel %vm483_vm8, %v485_v29, %v481_v30 }
 0x1b2   : > { %v487_v32 = vmul.f32 %v814_v14, %v486_v31 }
 0x1b4   : > { %488 = vst.msk [vmem:[%s962_s0] sm:$0x1f] %vm463_vm2, %v487_v32  ;;  %v489_v33 = vpack.c.bf16 %v487_v32, %v487_v32 }
 0x1b6   : > { %760 = vmatmul.msk.bf16.vlgmr.msra.gmra.mxu1 %vm491_vm9, %v489_v33 }
 0x233   : > { %v511_v35 = vpop.f32.mrf.mxu1 }
 0x234   : > { %v516_v36 = vpack.c.bf16 %v511_v35, %v511_v35 }
 0x236   : > { %765 = vmatmul.msk.bf16.vlgmr.msra.gmra.mxu2 %vm442_vm1, %v516_v36 }
 0x23b   : > { %v513_v37 = vpop.f32.mrf.mxu1 }
 0x2b9   : > { %v537_v39 = vpop.f32.mrf.mxu2 }
 0x2ba   : > { %v541_v40 = vadd.f32 %v537_v39, %v515_v38 }
 0x2bc   : > { %543 = vst.msk [vmem:[#allocation2] sm:$0x1f] %vm542_vm10, %v541_v40 }
 0x2bd   : > { %547 = sbr.rel (%p766_p8) target bundleno = 712 (0x2c8), region = 52 }
 0x2c1   : > { %v539_v41 = vpop.f32.mrf.mxu2 }
 0x2c2   : > { %vm550_vm11 = vcmask 518144   ;;  %vm551_vm12 = vsmask.f32 2304  ;;  %v553_v44 = vld [vmem:[%s957_s11] sm:$0x7] }
 0x2c3   : > { %v548_v42 = vld [vmem:[#allocation2] sm:$0x1f]  ;;  %vm552_vm13 = vmand %vm550_vm11, %vm551_vm12 }
 0x2c4   : > { %v549_v43 = vpack.c.bf16 %v548_v42, %v548_v42 }
 0x2c6   : > { %v554_v45 = vsel %vm552_vm13, %v549_v43, %v553_v44 }
 0x2c7   : > { %555 = vst [vmem:[%s957_s11] sm:$0x7] %v554_v45 }
 0x2c8 PF: > { %s18_s28 = sadd.s32 1, %s855_s28   ;;  %s1013_s0 = sld [smem:[#allocation3_spill]] }
 0x2c9   : > { %p15_p9 = scmp.ge.s32.totalorder %s18_s28, 10   ;;  %s1014_s30 = sld [smem:[#allocation4_spill]] }
 0x2ca   : > { %s1015_s24 = smov %s847_s26  ;;  %s1016_s25 = smov %s851_s27 }
 0x2cb   :  { %17 = sbr.rel (!%p15_p9) target bundleno = 4 (0x4), region = 106 }
 0x2ce   : > { %s1017_s26 = smov %s1013_s0 }
 0x2cf   : > { %s1018_s27 = smov %s1014_s30 }

// kernel: block_forward.35
= control target key start
LH: loop header
LB: loop body
LE: loop exit
PB: predicated region body
PF: predicated region fallthrough
CT: control target
= control target key end

     0   :  { %vm23_vm0 = vcmask 523264   ;;  %v212_v3 = vmov 64.0   ;;  %s310_s0 = inlined_call_operand.vmem [shape: bf16[8,64], index: 0, kind: input, shape index: {}]   ;;  %s311_s1 = inlined_call_operand.vmem [shape: f32[1,64], index: 1, kind: input, shape index: {}]   ;;  %s312_s2 = inlined_call_operand.vmem [shape: f32[1,64], index: 2, kind: input, shape index: {}]   ;;  %s313_s3 = inlined_call_operand.vmem [shape: bf16[64,256], index: 3, kind: input, shape index: {}]   ;;  %s314_s4 = inlined_call_operand.vmem [shape: f32[1,256], index: 4, kind: input, shape index: {}]   ;;  %s315_s5 = inlined_call_operand.vmem [shape: bf16[8,256], index: 5, kind: output, shape index: {}]  }
   0x1   :  { %v21_v0 = vld [vmem:[%s310_s0] sm:$0xf]  ;;  %208 = vrcp.f32 %v212_v3  ;;  %v189_v15 = vld [vmem:[%s313_s3 + $0x30] sm:$0xf]  ;;  %v204_v16 = vld [vmem:[%s313_s3 + $0x34] sm:$0xf0] }
   0x2   :  { %v22_v1 = vunpack.c.l.bf16 %v21_v0  ;;  %v203_v17 = vld [vmem:[%s313_s3 + $0x34] sm:$0xf]  ;;  %v190_v18 = vor.u32 %v204_v16, %v189_v15  ;;  %v191_v19 = vld [vmem:[%s313_s3 + $0x38] sm:$0xf0]  ;;  %v181_v21 = vld [vmem:[%s313_s3 + $0x20] sm:$0xf] }
   0x3   :  { %v194_v20 = vor.u32 %v203_v17, %v191_v19  ;;  %v202_v22 = vld [vmem:[%s313_s3 + $0x24] sm:$0xf0]  ;;  %v201_v23 = vld [vmem:[%s313_s3 + $0x24] sm:$0xf]  ;;  %v183_v25 = vld [vmem:[%s313_s3 + $0x28] sm:$0xf0] }
   0x4   :  { %v24_v2 = vsel %vm23_vm0, %v22_v1, 0.0  ;;  %125 = vmatpush.bf16.msra.mxu0 %v190_v18  ;;  %v182_v24 = vor.u32 %v202_v22, %v181_v21  ;;  %v186_v26 = vor.u32 %v201_v23, %v183_v25  ;;  %v173_v27 = vld [vmem:[%s313_s3 + $0x10] sm:$0xf]  ;;  %v200_v28 = vld [vmem:[%s313_s3 + $0x14] sm:$0xf0] }
   0x5   :  { %25 = vadd.xlane.f32.xlu0 %v24_v2  ;;  %138 = vmatpush.bf16.msra.mxu1 %v194_v20  ;;  %v199_v29 = vld [vmem:[%s313_s3 + $0x14] sm:$0xf]  ;;  %v174_v30 = vor.u32 %v200_v28, %v173_v27  ;;  %v175_v31 = vld [vmem:[%s313_s3 + $0x18] sm:$0xf0]  ;;  %v165_v32 = vld [vmem:[%s313_s3] sm:$0xf] }
   0x6   :  { %v198_v33 = vld [vmem:[%s313_s3 + $0x4] sm:$0xf0]  ;;  %v178_v34 = vor.u32 %v199_v29, %v175_v31  ;;  %v197_v35 = vld [vmem:[%s313_s3 + $0x4] sm:$0xf]  ;;  %v167_v36 = vld [vmem:[%s313_s3 + $0x8] sm:$0xf0] }
   0x7   :  { %v209_v4 = vpop.eup %208  ;;  %v166_v37 = vor.u32 %v198_v33, %v165_v32  ;;  %v170_v38 = vor.u32 %v197_v35, %v167_v36  ;;  %v206_v48 = vld [vmem:[%s311_s1] ss:$0 sm:$0xff] }
   0x8   :  { %v28_v5 = vmul.f32 64.0, %v209_v4  ;;  %vm32_vm1 = vweird.f32 %v209_v4  ;;  %126 = vmatpush.bf16.msra.mxu0 %v182_v24  ;;  %v207_v51 = vld [vmem:[%s312_s2] ss:$0 sm:$0xff] }
   0x9   :  { %139 = vmatpush.bf16.msra.mxu1 %v186_v26  ;;  %v72_v55 = vld [vmem:[%s314_s4] sm:$0x3] }
   0xa   :  { %v29_v6 = vsub.f32 1.0, %v28_v5  ;;  %v74_v56 = vperm.slane %v72_v55, 0  ;;  %v75_v57 = vperm.slane %v72_v55, 1 }
   0xc   :  { %v30_v7 = vmul.f32 %v209_v4, %v29_v6  ;;  %127 = vmatpush.bf16.msra.mxu0 %v174_v30 }
   0xd   :  { %140 = vmatpush.bf16.msra.mxu1 %v178_v34 }
   0xe   :  { %v31_v8 = vadd.f32 %v209_v4, %v30_v7 }
  0x10   :  { %v33_v9 = vsel %vm32_vm1, %v209_v4, %v31_v8  ;;  %128 = vmatpush.bf16.msra.mxu0 %v166_v37 }
  0x11   :  { %141 = vmatpush.bf16.msra.mxu1 %v170_v38 }
  0x78   :  { %v26_v10 = vpop.xlane.xlu0 %25 }
  0x79   :  { %v34_v11 = vmul.f32 %v33_v9, %v26_v10 }
  0x7b   :  { %v35_v12 = vsub.f32 %v22_v1, %v34_v11 }
  0x7d   :  { %v36_v13 = vmul.f32 %v35_v12, %v35_v12 }
  0x7f   :  { %v37_v14 = vsel %vm23_vm0, %v36_v13, 0.0 }
  0x80   :  { %38 = vadd.xlane.f32.xlu0 %v37_v14 }
  0xf3   :  { %v39_v39 = vpop.xlane.xlu0 %38 }
  0xf4   :  { %v40_v40 = vmul.f32 %v39_v39, %v33_v9 }
  0xf6   :  { %v41_v41 = vadd.f32 1e-05, %v40_v40 }
  0xf8   :  { %210 = vrsqrt.f32 %v41_v41  ;;  %vm48_vm3 = vweird.f32 %v41_v41 }
  0xfe   :  { %v211_v42 = vpop.eup %210 }
  0xff   :  { %v43_v43 = vmul.f32 %v211_v42, %v41_v41  ;;  %vm49_vm2 = vweird.f32 %v211_v42 }
 0x100   :  { %vm50_vm4 = vmor %vm48_vm3, %vm49_vm2 }
 0x101   :  { %v44_v44 = vmul.f32 %v211_v42, %v43_v43 }
 0x103   :  { %v45_v45 = vmul.f32 0.5, %v44_v44 }
 0x105   :  { %v46_v46 = vsub.f32 1.5, %v45_v45 }
 0x107   :  { %v47_v47 = vmul.f32 %v211_v42, %v46_v46 }
 0x109   :  { %v51_v49 = vsel %vm50_vm4, %v211_v42, %v47_v47 }
 0x10a   :  { %v52_v50 = vmul.f32 %v51_v49, %v35_v12 }
 0x10c   :  { %v57_v52 = vmul.f32 %v206_v48, %v52_v50 }
 0x10e   :  { %v62_v53 = vadd.f32 %v207_v51, %v57_v52 }
 0x110   :  { %v63_v54 = vpack.c.bf16 %v62_v53, %v62_v53 }
 0x112   :  { %195 = vmatmul.msk.bf16.vlgmr.msra.gmra.mxu0 %vm23_vm0, %v63_v54  ;;  %196 = vmatmul.msk.bf16.vlgmr.msra.gmra.mxu1 %vm23_vm0, %v63_v54 }
 0x18f   :  { %v130_v58 = vpop.f32.mrf.mxu0  ;;  %v143_v59 = vpop.f32.mrf.mxu1 }
 0x190   :  { %v131_v60 = vadd.f32 %v130_v58, %v74_v56  ;;  %v144_v61 = vadd.f32 %v143_v59, %v75_v57 }
 0x192   :  { %v147_v62 = vadd.f32 3.0, %v131_v60  ;;  %v148_v63 = vadd.f32 3.0, %v144_v61 }
 0x194   :  { %v149_v0 = vmax.f32 %v147_v62, 0.0  ;;  %v150_v1 = vmax.f32 %v148_v63, 0.0 }
 0x196   :  { %v151_v2 = vmin.f32 %v149_v0, 6.0  ;;  %v152_v3 = vmin.f32 %v150_v1, 6.0 }
 0x197   :  { %v132_v4 = vpop.f32.mrf.mxu0  ;;  %v145_v5 = vpop.f32.mrf.mxu1 }
 0x198   :  { %v153_v6 = vmul.f32 %v151_v2, %v131_v60  ;;  %v154_v7 = vmul.f32 %v152_v3, %v144_v61 }
 0x19a   :  { %v155_v8 = vmul.f32 0.16666667, %v153_v6  ;;  %v156_v9 = vmul.f32 0.16666667, %v154_v7 }
 0x19c   :  { %v157_v10 = vpack.c.bf16 %v156_v9, %v155_v8 }
 0x19e   :  { %158 = vst [vmem:[%s315_s5] sm:$0xff] %v157_v10 }

// kernel: block_forward.36
= control target key start
LH: loop header
LB: loop body
LE: loop exit
PB: predicated region body
PF: predicated region fallthrough
CT: control target
= control target key end

     0   :  { %s732_s18 = smov 0   ;;  %s878_s0 = inlined_call_operand.vmem [shape: bf16[2,4,4,256], index: 0, kind: input, shape index: {}]   ;;  %s879_s1 = inlined_call_operand.vmem [shape: f32[9,1,256], index: 1, kind: input, shape index: {}]   ;;  %s880_s2 = inlined_call_operand.vmem [shape: f32[1,1,256], index: 2, kind: input, shape index: {}]   ;;  %s881_s3 = inlined_call_operand.vmem [shape: f32[1,1,256], index: 3, kind: input, shape index: {}]   ;;  %s882_s4 = inlined_call_operand.vmem [shape: bf16[2,2,2,256], index: 4, kind: output, shape index: {0}]   ;;  %s883_s5 = inlined_call_operand.vmem [shape: f32[2,1,256], index: 5, kind: output, shape index: {1}]  }
   0x1 LB: > { %s665_s19 = sadd.s32 4294967295, %s700_s18   ;;  %p669_p0 = scmp.ge.s32.totalorder %s700_s18, 1  ;;  %s700_s18 = sphi %s732_s18, %s16_s18  }
   0x2   : > { %p190_p1 = scmp.lt.s32.totalorder %s700_s18, 3 }
   0x4   : > { %p191_p2 = pnand %p669_p0, %p190_p1 }
   0x5   : > { %p221_p3 = scmp.lt.s32.totalorder (!%p191_p2), %s665_s19, 1 }
   0x6   : > { %194 = sbr.rel (%p191_p2) target bundleno = 134 (0x86), region = 36 }
   0xb   : > { %s885_s19 = smov (!%p221_p3, %s665_s19), 1  ;;  %v242_v23 = vld [vmem:[%s879_s1] sm:$0x3]  ;;  %v243_v26 = vld [vmem:[%s879_s1 + $0x2] sm:$0x3]  ;;  %vm548_vm0 = vcmask 1041408  }
   0xc   : > { %s676_s20 = sshll.u32 %s885_s19, 4  ;;  %v244_v27 = vld [vmem:[%s879_s1 + $0x4] sm:$0x3]  ;;  %v252_v28 = vperm.slane %v242_v23, 0  ;;  %v253_v29 = vperm.slane %v242_v23, 1  ;;  %v274_v30 = vperm.slane %v243_v26, 0 }
   0xd   : > { %s225_s23 = scalar_lea.vmem %s878_s0, %s676_s20  ;;  %v275_v31 = vperm.slane %v243_v26, 1  ;;  %v302_v32 = vperm.slane %v244_v27, 0  ;;  %v303_v36 = vperm.slane %v244_v27, 1  ;;  %v245_v39 = vld [vmem:[%s879_s1 + $0x6] sm:$0x3]  ;;  %vm537_vm1 = vcmask 1040384  }
   0xe   : > { %v678_v0 = vld [vmem:[%s225_s23] sm:$0xff]   ;;  %v685_v11 = vld [vmem:[%s225_s23 + $0x8] sm:$0xff]   ;;  %v330_v50 = vperm.slane %v245_v39, 0  ;;  %v331_v51 = vperm.slane %v245_v39, 1  ;;  %s672_s23 = sshll.u32 %s885_s19, 2  ;;  %s673_s27 = sshll.u32 %s885_s19, 1 }
   0xf   : > { %v679_v1 = vunpack.c.l.bf16 %v678_v0  ;;  %v680_v2 = vunpack.c.h.bf16 %v678_v0  ;;  %v754_v12 = vunpack.c.l.bf16 %v685_v11  ;;  %v788_v33 = vunpack.c.h.bf16 %v685_v11  ;;  %v246_v46 = vld [vmem:[%s879_s1 + $0x8] sm:$0x3]  ;;  %v809_v47 = vld [vmem:[%s879_s1 + $0xa] sm:$0x3]  ;;  %v818_v56 = vld [vmem:[%s879_s1 + $0xc] sm:$0x3]  ;;  %s229_s26 = scalar_lea.vmem %s882_s4, %s672_s23  ;;  %s233_s30 = scalar_lea.vmem %s883_s5, %s673_s27 }
  0x10   : > { %v355_v57 = vperm.slane %v246_v46, 0  ;;  %v356_v58 = vperm.slane %v246_v46, 1  ;;  %v383_v63 = vperm.slane %v809_v47, 0  ;;  %v384_v0 = vperm.slane %v809_v47, 1 }
  0x11   : > { %258 = vst [vmem:[#allocation1] ss:$2 sm:$0xff] %v679_v1 }
  0x12   : > { %262 = vst [vmem:[#allocation1 + $0x10] ss:$2 sm:$0xff] %v680_v2 }
  0x18   : > { %v746_v3 = vld.sshfl [vmem:[#allocation1] sm:$0xff pattern:$0x75316420]  ;;  %v748_v4 = vld.sshfl [vmem:[#allocation1 + $0x8] sm:$0xff pattern:$0x75316420] }
  0x19   : > { %278 = vst [vmem:[#allocation1] ss:$2 sm:$0xff] %v679_v1  ;;  %v750_v5 = vld.sshfl [vmem:[#allocation1 + $0x10] sm:$0xff pattern:$0x75316420]  ;;  %v269_v54 = vmul.f32 %v746_v3, %v252_v28  ;;  %v270_v55 = vmul.f32 %v748_v4, %v253_v29 }
  0x1a   : > { %v752_v6 = vld.sshfl [vmem:[#allocation1 + $0x18] sm:$0xff pattern:$0x75316420]  ;;  %v271_v4 = vmul.f32 %v750_v5, %v252_v28  ;;  %v831_v5 = vld [vmem:[%s879_s1 + $0xe] sm:$0x3] }
  0x1b   : > { %282 = vst [vmem:[#allocation1 + $0x10] ss:$2 sm:$0xff] %v680_v2 }
  0x20   : > { %v279_v7 = vld.sshfl [vmem:[#allocation1] sm:$0xff pattern:$0x75316420]  ;;  %v280_v8 = vld.sshfl [vmem:[#allocation1 + $0x8] sm:$0xff pattern:$0x75316420] }
  0x21   : > { %306 = vst [vmem:[#allocation1] ss:$2 sm:$0xff] %v679_v1  ;;  %v285_v34 = vrot.slane %v279_v7, 1  ;;  %v286_v35 = vrot.slane %v280_v8, 1  ;;  %v272_v8 = vmul.f32 %v752_v6, %v253_v29 }
  0x22   : > { %v283_v9 = vld.sshfl [vmem:[#allocation1 + $0x10] sm:$0xff pattern:$0x75316420]  ;;  %v284_v10 = vld.sshfl [vmem:[#allocation1 + $0x18] sm:$0xff pattern:$0x75316420] }
  0x23   : > { %310 = vst [vmem:[#allocation1 + $0x10] ss:$2 sm:$0xff] %v680_v2  ;;  %v287_v40 = vrot.slane %v283_v9, 1  ;;  %v288_v41 = vrot.slane %v284_v10, 1  ;;  %v293_v48 = vmul.f32 %v285_v34, %v274_v30  ;;  %v294_v49 = vmul.f32 %v286_v35, %v275_v31 }
  0x24   : > { %v411_v9 = vperm.slane %v818_v56, 0  ;;  %v412_v10 = vperm.slane %v818_v56, 1  ;;  %v250_v56 = vld [vmem:[%s879_s1 + $0x10] sm:$0x3] }
  0x25   : > { %v295_v59 = vmul.f32 %v287_v40, %v274_v30  ;;  %v296_v60 = vmul.f32 %v288_v41, %v275_v31  ;;  %v297_v3 = vadd.f32 %v293_v48, %v269_v54  ;;  %v298_v7 = vadd.f32 %v294_v49, %v270_v55 }
  0x26   : > { %v436_v40 = vperm.slane %v831_v5, 0 }
  0x27   : > { %v300_v23 = vadd.f32 %v296_v60, %v272_v8  ;;  %v464_v8 = vperm.slane %v250_v56, 0 }
  0x28   : > { %v307_v13 = vld.sshfl [vmem:[#allocation1] sm:$0xff pattern:$0x75316420]  ;;  %v308_v14 = vld.sshfl [vmem:[#allocation1 + $0x8] sm:$0xff pattern:$0x75316420] }
  0x29   : > { %335 = vst [vmem:[#allocation1] ss:$2 sm:$0xff] %v680_v2  ;;  %v313_v44 = vrot.slane %v307_v13, 2  ;;  %v314_v45 = vrot.slane %v308_v14, 2 }
  0x2a   : > { %v756_v15 = vld.sshfl [vmem:[#allocation1 + $0x10] sm:$0xff pattern:$0x75316420]  ;;  %v758_v16 = vld.sshfl [vmem:[#allocation1 + $0x18] sm:$0xff pattern:$0x75316420] }
  0x2b   : > { %339 = vst [vmem:[#allocation1 + $0x10] ss:$2 sm:$0xff] %v754_v12  ;;  %v315_v52 = vrot.slane %v756_v15, 2  ;;  %v316_v53 = vrot.slane %v758_v16, 2  ;;  %v321_v61 = vmul.f32 %v313_v44, %v302_v32  ;;  %v322_v62 = vmul.f32 %v314_v45, %v303_v36 }
  0x2c   : > { %v299_v16 = vadd.f32 %v295_v59, %v271_v4 }
  0x2d   : > { %v323_v11 = vmul.f32 %v315_v52, %v302_v32  ;;  %v324_v13 = vmul.f32 %v316_v53, %v303_v36  ;;  %v325_v6 = vadd.f32 %v321_v61, %v297_v3  ;;  %v326_v26 = vadd.f32 %v322_v62, %v298_v7 }
  0x2f   : > { %v327_v36 = vadd.f32 %v323_v11, %v299_v16  ;;  %v328_v39 = vadd.f32 %v324_v13, %v300_v23  ;;  %v465_v11 = vperm.slane %v250_v56, 1 }
  0x30   : > { %v761_v17 = vld.sshfl [vmem:[#allocation1] sm:$0xff pattern:$0x75316420]  ;;  %v763_v18 = vld.sshfl [vmem:[#allocation1 + $0x8] sm:$0xff pattern:$0x75316420] }
  0x31   : > { %359 = vst [vmem:[#allocation1] ss:$2 sm:$0xff] %v680_v2  ;;  %v346_v29 = vmul.f32 %v761_v17, %v330_v50  ;;  %v347_v30 = vmul.f32 %v763_v18, %v331_v51 }
  0x32   : > { %v765_v19 = vld.sshfl [vmem:[#allocation1 + $0x10] sm:$0xff pattern:$0x75316420]  ;;  %v767_v20 = vld.sshfl [vmem:[#allocation1 + $0x18] sm:$0xff pattern:$0x75316420] }
  0x33   : > { %363 = vst [vmem:[#allocation1 + $0x10] ss:$2 sm:$0xff] %v754_v12  ;;  %v349_v17 = vmul.f32 %v767_v20, %v331_v51  ;;  %v350_v45 = vadd.f32 %v346_v29, %v325_v6 }
  0x35   : > { %v353_v53 = vadd.f32 %v349_v17, %v328_v39 }
  0x38   : > { %v770_v21 = vld.sshfl [vmem:[#allocation1] sm:$0xff pattern:$0x75316420]  ;;  %v772_v22 = vld.sshfl [vmem:[#allocation1 + $0x8] sm:$0xff pattern:$0x75316420] }
  0x39   : > { %387 = vst [vmem:[#allocation1] ss:$2 sm:$0xff] %v680_v2  ;;  %v366_v27 = vrot.slane %v770_v21, 1  ;;  %v367_v28 = vrot.slane %v772_v22, 1  ;;  %v437_v21 = vperm.slane %v831_v5, 1  ;;  %v348_v22 = vmul.f32 %v765_v19, %v330_v50 }
  0x3a   : > { %v777_v24 = vld.sshfl [vmem:[#allocation1 + $0x10] sm:$0xff pattern:$0x75316420]  ;;  %v779_v25 = vld.sshfl [vmem:[#allocation1 + $0x18] sm:$0xff pattern:$0x75316420] }
  0x3b   : > { %391 = vst [vmem:[#allocation1 + $0x10] ss:$2 sm:$0xff] %v754_v12  ;;  %v368_v31 = vrot.slane %v777_v24, 1  ;;  %v369_v32 = vrot.slane %v779_v25, 1  ;;  %v374_v41 = vmul.f32 %v366_v27, %v355_v57  ;;  %v375_v18 = vmul.f32 %v367_v28, %v356_v58 }
  0x3c   : > { %v352_v51 = vadd.f32 %v348_v22, %v327_v36 }
  0x3d   : > { %v376_v46 = vmul.f32 %v368_v31, %v355_v57  ;;  %v377_v47 = vmul.f32 %v369_v32, %v356_v58  ;;  %v501_v31 = vld [vmem:[%s881_s3] sm:$0x3] }
  0x3f   : > { %v380_v62 = vadd.f32 %v376_v46, %v352_v51  ;;  %v381_v3 = vadd.f32 %v377_v47, %v353_v53 }
  0x40   : > { %v790_v37 = vld.sshfl [vmem:[#allocation1] sm:$0xff pattern:$0x75316420]  ;;  %v792_v38 = vld.sshfl [vmem:[#allocation1 + $0x8] sm:$0xff pattern:$0x75316420] }
  0x41   : > { %416 = vst [vmem:[#allocation1] ss:$2 sm:$0xff] %v754_v12  ;;  %v394_v34 = vrot.slane %v790_v37, 2  ;;  %v395_v35 = vrot.slane %v792_v38, 2  ;;  %v351_v38 = vadd.f32 %v347_v30, %v326_v26 }
  0x42   : > { %v798_v42 = vld.sshfl [vmem:[#allocation1 + $0x10] sm:$0xff pattern:$0x75316420]  ;;  %v800_v43 = vld.sshfl [vmem:[#allocation1 + $0x18] sm:$0xff pattern:$0x75316420] }
  0x43   : > { %420 = vst [vmem:[#allocation1 + $0x10] ss:$2 sm:$0xff] %v788_v33  ;;  %v396_v24 = vrot.slane %v798_v42, 2  ;;  %v397_v25 = vrot.slane %v800_v43, 2  ;;  %v402_v48 = vmul.f32 %v394_v34, %v383_v63  ;;  %v403_v49 = vmul.f32 %v395_v35, %v384_v0 }
  0x44   : > { %v378_v42 = vadd.f32 %v374_v41, %v350_v45  ;;  %v379_v43 = vadd.f32 %v375_v18, %v351_v38 }
  0x45   : > { %v404_v54 = vmul.f32 %v396_v24, %v383_v63  ;;  %v405_v55 = vmul.f32 %v397_v25, %v384_v0 }
  0x46   : > { %v406_v60 = vadd.f32 %v402_v48, %v378_v42  ;;  %v407_v61 = vadd.f32 %v403_v49, %v379_v43 }
  0x47   : > { %v408_v13 = vadd.f32 %v404_v54, %v380_v62  ;;  %v409_v16 = vadd.f32 %v405_v55, %v381_v3 }
  0x48   : > { %v417_v1 = vld.sshfl [vmem:[#allocation1] sm:$0xff pattern:$0x75316420]  ;;  %v418_v2 = vld.sshfl [vmem:[#allocation1 + $0x8] sm:$0xff pattern:$0x75316420] }
  0x49   : > { %440 = vst [vmem:[#allocation1] ss:$2 sm:$0xff] %v754_v12  ;;  %v427_v57 = vmul.f32 %v417_v1, %v411_v9 }
  0x4a   : > { %v421_v14 = vld.sshfl [vmem:[#allocation1 + $0x10] sm:$0xff pattern:$0x75316420]  ;;  %v422_v15 = vld.sshfl [vmem:[#allocation1 + $0x18] sm:$0xff pattern:$0x75316420] }
  0x4b   : > { %444 = vst [vmem:[#allocation1 + $0x10] ss:$2 sm:$0xff] %v788_v33  ;;  %v429_v63 = vmul.f32 %v421_v14, %v411_v9  ;;  %v430_v0 = vmul.f32 %v422_v15, %v412_v10  ;;  %v431_v1 = vadd.f32 %v427_v57, %v406_v60 }
  0x4d   : > { %v433_v14 = vadd.f32 %v429_v63, %v408_v13  ;;  %v434_v15 = vadd.f32 %v430_v0, %v409_v16 }
  0x50   : > { %v441_v44 = vld.sshfl [vmem:[#allocation1] sm:$0xff pattern:$0x75316420]  ;;  %v442_v37 = vld.sshfl [vmem:[#allocation1 + $0x8] sm:$0xff pattern:$0x75316420] }
  0x51   : > { %468 = vst [vmem:[#allocation1] ss:$2 sm:$0xff] %v754_v12  ;;  %v447_v52 = vrot.slane %v441_v44, 1  ;;  %v448_v19 = vrot.slane %v442_v37, 1  ;;  %v428_v12 = vmul.f32 %v418_v2, %v412_v10 }
  0x52   : > { %v445_v50 = vld.sshfl [vmem:[#allocation1 + $0x10] sm:$0xff pattern:$0x75316420]  ;;  %v446_v20 = vld.sshfl [vmem:[#allocation1 + $0x18] sm:$0xff pattern:$0x75316420] }
  0x53   : > { %472 = vst [vmem:[#allocation1 + $0x10] ss:$2 sm:$0xff] %v788_v33  ;;  %v449_v58 = vrot.slane %v445_v50, 1  ;;  %v450_v59 = vrot.slane %v446_v20, 1  ;;  %v455_v7 = vmul.f32 %v447_v52, %v436_v40  ;;  %v456_v4 = vmul.f32 %v448_v19, %v437_v21  ;;  %v491_v33 = vld [vmem:[%s880_s2] sm:$0x3] }
  0x54   : > { %v432_v2 = vadd.f32 %v428_v12, %v407_v61  ;;  %v493_v29 = vperm.slane %v491_v33, 0  ;;  %v494_v30 = vperm.slane %v491_v33, 1 }
  0x55   : > { %v457_v6 = vmul.f32 %v449_v58, %v436_v40  ;;  %v458_v26 = vmul.f32 %v450_v59, %v437_v21  ;;  %v459_v9 = vadd.f32 %v455_v7, %v431_v1  ;;  %v503_v40 = vperm.slane %v501_v31, 0 }
  0x56   : > { %v460_v10 = vadd.f32 %v456_v4, %v432_v2  ;;  %v504_v21 = vperm.slane %v501_v31, 1 }
  0x57   : > { %v461_v17 = vadd.f32 %v457_v6, %v433_v14  ;;  %v462_v41 = vadd.f32 %v458_v26, %v434_v15 }
  0x58   : > { %v469_v23 = vld.sshfl [vmem:[#allocation1] sm:$0xff pattern:$0x75316420]  ;;  %v470_v5 = vld.sshfl [vmem:[#allocation1 + $0x8] sm:$0xff pattern:$0x75316420] }
  0x59   : > { %v475_v27 = vrot.slane %v469_v23, 2  ;;  %v476_v28 = vrot.slane %v470_v5, 2 }
  0x5a   : > { %v473_v32 = vld.sshfl [vmem:[#allocation1 + $0x10] sm:$0xff pattern:$0x75316420]  ;;  %v474_v34 = vld.sshfl [vmem:[#allocation1 + $0x18] sm:$0xff pattern:$0x75316420] }
  0x5b   : > { %v483_v35 = vmul.f32 %v475_v27, %v464_v8  ;;  %v484_v36 = vmul.f32 %v476_v28, %v465_v11  ;;  %v477_v39 = vrot.slane %v473_v32, 2  ;;  %v478_v22 = vrot.slane %v474_v34, 2 }
  0x5d   : > { %v487_v18 = vadd.f32 %v483_v35, %v459_v9  ;;  %v488_v24 = vadd.f32 %v484_v36, %v460_v10  ;;  %v485_v25 = vmul.f32 %v477_v39, %v464_v8  ;;  %v486_v44 = vmul.f32 %v478_v22, %v465_v11 }
  0x5f   : > { %v497_v37 = vmul.f32 %v493_v29, %v487_v18  ;;  %v498_v45 = vmul.f32 %v494_v30, %v488_v24  ;;  %v489_v38 = vadd.f32 %v485_v25, %v461_v17  ;;  %v490_v46 = vadd.f32 %v486_v44, %v462_v41 }
  0x61   : > { %v507_v47 = vadd.f32 %v503_v40, %v497_v37  ;;  %v508_v48 = vadd.f32 %v504_v21, %v498_v45  ;;  %v499_v49 = vmul.f32 %v493_v29, %v489_v38  ;;  %v500_v52 = vmul.f32 %v494_v30, %v490_v46 }
  0x63   : > { %v511_v19 = vadd.f32 3.0, %v507_v47  ;;  %v512_v50 = vadd.f32 3.0, %v508_v48  ;;  %v509_v20 = vadd.f32 %v503_v40, %v499_v49  ;;  %v510_v51 = vadd.f32 %v504_v21, %v500_v52 }
  0x64   : > { %v576_v40 = vlaneseq }
  0x65   : > { %v515_v53 = vmax.f32 %v511_v19, 0.0  ;;  %v516_v42 = vmax.f32 %v512_v50, 0.0  ;;  %v513_v43 = vadd.f32 3.0, %v509_v20  ;;  %v514_v54 = vadd.f32 3.0, %v510_v51 }
  0x66   : > { %vm578_vm2 = vcmp.lt.s32.totalorder %v576_v40, 256 }
  0x67   : > { %v519_v55 = vmin.f32 %v515_v53, 6.0  ;;  %v520_v56 = vmin.f32 %v516_v42, 6.0  ;;  %v517_v57 = vmax.f32 %v513_v43, 0.0  ;;  %v518_v12 = vmax.f32 %v514_v54, 0.0 }
  0x69   : > { %v523_v58 = vmul.f32 %v519_v55, %v507_v47  ;;  %v524_v59 = vmul.f32 %v520_v56, %v508_v48  ;;  %v521_v60 = vmin.f32 %v517_v57, 6.0  ;;  %v522_v61 = vmin.f32 %v518_v12, 6.0 }
  0x6b   : > { %v527_v62 = vmul.f32 0.16666667, %v523_v58  ;;  %v528_v3 = vmul.f32 0.16666667, %v524_v59  ;;  %v525_v7 = vmul.f32 %v521_v60, %v509_v20  ;;  %v526_v4 = vmul.f32 %v522_v61, %v510_v51 }
  0x6d   : > { %v531_v33 = vpack.c.bf16 %v528_v3, %v527_v62  ;;  %v549_v63 = vsel %vm548_vm0, %v527_v62, 0.0  ;;  %v529_v0 = vmul.f32 0.16666667, %v525_v7  ;;  %v552_v8 = vsel %vm548_vm0, %v528_v3, 0.0 }
  0x6e   : > { %v530_v11 = vmul.f32 0.16666667, %v526_v4 }
  0x6f   : > { %v535_v13 = vrot.slane %v531_v33, 3  ;;  %v550_v16 = vsel %vm548_vm0, %v529_v0, 0.0 }
  0x70   : > { %v532_v1 = vpack.c.bf16 %v530_v11, %v529_v0  ;;  %v551_v2 = vadd.f32 %v550_v16, %v549_v63  ;;  %v553_v23 = vsel %vm548_vm0, %v530_v11, 0.0 }
  0x71   : > { %v540_v5 = vsel %vm537_vm1, %v531_v33, %v535_v13  ;;  %v554_v6 = vadd.f32 %v553_v23, %v552_v8 }
  0x72   : > { %546 = vst [vmem:[%s229_s26] sm:$0x3] %v540_v5  ;;  %v536_v26 = vrot.slane %v532_v1, 3  ;;  %v555_v27 = vsel %vm548_vm0, %v551_v2, 0.0 }
  0x73   : > { %v562_v28 = vsel %vm548_vm0, %v554_v6, 0.0  ;;  %v556_v29 = vrot.slane %v555_v27, 4 }
  0x74   : > { %v543_v30 = vsel %vm537_vm1, %v532_v1, %v536_v26  ;;  %v563_v31 = vrot.slane %v562_v28, 4 }
  0x75   : > { %547 = vst [vmem:[%s229_s26 + $0x2] sm:$0x3] %v543_v30  ;;  %v557_v9 = vadd.f32 %v556_v29, %v555_v27 }
  0x76   : > { %v564_v10 = vadd.f32 %v563_v31, %v562_v28 }
  0x77   : > { %v558_v14 = vrot.slane %v557_v9, 2 }
  0x78   : > { %v565_v15 = vrot.slane %v564_v10, 2 }
  0x79   : > { %v559_v32 = vadd.f32 %v558_v14, %v557_v9 }
  0x7a   : > { %v566_v34 = vadd.f32 %v565_v15, %v564_v10 }
  0x7b   : > { %v560_v35 = vrot.slane %v559_v32, 1 }
  0x7c   : > { %v567_v36 = vrot.slane %v566_v34, 1 }
  0x7d   : > { %v561_v39 = vadd.f32 %v560_v35, %v559_v32 }
  0x7e   : > { %v568_v22 = vadd.f32 %v567_v36, %v566_v34 }
  0x7f   : > { %v569_v17 = vmul.f32 0.25, %v561_v39 }
  0x80   : > { %v570_v21 = vmul.f32 0.25, %v568_v22 }
  0x82   : > { %v573_v41 = vrot.slane %v570_v21, 7 }
  0x84   : > { %v574_v18 = vsel %vm537_vm1, %v569_v17, %v573_v41 }
  0x85   : > { %580 = vst.msk [vmem:[%s233_s30] sm:$0x3] %vm578_vm2, %v574_v18 }
  0x86 PF: > { %s16_s18 = sadd.s32 1, %s700_s18  }
  0x87   : > { %p13_p4 = scmp.ge.s32.totalorder %s16_s18, 4  }
  0x89   :  { %15 = sbr.rel (!%p13_p4) target bundleno = 1 (0x1), region = 87 }

// kernel: block_forward.33
= control target key start
LH: loop header
LB: loop body
LE: loop exit
PB: predicated region body
PF: predicated region fallthrough
CT: control target
= control target key end

     0   :  { %vm115_vm0 = vcmask 523264   ;;  %s402_s1 = inlined_call_operand.vmem [shape: bf16[64,512], index: 1, kind: input, shape index: {}]   ;;  %s403_s0 = inlined_call_operand.vmem [shape: bf16[16,64], index: 0, kind: input, shape index: {}]   ;;  %s404_s2 = inlined_call_operand.vmem [shape: bf16[16,512], index: 2, kind: output, shape index: {}]  }
   0x1   :  { %v241_v0 = vld [vmem:[%s402_s1 + $0x60] sm:$0xf]  ;;  %v274_v1 = vld [vmem:[%s402_s1 + $0x6c] sm:$0xf0]  ;;  %v272_v2 = vld [vmem:[%s402_s1 + $0x64] sm:$0xf] }
   0x2   :  { %v242_v3 = vor.u32 %v274_v1, %v241_v0  ;;  %v243_v4 = vld [vmem:[%s402_s1 + $0x70] sm:$0xf0]  ;;  %v249_v5 = vld [vmem:[%s402_s1 + $0x68] sm:$0xf]  ;;  %v275_v6 = vld [vmem:[%s402_s1 + $0x74] sm:$0xf0] }
   0x3   :  { %v246_v7 = vor.u32 %v272_v2, %v243_v4  ;;  %v250_v8 = vor.u32 %v275_v6, %v249_v5  ;;  %v273_v9 = vld [vmem:[%s402_s1 + $0x6c] sm:$0xf]  ;;  %v251_v10 = vld [vmem:[%s402_s1 + $0x78] sm:$0xf0]  ;;  %v225_v11 = vld [vmem:[%s402_s1 + $0x40] sm:$0xf] }
   0x4   :  { %123 = vmatpush.bf16.msra.mxu0 %v242_v3  ;;  %v254_v12 = vor.u32 %v273_v9, %v251_v10  ;;  %v270_v13 = vld [vmem:[%s402_s1 + $0x4c] sm:$0xf0]  ;;  %v268_v14 = vld [vmem:[%s402_s1 + $0x44] sm:$0xf]  ;;  %v227_v15 = vld [vmem:[%s402_s1 + $0x50] sm:$0xf0] }
   0x5   :  { %137 = vmatpush.bf16.msra.mxu1 %v246_v7  ;;  %151 = vmatpush.bf16.msra.mxu2 %v250_v8  ;;  %v226_v16 = vor.u32 %v270_v13, %v225_v11  ;;  %v230_v17 = vor.u32 %v268_v14, %v227_v15  ;;  %v233_v18 = vld [vmem:[%s402_s1 + $0x48] sm:$0xf]  ;;  %v271_v19 = vld [vmem:[%s402_s1 + $0x54] sm:$0xf0]  ;;  %v269_v20 = vld [vmem:[%s402_s1 + $0x4c] sm:$0xf] }
   0x6   :  { %165 = vmatpush.bf16.msra.mxu3 %v254_v12  ;;  %v234_v21 = vor.u32 %v271_v19, %v233_v18  ;;  %v235_v22 = vld [vmem:[%s402_s1 + $0x58] sm:$0xf0]  ;;  %v209_v23 = vld [vmem:[%s402_s1 + $0x20] sm:$0xf]  ;;  %v266_v24 = vld [vmem:[%s402_s1 + $0x2c] sm:$0xf0] }
   0x7   :  { %v238_v25 = vor.u32 %v269_v20, %v235_v22  ;;  %v264_v26 = vld [vmem:[%s402_s1 + $0x24] sm:$0xf]  ;;  %v211_v27 = vld [vmem:[%s402_s1 + $0x30] sm:$0xf0]  ;;  %v217_v28 = vld [vmem:[%s402_s1 + $0x28] sm:$0xf]  ;;  %v210_v29 = vor.u32 %v266_v24, %v209_v23 }
   0x8   :  { %124 = vmatpush.bf16.msra.mxu0 %v226_v16  ;;  %v267_v30 = vld [vmem:[%s402_s1 + $0x34] sm:$0xf0]  ;;  %v265_v31 = vld [vmem:[%s402_s1 + $0x2c] sm:$0xf]  ;;  %v219_v32 = vld [vmem:[%s402_s1 + $0x38] sm:$0xf0]  ;;  %v214_v33 = vor.u32 %v264_v26, %v211_v27 }
   0x9   :  { %138 = vmatpush.bf16.msra.mxu1 %v230_v17  ;;  %152 = vmatpush.bf16.msra.mxu2 %v234_v21  ;;  %v218_v34 = vor.u32 %v267_v30, %v217_v28  ;;  %v193_v35 = vld [vmem:[%s402_s1] sm:$0xf]  ;;  %v262_v36 = vld [vmem:[%s402_s1 + $0xc] sm:$0xf0]  ;;  %v260_v37 = vld [vmem:[%s402_s1 + $0x4] sm:$0xf]  ;;  %v222_v38 = vor.u32 %v265_v31, %v219_v32 }
   0xa   :  { %166 = vmatpush.bf16.msra.mxu3 %v238_v25  ;;  %v195_v39 = vld [vmem:[%s402_s1 + $0x10] sm:$0xf0]  ;;  %v201_v40 = vld [vmem:[%s402_s1 + $0x8] sm:$0xf]  ;;  %v263_v41 = vld [vmem:[%s402_s1 + $0x14] sm:$0xf0]  ;;  %v194_v44 = vor.u32 %v262_v36, %v193_v35 }
   0xb   :  { %v261_v42 = vld [vmem:[%s402_s1 + $0xc] sm:$0xf]  ;;  %v203_v43 = vld [vmem:[%s402_s1 + $0x18] sm:$0xf0]  ;;  %v198_v45 = vor.u32 %v260_v37, %v195_v39  ;;  %v202_v46 = vor.u32 %v263_v41, %v201_v40  ;;  %v259_v48 = vld [vmem:[%s403_s0] sm:$0xff] }
   0xc   :  { %125 = vmatpush.bf16.msra.mxu0 %v210_v29  ;;  %v206_v47 = vor.u32 %v261_v42, %v203_v43 }
   0xd   :  { %139 = vmatpush.bf16.msra.mxu1 %v214_v33  ;;  %153 = vmatpush.bf16.msra.mxu2 %v218_v34 }
   0xe   :  { %167 = vmatpush.bf16.msra.mxu3 %v222_v38 }
  0x10   :  { %126 = vmatpush.bf16.msra.mxu0 %v194_v44 }
  0x11   :  { %140 = vmatpush.bf16.msra.mxu1 %v198_v45  ;;  %154 = vmatpush.bf16.msra.mxu2 %v202_v46 }
  0x12   :  { %168 = vmatpush.bf16.msra.mxu3 %v206_v47 }
  0x13   :  { %255 = vmatmul.msk.bf16.vlgmr.msra.gmra.mxu0 %vm115_vm0, %v259_v48 }
  0x14   :  { %256 = vmatmul.msk.bf16.vlgmr.msra.gmra.mxu1 %vm115_vm0, %v259_v48  ;;  %257 = vmatmul.msk.bf16.vlgmr.msra.gmra.mxu2 %vm115_vm0, %v259_v48 }
  0x15   :  { %258 = vmatmul.msk.bf16.vlgmr.msra.gmra.mxu3 %vm115_vm0, %v259_v48 }
  0x90   :  { %v128_v49 = vpop.f32.mrf.mxu0 }
  0x91   :  { %v142_v50 = vpop.f32.mrf.mxu1 }
  0x92   :  { %v175_v51 = vpack.c.bf16 %v142_v50, %v128_v49 }
  0x94   :  { %179 = vst [vmem:[%s404_s2] sm:$0xff] %v175_v51 }
  0x97   :  { %v156_v52 = vpop.f32.mrf.mxu2 }
  0x98   :  { %v170_v53 = vpop.f32.mrf.mxu3  ;;  %v130_v54 = vpop.f32.mrf.mxu0 }
  0x99   :  { %v176_v55 = vpack.c.bf16 %v170_v53, %v156_v52  ;;  %v144_v56 = vpop.f32.mrf.mxu1 }
  0x9a   :  { %v177_v57 = vpack.c.bf16 %v144_v56, %v130_v54 }
  0x9b   :  { %180 = vst [vmem:[%s404_s2 + $0x8] sm:$0xff] %v176_v55 }
  0x9c   :  { %181 = vst [vmem:[%s404_s2 + $0x10] sm:$0xff] %v177_v57 }
  0x9f   :  { %v158_v58 = vpop.f32.mrf.mxu2 }
  0xa0   :  { %v172_v59 = vpop.f32.mrf.mxu3 }
  0xa1   :  { %v178_v60 = vpack.c.bf16 %v172_v59, %v158_v58 }
  0xa3   :  { %182 = vst [vmem:[%s404_s2 + $0x18] sm:$0xff] %v178_v60 }

// kernel: block_forward.37
= control target key start
LH: loop header
LB: loop body
LE: loop exit
PB: predicated region body
PF: predicated region fallthrough
CT: control target
= control target key end

     0   :  { %s936_s30 = smov 0   ;;  %s1131_s0 = inlined_call_operand.vmem [shape: bf16[2,4,256], index: 0, kind: input, shape index: {}]   ;;  %s1132_s1 = inlined_call_operand.vmem [shape: f32[2,1,256], index: 1, kind: input, shape index: {}]   ;;  %s1133_s2 = inlined_call_operand.vmem [shape: f32[256,4], index: 2, kind: input, shape index: {}]   ;;  %s1134_s3 = inlined_call_operand.vmem [shape: f32[1,4], index: 3, kind: input, shape index: {}]   ;;  %s1135_s4 = inlined_call_operand.vmem [shape: f32[4,256], index: 4, kind: input, shape index: {}]   ;;  %s1136_s5 = inlined_call_operand.vmem [shape: f32[1,256], index: 5, kind: input, shape index: {}]   ;;  %s1137_s6 = inlined_call_operand.vmem [shape: bf16[256,64], index: 6, kind: input, shape index: {}]   ;;  %s1138_s7 = inlined_call_operand.vmem [shape: f32[1,64], index: 7, kind: input, shape index: {}]   ;;  %s1139_s8 = inlined_call_operand.vmem [shape: bf16[2,4,64], index: 8, kind: input, shape index: {}]   ;;  %s1140_s9 = inlined_call_operand.vmem [shape: bf16[2,4,64], index: 9, kind: output, shape index: {}]  }
   0x1 LB: > { %s772_s10 = sadd.s32 4294967295, %s884_s30   ;;  %p776_p0 = scmp.ge.s32.totalorder %s884_s30, 1  ;;  %s884_s30 = sphi %s936_s30, %s19_s30  }
   0x2   : > { %p305_p1 = scmp.lt.s32.totalorder %s884_s30, 3 }
   0x4   : > { %p306_p2 = pnand %p776_p0, %p305_p1 }
   0x5   : > { %p348_p3 = scmp.lt.s32.totalorder (!%p306_p2), %s772_s10, 1 }
   0x6   : > { %309 = sbr.rel (%p306_p2) target bundleno = 469 (0x1d5), region = 56 }
   0xb   : > { %v381_v0 = vld [vmem:[%s1133_s2 + $0x78] sm:$0xff]  ;;  %v380_v1 = vld [vmem:[%s1133_s2 + $0x70] sm:$0xff]  ;;  %v379_v4 = vld [vmem:[%s1133_s2 + $0x68] sm:$0xff]  ;;  %s1142_s10 = smov (!%p348_p3, %s772_s10), 1  ;;  %vm460_vm0 = vcmask 1043456   ;;  %vm456_vm1 = vcmask 31744  }
   0xc   : > { %v397_v2 = vld [vmem:[%s1133_s2 + $0xf8] sm:$0xff]  ;;  %404 = vmatpush.msra.mxu0 %v381_v0  ;;  %v396_v3 = vld [vmem:[%s1133_s2 + $0xf0] sm:$0xff]  ;;  %v395_v5 = vld [vmem:[%s1133_s2 + $0xe8] sm:$0xff]  ;;  %s1020_s19 = sshll.u32 %s1142_s10, 1  ;;  %s852_s25 = sshll.u32 %s1142_s10, 2  ;;  %vm693_vm2 = vcmask 517120  }
   0xd   : > { %424 = vmatpush.msra.mxu1 %v397_v2  ;;  %v378_v6 = vld [vmem:[%s1133_s2 + $0x60] sm:$0xff]  ;;  %v377_v8 = vld [vmem:[%s1133_s2 + $0x58] sm:$0xff]  ;;  %v376_v10 = vld [vmem:[%s1133_s2 + $0x50] sm:$0xff]  ;;  %s356_s11 = scalar_lea.vmem %s1132_s1, %s1020_s19  ;;  %s352_s28 = scalar_lea.vmem %s1131_s0, %s852_s25 }
   0xe   : > { %405 = vmatpush.msra.mxu0 %v380_v1  ;;  %v394_v7 = vld [vmem:[%s1133_s2 + $0xe0] sm:$0xff]  ;;  %v393_v9 = vld [vmem:[%s1133_s2 + $0xd8] sm:$0xff]  ;;  %v392_v11 = vld [vmem:[%s1133_s2 + $0xd0] sm:$0xff]  ;;  %s364_s16 = scalar_lea.vmem %s1140_s9, %s1020_s19 }
   0xf   : > { %425 = vmatpush.msra.mxu1 %v396_v3  ;;  %v375_v12 = vld [vmem:[%s1133_s2 + $0x48] sm:$0xff]  ;;  %v445_v14 = vld [vmem:[%s1135_s4] sm:$0xff]  ;;  %v373_v17 = vld [vmem:[%s1133_s2 + $0x38] sm:$0xff] }
  0x10   : > { %406 = vmatpush.msra.mxu0 %v379_v4  ;;  %v391_v13 = vld [vmem:[%s1133_s2 + $0xc8] sm:$0xff]  ;;  %v374_v15 = vld [vmem:[%s1133_s2 + $0x40] sm:$0xff]  ;;  %448 = vst [vmem:[#allocation1] ss:$2 sm:$0xff] %v445_v14  ;;  %v389_v18 = vld [vmem:[%s1133_s2 + $0xb8] sm:$0xff] }
  0x11   : > { %426 = vmatpush.msra.mxu1 %v395_v5  ;;  %v390_v16 = vld [vmem:[%s1133_s2 + $0xc0] sm:$0xff]  ;;  %v372_v19 = vld [vmem:[%s1133_s2 + $0x30] sm:$0xff]  ;;  %v371_v21 = vld [vmem:[%s1133_s2 + $0x28] sm:$0xff] }
  0x12   : > { %407 = vmatpush.msra.mxu0 %v378_v6  ;;  %v388_v20 = vld [vmem:[%s1133_s2 + $0xb0] sm:$0xff]  ;;  %v387_v22 = vld [vmem:[%s1133_s2 + $0xa8] sm:$0xff]  ;;  %v370_v23 = vld [vmem:[%s1133_s2 + $0x20] sm:$0xff] }
  0x13   : > { %427 = vmatpush.msra.mxu1 %v394_v7  ;;  %v386_v24 = vld [vmem:[%s1133_s2 + $0xa0] sm:$0xff]  ;;  %v369_v25 = vld [vmem:[%s1133_s2 + $0x18] sm:$0xff]  ;;  %v368_v27 = vld [vmem:[%s1133_s2 + $0x10] sm:$0xff] }
  0x14   : > { %408 = vmatpush.msra.mxu0 %v377_v8  ;;  %v385_v26 = vld [vmem:[%s1133_s2 + $0x98] sm:$0xff]  ;;  %v384_v28 = vld [vmem:[%s1133_s2 + $0x90] sm:$0xff]  ;;  %v365_v29 = vld [vmem:[%s356_s11] sm:$0x3]  ;;  %s360_s11 = scalar_lea.vmem %s1139_s8, %s1020_s19 }
  0x15   : > { %428 = vmatpush.msra.mxu1 %v393_v9  ;;  %v367_v30 = vld [vmem:[%s1133_s2 + $0x8] sm:$0xff]  ;;  %v366_v32 = vld [vmem:[%s1133_s2] sm:$0xff]  ;;  %v400_v33 = vperm.slane %v365_v29, 0  ;;  %v401_v35 = vperm.slane %v365_v29, 1  ;;  %v860_v38 = vld [vmem:[%s1137_s6 + $0x38] sm:$0xff] }
  0x16   : > { %409 = vmatpush.msra.mxu0 %v376_v10  ;;  %v383_v31 = vld [vmem:[%s1133_s2 + $0x88] sm:$0xff]  ;;  %v382_v34 = vld [vmem:[%s1133_s2 + $0x80] sm:$0xff]  ;;  %v868_v39 = vld [vmem:[%s1137_s6 + $0x78] sm:$0xff]  ;;  %663 = vmatpush.bf16.msra.mxu2 %v860_v38 }
  0x17   : > { %429 = vmatpush.msra.mxu1 %v392_v11  ;;  %v450_v36 = vld.sshfl [vmem:[#allocation1 + $0x8] sm:$0xff pattern:$0x75316420]  ;;  %v449_v37 = vld.sshfl [vmem:[#allocation1] sm:$0xff pattern:$0x75316420]  ;;  %676 = vmatpush.bf16.msra.mxu3 %v868_v39 }
  0x18   : > { %410 = vmatpush.msra.mxu0 %v375_v12  ;;  %v398_v40 = vld [vmem:[%s1134_s3] sm:$0x1]  ;;  %v859_v46 = vld [vmem:[%s1137_s6 + $0x30] sm:$0xff]  ;;  %v858_v48 = vld [vmem:[%s1137_s6 + $0x28] sm:$0xff] }
  0x19   : > { %430 = vmatpush.msra.mxu1 %v391_v13  ;;  %v867_v47 = vld [vmem:[%s1137_s6 + $0x70] sm:$0xff]  ;;  %v866_v49 = vld [vmem:[%s1137_s6 + $0x68] sm:$0xff]  ;;  %v857_v50 = vld [vmem:[%s1137_s6 + $0x20] sm:$0xff] }
  0x1a   : > { %411 = vmatpush.msra.mxu0 %v374_v15  ;;  %664 = vmatpush.bf16.msra.mxu2 %v859_v46  ;;  %v865_v51 = vld [vmem:[%s1137_s6 + $0x60] sm:$0xff]  ;;  %v856_v52 = vld [vmem:[%s1137_s6 + $0x18] sm:$0xff]  ;;  %v855_v54 = vld [vmem:[%s1137_s6 + $0x10] sm:$0xff] }
  0x1b   : > { %431 = vmatpush.msra.mxu1 %v390_v16  ;;  %677 = vmatpush.bf16.msra.mxu3 %v867_v47  ;;  %v864_v53 = vld [vmem:[%s1137_s6 + $0x58] sm:$0xff]  ;;  %v863_v55 = vld [vmem:[%s1137_s6 + $0x50] sm:$0xff]  ;;  %v854_v56 = vld [vmem:[%s1137_s6 + $0x8] sm:$0xff] }
  0x1c   : > { %412 = vmatpush.msra.mxu0 %v373_v17  ;;  %v862_v57 = vld [vmem:[%s1137_s6 + $0x48] sm:$0xff]  ;;  %v853_v58 = vld [vmem:[%s1137_s6] sm:$0xff] }
  0x1d   : > { %432 = vmatpush.msra.mxu1 %v389_v18  ;;  %v861_v59 = vld [vmem:[%s1137_s6 + $0x40] sm:$0xff] }
  0x1e   : > { %413 = vmatpush.msra.mxu0 %v372_v19  ;;  %665 = vmatpush.bf16.msra.mxu2 %v858_v48  ;;  %v446_v60 = vld [vmem:[%s1136_s5] sm:$0x3] }
  0x1f   : > { %433 = vmatpush.msra.mxu1 %v388_v20  ;;  %678 = vmatpush.bf16.msra.mxu3 %v866_v49  ;;  %v452_v61 = vperm.slane %v446_v60, 0  ;;  %v453_v62 = vperm.slane %v446_v60, 1  ;;  %v513_v9 = vld [vmem:[%s352_s28] sm:$0xf] }
  0x20   : > { %414 = vmatpush.msra.mxu0 %v371_v21  ;;  %v514_v13 = vunpack.c.l.bf16 %v513_v9 }
  0x21   : > { %434 = vmatpush.msra.mxu1 %v387_v22  ;;  %v877_v22 = vld [vmem:[%s1138_s7] ss:$0 sm:$0xff] }
  0x22   : > { %415 = vmatpush.msra.mxu0 %v370_v23  ;;  %666 = vmatpush.bf16.msra.mxu2 %v857_v50  ;;  %v689_v23 = vld [vmem:[%s360_s11] sm:$0x3] }
  0x23   : > { %435 = vmatpush.msra.mxu1 %v386_v24  ;;  %679 = vmatpush.bf16.msra.mxu3 %v865_v51 }
  0x24   : > { %416 = vmatpush.msra.mxu0 %v369_v25 }
  0x25   : > { %436 = vmatpush.msra.mxu1 %v385_v26 }
  0x26   : > { %417 = vmatpush.msra.mxu0 %v368_v27  ;;  %667 = vmatpush.bf16.msra.mxu2 %v856_v52  ;;  %v690_v27 = vunpack.c.l.bf16 %v689_v23 }
  0x27   : > { %437 = vmatpush.msra.mxu1 %v384_v28  ;;  %680 = vmatpush.bf16.msra.mxu3 %v864_v53 }
  0x28   : > { %418 = vmatpush.msra.mxu0 %v367_v30 }
  0x29   : > { %438 = vmatpush.msra.mxu1 %v383_v31 }
  0x2a   : > { %419 = vmatpush.msra.mxu0 %v366_v32  ;;  %668 = vmatpush.bf16.msra.mxu2 %v855_v54 }
  0x2b   : > { %439 = vmatpush.msra.mxu1 %v382_v34  ;;  %420 = vmatmul.f32.vlgmr.msra.gmra.mxu0 %v400_v33 }
  0x2c   : > { %440 = vmatmul.f32.vlgmr.msra.gmra.mxu1 %v401_v35  ;;  %782 = vmatpush.msk.msrb.mxu0 %vm460_vm0, %v449_v37 }
  0x2d   : > { %784 = vmatpush.msk.msrb.mxu1 %vm460_vm0, %v450_v36  ;;  %681 = vmatpush.bf16.msra.mxu3 %v863_v55 }
  0x2e   : > { %669 = vmatpush.bf16.msra.mxu2 %v854_v56 }
  0x31   : > { %682 = vmatpush.bf16.msra.mxu3 %v862_v57 }
  0x32   : > { %670 = vmatpush.bf16.msra.mxu2 %v853_v58 }
  0x35   : > { %683 = vmatpush.bf16.msra.mxu3 %v861_v59 }
  0xa8   : > { %v421_v41 = vpop.f32.mrf.mxu0 }
  0xa9   : > { %v441_v42 = vpop.f32.mrf.mxu1  ;;  %v422_v43 = vadd.f32 %v421_v41, %v398_v40 }
  0xab   : > { %v442_v44 = vadd.f32 %v441_v42, %v422_v43 }
  0xad   : > { %v444_v45 = vmax.f32 %v442_v44, 0.0 }
  0xaf   : > { %783 = vmatmul.msk.f32.vlgmr.msrb.gmra.mxu0 %vm456_vm1, %v444_v45  ;;  %785 = vmatmul.msk.f32.vlgmr.msrb.gmra.mxu1 %vm456_vm1, %v444_v45 }
 0x12c   : > { %v482_v63 = vpop.f32.mrf.mxu0  ;;  %v502_v0 = vpop.f32.mrf.mxu1 }
 0x12d   : > { %v483_v1 = vadd.f32 %v482_v63, %v452_v61  ;;  %v503_v2 = vadd.f32 %v502_v0, %v453_v62 }
 0x12f   : > { %v505_v3 = vadd.f32 3.0, %v483_v1  ;;  %v506_v4 = vadd.f32 3.0, %v503_v2 }
 0x131   : > { %v507_v5 = vmax.f32 %v505_v3, 0.0  ;;  %v508_v6 = vmax.f32 %v506_v4, 0.0 }
 0x133   : > { %v509_v7 = vmin.f32 %v507_v5, 6.0  ;;  %v510_v8 = vmin.f32 %v508_v6, 6.0 }
 0x135   : > { %v511_v10 = vmul.f32 0.16666667, %v509_v7  ;;  %v512_v11 = vmul.f32 0.16666667, %v510_v8 }
 0x137   : > { %v516_v12 = vperm.slane %v512_v11, 0  ;;  %v515_v14 = vperm.slane %v511_v10, 0 }
 0x139   : > { %v519_v15 = vrot.slane %v516_v12, 4 }
 0x13b   : > { %v520_v16 = vsel %vm460_vm0, %v515_v14, %v519_v15 }
 0x13c   : > { %v522_v17 = vmul.f32 %v520_v16, %v514_v13 }
 0x13e   : > { %524 = vst [vmem:[#allocation1] ss:$2 sm:$0xff] %v522_v17 }
 0x145   : > { %v525_v18 = vld.sshfl [vmem:[#allocation1] sm:$0xff pattern:$0x75316420]  ;;  %v526_v19 = vld.sshfl [vmem:[#allocation1 + $0x8] sm:$0xff pattern:$0x75316420] }
 0x146   : > { %v529_v20 = vpack.c.bf16 %v525_v18, %v525_v18  ;;  %v530_v21 = vpack.c.bf16 %v526_v19, %v526_v19 }
 0x148   : > { %671 = vmatmul.bf16.vlgmr.msra.gmra.mxu2 %v529_v20  ;;  %684 = vmatmul.bf16.vlgmr.msra.gmra.mxu3 %v530_v21 }
 0x1cb   : > { %v672_v24 = vpop.f32.mrf.mxu2  ;;  %v685_v25 = vpop.f32.mrf.mxu3 }
 0x1cc   : > { %v673_v26 = vadd.f32 %v877_v22, %v672_v24 }
 0x1ce   : > { %v686_v28 = vadd.f32 %v685_v25, %v673_v26 }
 0x1d0   : > { %v691_v29 = vadd.f32 %v690_v27, %v686_v28 }
 0x1d2   : > { %v692_v30 = vpack.c.bf16 %v691_v29, %v691_v29 }
 0x1d3   : > { %v674_v31 = vpop.f32.mrf.mxu2  ;;  %v687_v32 = vpop.f32.mrf.mxu3 }
 0x1d4   : > { %694 = vst.msk [vmem:[%s364_s16] sm:$0x3] %vm693_vm2, %v692_v30 }
 0x1d5 PF: > { %s19_s30 = sadd.s32 1, %s884_s30  }
 0x1d6   : > { %p16_p4 = scmp.ge.s32.totalorder %s19_s30, 4  }
 0x1d8   :  { %18 = sbr.rel (!%p16_p4) target bundleno = 1 (0x1), region = 92 }

// kernel: block_forward.32
= control target key start
LH: loop header
LB: loop body
LE: loop exit
PB: predicated region body
PF: predicated region fallthrough
CT: control target
= control target key end

     0   :  { %vm38_vm0 = vcmask 130048   ;;  %s166_s1 = inlined_call_operand.vmem [shape: bf16[16,256], index: 1, kind: input, shape index: {}]   ;;  %s167_s0 = inlined_call_operand.vmem [shape: bf16[32,16], index: 0, kind: input, shape index: {}]   ;;  %s168_s2 = inlined_call_operand.vmem [shape: bf16[32,256], index: 2, kind: output, shape index: {}]  }
   0x1   :  { %v105_v0 = vld [vmem:[%s166_s1] sm:$0xf]  ;;  %v118_v1 = vld [vmem:[%s166_s1 + $0x4] sm:$0xf0]  ;;  %v117_v2 = vld [vmem:[%s166_s1 + $0x4] sm:$0xf] }
   0x2   :  { %v106_v3 = vor.u32 %v118_v1, %v105_v0  ;;  %v107_v4 = vld [vmem:[%s166_s1 + $0x8] sm:$0xf0]  ;;  %v115_v6 = vld [vmem:[%s167_s0] sm:$0xff] }
   0x3   :  { %v110_v5 = vor.u32 %v117_v2, %v107_v4  ;;  %v116_v7 = vld [vmem:[%s167_s0 + $0x8] sm:$0xff] }
   0x4   :  { %52 = vmatpush.bf16.msra.mxu0 %v106_v3  ;;  %119 = vmatpush.bf16.msra.mxu2 %v106_v3 }
   0x5   :  { %71 = vmatpush.bf16.msra.mxu1 %v110_v5  ;;  %120 = vmatpush.bf16.msra.mxu3 %v110_v5 }
   0x7   :  { %111 = vmatmul.msk.bf16.vlgmr.msra.gmra.mxu0 %vm38_vm0, %v115_v6  ;;  %112 = vmatmul.msk.bf16.vlgmr.msra.gmra.mxu2 %vm38_vm0, %v116_v7 }
   0x8   :  { %113 = vmatmul.msk.bf16.vlgmr.msra.gmra.mxu1 %vm38_vm0, %v115_v6  ;;  %114 = vmatmul.msk.bf16.vlgmr.msra.gmra.mxu3 %vm38_vm0, %v116_v7 }
  0x84   :  { %v54_v8 = vpop.f32.mrf.mxu0 }
  0x85   :  { %v73_v9 = vpop.f32.mrf.mxu1 }
  0x86   :  { %v83_v10 = vpack.c.bf16 %v73_v9, %v54_v8 }
  0x88   :  { %87 = vst [vmem:[%s168_s2] sm:$0xff] %v83_v10 }
  0x8a   :  { %v59_v11 = vpop.f32.mrf.mxu2 }
  0x8b   :  { %v78_v12 = vpop.f32.mrf.mxu3 }
  0x8c   :  { %v85_v13 = vpack.c.bf16 %v78_v12, %v59_v11  ;;  %v56_v14 = vpop.f32.mrf.mxu0 }
  0x8d   :  { %v75_v15 = vpop.f32.mrf.mxu1 }
  0x8e   :  { %89 = vst [vmem:[%s168_s2 + $0x10] sm:$0xff] %v85_v13  ;;  %v84_v16 = vpack.c.bf16 %v75_v15, %v56_v14 }
  0x90   :  { %88 = vst [vmem:[%s168_s2 + $0x8] sm:$0xff] %v84_v16 }
  0x92   :  { %v61_v17 = vpop.f32.mrf.mxu2 }
  0x93   :  { %v80_v18 = vpop.f32.mrf.mxu3 }
  0x94   :  { %v86_v19 = vpack.c.bf16 %v80_v18, %v61_v17 }
  0x96   :  { %90 = vst [vmem:[%s168_s2 + $0x18] sm:$0xff] %v86_v19 }

// kernel: block_forward.34
= control target key start
LH: loop header
LB: loop body
LE: loop exit
PB: predicated region body
PF: predicated region fallthrough
CT: control target
= control target key end

     0   :  { %s794_s18 = smov 0   ;;  %s796_s19 = smov 0   ;;  %s884_s0 = inlined_call_operand.vmem [shape: bf16[2,4,16,64], index: 0, kind: input, shape index: {}]   ;;  %s885_s1 = inlined_call_operand.vmem [shape: bf16[2,2,4,5,64], index: 1, kind: input, shape index: {}, may-alias: {1,2}]   ;;  %s886_s2 = inlined_call_operand.vmem [shape: bf16[2,2,4,5,64], index: 2, kind: input, shape index: {}, may-alias: {1,2}]   ;;  %s887_s3 = inlined_call_operand.vmem [shape: bf16[4,64,16], index: 3, kind: input, shape index: {}]   ;;  %s888_s4 = inlined_call_operand.vmem [shape: f32[1,16], index: 4, kind: input, shape index: {}]   ;;  %s889_s5 = inlined_call_operand.vmem [shape: bf16[2,16,16], index: 5, kind: output, shape index: {}]  }
   0x1   :  { %s798_s20 = smov 0   ;;  %s800_s21 = smov 0  }
   0x2   :  { %s802_s22 = smov 0  }
   0x3 LB: > { %s24_s23 = sadd.s32 1, %s753_s20  ;;  %s27_s24 = sadd.s32 1, %s757_s21  ;;  %s761_s22 = sphi %s802_s22, %s15_s22   ;;  %s757_s21 = sphi %s800_s21, %s895_s21   ;;  %s753_s20 = sphi %s798_s20, %s894_s20   ;;  %s749_s19 = sphi %s796_s19, %s893_s19   ;;  %s745_s18 = sphi %s794_s18, %s892_s18  }
   0x4   : > { %p25_p0 = scmp.ge.s32.totalorder %s24_s23, 4  ;;  %p626_p1 = scmp.ge.s32.totalorder %s761_s22, 1 }
   0x5   : > { %p246_p2 = scmp.lt.s32.totalorder %s761_s22, 9 }
   0x6   : > { %s897_s23 = smov (%p25_p0, %s24_s23), 0  ;;  %s899_s24 = smov (!%p25_p0, %s27_s24), %s757_s21 }
   0x7   : > { %p247_p3 = pnand %p626_p1, %p246_p2  ;;  %p29_p4 = scmp.ge.s32.totalorder %s899_s24, 2 }
   0x8   : > { %p300_p5 = scmp.lt.s32.totalorder (!%p247_p3), %s749_s19, 1  ;;  %p302_p6 = scmp.lt.s32.totalorder (!%p247_p3), %s745_s18, 3 }
   0x9   : > { %s901_s24 = smov (%p29_p4, %s899_s24), 0  ;;  %250 = sbr.rel (%p247_p3) target bundleno = 720 (0x2d0), region = 40 }
   0xa   : > { %890 = sst [smem:[#allocation3_spill]] %s901_s24  ;;  %p638_p7 = scmp.ne.s32.totalorder (!%p247_p3), %s745_s18, 0 }
   0xe   : > { %s903_s19 = smov (!%p300_p5, %s749_s19), 1 }
   0xf   : > { %s303_s25 = scalar_select %p302_p6, %s745_s18, 3 }
  0x10   : > { %s628_s26 = sshll.u32 %s903_s19, 3  ;;  %s630_s27 = sshll.u32 %s903_s19, 2 }
  0x11   : > { %s627_s28 = sshll.u32 %s303_s25, 1  ;;  %s314_s29 = sadd.s32 %s630_s27, %s303_s25 }
  0x12   : > { %s306_s30 = sadd.s32 %s628_s26, %s627_s28  ;;  %s631_s6 = sshll.u32 %s314_s29, 2 }
  0x13   : > { %s629_s7 = sshll.u32 %s306_s30, 2  ;;  %s316_s10 = scalar_lea.vmem %s885_s1, %s631_s6 }
  0x14   : > { %s308_s13 = scalar_lea.vmem %s884_s0, %s629_s7  ;;  %s837_s16 = scalar_lea.vmem %s886_s2, %s631_s6 }
  0x15   : > { %s666_s17 = sshll.u32 %s303_s25, 5  ;;  %s842_s27 = scalar_lea.vmem %s889_s5, %s628_s26 }
  0x16   : > { %s847_s30 = scalar_lea.vmem %s887_s3, %s666_s17  ;;  %340 = sbr.rel (%p638_p7) target bundleno = 30 (0x1e), region = 44 }
  0x1b   : > { %v714_v0 = vld [vmem:[%s888_s4] ss:$0 sm:$0xff]  ;;  %vm345_vm0 = vcmask 130048  }
  0x1c   : > { %346 = vst.msk [vmem:[#allocation2] sm:$0xff] %vm345_vm0, %v714_v0 }
  0x1d   : > { %347 = vst.msk [vmem:[#allocation2 + $0x8] sm:$0xff] %vm345_vm0, %v714_v0 }
  0x1e PF: > { %v350_v1 = vld [vmem:[%s316_s10] sm:$0x7]  ;;  %vm356_vm1 = vcmask 523264   ;;  %vm379_vm2 = vcmask 39936   ;;  %vm407_vm3 = vcmask 1041408   ;;  %vm408_vm4 = vcmask 1042432  }
  0x1f   : > { %v361_v2 = vsel %vm356_vm1, %v350_v1, 0  ;;  %v668_v3 = vld [vmem:[%s308_s13] sm:$0xff]  ;;  %v763_v21 = vmov 65535   ;;  %v672_v25 = vld [vmem:[%s847_s30 + $0x18] sm:$0xff]  ;;  %v671_v33 = vld [vmem:[%s847_s30 + $0x10] sm:$0xff]  ;;  %vm482_vm5 = vcmask 130048  }
  0x20   : > { %370 = vmatpush.bf16.xpose.msra.mxu0 %v361_v2  ;;  %v644_v20 = vld [vmem:[%s837_s16 + $0x20] sm:$0x7]  ;;  %v409_v22 = vsel %vm407_vm3, 4294967295, %v763_v21  ;;  %470 = vmatpush.bf16.msra.mxu2 %v672_v25  ;;  %v670_v34 = vld [vmem:[%s847_s30 + $0x8] sm:$0xff]  ;;  %p663_p8 = scmp.ne.s32.totalorder %s745_s18, 3 }
  0x21   : > { %v410_v23 = vsel %vm408_vm4, %v409_v22, 0  ;;  %v669_v35 = vld [vmem:[%s847_s30] sm:$0xff] }
  0x22   : > { %v412_v24 = vand.u32 %v644_v20, %v410_v23 }
  0x23   : > { %v428_v39 = vld [vmem:[#allocation2] sm:$0xff] }
  0x24   : > { %421 = vmatpush.bf16.msra.mxu1 %v412_v24  ;;  %471 = vmatpush.bf16.msra.mxu2 %v671_v33  ;;  %v429_v42 = vld [vmem:[#allocation2 + $0x8] sm:$0xff] }
  0x27   : > { %643 = vmatmul.msk.bf16.vlgmr.msra.gmra.mxu0 %vm356_vm1, %v668_v3 }
  0x28   : > { %472 = vmatpush.bf16.msra.mxu2 %v670_v34 }
  0x2c   : > { %473 = vmatpush.bf16.msra.mxu2 %v669_v35 }
  0xa4   : > { %v372_v4 = vpop.f32.mrf.mxu0 }
  0xa5   : > { %v377_v5 = vmul.f32 0.125, %v372_v4 }
  0xa7   : > { %v380_v6 = vsel %vm379_vm2, %v377_v5, -inf }
  0xa8   : > { %381 = vmax.xlane.f32.xlu0 %v380_v6 }
  0xac   : > { %v374_v7 = vpop.f32.mrf.mxu0 }
  0xad   : > { %v378_v8 = vmul.f32 0.125, %v374_v7 }
  0xaf   : > { %v383_v9 = vsel %vm379_vm2, %v378_v8, -inf }
  0xb0   : > { %384 = vmax.xlane.f32.xlu0 %v383_v9 }
 0x11b   : > { %v382_v10 = vpop.xlane.xlu0 %381 }
 0x11c   : > { %v386_v11 = vsub.f32 %v377_v5, %v382_v10 }
 0x11e   : > { %v388_v12 = vmul.f32 1.442695, %v386_v11 }
 0x120   : > { %715 = vpow2.f32 %v388_v12 }
 0x123   : > { %v385_v13 = vpop.xlane.xlu0 %384 }
 0x124   : > { %v387_v14 = vsub.f32 %v378_v8, %v385_v13 }
 0x126   : > { %v716_v15 = vpop.eup %715  ;;  %v390_v16 = vmul.f32 1.442695, %v387_v14 }
 0x127   : > { %v392_v17 = vsel %vm379_vm2, %v716_v15, 0.0 }
 0x128   : > { %717 = vpow2.f32 %v390_v16  ;;  %393 = vadd.xlane.f32.xlu1 %v392_v17 }
 0x12e   : > { %v718_v18 = vpop.eup %717 }
 0x12f   : > { %v395_v19 = vsel %vm379_vm2, %v718_v18, 0.0 }
 0x130   : > { %396 = vadd.xlane.f32.xlu1 %v395_v19 }
 0x19b   : > { %v394_v26 = vpop.xlane.xlu1 %393 }
 0x19c   : > { %719 = vrcp.f32 %v394_v26 }
 0x1a2   : > { %v720_v28 = vpop.eup %719 }
 0x1a3   : > { %v397_v27 = vpop.xlane.xlu1 %396  ;;  %v400_v30 = vmul.f32 %v720_v28, %v716_v15 }
 0x1a4   : > { %721 = vrcp.f32 %v397_v27 }
 0x1aa   : > { %v722_v29 = vpop.eup %721 }
 0x1ab   : > { %v401_v31 = vmul.f32 %v722_v29, %v718_v18 }
 0x1ad   : > { %v402_v32 = vpack.c.bf16 %v401_v31, %v400_v30 }
 0x1af   : > { %645 = vmatmul.msk.bf16.vlgmr.msra.gmra.mxu1 %vm379_vm2, %v402_v32 }
 0x22c   : > { %v423_v36 = vpop.f32.mrf.mxu1 }
 0x234   : > { %v425_v37 = vpop.f32.mrf.mxu1 }
 0x235   : > { %v430_v38 = vpack.c.bf16 %v425_v37, %v423_v36 }
 0x237   : > { %662 = vmatmul.msk.bf16.vlgmr.msra.gmra.mxu2 %vm356_vm1, %v430_v38 }
 0x2ba   : > { %v475_v40 = vpop.f32.mrf.mxu2 }
 0x2bb   : > { %v480_v41 = vadd.f32 %v475_v40, %v428_v39 }
 0x2bd   : > { %483 = vst.msk [vmem:[#allocation2] sm:$0xff] %vm482_vm5, %v480_v41 }
 0x2c1   : > { %488 = sbr.rel (%p663_p8) target bundleno = 720 (0x2d0), region = 48 }
 0x2c2   : > { %v477_v43 = vpop.f32.mrf.mxu2 }
 0x2c3   : > { %v481_v44 = vadd.f32 %v477_v43, %v429_v42 }
 0x2c5   : > { %484 = vst.msk [vmem:[#allocation2 + $0x8] sm:$0xff] %vm482_vm5, %v481_v44 }
 0x2c6   : > { %v489_v45 = vld [vmem:[#allocation2] sm:$0xff]  ;;  %vm493_vm6 = vcmask 125952  }
 0x2c7   : > { %v491_v47 = vpack.c.bf16 %v489_v45, %v489_v45 }
 0x2c9   : > { %494 = vst.msk [vmem:[%s842_s27] sm:$0xf] %vm493_vm6, %v491_v47 }
 0x2cc   : > { %v490_v46 = vld [vmem:[#allocation2 + $0x8] sm:$0xff] }
 0x2cd   : > { %v492_v48 = vpack.c.bf16 %v490_v46, %v490_v46 }
 0x2cf   : > { %495 = vst.msk [vmem:[%s842_s27 + $0x4] sm:$0xf] %vm493_vm6, %v492_v48 }
 0x2d0 PF: > { %s15_s22 = sadd.s32 1, %s761_s22   ;;  %s891_s24 = sld [smem:[#allocation3_spill]] }
 0x2d1   : > { %p12_p9 = scmp.ge.s32.totalorder %s15_s22, 10   ;;  %s892_s18 = smov %s753_s20 }
 0x2d2   : > { %s893_s19 = smov %s757_s21  ;;  %s894_s20 = smov %s897_s23 }
 0x2d3   :  { %14 = sbr.rel (!%p12_p9) target bundleno = 3 (0x3), region = 87 }
 0x2d6   : > { %s895_s21 = smov %s891_s24 }

</bundles_post_ra>
